<compile_context>
chip_gen: v5e
topology: v5e:2x2
jax: 0.10.0
libtpu: 0.0.40
codegen_flags: <defaults>
</compile_context>

<pallas_src>
import functools
import math

import jax
import jax.numpy as jnp
from jax import lax
from jax.experimental import pallas as pl
from jax.experimental.pallas import tpu as pltpu

# ---- scaled-down config (codet5-base: d_model=768, 12 layers, 12 heads) -----
VOCAB = 128
D_MODEL = 128          # lane-dense residual width
N_HEADS = 4
D_HEAD = 32            # N_HEADS * D_HEAD == D_MODEL (as in codet5-base)
D_FF = 256
N_LAYERS = 2
NUM_BUCKETS = 32
MAX_DISTANCE = 128
LN_EPS = 1e-6
N_CLASSES = 2
CLS_PAD = 128          # classifier output padded to a full lane width


# ----------------------------- fused encoder kernel --------------------------
def _encoder_kernel(x_ref, bias_ref, mask_ref, ln0_ref, wqkv_ref, wo_ref,
                    ln1_ref, wi_ref, woff_ref, lnf_ref, outw_ref, outb_ref,
                    emb_ref, logit_ref, h_ref, qkv_ref,
                    *, n_layers, n_heads, d_head, eps):
    """Whole T5 encoder + last-token RMSNorm + classifier for one batch row.

    x_ref:    (S, D)        bf16 token embeddings for this batch row
    bias_ref: (H, S, S)     bf16 relative-position bias (shared across batch)
    mask_ref: (1, S)        bf16 additive key-padding mask for this batch row
    ln0_ref:  (L, 1, D)     f32  attention RMSNorm weights
    wqkv_ref: (L, D, 3D)    bf16 fused [wq | wk | wv]
    wo_ref:   (L*H, Dh, D)  bf16 per-head output projection
    ln1_ref:  (L, 1, D)     f32  FFN RMSNorm weights
    wi_ref:   (L, D, D_FF)  bf16
    woff_ref: (L, D_FF, D)  bf16
    lnf_ref:  (1, D)        f32  final RMSNorm weight
    outw_ref: (D, CLS_PAD)  f32  classifier weight (zero-padded lanes)
    outb_ref: (1, CLS_PAD)  f32  classifier bias (zero-padded lanes)
    emb_ref:  (1, 1, D)     f32  last-token embedding output
    logit_ref:(1, 1, CLS_PAD) f32 padded classifier logits output
    h_ref:    (S, D)        bf16 VMEM scratch: residual stream
    qkv_ref:  (S, 3D)       bf16 VMEM scratch: staged QKV projection
    """
    seq, d_model = h_ref.shape

    h_ref[...] = x_ref[...]                               # residual stream in VMEM
    add_mask = mask_ref[...].astype(jnp.float32)          # (1, S)

    def rms_norm(v, w):                                   # f32 math (v5e-safe)
        var = jnp.mean(v * v, axis=-1, keepdims=True)
        return v * lax.rsqrt(var + eps) * w

    for l in range(n_layers):
        # ---------------- T5LayerSelfAttention (pre-norm, residual) ----------
        n = rms_norm(h_ref[...].astype(jnp.float32), ln0_ref[l]).astype(jnp.bfloat16)
        # fused QKV projection, staged in VMEM so heads are sliced from the ref
        qkv_ref[...] = jnp.dot(n, wqkv_ref[l],
                               preferred_element_type=jnp.float32).astype(jnp.bfloat16)

        acc = jnp.zeros((seq, d_model), jnp.float32)
        for hh in range(n_heads):
            q_h = qkv_ref[:, pl.ds(hh * d_head, d_head)]
            k_h = qkv_ref[:, pl.ds(d_model + hh * d_head, d_head)]
            v_h = qkv_ref[:, pl.ds(2 * d_model + hh * d_head, d_head)]
            # QK^T via transposed contraction -> no explicit k.T / XLU transpose
            # (T5 has NO 1/sqrt(d_head) scaling)
            s = lax.dot_general(q_h, k_h, (((1,), (1,)), ((), ())),
                                preferred_element_type=jnp.float32)   # (S, S)
            s = s + bias_ref[hh].astype(jnp.float32) + add_mask
            m = jnp.max(s, axis=-1, keepdims=True)
            p = jnp.exp(s - m)
            denom = jnp.sum(p, axis=-1, keepdims=True)
            p = p * pl.reciprocal(denom, approx=True)                 # EUP slot
            ctx_h = jnp.dot(p.astype(jnp.bfloat16), v_h,
                            preferred_element_type=jnp.float32).astype(jnp.bfloat16)
            # per-head output projection accumulated on the MXU (no head concat)
            acc = acc + jnp.dot(ctx_h, wo_ref[l * n_heads + hh],
                                preferred_element_type=jnp.float32)
        # re-read residual from VMEM (cheap vld) instead of holding f32 x live
        h_ref[...] = (h_ref[...].astype(jnp.float32) + acc).astype(h_ref.dtype)

        # ---------------- T5LayerFF (DenseReluDense, residual) ---------------
        n = rms_norm(h_ref[...].astype(jnp.float32), ln1_ref[l]).astype(jnp.bfloat16)
        ff = jnp.dot(n, wi_ref[l], preferred_element_type=jnp.float32)
        ff = jnp.maximum(ff, 0.0).astype(jnp.bfloat16)
        out = jnp.dot(ff, woff_ref[l], preferred_element_type=jnp.float32)
        h_ref[...] = (h_ref[...].astype(jnp.float32) + out).astype(h_ref.dtype)

    # -------- final RMSNorm + last-token selection + classifier -------------
    # Only the last row is consumed downstream (emb = hidden[:, -1]); RMSNorm
    # is per-row, so normalize just that row and never write (S, D) to HBM.
    last = h_ref[pl.ds(seq - 1, 1), :].astype(jnp.float32)            # (1, D)
    emb = rms_norm(last, lnf_ref[...])                                # (1, D) f32
    emb_ref[...] = emb.reshape(1, 1, d_model)
    logits = jnp.dot(emb, outw_ref[...],
                     preferred_element_type=jnp.float32) + outb_ref[...]
    logit_ref[...] = logits.reshape(1, 1, -1)


# ------------------------------ wrapper ---------------------------------------
def codet5_encoder_fused(x_flat, pos_bias, add_mask, ln0, wqkv, wo, ln1, wi,
                         woff, final_ln, out_w_pad, out_b_pad, *, batch, seq):
    d = x_flat.shape[-1]
    n_layers = wqkv.shape[0]
    n_heads = pos_bias.shape[0]
    cls_pad = out_w_pad.shape[1]

    emb, logits = pl.pallas_call(
        functools.partial(_encoder_kernel, n_layers=n_layers, n_heads=n_heads,
                          d_head=d // n_heads, eps=LN_EPS),
        out_shape=(jax.ShapeDtypeStruct((batch, 1, d), jnp.float32),
                   jax.ShapeDtypeStruct((batch, 1, cls_pad), jnp.float32)),
        grid=(batch,),
        in_specs=[
            pl.BlockSpec((seq, d), lambda b: (b, 0)),                 # embeddings
            pl.BlockSpec(pos_bias.shape, lambda b: (0, 0, 0)),        # shared bias
            pl.BlockSpec((pl.Squeezed(), 1, seq), lambda b: (b, 0, 0)),  # pad mask
            pl.BlockSpec(ln0.shape, lambda b: (0, 0, 0)),             # ln0 stack
            pl.BlockSpec(wqkv.shape, lambda b: (0, 0, 0)),            # qkv stack
            pl.BlockSpec(wo.shape, lambda b: (0, 0, 0)),              # wo per head
            pl.BlockSpec(ln1.shape, lambda b: (0, 0, 0)),             # ln1 stack
            pl.BlockSpec(wi.shape, lambda b: (0, 0, 0)),              # wi stack
            pl.BlockSpec(woff.shape, lambda b: (0, 0, 0)),            # wo_ff stack
            pl.BlockSpec(final_ln.shape, lambda b: (0, 0)),           # final ln
            pl.BlockSpec(out_w_pad.shape, lambda b: (0, 0)),          # classifier W
            pl.BlockSpec(out_b_pad.shape, lambda b: (0, 0)),          # classifier b
        ],
        out_specs=(pl.BlockSpec((1, 1, d), lambda b: (b, 0, 0)),
                   pl.BlockSpec((1, 1, cls_pad), lambda b: (b, 0, 0))),
        scratch_shapes=[
            pltpu.VMEM((seq, d), jnp.bfloat16),        # residual stream
            pltpu.VMEM((seq, 3 * d), jnp.bfloat16),    # staged QKV
        ],
        compiler_params=pltpu.CompilerParams(
            dimension_semantics=("parallel",)),        # >=2 steps -> both v7x TCs
    )(x_flat, pos_bias, add_mask, ln0, wqkv, wo, ln1, wi, woff,
      final_ln, out_w_pad, out_b_pad)
    return emb, logits


# ------------------------------ JAX glue --------------------------------------
def _relative_position_bucket(relative_position,
                              num_buckets=NUM_BUCKETS, max_distance=MAX_DISTANCE):
    # bidirectional=True (encoder); mirrors HF T5Attention._relative_position_bucket
    num_buckets //= 2
    buckets = (relative_position > 0).astype(jnp.int32) * num_buckets
    relative_position = jnp.abs(relative_position)
    max_exact = num_buckets // 2
    is_small = relative_position < max_exact
    rp_safe = jnp.maximum(relative_position, 1).astype(jnp.float32)
    if_large = max_exact + (
        jnp.log(rp_safe / max_exact) / math.log(max_distance / max_exact)
        * (num_buckets - max_exact)
    ).astype(jnp.int32)
    if_large = jnp.minimum(if_large, num_buckets - 1)
    return buckets + jnp.where(is_small, relative_position, if_large)


def compute_position_bias(rel_attn_bias, seq_len):
    ctx = jnp.arange(seq_len)[:, None]
    mem = jnp.arange(seq_len)[None, :]
    buckets = _relative_position_bucket(mem - ctx)               # (S, S)
    values = rel_attn_bias[buckets]                              # (S, S, H) gather (glue)
    return jnp.transpose(values, (2, 0, 1))                      # (H, S, S)


def init_params(key):
    def nrm(k, shape, scale=0.02, dtype=jnp.float32):
        return (scale * jax.random.normal(k, shape, jnp.float32)).astype(dtype)

    ks = iter(jax.random.split(key, 4 + 4 * N_LAYERS))
    params = {
        "shared": nrm(next(ks), (VOCAB, D_MODEL)),                    # token embedding
        "rel_attn_bias": nrm(next(ks), (NUM_BUCKETS, N_HEADS)),       # layer-0 rel bias
        "final_ln": jnp.ones((1, D_MODEL), jnp.float32),
        "out_w": nrm(next(ks), (D_MODEL, N_CLASSES)),                 # nn.Linear(768, 2)
        "out_b": nrm(next(ks), (N_CLASSES,)),
        "layers": [],
    }
    for _ in range(N_LAYERS):
        params["layers"].append({
            "ln0": jnp.ones((1, D_MODEL), jnp.float32),
            # wq|wk|wv fused into a single (D, 3D) bf16 weight -> one MXU matmul
            "wqkv": nrm(next(ks), (D_MODEL, 3 * D_MODEL), dtype=jnp.bfloat16),
            "wo": nrm(next(ks), (D_MODEL, D_MODEL), dtype=jnp.bfloat16),
            "ln1": jnp.ones((1, D_MODEL), jnp.float32),
            "wi": nrm(next(ks), (D_MODEL, D_FF), dtype=jnp.bfloat16),
            "wo_ff": nrm(next(ks), (D_FF, D_MODEL), dtype=jnp.bfloat16),
        })
    return params


def codet5_enc_forward(params, ids, mask):
    """Mirrors CodeT5Enc.forward: (logits, last_token_embedding)."""
    B, S = ids.shape
    # TODO(synk): embedding lookup is a row gather done in plain JAX (glue).
    x = params["shared"][ids]                                    # (B, S, D) f32
    x_flat = x.reshape(B * S, D_MODEL).astype(jnp.bfloat16)      # bf16 residual stream

    # relative-position bias computed ONCE, shared across layers & batch (bf16 DMA)
    pos_bias = compute_position_bias(params["rel_attn_bias"], S).astype(jnp.bfloat16)
    add_mask = ((1.0 - mask.astype(jnp.float32)) * -1e9
                ).reshape(B, 1, S).astype(jnp.bfloat16)

    # stack per-layer weights so the whole encoder runs as one pallas_call
    layers = params["layers"]
    ln0 = jnp.stack([l["ln0"] for l in layers])                          # (L, 1, D)
    wqkv = jnp.stack([l["wqkv"] for l in layers])                        # (L, D, 3D)
    wo = jnp.stack([l["wo"].reshape(N_HEADS, D_HEAD, D_MODEL)
                    for l in layers]).reshape(N_LAYERS * N_HEADS, D_HEAD, D_MODEL)
    ln1 = jnp.stack([l["ln1"] for l in layers])                          # (L, 1, D)
    wi = jnp.stack([l["wi"] for l in layers])                            # (L, D, D_FF)
    woff = jnp.stack([l["wo_ff"] for l in layers])                       # (L, D_FF, D)

    # classifier weights zero-padded to a full 128-lane width (lane-dense store)
    out_w_pad = jnp.zeros((D_MODEL, CLS_PAD), jnp.float32
                          ).at[:, :N_CLASSES].set(params["out_w"])
    out_b_pad = jnp.zeros((1, CLS_PAD), jnp.float32
                          ).at[0, :N_CLASSES].set(params["out_b"])

    emb3, logits_pad = codet5_encoder_fused(
        x_flat, pos_bias, add_mask, ln0, wqkv, wo, ln1, wi, woff,
        params["final_ln"], out_w_pad, out_b_pad, batch=B, seq=S)

    emb = emb3.reshape(B, D_MODEL)                               # emb = hidden[:, -1]
    out = logits_pad.reshape(B, CLS_PAD)[:, :N_CLASSES]          # (B, 2)
    return out, emb


if __name__ == "__main__":
    key = jax.random.PRNGKey(0)
    k_ids, k_params = jax.random.split(key)
    B, S = 2, 128
    ids = jax.random.randint(k_ids, (B, S), 0, VOCAB, dtype=jnp.int32)
    mask = jnp.ones((B, S), jnp.int32).at[1, 96:].set(0)         # padding in row 1
    params = init_params(k_params)

    out, emb = jax.jit(codet5_enc_forward)(params, ids, mask)
    jax.block_until_ready((out, emb))
    assert out.shape == (B, N_CLASSES)
    assert emb.shape == (B, D_MODEL)
    assert bool(jnp.all(jnp.isfinite(out))) and bool(jnp.all(jnp.isfinite(emb)))
    print("KERNEL_OK")
</pallas_src>

<mosaic_0001>
module attributes {stable_mosaic.version = 11 : i64} {
  func.func @_encoder_kernel(%arg0: i32, %arg1: memref<128x128xbf16, #tpu.memory_space<vmem>>, %arg2: memref<4x128x128xbf16, #tpu.memory_space<vmem>>, %arg3: memref<1x1x128xbf16, #tpu.memory_space<vmem>>, %arg4: memref<2x1x128xf32, #tpu.memory_space<vmem>>, %arg5: memref<2x128x384xbf16, #tpu.memory_space<vmem>>, %arg6: memref<8x32x128xbf16, #tpu.memory_space<vmem>>, %arg7: memref<2x1x128xf32, #tpu.memory_space<vmem>>, %arg8: memref<2x128x256xbf16, #tpu.memory_space<vmem>>, %arg9: memref<2x256x128xbf16, #tpu.memory_space<vmem>>, %arg10: memref<1x128xf32, #tpu.memory_space<vmem>>, %arg11: memref<128x128xf32, #tpu.memory_space<vmem>>, %arg12: memref<1x128xf32, #tpu.memory_space<vmem>>, %arg13: memref<1x1x128xf32, #tpu.memory_space<vmem>>, %arg14: memref<1x1x128xf32, #tpu.memory_space<vmem>>, %arg15: memref<128x128xbf16, #tpu.memory_space<vmem>>, %arg16: memref<128x384xbf16, #tpu.memory_space<vmem>>) attributes {dimension_semantics = [#tpu.dimension_semantics<parallel>], iteration_bounds = array<i64: 2>, scalar_prefetch = 0 : i64, scratch_operands = 2 : i64, tpu.core_type = #tpu.core_type<tc>, window_params = [{transform_indices = @transform_0, window_bounds = array<i64: 128, 128>}, {pipeline_mode = #tpu.pipeline_mode<synchronous>, transform_indices = @transform_1, window_bounds = array<i64: 4, 128, 128>}, {transform_indices = @transform_2, window_bounds = array<i64: 1, 1, 128>}, {pipeline_mode = #tpu.pipeline_mode<synchronous>, transform_indices = @transform_3, window_bounds = array<i64: 2, 1, 128>}, {pipeline_mode = #tpu.pipeline_mode<synchronous>, transform_indices = @transform_4, window_bounds = array<i64: 2, 128, 384>}, {pipeline_mode = #tpu.pipeline_mode<synchronous>, transform_indices = @transform_5, window_bounds = array<i64: 8, 32, 128>}, {pipeline_mode = #tpu.pipeline_mode<synchronous>, transform_indices = @transform_6, window_bounds = array<i64: 2, 1, 128>}, {pipeline_mode = #tpu.pipeline_mode<synchronous>, transform_indices = @transform_7, window_bounds = array<i64: 2, 128, 256>}, {pipeline_mode = #tpu.pipeline_mode<synchronous>, transform_indices = @transform_8, window_bounds = array<i64: 2, 256, 128>}, {pipeline_mode = #tpu.pipeline_mode<synchronous>, transform_indices = @transform_9, window_bounds = array<i64: 1, 128>}, {pipeline_mode = #tpu.pipeline_mode<synchronous>, transform_indices = @transform_10, window_bounds = array<i64: 128, 128>}, {pipeline_mode = #tpu.pipeline_mode<synchronous>, transform_indices = @transform_11, window_bounds = array<i64: 1, 128>}, {transform_indices = @transform_12, window_bounds = array<i64: 1, 1, 128>}, {transform_indices = @transform_13, window_bounds = array<i64: 1, 1, 128>}]} {
    %c0 = arith.constant 0 : index
    %c0_0 = arith.constant 0 : index
    %0 = vector.load %arg1[%c0, %c0_0] : memref<128x128xbf16, #tpu.memory_space<vmem>>, vector<128x128xbf16>
    %c0_1 = arith.constant 0 : index
    %c0_2 = arith.constant 0 : index
    %1 = vector.load %arg15[%c0_1, %c0_2] : memref<128x128xbf16, #tpu.memory_space<vmem>>, vector<128x128xbf16>
    tpu.vector_store %arg15[%c0_1, %c0_2], %0 {strides = array<i32>} : memref<128x128xbf16, #tpu.memory_space<vmem>>, vector<128x128xbf16>,
    %c0_3 = arith.constant 0 : index
    %c0_4 = arith.constant 0 : index
    %c0_5 = arith.constant 0 : index
    %2 = vector.load %arg3[%c0_3, %c0_4, %c0_5] : memref<1x1x128xbf16, #tpu.memory_space<vmem>>, vector<1x1x128xbf16>
    %3 = vector.shape_cast %2 : vector<1x1x128xbf16> to vector<1x128xbf16>
    %4 = arith.extf %3 : vector<1x128xbf16> to vector<1x128xf32>
    %c0_6 = arith.constant 0 : index
    %c0_7 = arith.constant 0 : index
    %5 = vector.load %arg15[%c0_6, %c0_7] : memref<128x128xbf16, #tpu.memory_space<vmem>>, vector<128x128xbf16>
    %6 = arith.extf %5 : vector<128x128xbf16> to vector<128x128xf32>
    %c0_8 = arith.constant 0 : index
    %c0_9 = arith.constant 0 : index
    %c0_10 = arith.constant 0 : index
    %7 = vector.load %arg4[%c0_8, %c0_9, %c0_10] : memref<2x1x128xf32, #tpu.memory_space<vmem>>, vector<1x1x128xf32>
    %8 = vector.shape_cast %7 : vector<1x1x128xf32> to vector<1x128xf32>
    %9 = arith.mulf %6, %6 : vector<128x128xf32>
    %cst = arith.constant dense<0.000000e+00> : vector<128xf32>
    %10 = vector.multi_reduction <add>, %9, %cst [1] : vector<128x128xf32> to vector<128xf32>
    %11 = vector.shape_cast %10 : vector<128xf32> to vector<128x1xf32>
    %cst_11 = arith.constant 1.280000e+02 : f32
    %12 = vector.broadcast %cst_11 : f32 to vector<128x1xf32>
    %13 = arith.divf %11, %12 : vector<128x1xf32>
    %cst_12 = arith.constant 9.99999997E-7 : f32
    %14 = vector.broadcast %cst_12 : f32 to vector<128x1xf32>
    %15 = arith.addf %13, %14 : vector<128x1xf32>
    %16 = math.rsqrt %15 : vector<128x1xf32>
    %17 = vector.broadcast %16 : vector<128x1xf32> to vector<128x128xf32>
    %18 = arith.mulf %6, %17 : vector<128x128xf32>
    %19 = vector.broadcast %8 : vector<1x128xf32> to vector<128x128xf32>
    %20 = arith.mulf %18, %19 : vector<128x128xf32>
    %21 = arith.truncf %20 : vector<128x128xf32> to vector<128x128xbf16>
    %c0_13 = arith.constant 0 : index
    %c0_14 = arith.constant 0 : index
    %c0_15 = arith.constant 0 : index
    %22 = vector.load %arg5[%c0_13, %c0_14, %c0_15] : memref<2x128x384xbf16, #tpu.memory_space<vmem>>, vector<1x128x384xbf16>
    %23 = vector.shape_cast %22 : vector<1x128x384xbf16> to vector<128x384xbf16>
    %cst_16 = arith.constant dense<0.000000e+00> : vector<128x384xf32>
    %24 = tpu.matmul %21, %23, %cst_16 {dimension_numbers = #tpu.dot_dimension_numbers<[1], [0], [0], [1], [0, 0, 1, 1], [], []>} : vector<128x128xbf16>, vector<128x384xbf16>, vector<128x384xf32> -> vector<128x384xf32>
    %25 = arith.truncf %24 : vector<128x384xf32> to vector<128x384xbf16>
    %c0_17 = arith.constant 0 : index
    %c0_18 = arith.constant 0 : index
    %26 = vector.load %arg16[%c0_17, %c0_18] : memref<128x384xbf16, #tpu.memory_space<vmem>>, vector<128x384xbf16>
    tpu.vector_store %arg16[%c0_17, %c0_18], %25 {strides = array<i32>} : memref<128x384xbf16, #tpu.memory_space<vmem>>, vector<128x384xbf16>,
    %cst_19 = arith.constant 0.000000e+00 : f32
    %27 = vector.broadcast %cst_19 : f32 to vector<128x128xf32>
    %c0_20 = arith.constant 0 : index
    %c0_21 = arith.constant 0 : index
    %28 = vector.load %arg16[%c0_20, %c0_21] : memref<128x384xbf16, #tpu.memory_space<vmem>>, vector<128x32xbf16>
    %c0_22 = arith.constant 0 : index
    %c128 = arith.constant 128 : index
    %29 = vector.load %arg16[%c0_22, %c128] : memref<128x384xbf16, #tpu.memory_space<vmem>>, vector<128x32xbf16>
    %c0_23 = arith.constant 0 : index
    %c256 = arith.constant 256 : index
    %30 = vector.load %arg16[%c0_23, %c256] : memref<128x384xbf16, #tpu.memory_space<vmem>>, vector<128x32xbf16>
    %cst_24 = arith.constant dense<0.000000e+00> : vector<128x128xf32>
    %31 = tpu.matmul %28, %29, %cst_24 {dimension_numbers = #tpu.dot_dimension_numbers<[1], [1], [0], [0], [0, 0, 1, 0], [], []>} : vector<128x32xbf16>, vector<128x32xbf16>, vector<128x128xf32> -> vector<128x128xf32>
    %c0_25 = arith.constant 0 : index
    %c0_26 = arith.constant 0 : index
    %c0_27 = arith.constant 0 : index
    %32 = vector.load %arg2[%c0_25, %c0_26, %c0_27] : memref<4x128x128xbf16, #tpu.memory_space<vmem>>, vector<1x128x128xbf16>
    %33 = vector.shape_cast %32 : vector<1x128x128xbf16> to vector<128x128xbf16>
    %34 = arith.extf %33 : vector<128x128xbf16> to vector<128x128xf32>
    %35 = arith.addf %31, %34 : vector<128x128xf32>
    %36 = vector.broadcast %4 : vector<1x128xf32> to vector<128x128xf32>
    %37 = arith.addf %35, %36 : vector<128x128xf32>
    %cst_28 = arith.constant dense<0xFF800000> : vector<128xf32>
    %38 = vector.multi_reduction <maximumf>, %37, %cst_28 [1] : vector<128x128xf32> to vector<128xf32>
    %39 = vector.shape_cast %38 : vector<128xf32> to vector<128x1xf32>
    %40 = vector.broadcast %39 : vector<128x1xf32> to vector<128x128xf32>
    %41 = arith.subf %37, %40 : vector<128x128xf32>
    %42 = math.exp %41 : vector<128x128xf32>
    %cst_29 = arith.constant dense<0.000000e+00> : vector<128xf32>
    %43 = vector.multi_reduction <add>, %42, %cst_29 [1] : vector<128x128xf32> to vector<128xf32>
    %44 = vector.shape_cast %43 : vector<128xf32> to vector<128x1xf32>
    %45 = tpu.reciprocal %44 {approx = true} : vector<128x1xf32> -> vector<128x1xf32>
    %46 = vector.broadcast %45 : vector<128x1xf32> to vector<128x128xf32>
    %47 = arith.mulf %42, %46 : vector<128x128xf32>
    %48 = arith.truncf %47 : vector<128x128xf32> to vector<128x128xbf16>
    %cst_30 = arith.constant dense<0.000000e+00> : vector<128x32xf32>
    %49 = tpu.matmul %48, %30, %cst_30 {dimension_numbers = #tpu.dot_dimension_numbers<[1], [0], [0], [1], [0, 0, 1, 1], [], []>} : vector<128x128xbf16>, vector<128x32xbf16>, vector<128x32xf32> -> vector<128x32xf32>
    %50 = arith.truncf %49 : vector<128x32xf32> to vector<128x32xbf16>
    %c0_31 = arith.constant 0 : index
    %c0_32 = arith.constant 0 : index
    %c0_33 = arith.constant 0 : index
    %51 = vector.load %arg6[%c0_31, %c0_32, %c0_33] : memref<8x32x128xbf16, #tpu.memory_space<vmem>>, vector<1x32x128xbf16>
    %52 = vector.shape_cast %51 : vector<1x32x128xbf16> to vector<32x128xbf16>
    %cst_34 = arith.constant dense<0.000000e+00> : vector<128x128xf32>
    %53 = tpu.matmul %50, %52, %cst_34 {dimension_numbers = #tpu.dot_dimension_numbers<[1], [0], [0], [1], [0, 0, 1, 1], [], []>} : vector<128x32xbf16>, vector<32x128xbf16>, vector<128x128xf32> -> vector<128x128xf32>
    %54 = arith.addf %27, %53 : vector<128x128xf32>
    %c0_35 = arith.constant 0 : index
    %c32 = arith.constant 32 : index
    %55 = vector.load %arg16[%c0_35, %c32] : memref<128x384xbf16, #tpu.memory_space<vmem>>, vector<128x32xbf16>
    %c0_36 = arith.constant 0 : index
    %c160 = arith.constant 160 : index
    %56 = vector.load %arg16[%c0_36, %c160] : memref<128x384xbf16, #tpu.memory_space<vmem>>, vector<128x32xbf16>
    %c0_37 = arith.constant 0 : index
    %c288 = arith.constant 288 : index
    %57 = vector.load %arg16[%c0_37, %c288] : memref<128x384xbf16, #tpu.memory_space<vmem>>, vector<128x32xbf16>
    %cst_38 = arith.constant dense<0.000000e+00> : vector<128x128xf32>
    %58 = tpu.matmul %55, %56, %cst_38 {dimension_numbers = #tpu.dot_dimension_numbers<[1], [1], [0], [0], [0, 0, 1, 0], [], []>} : vector<128x32xbf16>, vector<128x32xbf16>, vector<128x128xf32> -> vector<128x128xf32>
    %c1 = arith.constant 1 : index
    %c0_39 = arith.constant 0 : index
    %c0_40 = arith.constant 0 : index
    %59 = vector.load %arg2[%c1, %c0_39, %c0_40] : memref<4x128x128xbf16, #tpu.memory_space<vmem>>, vector<1x128x128xbf16>
    %60 = vector.shape_cast %59 : vector<1x128x128xbf16> to vector<128x128xbf16>
    %61 = arith.extf %60 : vector<128x128xbf16> to vector<128x128xf32>
    %62 = arith.addf %58, %61 : vector<128x128xf32>
    %63 = vector.broadcast %4 : vector<1x128xf32> to vector<128x128xf32>
    %64 = arith.addf %62, %63 : vector<128x128xf32>
    %cst_41 = arith.constant dense<0xFF800000> : vector<128xf32>
    %65 = vector.multi_reduction <maximumf>, %64, %cst_41 [1] : vector<128x128xf32> to vector<128xf32>
    %66 = vector.shape_cast %65 : vector<128xf32> to vector<128x1xf32>
    %67 = vector.broadcast %66 : vector<128x1xf32> to vector<128x128xf32>
    %68 = arith.subf %64, %67 : vector<128x128xf32>
    %69 = math.exp %68 : vector<128x128xf32>
    %cst_42 = arith.constant dense<0.000000e+00> : vector<128xf32>
    %70 = vector.multi_reduction <add>, %69, %cst_42 [1] : vector<128x128xf32> to vector<128xf32>
    %71 = vector.shape_cast %70 : vector<128xf32> to vector<128x1xf32>
    %72 = tpu.reciprocal %71 {approx = true} : vector<128x1xf32> -> vector<128x1xf32>
    %73 = vector.broadcast %72 : vector<128x1xf32> to vector<128x128xf32>
    %74 = arith.mulf %69, %73 : vector<128x128xf32>
    %75 = arith.truncf %74 : vector<128x128xf32> to vector<128x128xbf16>
    %cst_43 = arith.constant dense<0.000000e+00> : vector<128x32xf32>
    %76 = tpu.matmul %75, %57, %cst_43 {dimension_numbers = #tpu.dot_dimension_numbers<[1], [0], [0], [1], [0, 0, 1, 1], [], []>} : vector<128x128xbf16>, vector<128x32xbf16>, vector<128x32xf32> -> vector<128x32xf32>
    %77 = arith.truncf %76 : vector<128x32xf32> to vector<128x32xbf16>
    %c1_44 = arith.constant 1 : index
    %c0_45 = arith.constant 0 : index
    %c0_46 = arith.constant 0 : index
    %78 = vector.load %arg6[%c1_44, %c0_45, %c0_46] : memref<8x32x128xbf16, #tpu.memory_space<vmem>>, vector<1x32x128xbf16>
    %79 = vector.shape_cast %78 : vector<1x32x128xbf16> to vector<32x128xbf16>
    %cst_47 = arith.constant dense<0.000000e+00> : vector<128x128xf32>
    %80 = tpu.matmul %77, %79, %cst_47 {dimension_numbers = #tpu.dot_dimension_numbers<[1], [0], [0], [1], [0, 0, 1, 1], [], []>} : vector<128x32xbf16>, vector<32x128xbf16>, vector<128x128xf32> -> vector<128x128xf32>
    %81 = arith.addf %54, %80 : vector<128x128xf32>
    %c0_48 = arith.constant 0 : index
    %c64 = arith.constant 64 : index
    %82 = vector.load %arg16[%c0_48, %c64] : memref<128x384xbf16, #tpu.memory_space<vmem>>, vector<128x32xbf16>
    %c0_49 = arith.constant 0 : index
    %c192 = arith.constant 192 : index
    %83 = vector.load %arg16[%c0_49, %c192] : memref<128x384xbf16, #tpu.memory_space<vmem>>, vector<128x32xbf16>
    %c0_50 = arith.constant 0 : index
    %c320 = arith.constant 320 : index
    %84 = vector.load %arg16[%c0_50, %c320] : memref<128x384xbf16, #tpu.memory_space<vmem>>, vector<128x32xbf16>
    %cst_51 = arith.constant dense<0.000000e+00> : vector<128x128xf32>
    %85 = tpu.matmul %82, %83, %cst_51 {dimension_numbers = #tpu.dot_dimension_numbers<[1], [1], [0], [0], [0, 0, 1, 0], [], []>} : vector<128x32xbf16>, vector<128x32xbf16>, vector<128x128xf32> -> vector<128x128xf32>
    %c2 = arith.constant 2 : index
    %c0_52 = arith.constant 0 : index
    %c0_53 = arith.constant 0 : index
    %86 = vector.load %arg2[%c2, %c0_52, %c0_53] : memref<4x128x128xbf16, #tpu.memory_space<vmem>>, vector<1x128x128xbf16>
    %87 = vector.shape_cast %86 : vector<1x128x128xbf16> to vector<128x128xbf16>
    %88 = arith.extf %87 : vector<128x128xbf16> to vector<128x128xf32>
    %89 = arith.addf %85, %88 : vector<128x128xf32>
    %90 = vector.broadcast %4 : vector<1x128xf32> to vector<128x128xf32>
    %91 = arith.addf %89, %90 : vector<128x128xf32>
    %cst_54 = arith.constant dense<0xFF800000> : vector<128xf32>
    %92 = vector.multi_reduction <maximumf>, %91, %cst_54 [1] : vector<128x128xf32> to vector<128xf32>
    %93 = vector.shape_cast %92 : vector<128xf32> to vector<128x1xf32>
    %94 = vector.broadcast %93 : vector<128x1xf32> to vector<128x128xf32>
    %95 = arith.subf %91, %94 : vector<128x128xf32>
    %96 = math.exp %95 : vector<128x128xf32>
    %cst_55 = arith.constant dense<0.000000e+00> : vector<128xf32>
    %97 = vector.multi_reduction <add>, %96, %cst_55 [1] : vector<128x128xf32> to vector<128xf32>
    %98 = vector.shape_cast %97 : vector<128xf32> to vector<128x1xf32>
    %99 = tpu.reciprocal %98 {approx = true} : vector<128x1xf32> -> vector<128x1xf32>
    %100 = vector.broadcast %99 : vector<128x1xf32> to vector<128x128xf32>
    %101 = arith.mulf %96, %100 : vector<128x128xf32>
    %102 = arith.truncf %101 : vector<128x128xf32> to vector<128x128xbf16>
    %cst_56 = arith.constant dense<0.000000e+00> : vector<128x32xf32>
    %103 = tpu.matmul %102, %84, %cst_56 {dimension_numbers = #tpu.dot_dimension_numbers<[1], [0], [0], [1], [0, 0, 1, 1], [], []>} : vector<128x128xbf16>, vector<128x32xbf16>, vector<128x32xf32> -> vector<128x32xf32>
    %104 = arith.truncf %103 : vector<128x32xf32> to vector<128x32xbf16>
    %c2_57 = arith.constant 2 : index
    %c0_58 = arith.constant 0 : index
    %c0_59 = arith.constant 0 : index
    %105 = vector.load %arg6[%c2_57, %c0_58, %c0_59] : memref<8x32x128xbf16, #tpu.memory_space<vmem>>, vector<1x32x128xbf16>
    %106 = vector.shape_cast %105 : vector<1x32x128xbf16> to vector<32x128xbf16>
    %cst_60 = arith.constant dense<0.000000e+00> : vector<128x128xf32>
    %107 = tpu.matmul %104, %106, %cst_60 {dimension_numbers = #tpu.dot_dimension_numbers<[1], [0], [0], [1], [0, 0, 1, 1], [], []>} : vector<128x32xbf16>, vector<32x128xbf16>, vector<128x128xf32> -> vector<128x128xf32>
    %108 = arith.addf %81, %107 : vector<128x128xf32>
    %c0_61 = arith.constant 0 : index
    %c96 = arith.constant 96 : index
    %109 = vector.load %arg16[%c0_61, %c96] : memref<128x384xbf16, #tpu.memory_space<vmem>>, vector<128x32xbf16>
    %c0_62 = arith.constant 0 : index
    %c224 = arith.constant 224 : index
    %110 = vector.load %arg16[%c0_62, %c224] : memref<128x384xbf16, #tpu.memory_space<vmem>>, vector<128x32xbf16>
    %c0_63 = arith.constant 0 : index
    %c352 = arith.constant 352 : index
    %111 = vector.load %arg16[%c0_63, %c352] : memref<128x384xbf16, #tpu.memory_space<vmem>>, vector<128x32xbf16>
    %cst_64 = arith.constant dense<0.000000e+00> : vector<128x128xf32>
    %112 = tpu.matmul %109, %110, %cst_64 {dimension_numbers = #tpu.dot_dimension_numbers<[1], [1], [0], [0], [0, 0, 1, 0], [], []>} : vector<128x32xbf16>, vector<128x32xbf16>, vector<128x128xf32> -> vector<128x128xf32>
    %c3 = arith.constant 3 : index
    %c0_65 = arith.constant 0 : index
    %c0_66 = arith.constant 0 : index
    %113 = vector.load %arg2[%c3, %c0_65, %c0_66] : memref<4x128x128xbf16, #tpu.memory_space<vmem>>, vector<1x128x128xbf16>
    %114 = vector.shape_cast %113 : vector<1x128x128xbf16> to vector<128x128xbf16>
    %115 = arith.extf %114 : vector<128x128xbf16> to vector<128x128xf32>
    %116 = arith.addf %112, %115 : vector<128x128xf32>
    %117 = vector.broadcast %4 : vector<1x128xf32> to vector<128x128xf32>
    %118 = arith.addf %116, %117 : vector<128x128xf32>
    %cst_67 = arith.constant dense<0xFF800000> : vector<128xf32>
    %119 = vector.multi_reduction <maximumf>, %118, %cst_67 [1] : vector<128x128xf32> to vector<128xf32>
    %120 = vector.shape_cast %119 : vector<128xf32> to vector<128x1xf32>
    %121 = vector.broadcast %120 : vector<128x1xf32> to vector<128x128xf32>
    %122 = arith.subf %118, %121 : vector<128x128xf32>
    %123 = math.exp %122 : vector<128x128xf32>
    %cst_68 = arith.constant dense<0.000000e+00> : vector<128xf32>
    %124 = vector.multi_reduction <add>, %123, %cst_68 [1] : vector<128x128xf32> to vector<128xf32>
    %125 = vector.shape_cast %124 : vector<128xf32> to vector<128x1xf32>
    %126 = tpu.reciprocal %125 {approx = true} : vector<128x1xf32> -> vector<128x1xf32>
    %127 = vector.broadcast %126 : vector<128x1xf32> to vector<128x128xf32>
    %128 = arith.mulf %123, %127 : vector<128x128xf32>
    %129 = arith.truncf %128 : vector<128x128xf32> to vector<128x128xbf16>
    %cst_69 = arith.constant dense<0.000000e+00> : vector<128x32xf32>
    %130 = tpu.matmul %129, %111, %cst_69 {dimension_numbers = #tpu.dot_dimension_numbers<[1], [0], [0], [1], [0, 0, 1, 1], [], []>} : vector<128x128xbf16>, vector<128x32xbf16>, vector<128x32xf32> -> vector<128x32xf32>
    %131 = arith.truncf %130 : vector<128x32xf32> to vector<128x32xbf16>
    %c3_70 = arith.constant 3 : index
    %c0_71 = arith.constant 0 : index
    %c0_72 = arith.constant 0 : index
    %132 = vector.load %arg6[%c3_70, %c0_71, %c0_72] : memref<8x32x128xbf16, #tpu.memory_space<vmem>>, vector<1x32x128xbf16>
    %133 = vector.shape_cast %132 : vector<1x32x128xbf16> to vector<32x128xbf16>
    %cst_73 = arith.constant dense<0.000000e+00> : vector<128x128xf32>
    %134 = tpu.matmul %131, %133, %cst_73 {dimension_numbers = #tpu.dot_dimension_numbers<[1], [0], [0], [1], [0, 0, 1, 1], [], []>} : vector<128x32xbf16>, vector<32x128xbf16>, vector<128x128xf32> -> vector<128x128xf32>
    %135 = arith.addf %108, %134 : vector<128x128xf32>
    %c0_74 = arith.constant 0 : index
    %c0_75 = arith.constant 0 : index
    %136 = vector.load %arg15[%c0_74, %c0_75] : memref<128x128xbf16, #tpu.memory_space<vmem>>, vector<128x128xbf16>
    %137 = arith.extf %136 : vector<128x128xbf16> to vector<128x128xf32>
    %138 = arith.addf %137, %135 : vector<128x128xf32>
    %139 = arith.truncf %138 : vector<128x128xf32> to vector<128x128xbf16>
    %c0_76 = arith.constant 0 : index
    %c0_77 = arith.constant 0 : index
    %140 = vector.load %arg15[%c0_76, %c0_77] : memref<128x128xbf16, #tpu.memory_space<vmem>>, vector<128x128xbf16>
    tpu.vector_store %arg15[%c0_76, %c0_77], %139 {strides = array<i32>} : memref<128x128xbf16, #tpu.memory_space<vmem>>, vector<128x128xbf16>,
    %c0_78 = arith.constant 0 : index
    %c0_79 = arith.constant 0 : index
    %141 = vector.load %arg15[%c0_78, %c0_79] : memref<128x128xbf16, #tpu.memory_space<vmem>>, vector<128x128xbf16>
    %142 = arith.extf %141 : vector<128x128xbf16> to vector<128x128xf32>
    %c0_80 = arith.constant 0 : index
    %c0_81 = arith.constant 0 : index
    %c0_82 = arith.constant 0 : index
    %143 = vector.load %arg7[%c0_80, %c0_81, %c0_82] : memref<2x1x128xf32, #tpu.memory_space<vmem>>, vector<1x1x128xf32>
    %144 = vector.shape_cast %143 : vector<1x1x128xf32> to vector<1x128xf32>
    %145 = arith.mulf %142, %142 : vector<128x128xf32>
    %cst_83 = arith.constant dense<0.000000e+00> : vector<128xf32>
    %146 = vector.multi_reduction <add>, %145, %cst_83 [1] : vector<128x128xf32> to vector<128xf32>
    %147 = vector.shape_cast %146 : vector<128xf32> to vector<128x1xf32>
    %cst_84 = arith.constant 1.280000e+02 : f32
    %148 = vector.broadcast %cst_84 : f32 to vector<128x1xf32>
    %149 = arith.divf %147, %148 : vector<128x1xf32>
    %cst_85 = arith.constant 9.99999997E-7 : f32
    %150 = vector.broadcast %cst_85 : f32 to vector<128x1xf32>
    %151 = arith.addf %149, %150 : vector<128x1xf32>
    %152 = math.rsqrt %151 : vector<128x1xf32>
    %153 = vector.broadcast %152 : vector<128x1xf32> to vector<128x128xf32>
    %154 = arith.mulf %142, %153 : vector<128x128xf32>
    %155 = vector.broadcast %144 : vector<1x128xf32> to vector<128x128xf32>
    %156 = arith.mulf %154, %155 : vector<128x128xf32>
    %157 = arith.truncf %156 : vector<128x128xf32> to vector<128x128xbf16>
    %c0_86 = arith.constant 0 : index
    %c0_87 = arith.constant 0 : index
    %c0_88 = arith.constant 0 : index
    %158 = vector.load %arg8[%c0_86, %c0_87, %c0_88] : memref<2x128x256xbf16, #tpu.memory_space<vmem>>, vector<1x128x256xbf16>
    %159 = vector.shape_cast %158 : vector<1x128x256xbf16> to vector<128x256xbf16>
    %cst_89 = arith.constant dense<0.000000e+00> : vector<128x256xf32>
    %160 = tpu.matmul %157, %159, %cst_89 {dimension_numbers = #tpu.dot_dimension_numbers<[1], [0], [0], [1], [0, 0, 1, 1], [], []>} : vector<128x128xbf16>, vector<128x256xbf16>, vector<128x256xf32> -> vector<128x256xf32>
    %cst_90 = arith.constant 0.000000e+00 : f32
    %161 = vector.broadcast %cst_90 : f32 to vector<128x256xf32>
    %162 = arith.maximumf %160, %161 : vector<128x256xf32>
    %163 = arith.truncf %162 : vector<128x256xf32> to vector<128x256xbf16>
    %c0_91 = arith.constant 0 : index
    %c0_92 = arith.constant 0 : index
    %c0_93 = arith.constant 0 : index
    %164 = vector.load %arg9[%c0_91, %c0_92, %c0_93] : memref<2x256x128xbf16, #tpu.memory_space<vmem>>, vector<1x256x128xbf16>
    %165 = vector.shape_cast %164 : vector<1x256x128xbf16> to vector<256x128xbf16>
    %cst_94 = arith.constant dense<0.000000e+00> : vector<128x128xf32>
    %166 = tpu.matmul %163, %165, %cst_94 {dimension_numbers = #tpu.dot_dimension_numbers<[1], [0], [0], [1], [0, 0, 1, 1], [], []>} : vector<128x256xbf16>, vector<256x128xbf16>, vector<128x128xf32> -> vector<128x128xf32>
    %c0_95 = arith.constant 0 : index
    %c0_96 = arith.constant 0 : index
    %167 = vector.load %arg15[%c0_95, %c0_96] : memref<128x128xbf16, #tpu.memory_space<vmem>>, vector<128x128xbf16>
    %168 = arith.extf %167 : vector<128x128xbf16> to vector<128x128xf32>
    %169 = arith.addf %168, %166 : vector<128x128xf32>
    %170 = arith.truncf %169 : vector<128x128xf32> to vector<128x128xbf16>
    %c0_97 = arith.constant 0 : index
    %c0_98 = arith.constant 0 : index
    %171 = vector.load %arg15[%c0_97, %c0_98] : memref<128x128xbf16, #tpu.memory_space<vmem>>, vector<128x128xbf16>
    tpu.vector_store %arg15[%c0_97, %c0_98], %170 {strides = array<i32>} : memref<128x128xbf16, #tpu.memory_space<vmem>>, vector<128x128xbf16>,
    %c0_99 = arith.constant 0 : index
    %c0_100 = arith.constant 0 : index
    %172 = vector.load %arg15[%c0_99, %c0_100] : memref<128x128xbf16, #tpu.memory_space<vmem>>, vector<128x128xbf16>
    %173 = arith.extf %172 : vector<128x128xbf16> to vector<128x128xf32>
    %c1_101 = arith.constant 1 : index
    %c0_102 = arith.constant 0 : index
    %c0_103 = arith.constant 0 : index
    %174 = vector.load %arg4[%c1_101, %c0_102, %c0_103] : memref<2x1x128xf32, #tpu.memory_space<vmem>>, vector<1x1x128xf32>
    %175 = vector.shape_cast %174 : vector<1x1x128xf32> to vector<1x128xf32>
    %176 = arith.mulf %173, %173 : vector<128x128xf32>
    %cst_104 = arith.constant dense<0.000000e+00> : vector<128xf32>
    %177 = vector.multi_reduction <add>, %176, %cst_104 [1] : vector<128x128xf32> to vector<128xf32>
    %178 = vector.shape_cast %177 : vector<128xf32> to vector<128x1xf32>
    %cst_105 = arith.constant 1.280000e+02 : f32
    %179 = vector.broadcast %cst_105 : f32 to vector<128x1xf32>
    %180 = arith.divf %178, %179 : vector<128x1xf32>
    %cst_106 = arith.constant 9.99999997E-7 : f32
    %181 = vector.broadcast %cst_106 : f32 to vector<128x1xf32>
    %182 = arith.addf %180, %181 : vector<128x1xf32>
    %183 = math.rsqrt %182 : vector<128x1xf32>
    %184 = vector.broadcast %183 : vector<128x1xf32> to vector<128x128xf32>
    %185 = arith.mulf %173, %184 : vector<128x128xf32>
    %186 = vector.broadcast %175 : vector<1x128xf32> to vector<128x128xf32>
    %187 = arith.mulf %185, %186 : vector<128x128xf32>
    %188 = arith.truncf %187 : vector<128x128xf32> to vector<128x128xbf16>
    %c1_107 = arith.constant 1 : index
    %c0_108 = arith.constant 0 : index
    %c0_109 = arith.constant 0 : index
    %189 = vector.load %arg5[%c1_107, %c0_108, %c0_109] : memref<2x128x384xbf16, #tpu.memory_space<vmem>>, vector<1x128x384xbf16>
    %190 = vector.shape_cast %189 : vector<1x128x384xbf16> to vector<128x384xbf16>
    %cst_110 = arith.constant dense<0.000000e+00> : vector<128x384xf32>
    %191 = tpu.matmul %188, %190, %cst_110 {dimension_numbers = #tpu.dot_dimension_numbers<[1], [0], [0], [1], [0, 0, 1, 1], [], []>} : vector<128x128xbf16>, vector<128x384xbf16>, vector<128x384xf32> -> vector<128x384xf32>
    %192 = arith.truncf %191 : vector<128x384xf32> to vector<128x384xbf16>
    %c0_111 = arith.constant 0 : index
    %c0_112 = arith.constant 0 : index
    %193 = vector.load %arg16[%c0_111, %c0_112] : memref<128x384xbf16, #tpu.memory_space<vmem>>, vector<128x384xbf16>
    tpu.vector_store %arg16[%c0_111, %c0_112], %192 {strides = array<i32>} : memref<128x384xbf16, #tpu.memory_space<vmem>>, vector<128x384xbf16>,
    %cst_113 = arith.constant 0.000000e+00 : f32
    %194 = vector.broadcast %cst_113 : f32 to vector<128x128xf32>
    %c0_114 = arith.constant 0 : index
    %c0_115 = arith.constant 0 : index
    %195 = vector.load %arg16[%c0_114, %c0_115] : memref<128x384xbf16, #tpu.memory_space<vmem>>, vector<128x32xbf16>
    %c0_116 = arith.constant 0 : index
    %c128_117 = arith.constant 128 : index
    %196 = vector.load %arg16[%c0_116, %c128_117] : memref<128x384xbf16, #tpu.memory_space<vmem>>, vector<128x32xbf16>
    %c0_118 = arith.constant 0 : index
    %c256_119 = arith.constant 256 : index
    %197 = vector.load %arg16[%c0_118, %c256_119] : memref<128x384xbf16, #tpu.memory_space<vmem>>, vector<128x32xbf16>
    %cst_120 = arith.constant dense<0.000000e+00> : vector<128x128xf32>
    %198 = tpu.matmul %195, %196, %cst_120 {dimension_numbers = #tpu.dot_dimension_numbers<[1], [1], [0], [0], [0, 0, 1, 0], [], []>} : vector<128x32xbf16>, vector<128x32xbf16>, vector<128x128xf32> -> vector<128x128xf32>
    %c0_121 = arith.constant 0 : index
    %c0_122 = arith.constant 0 : index
    %c0_123 = arith.constant 0 : index
    %199 = vector.load %arg2[%c0_121, %c0_122, %c0_123] : memref<4x128x128xbf16, #tpu.memory_space<vmem>>, vector<1x128x128xbf16>
    %200 = vector.shape_cast %199 : vector<1x128x128xbf16> to vector<128x128xbf16>
    %201 = arith.extf %200 : vector<128x128xbf16> to vector<128x128xf32>
    %202 = arith.addf %198, %201 : vector<128x128xf32>
    %203 = vector.broadcast %4 : vector<1x128xf32> to vector<128x128xf32>
    %204 = arith.addf %202, %203 : vector<128x128xf32>
    %cst_124 = arith.constant dense<0xFF800000> : vector<128xf32>
    %205 = vector.multi_reduction <maximumf>, %204, %cst_124 [1] : vector<128x128xf32> to vector<128xf32>
    %206 = vector.shape_cast %205 : vector<128xf32> to vector<128x1xf32>
    %207 = vector.broadcast %206 : vector<128x1xf32> to vector<128x128xf32>
    %208 = arith.subf %204, %207 : vector<128x128xf32>
    %209 = math.exp %208 : vector<128x128xf32>
    %cst_125 = arith.constant dense<0.000000e+00> : vector<128xf32>
    %210 = vector.multi_reduction <add>, %209, %cst_125 [1] : vector<128x128xf32> to vector<128xf32>
    %211 = vector.shape_cast %210 : vector<128xf32> to vector<128x1xf32>
    %212 = tpu.reciprocal %211 {approx = true} : vector<128x1xf32> -> vector<128x1xf32>
    %213 = vector.broadcast %212 : vector<128x1xf32> to vector<128x128xf32>
    %214 = arith.mulf %209, %213 : vector<128x128xf32>
    %215 = arith.truncf %214 : vector<128x128xf32> to vector<128x128xbf16>
    %cst_126 = arith.constant dense<0.000000e+00> : vector<128x32xf32>
    %216 = tpu.matmul %215, %197, %cst_126 {dimension_numbers = #tpu.dot_dimension_numbers<[1], [0], [0], [1], [0, 0, 1, 1], [], []>} : vector<128x128xbf16>, vector<128x32xbf16>, vector<128x32xf32> -> vector<128x32xf32>
    %217 = arith.truncf %216 : vector<128x32xf32> to vector<128x32xbf16>
    %c4 = arith.constant 4 : index
    %c0_127 = arith.constant 0 : index
    %c0_128 = arith.constant 0 : index
    %218 = vector.load %arg6[%c4, %c0_127, %c0_128] : memref<8x32x128xbf16, #tpu.memory_space<vmem>>, vector<1x32x128xbf16>
    %219 = vector.shape_cast %218 : vector<1x32x128xbf16> to vector<32x128xbf16>
    %cst_129 = arith.constant dense<0.000000e+00> : vector<128x128xf32>
    %220 = tpu.matmul %217, %219, %cst_129 {dimension_numbers = #tpu.dot_dimension_numbers<[1], [0], [0], [1], [0, 0, 1, 1], [], []>} : vector<128x32xbf16>, vector<32x128xbf16>, vector<128x128xf32> -> vector<128x128xf32>
    %221 = arith.addf %194, %220 : vector<128x128xf32>
    %c0_130 = arith.constant 0 : index
    %c32_131 = arith.constant 32 : index
    %222 = vector.load %arg16[%c0_130, %c32_131] : memref<128x384xbf16, #tpu.memory_space<vmem>>, vector<128x32xbf16>
    %c0_132 = arith.constant 0 : index
    %c160_133 = arith.constant 160 : index
    %223 = vector.load %arg16[%c0_132, %c160_133] : memref<128x384xbf16, #tpu.memory_space<vmem>>, vector<128x32xbf16>
    %c0_134 = arith.constant 0 : index
    %c288_135 = arith.constant 288 : index
    %224 = vector.load %arg16[%c0_134, %c288_135] : memref<128x384xbf16, #tpu.memory_space<vmem>>, vector<128x32xbf16>
    %cst_136 = arith.constant dense<0.000000e+00> : vector<128x128xf32>
    %225 = tpu.matmul %222, %223, %cst_136 {dimension_numbers = #tpu.dot_dimension_numbers<[1], [1], [0], [0], [0, 0, 1, 0], [], []>} : vector<128x32xbf16>, vector<128x32xbf16>, vector<128x128xf32> -> vector<128x128xf32>
    %c1_137 = arith.constant 1 : index
    %c0_138 = arith.constant 0 : index
    %c0_139 = arith.constant 0 : index
    %226 = vector.load %arg2[%c1_137, %c0_138, %c0_139] : memref<4x128x128xbf16, #tpu.memory_space<vmem>>, vector<1x128x128xbf16>
    %227 = vector.shape_cast %226 : vector<1x128x128xbf16> to vector<128x128xbf16>
    %228 = arith.extf %227 : vector<128x128xbf16> to vector<128x128xf32>
    %229 = arith.addf %225, %228 : vector<128x128xf32>
    %230 = vector.broadcast %4 : vector<1x128xf32> to vector<128x128xf32>
    %231 = arith.addf %229, %230 : vector<128x128xf32>
    %cst_140 = arith.constant dense<0xFF800000> : vector<128xf32>
    %232 = vector.multi_reduction <maximumf>, %231, %cst_140 [1] : vector<128x128xf32> to vector<128xf32>
    %233 = vector.shape_cast %232 : vector<128xf32> to vector<128x1xf32>
    %234 = vector.broadcast %233 : vector<128x1xf32> to vector<128x128xf32>
    %235 = arith.subf %231, %234 : vector<128x128xf32>
    %236 = math.exp %235 : vector<128x128xf32>
    %cst_141 = arith.constant dense<0.000000e+00> : vector<128xf32>
    %237 = vector.multi_reduction <add>, %236, %cst_141 [1] : vector<128x128xf32> to vector<128xf32>
    %238 = vector.shape_cast %237 : vector<128xf32> to vector<128x1xf32>
    %239 = tpu.reciprocal %238 {approx = true} : vector<128x1xf32> -> vector<128x1xf32>
    %240 = vector.broadcast %239 : vector<128x1xf32> to vector<128x128xf32>
    %241 = arith.mulf %236, %240 : vector<128x128xf32>
    %242 = arith.truncf %241 : vector<128x128xf32> to vector<128x128xbf16>
    %cst_142 = arith.constant dense<0.000000e+00> : vector<128x32xf32>
    %243 = tpu.matmul %242, %224, %cst_142 {dimension_numbers = #tpu.dot_dimension_numbers<[1], [0], [0], [1], [0, 0, 1, 1], [], []>} : vector<128x128xbf16>, vector<128x32xbf16>, vector<128x32xf32> -> vector<128x32xf32>
    %244 = arith.truncf %243 : vector<128x32xf32> to vector<128x32xbf16>
    %c5 = arith.constant 5 : index
    %c0_143 = arith.constant 0 : index
    %c0_144 = arith.constant 0 : index
    %245 = vector.load %arg6[%c5, %c0_143, %c0_144] : memref<8x32x128xbf16, #tpu.memory_space<vmem>>, vector<1x32x128xbf16>
    %246 = vector.shape_cast %245 : vector<1x32x128xbf16> to vector<32x128xbf16>
    %cst_145 = arith.constant dense<0.000000e+00> : vector<128x128xf32>
    %247 = tpu.matmul %244, %246, %cst_145 {dimension_numbers = #tpu.dot_dimension_numbers<[1], [0], [0], [1], [0, 0, 1, 1], [], []>} : vector<128x32xbf16>, vector<32x128xbf16>, vector<128x128xf32> -> vector<128x128xf32>
    %248 = arith.addf %221, %247 : vector<128x128xf32>
    %c0_146 = arith.constant 0 : index
    %c64_147 = arith.constant 64 : index
    %249 = vector.load %arg16[%c0_146, %c64_147] : memref<128x384xbf16, #tpu.memory_space<vmem>>, vector<128x32xbf16>
    %c0_148 = arith.constant 0 : index
    %c192_149 = arith.constant 192 : index
    %250 = vector.load %arg16[%c0_148, %c192_149] : memref<128x384xbf16, #tpu.memory_space<vmem>>, vector<128x32xbf16>
    %c0_150 = arith.constant 0 : index
    %c320_151 = arith.constant 320 : index
    %251 = vector.load %arg16[%c0_150, %c320_151] : memref<128x384xbf16, #tpu.memory_space<vmem>>, vector<128x32xbf16>
    %cst_152 = arith.constant dense<0.000000e+00> : vector<128x128xf32>
    %252 = tpu.matmul %249, %250, %cst_152 {dimension_numbers = #tpu.dot_dimension_numbers<[1], [1], [0], [0], [0, 0, 1, 0], [], []>} : vector<128x32xbf16>, vector<128x32xbf16>, vector<128x128xf32> -> vector<128x128xf32>
    %c2_153 = arith.constant 2 : index
    %c0_154 = arith.constant 0 : index
    %c0_155 = arith.constant 0 : index
    %253 = vector.load %arg2[%c2_153, %c0_154, %c0_155] : memref<4x128x128xbf16, #tpu.memory_space<vmem>>, vector<1x128x128xbf16>
    %254 = vector.shape_cast %253 : vector<1x128x128xbf16> to vector<128x128xbf16>
    %255 = arith.extf %254 : vector<128x128xbf16> to vector<128x128xf32>
    %256 = arith.addf %252, %255 : vector<128x128xf32>
    %257 = vector.broadcast %4 : vector<1x128xf32> to vector<128x128xf32>
    %258 = arith.addf %256, %257 : vector<128x128xf32>
    %cst_156 = arith.constant dense<0xFF800000> : vector<128xf32>
    %259 = vector.multi_reduction <maximumf>, %258, %cst_156 [1] : vector<128x128xf32> to vector<128xf32>
    %260 = vector.shape_cast %259 : vector<128xf32> to vector<128x1xf32>
    %261 = vector.broadcast %260 : vector<128x1xf32> to vector<128x128xf32>
    %262 = arith.subf %258, %261 : vector<128x128xf32>
    %263 = math.exp %262 : vector<128x128xf32>
    %cst_157 = arith.constant dense<0.000000e+00> : vector<128xf32>
    %264 = vector.multi_reduction <add>, %263, %cst_157 [1] : vector<128x128xf32> to vector<128xf32>
    %265 = vector.shape_cast %264 : vector<128xf32> to vector<128x1xf32>
    %266 = tpu.reciprocal %265 {approx = true} : vector<128x1xf32> -> vector<128x1xf32>
    %267 = vector.broadcast %266 : vector<128x1xf32> to vector<128x128xf32>
    %268 = arith.mulf %263, %267 : vector<128x128xf32>
    %269 = arith.truncf %268 : vector<128x128xf32> to vector<128x128xbf16>
    %cst_158 = arith.constant dense<0.000000e+00> : vector<128x32xf32>
    %270 = tpu.matmul %269, %251, %cst_158 {dimension_numbers = #tpu.dot_dimension_numbers<[1], [0], [0], [1], [0, 0, 1, 1], [], []>} : vector<128x128xbf16>, vector<128x32xbf16>, vector<128x32xf32> -> vector<128x32xf32>
    %271 = arith.truncf %270 : vector<128x32xf32> to vector<128x32xbf16>
    %c6 = arith.constant 6 : index
    %c0_159 = arith.constant 0 : index
    %c0_160 = arith.constant 0 : index
    %272 = vector.load %arg6[%c6, %c0_159, %c0_160] : memref<8x32x128xbf16, #tpu.memory_space<vmem>>, vector<1x32x128xbf16>
    %273 = vector.shape_cast %272 : vector<1x32x128xbf16> to vector<32x128xbf16>
    %cst_161 = arith.constant dense<0.000000e+00> : vector<128x128xf32>
    %274 = tpu.matmul %271, %273, %cst_161 {dimension_numbers = #tpu.dot_dimension_numbers<[1], [0], [0], [1], [0, 0, 1, 1], [], []>} : vector<128x32xbf16>, vector<32x128xbf16>, vector<128x128xf32> -> vector<128x128xf32>
    %275 = arith.addf %248, %274 : vector<128x128xf32>
    %c0_162 = arith.constant 0 : index
    %c96_163 = arith.constant 96 : index
    %276 = vector.load %arg16[%c0_162, %c96_163] : memref<128x384xbf16, #tpu.memory_space<vmem>>, vector<128x32xbf16>
    %c0_164 = arith.constant 0 : index
    %c224_165 = arith.constant 224 : index
    %277 = vector.load %arg16[%c0_164, %c224_165] : memref<128x384xbf16, #tpu.memory_space<vmem>>, vector<128x32xbf16>
    %c0_166 = arith.constant 0 : index
    %c352_167 = arith.constant 352 : index
    %278 = vector.load %arg16[%c0_166, %c352_167] : memref<128x384xbf16, #tpu.memory_space<vmem>>, vector<128x32xbf16>
    %cst_168 = arith.constant dense<0.000000e+00> : vector<128x128xf32>
    %279 = tpu.matmul %276, %277, %cst_168 {dimension_numbers = #tpu.dot_dimension_numbers<[1], [1], [0], [0], [0, 0, 1, 0], [], []>} : vector<128x32xbf16>, vector<128x32xbf16>, vector<128x128xf32> -> vector<128x128xf32>
    %c3_169 = arith.constant 3 : index
    %c0_170 = arith.constant 0 : index
    %c0_171 = arith.constant 0 : index
    %280 = vector.load %arg2[%c3_169, %c0_170, %c0_171] : memref<4x128x128xbf16, #tpu.memory_space<vmem>>, vector<1x128x128xbf16>
    %281 = vector.shape_cast %280 : vector<1x128x128xbf16> to vector<128x128xbf16>
    %282 = arith.extf %281 : vector<128x128xbf16> to vector<128x128xf32>
    %283 = arith.addf %279, %282 : vector<128x128xf32>
    %284 = vector.broadcast %4 : vector<1x128xf32> to vector<128x128xf32>
    %285 = arith.addf %283, %284 : vector<128x128xf32>
    %cst_172 = arith.constant dense<0xFF800000> : vector<128xf32>
    %286 = vector.multi_reduction <maximumf>, %285, %cst_172 [1] : vector<128x128xf32> to vector<128xf32>
    %287 = vector.shape_cast %286 : vector<128xf32> to vector<128x1xf32>
    %288 = vector.broadcast %287 : vector<128x1xf32> to vector<128x128xf32>
    %289 = arith.subf %285, %288 : vector<128x128xf32>
    %290 = math.exp %289 : vector<128x128xf32>
    %cst_173 = arith.constant dense<0.000000e+00> : vector<128xf32>
    %291 = vector.multi_reduction <add>, %290, %cst_173 [1] : vector<128x128xf32> to vector<128xf32>
    %292 = vector.shape_cast %291 : vector<128xf32> to vector<128x1xf32>
    %293 = tpu.reciprocal %292 {approx = true} : vector<128x1xf32> -> vector<128x1xf32>
    %294 = vector.broadcast %293 : vector<128x1xf32> to vector<128x128xf32>
    %295 = arith.mulf %290, %294 : vector<128x128xf32>
    %296 = arith.truncf %295 : vector<128x128xf32> to vector<128x128xbf16>
    %cst_174 = arith.constant dense<0.000000e+00> : vector<128x32xf32>
    %297 = tpu.matmul %296, %278, %cst_174 {dimension_numbers = #tpu.dot_dimension_numbers<[1], [0], [0], [1], [0, 0, 1, 1], [], []>} : vector<128x128xbf16>, vector<128x32xbf16>, vector<128x32xf32> -> vector<128x32xf32>
    %298 = arith.truncf %297 : vector<128x32xf32> to vector<128x32xbf16>
    %c7 = arith.constant 7 : index
    %c0_175 = arith.constant 0 : index
    %c0_176 = arith.constant 0 : index
    %299 = vector.load %arg6[%c7, %c0_175, %c0_176] : memref<8x32x128xbf16, #tpu.memory_space<vmem>>, vector<1x32x128xbf16>
    %300 = vector.shape_cast %299 : vector<1x32x128xbf16> to vector<32x128xbf16>
    %cst_177 = arith.constant dense<0.000000e+00> : vector<128x128xf32>
    %301 = tpu.matmul %298, %300, %cst_177 {dimension_numbers = #tpu.dot_dimension_numbers<[1], [0], [0], [1], [0, 0, 1, 1], [], []>} : vector<128x32xbf16>, vector<32x128xbf16>, vector<128x128xf32> -> vector<128x128xf32>
    %302 = arith.addf %275, %301 : vector<128x128xf32>
    %c0_178 = arith.constant 0 : index
    %c0_179 = arith.constant 0 : index
    %303 = vector.load %arg15[%c0_178, %c0_179] : memref<128x128xbf16, #tpu.memory_space<vmem>>, vector<128x128xbf16>
    %304 = arith.extf %303 : vector<128x128xbf16> to vector<128x128xf32>
    %305 = arith.addf %304, %302 : vector<128x128xf32>
    %306 = arith.truncf %305 : vector<128x128xf32> to vector<128x128xbf16>
    %c0_180 = arith.constant 0 : index
    %c0_181 = arith.constant 0 : index
    %307 = vector.load %arg15[%c0_180, %c0_181] : memref<128x128xbf16, #tpu.memory_space<vmem>>, vector<128x128xbf16>
    tpu.vector_store %arg15[%c0_180, %c0_181], %306 {strides = array<i32>} : memref<128x128xbf16, #tpu.memory_space<vmem>>, vector<128x128xbf16>,
    %c0_182 = arith.constant 0 : index
    %c0_183 = arith.constant 0 : index
    %308 = vector.load %arg15[%c0_182, %c0_183] : memref<128x128xbf16, #tpu.memory_space<vmem>>, vector<128x128xbf16>
    %309 = arith.extf %308 : vector<128x128xbf16> to vector<128x128xf32>
    %c1_184 = arith.constant 1 : index
    %c0_185 = arith.constant 0 : index
    %c0_186 = arith.constant 0 : index
    %310 = vector.load %arg7[%c1_184, %c0_185, %c0_186] : memref<2x1x128xf32, #tpu.memory_space<vmem>>, vector<1x1x128xf32>
    %311 = vector.shape_cast %310 : vector<1x1x128xf32> to vector<1x128xf32>
    %312 = arith.mulf %309, %309 : vector<128x128xf32>
    %cst_187 = arith.constant dense<0.000000e+00> : vector<128xf32>
    %313 = vector.multi_reduction <add>, %312, %cst_187 [1] : vector<128x128xf32> to vector<128xf32>
    %314 = vector.shape_cast %313 : vector<128xf32> to vector<128x1xf32>
    %cst_188 = arith.constant 1.280000e+02 : f32
    %315 = vector.broadcast %cst_188 : f32 to vector<128x1xf32>
    %316 = arith.divf %314, %315 : vector<128x1xf32>
    %cst_189 = arith.constant 9.99999997E-7 : f32
    %317 = vector.broadcast %cst_189 : f32 to vector<128x1xf32>
    %318 = arith.addf %316, %317 : vector<128x1xf32>
    %319 = math.rsqrt %318 : vector<128x1xf32>
    %320 = vector.broadcast %319 : vector<128x1xf32> to vector<128x128xf32>
    %321 = arith.mulf %309, %320 : vector<128x128xf32>
    %322 = vector.broadcast %311 : vector<1x128xf32> to vector<128x128xf32>
    %323 = arith.mulf %321, %322 : vector<128x128xf32>
    %324 = arith.truncf %323 : vector<128x128xf32> to vector<128x128xbf16>
    %c1_190 = arith.constant 1 : index
    %c0_191 = arith.constant 0 : index
    %c0_192 = arith.constant 0 : index
    %325 = vector.load %arg8[%c1_190, %c0_191, %c0_192] : memref<2x128x256xbf16, #tpu.memory_space<vmem>>, vector<1x128x256xbf16>
    %326 = vector.shape_cast %325 : vector<1x128x256xbf16> to vector<128x256xbf16>
    %cst_193 = arith.constant dense<0.000000e+00> : vector<128x256xf32>
    %327 = tpu.matmul %324, %326, %cst_193 {dimension_numbers = #tpu.dot_dimension_numbers<[1], [0], [0], [1], [0, 0, 1, 1], [], []>} : vector<128x128xbf16>, vector<128x256xbf16>, vector<128x256xf32> -> vector<128x256xf32>
    %cst_194 = arith.constant 0.000000e+00 : f32
    %328 = vector.broadcast %cst_194 : f32 to vector<128x256xf32>
    %329 = arith.maximumf %327, %328 : vector<128x256xf32>
    %330 = arith.truncf %329 : vector<128x256xf32> to vector<128x256xbf16>
    %c1_195 = arith.constant 1 : index
    %c0_196 = arith.constant 0 : index
    %c0_197 = arith.constant 0 : index
    %331 = vector.load %arg9[%c1_195, %c0_196, %c0_197] : memref<2x256x128xbf16, #tpu.memory_space<vmem>>, vector<1x256x128xbf16>
    %332 = vector.shape_cast %331 : vector<1x256x128xbf16> to vector<256x128xbf16>
    %cst_198 = arith.constant dense<0.000000e+00> : vector<128x128xf32>
    %333 = tpu.matmul %330, %332, %cst_198 {dimension_numbers = #tpu.dot_dimension_numbers<[1], [0], [0], [1], [0, 0, 1, 1], [], []>} : vector<128x256xbf16>, vector<256x128xbf16>, vector<128x128xf32> -> vector<128x128xf32>
    %c0_199 = arith.constant 0 : index
    %c0_200 = arith.constant 0 : index
    %334 = vector.load %arg15[%c0_199, %c0_200] : memref<128x128xbf16, #tpu.memory_space<vmem>>, vector<128x128xbf16>
    %335 = arith.extf %334 : vector<128x128xbf16> to vector<128x128xf32>
    %336 = arith.addf %335, %333 : vector<128x128xf32>
    %337 = arith.truncf %336 : vector<128x128xf32> to vector<128x128xbf16>
    %c0_201 = arith.constant 0 : index
    %c0_202 = arith.constant 0 : index
    %338 = vector.load %arg15[%c0_201, %c0_202] : memref<128x128xbf16, #tpu.memory_space<vmem>>, vector<128x128xbf16>
    tpu.vector_store %arg15[%c0_201, %c0_202], %337 {strides = array<i32>} : memref<128x128xbf16, #tpu.memory_space<vmem>>, vector<128x128xbf16>,
    %c127 = arith.constant 127 : index
    %c0_203 = arith.constant 0 : index
    %339 = vector.load %arg15[%c127, %c0_203] : memref<128x128xbf16, #tpu.memory_space<vmem>>, vector<1x128xbf16>
    %340 = arith.extf %339 : vector<1x128xbf16> to vector<1x128xf32>
    %c0_204 = arith.constant 0 : index
    %c0_205 = arith.constant 0 : index
    %341 = vector.load %arg10[%c0_204, %c0_205] : memref<1x128xf32, #tpu.memory_space<vmem>>, vector<1x128xf32>
    %342 = arith.mulf %340, %340 : vector<1x128xf32>
    %cst_206 = arith.constant dense<0.000000e+00> : vector<1xf32>
    %343 = vector.multi_reduction <add>, %342, %cst_206 [1] : vector<1x128xf32> to vector<1xf32>
    %344 = vector.shape_cast %343 : vector<1xf32> to vector<1x1xf32>
    %cst_207 = arith.constant 1.280000e+02 : f32
    %345 = vector.broadcast %cst_207 : f32 to vector<1x1xf32>
    %346 = arith.divf %344, %345 : vector<1x1xf32>
    %cst_208 = arith.constant 9.99999997E-7 : f32
    %347 = vector.broadcast %cst_208 : f32 to vector<1x1xf32>
    %348 = arith.addf %346, %347 : vector<1x1xf32>
    %349 = math.rsqrt %348 : vector<1x1xf32>
    %350 = vector.broadcast %349 : vector<1x1xf32> to vector<1x128xf32>
    %351 = arith.mulf %340, %350 : vector<1x128xf32>
    %352 = arith.mulf %351, %341 : vector<1x128xf32>
    %353 = vector.shape_cast %352 : vector<1x128xf32> to vector<1x1x128xf32>
    %c0_209 = arith.constant 0 : index
    %c0_210 = arith.constant 0 : index
    %c0_211 = arith.constant 0 : index
    %354 = vector.load %arg13[%c0_209, %c0_210, %c0_211] : memref<1x1x128xf32, #tpu.memory_space<vmem>>, vector<1x1x128xf32>
    tpu.vector_store %arg13[%c0_209, %c0_210, %c0_211], %353 {strides = array<i32>} : memref<1x1x128xf32, #tpu.memory_space<vmem>>, vector<1x1x128xf32>,
    %c0_212 = arith.constant 0 : index
    %c0_213 = arith.constant 0 : index
    %355 = vector.load %arg11[%c0_212, %c0_213] : memref<128x128xf32, #tpu.memory_space<vmem>>, vector<128x128xf32>
    %cst_214 = arith.constant dense<0.000000e+00> : vector<1x128xf32>
    %356 = tpu.matmul %352, %355, %cst_214 {dimension_numbers = #tpu.dot_dimension_numbers<[1], [0], [0], [1], [0, 0, 1, 1], [], []>} : vector<1x128xf32>, vector<128x128xf32>, vector<1x128xf32> -> vector<1x128xf32>
    %c0_215 = arith.constant 0 : index
    %c0_216 = arith.constant 0 : index
    %357 = vector.load %arg12[%c0_215, %c0_216] : memref<1x128xf32, #tpu.memory_space<vmem>>, vector<1x128xf32>
    %358 = arith.addf %356, %357 : vector<1x128xf32>
    %359 = vector.shape_cast %358 : vector<1x128xf32> to vector<1x1x128xf32>
    %c0_217 = arith.constant 0 : index
    %c0_218 = arith.constant 0 : index
    %c0_219 = arith.constant 0 : index
    %360 = vector.load %arg14[%c0_217, %c0_218, %c0_219] : memref<1x1x128xf32, #tpu.memory_space<vmem>>, vector<1x1x128xf32>
    tpu.vector_store %arg14[%c0_217, %c0_218, %c0_219], %359 {strides = array<i32>} : memref<1x1x128xf32, #tpu.memory_space<vmem>>, vector<1x1x128xf32>,
    return
  }
  func.func @transform_0(%arg0: i32) -> (i32, i32) {
    %c0_i32 = arith.constant 0 : i32
    %c0_i32_0 = arith.constant 0 : i32
    return %arg0, %c0_i32 : i32, i32
  }
  func.func @transform_1(%arg0: i32) -> (i32, i32, i32) {
    %c0_i32 = arith.constant 0 : i32
    %c0_i32_0 = arith.constant 0 : i32
    %c0_i32_1 = arith.constant 0 : i32
    %c0_i32_2 = arith.constant 0 : i32
    return %c0_i32, %c0_i32_0, %c0_i32_1 : i32, i32, i32
  }
  func.func @transform_2(%arg0: i32) -> (i32, i32, i32) {
    %c0_i32 = arith.constant 0 : i32
    %c0_i32_0 = arith.constant 0 : i32
    %c0_i32_1 = arith.constant 0 : i32
    return %arg0, %c0_i32, %c0_i32_0 : i32, i32, i32
  }
  func.func @transform_3(%arg0: i32) -> (i32, i32, i32) {
    %c0_i32 = arith.constant 0 : i32
    %c0_i32_0 = arith.constant 0 : i32
    %c0_i32_1 = arith.constant 0 : i32
    %c0_i32_2 = arith.constant 0 : i32
    return %c0_i32, %c0_i32_0, %c0_i32_1 : i32, i32, i32
  }
  func.func @transform_4(%arg0: i32) -> (i32, i32, i32) {
    %c0_i32 = arith.constant 0 : i32
    %c0_i32_0 = arith.constant 0 : i32
    %c0_i32_1 = arith.constant 0 : i32
    %c0_i32_2 = arith.constant 0 : i32
    return %c0_i32, %c0_i32_0, %c0_i32_1 : i32, i32, i32
  }
  func.func @transform_5(%arg0: i32) -> (i32, i32, i32) {
    %c0_i32 = arith.constant 0 : i32
    %c0_i32_0 = arith.constant 0 : i32
    %c0_i32_1 = arith.constant 0 : i32
    %c0_i32_2 = arith.constant 0 : i32
    return %c0_i32, %c0_i32_0, %c0_i32_1 : i32, i32, i32
  }
  func.func @transform_6(%arg0: i32) -> (i32, i32, i32) {
    %c0_i32 = arith.constant 0 : i32
    %c0_i32_0 = arith.constant 0 : i32
    %c0_i32_1 = arith.constant 0 : i32
    %c0_i32_2 = arith.constant 0 : i32
    return %c0_i32, %c0_i32_0, %c0_i32_1 : i32, i32, i32
  }
  func.func @transform_7(%arg0: i32) -> (i32, i32, i32) {
    %c0_i32 = arith.constant 0 : i32
    %c0_i32_0 = arith.constant 0 : i32
    %c0_i32_1 = arith.constant 0 : i32
    %c0_i32_2 = arith.constant 0 : i32
    return %c0_i32, %c0_i32_0, %c0_i32_1 : i32, i32, i32
  }
  func.func @transform_8(%arg0: i32) -> (i32, i32, i32) {
    %c0_i32 = arith.constant 0 : i32
    %c0_i32_0 = arith.constant 0 : i32
    %c0_i32_1 = arith.constant 0 : i32
    %c0_i32_2 = arith.constant 0 : i32
    return %c0_i32, %c0_i32_0, %c0_i32_1 : i32, i32, i32
  }
  func.func @transform_9(%arg0: i32) -> (i32, i32) {
    %c0_i32 = arith.constant 0 : i32
    %c0_i32_0 = arith.constant 0 : i32
    %c0_i32_1 = arith.constant 0 : i32
    return %c0_i32, %c0_i32_0 : i32, i32
  }
  func.func @transform_10(%arg0: i32) -> (i32, i32) {
    %c0_i32 = arith.constant 0 : i32
    %c0_i32_0 = arith.constant 0 : i32
    %c0_i32_1 = arith.constant 0 : i32
    return %c0_i32, %c0_i32_0 : i32, i32
  }
  func.func @transform_11(%arg0: i32) -> (i32, i32) {
    %c0_i32 = arith.constant 0 : i32
    %c0_i32_0 = arith.constant 0 : i32
    %c0_i32_1 = arith.constant 0 : i32
    return %c0_i32, %c0_i32_0 : i32, i32
  }
  func.func @transform_12(%arg0: i32) -> (i32, i32, i32) {
    %c0_i32 = arith.constant 0 : i32
    %c0_i32_0 = arith.constant 0 : i32
    %c0_i32_1 = arith.constant 0 : i32
    return %arg0, %c0_i32, %c0_i32_0 : i32, i32, i32
  }
  func.func @transform_13(%arg0: i32) -> (i32, i32, i32) {
    %c0_i32 = arith.constant 0 : i32
    %c0_i32_0 = arith.constant 0 : i32
    %c0_i32_1 = arith.constant 0 : i32
    return %arg0, %c0_i32, %c0_i32_0 : i32, i32, i32
  }
}

</mosaic_0001>

<bundles_post_ra>
// kernel: codet5_enc_forward.1
= control target key start
LH: loop header
LB: loop body
LE: loop exit
PB: predicated region body
PF: predicated region fallthrough
CT: control target
= control target key end

     0   :  { %s15236_s0 = inlined_call_operand.vmem [shape: bf16[256,128], index: 0, kind: input, shape index: {}]   ;;  %s15237_s1 = inlined_call_operand.vmem [shape: bf16[4,128,128], index: 1, kind: input, shape index: {}]   ;;  %s15238_s2 = inlined_call_operand.vmem [shape: bf16[2,1,128], index: 2, kind: input, shape index: {}]   ;;  %s15239_s3 = inlined_call_operand.vmem [shape: f32[2,1,128], index: 3, kind: input, shape index: {}]   ;;  %s15240_s4 = inlined_call_operand.vmem [shape: bf16[2,128,384], index: 4, kind: input, shape index: {}]   ;;  %s15241_s5 = inlined_call_operand.vmem [shape: bf16[8,32,128], index: 5, kind: input, shape index: {}]   ;;  %s15242_s6 = inlined_call_operand.vmem [shape: f32[2,1,128], index: 6, kind: input, shape index: {}]   ;;  %s15243_s7 = inlined_call_operand.vmem [shape: bf16[2,128,256], index: 7, kind: input, shape index: {}]   ;;  %s15244_s8 = inlined_call_operand.vmem [shape: bf16[2,256,128], index: 8, kind: input, shape index: {}]   ;;  %s15245_s9 = inlined_call_operand.vmem [shape: f32[1,128], index: 9, kind: input, shape index: {}]   ;;  %s15246_s10 = inlined_call_operand.vmem [shape: f32[128,128], index: 10, kind: input, shape index: {}]   ;;  %s15247_s11 = inlined_call_operand.vmem [shape: f32[1,128], index: 11, kind: input, shape index: {}]   ;;  %s15248_s12 = inlined_call_operand.hbm [shape: f32[2,1,128], index: 12, kind: output, shape index: {0}]   ;;  %s15249_s13 = inlined_call_operand.hbm [shape: f32[2,1,128], index: 13, kind: output, shape index: {1}]  }
   0x1   :  { %15274 = sst [smem:[#allocation27_spill]] %s15236_s0 }
   0x2   :  { %15275 = sst [smem:[#allocation28_spill]] %s15237_s1 }
   0x3   :  { %15276 = sst [smem:[#allocation29_spill]] %s15238_s2 }
   0x4   :  { %15277 = sst [smem:[#allocation30_spill]] %s15239_s3 }
   0x5   :  { %15278 = sst [smem:[#allocation31_spill]] %s15240_s4 }
   0x6   :  { %19 = vsyncpa [#allocation5], 0 }
   0x7   :  { %21 = vsyncpa [#allocation5 + $0x1], 0 }
   0x8   :  { %22 = vsyncpa [#allocation7], 0 }
   0x9   :  { %24 = vsyncpa [#allocation7 + $0x1], 0  ;;  %s11045_s25 = smov 0   ;;  %s11047_s26 = smov 0  }
   0xa   :  { %s11049_s27 = smov 0   ;;  %s11051_s28 = smov 0  }
   0xb LB: > { %15279 = sst [smem:[#allocation10_spill]] %s10965_s27  ;;  %s11066_s29 = sadd.s32 4294967295, %s10969_s28   ;;  %s10969_s28 = sphi %s11051_s28, %s15360_s28   ;;  %s10965_s27 = sphi %s11049_s27, %s15357_s27   ;;  %s10961_s26 = sphi %s11047_s26, %s15359_s26   ;;  %s10957_s25 = sphi %s11045_s25, %s15358_s25  }
   0xc   : > { %s8206_s30 = sadd.s32 4294967294, %s10969_s28   ;;  %s11070_s14 = sadd.s32 1, %s10969_s28  }
   0xd   : > { %s299_s15 = sadd.s32 1, %s10965_s27  ;;  %s296_s16 = ssub.s32 %s10969_s28, %s11070_s14 }
   0xe   : > { %p309_p0 = scmp.ne.s32.totalorder %s10965_s27, %s10961_s26  ;;  %p297_p1 = scmp.eq.s32.totalorder %s296_s16, 0 }
   0xf   : > { %p310_p2 = scmp.eq.s32.totalorder %s11066_s29, 1  ;;  %p315_p3 = scmp.ne.s32.totalorder %s10961_s26, %s10957_s25 }
  0x10   : > { %p316_p4 = scmp.eq.s32.totalorder %s8206_s30, 1  ;;  %p8209_p7 = scmp.ge.s32.totalorder %s10969_s28, 1 }
  0x11   : > { %s11081_s17 = scalar_select %p297_p1, %s10965_s27, %s299_s15  }
  0x12   : > { %p11083_p5 = por %p310_p2, %p309_p0  ;;  %p11087_p6 = por %p316_p4, %p315_p3 }
  0x13   : > { %15280 = sst [smem:[#allocation11_spill]] %s11081_s17  ;;  %p405_p8 = scmp.lt.s32.totalorder %s10969_s28, 3 }
  0x15   : > { %p406_p9 = pnand %p8209_p7, %p405_p8 }
  0x17   : > { %409 = sbr.rel (%p406_p9) target bundleno = 5227 (0x146b), region = 68 }
  0x1c   : > { %s8210_s20 = sshll.u32 %s11066_s29, 4  ;;  %s15283_s0 = sld [smem:[#allocation27_spill]]  ;;  %v10971_v55 = vmov 128.0  }
  0x1d   : > { %p456_p10 = scmp.lt.s32.totalorder %s8210_s20, 31  ;;  %s15284_s4 = sld [smem:[#allocation31_spill]]  ;;  %10231 = vrcp.f32 %v10971_v55 }
  0x1e   : > { %s15288_s3 = sld [smem:[#allocation30_spill]]  ;;  %s15267_s30 = smov 32  }
  0x1f   : > { %s15362_s20 = smov (!%p456_p10, %s8210_s20), 31  ;;  %s15271_s15 = smov 64  }
  0x20   : > { %s8211_s21 = sshll.u32 %s15362_s20, 2  ;;  %p461_p11 = scmp.lt.s32.totalorder %s11066_s29, 1 }
  0x21   : > { %s15316_s2 = sld [smem:[#allocation29_spill]]  ;;  %s15341_s20 = smov 96  }
  0x22   : > { %s459_s24 = scalar_lea.vmem %s15283_s0, %s8211_s21  ;;  %s15317_s1 = sld [smem:[#allocation28_spill]] }
  0x23   : > { %v467_v0 = vld [vmem:[%s459_s24 + $0x8] sm:$0xff]   ;;  %v465_v1 = vld [vmem:[%s459_s24] sm:$0xff]   ;;  %v469_v2 = vld [vmem:[%s459_s24 + $0x10] sm:$0xff]   ;;  %s462_s16 = scalar_select %p461_p11, %s11066_s29, 1 }
  0x24   : > { %483 = vst [vmem:[#allocation2 + $0x8] sm:$0xff] %v467_v0   ;;  %v471_v3 = vld [vmem:[%s459_s24 + $0x18] sm:$0xff]   ;;  %v473_v4 = vld [vmem:[%s459_s24 + $0x20] sm:$0xff]   ;;  %v475_v5 = vld [vmem:[%s459_s24 + $0x28] sm:$0xff]   ;;  %s15342_s21 = smov 32   ;;  %s15182_s22 = sand.u32 1, %s10961_s26  }
  0x25   : > { %481 = vst [vmem:[#allocation2] sm:$0xff] %v465_v1   ;;  %v477_v6 = vld [vmem:[%s459_s24 + $0x30] sm:$0xff]   ;;  %v479_v18 = vld [vmem:[%s459_s24 + $0x38] sm:$0xff]   ;;  %v8298_v48 = vld [vmem:[%s15284_s4 + $0xa8] sm:$0xf]  ;;  %s15269_s24 = smov 96  }
  0x26   : > { %485 = vst [vmem:[#allocation2 + $0x10] sm:$0xff] %v469_v2   ;;  %v9274_v49 = vld [vmem:[%s15284_s4 + $0xb0] sm:$0xf0]  ;;  %v9273_v50 = vld [vmem:[%s15284_s4 + $0xac] sm:$0xf] }
  0x27   : > { %487 = vst [vmem:[#allocation2 + $0x18] sm:$0xff] %v471_v3   ;;  %v8299_v51 = vor.u32 %v9274_v49, %v8298_v48  ;;  %v8300_v52 = vld [vmem:[%s15284_s4 + $0xb4] sm:$0xf0]  ;;  %v8306_v53 = vld [vmem:[%s15284_s4 + $0xb0] sm:$0xf]  ;;  %v11197_v3 = vpop.eup %10231  ;;  %s463_s0 = scalar_lea.vmem %s15316_s2, %s462_s16  ;;  %s15340_s16 = smov 64  }
  0x28   : > { %489 = vst [vmem:[#allocation2 + $0x20] sm:$0xff] %v473_v4   ;;  %v9275_v54 = vld [vmem:[%s15284_s4 + $0xb8] sm:$0xf0]  ;;  %v8303_v56 = vor.u32 %v9273_v50, %v8300_v52  ;;  %v8286_v58 = vld [vmem:[%s15284_s4 + $0x90] sm:$0xf]  ;;  %vm585_vm0 = vweird.f32 %v11197_v3  ;;  %s10895_s2 = scalar_lea.hbm %s15248_s12, 2 }
  0x29   : > { %491 = vst [vmem:[#allocation2 + $0x28] sm:$0xff] %v475_v5   ;;  %v8307_v57 = vor.u32 %v9275_v54, %v8306_v53  ;;  %982 = vmatpush.bf16.msra.mxu0 %v8299_v51  ;;  %v9271_v59 = vld [vmem:[%s15284_s4 + $0x98] sm:$0xf0]  ;;  %v9270_v60 = vld [vmem:[%s15284_s4 + $0x94] sm:$0xf] }
  0x2a   : > { %493 = vst [vmem:[#allocation2 + $0x30] sm:$0xff] %v477_v6   ;;  %1031 = vmatpush.bf16.msra.mxu1 %v8303_v56  ;;  %v8287_v61 = vor.u32 %v9271_v59, %v8286_v58  ;;  %v8288_v62 = vld [vmem:[%s15284_s4 + $0x9c] sm:$0xf0]  ;;  %v8294_v63 = vld [vmem:[%s15284_s4 + $0x98] sm:$0xf]  ;;  %10168 = vmatpush.bf16.msra.mxu3 %v8303_v56 }
  0x2b   : > { %v10036_v7 = vld [vmem:[#allocation2 + $0x8] sm:$0xff]   ;;  %495 = vst [vmem:[#allocation2 + $0x38] sm:$0xff] %v479_v18   ;;  %1080 = vmatpush.bf16.msra.mxu2 %v8307_v57  ;;  %v9272_v0 = vld [vmem:[%s15284_s4 + $0xa0] sm:$0xf0]  ;;  %v8291_v1 = vor.u32 %v9270_v60, %v8288_v62  ;;  %v8274_v4 = vld [vmem:[%s15284_s4 + $0x78] sm:$0xf] }
  0x2c   : > { %v11097_v8 = vunpack.c.l.bf16 %v10036_v7  ;;  %v9429_v9 = vld [vmem:[#allocation2] sm:$0xff]   ;;  %v11107_v15 = vunpack.c.h.bf16 %v10036_v7  ;;  %v8295_v2 = vor.u32 %v9272_v0, %v8294_v63  ;;  %v9267_v6 = vld [vmem:[%s15284_s4 + $0x7c] sm:$0xf]  ;;  %v581_v18 = vmul.f32 128.0, %v11197_v3  ;;  %v8238_v50 = vld [vmem:[%s15284_s4 + $0x30] sm:$0xf] }
  0x2d   : > { %v11099_v10 = vunpack.c.l.bf16 %v9429_v9  ;;  %v10037_v11 = vld [vmem:[#allocation2 + $0x10] sm:$0xff]   ;;  %v11111_v17 = vunpack.c.h.bf16 %v9429_v9  ;;  %983 = vmatpush.bf16.msra.mxu0 %v8287_v61  ;;  %v9268_v5 = vld [vmem:[%s15284_s4 + $0x80] sm:$0xf0]  ;;  %v8276_v9 = vld [vmem:[%s15284_s4 + $0x84] sm:$0xf0] }
  0x2e   : > { %v534_v12 = vmul.f32 %v11097_v8, %v11097_v8  ;;  %v11103_v13 = vunpack.c.l.bf16 %v10037_v11  ;;  %v11113_v19 = vunpack.c.h.bf16 %v10037_v11  ;;  %v535_v20 = vmul.f32 %v11107_v15, %v11107_v15  ;;  %v10038_v23 = vld [vmem:[#allocation2 + $0x18] sm:$0xff]   ;;  %1032 = vmatpush.bf16.msra.mxu1 %v8291_v1  ;;  %v8282_v11 = vld [vmem:[%s15284_s4 + $0x80] sm:$0xf]  ;;  %10169 = vmatpush.bf16.msra.mxu3 %v8291_v1  ;;  %v9258_v52 = vld [vmem:[%s15284_s4 + $0x34] sm:$0xf] }
  0x2f   : > { %v532_v14 = vmul.f32 %v11099_v10, %v11099_v10  ;;  %v533_v21 = vmul.f32 %v11111_v17, %v11111_v17  ;;  %v10039_v24 = vld [vmem:[#allocation2 + $0x20] sm:$0xff]   ;;  %v11121_v25 = vunpack.c.h.bf16 %v10038_v23  ;;  %v11123_v26 = vunpack.c.l.bf16 %v10038_v23  ;;  %1081 = vmatpush.bf16.msra.mxu2 %v8295_v2  ;;  %v9259_v51 = vld [vmem:[%s15284_s4 + $0x38] sm:$0xf0]  ;;  %v8246_v55 = vld [vmem:[%s15284_s4 + $0x38] sm:$0xf] }
  0x30   : > { %552 = vadd.xlane.f32.xlu1 %v534_v12  ;;  %v536_v16 = vmul.f32 %v11103_v13, %v11103_v13  ;;  %v537_v22 = vmul.f32 %v11113_v19, %v11113_v19  ;;  %v11125_v27 = vunpack.c.l.bf16 %v10039_v24  ;;  %v10040_v30 = vld [vmem:[#allocation2 + $0x28] sm:$0xff]   ;;  %v11135_v33 = vunpack.c.h.bf16 %v10039_v24  ;;  %v8264_v24 = vld [vmem:[%s15284_s4 + $0x6c] sm:$0xf0]  ;;  %v8240_v54 = vld [vmem:[%s15284_s4 + $0x3c] sm:$0xf0] }
  0x31   : > { %548 = vadd.xlane.f32.xlu0 %v532_v14  ;;  %v539_v28 = vmul.f32 %v11121_v25, %v11121_v25  ;;  %v538_v29 = vmul.f32 %v11123_v26, %v11123_v26  ;;  %v11133_v32 = vunpack.c.l.bf16 %v10040_v30  ;;  %v11137_v34 = vunpack.c.h.bf16 %v10040_v30  ;;  %v10041_v37 = vld [vmem:[#allocation2 + $0x30] sm:$0xff]   ;;  %v9269_v12 = vld [vmem:[%s15284_s4 + $0x88] sm:$0xf0]  ;;  %v9260_v56 = vld [vmem:[%s15284_s4 + $0x40] sm:$0xf0] }
  0x32   : > { %556 = vadd.xlane.f32.xlu2 %v536_v16  ;;  %v540_v31 = vmul.f32 %v11125_v27, %v11125_v27  ;;  %v541_v36 = vmul.f32 %v11135_v33, %v11135_v33  ;;  %v10042_v39 = vld [vmem:[#allocation2 + $0x38] sm:$0xff]   ;;  %v11145_v40 = vunpack.c.h.bf16 %v10041_v37  ;;  %v11147_v41 = vunpack.c.l.bf16 %v10041_v37  ;;  %v9262_v37 = vld [vmem:[%s15284_s4 + $0x50] sm:$0xf0]  ;;  %v9256_v61 = vld [vmem:[%s15284_s4 + $0x20] sm:$0xf0] }
  0x33   : > { %v542_v35 = vmul.f32 %v11133_v32, %v11133_v32  ;;  %v543_v38 = vmul.f32 %v11137_v34, %v11137_v34  ;;  %v11149_v42 = vunpack.c.l.bf16 %v10042_v39  ;;  %v11157_v46 = vunpack.c.h.bf16 %v10042_v39  ;;  %v8226_v60 = vld [vmem:[%s15284_s4 + $0x18] sm:$0xf]  ;;  %v9255_v62 = vld [vmem:[%s15284_s4 + $0x1c] sm:$0xf]  ;;  %v8228_v0 = vld [vmem:[%s15284_s4 + $0x24] sm:$0xf0] }
  0x34   : > { %v545_v43 = vmul.f32 %v11145_v40, %v11145_v40  ;;  %v544_v44 = vmul.f32 %v11147_v41, %v11147_v41  ;;  %v8275_v7 = vor.u32 %v9268_v5, %v8274_v4  ;;  %v8279_v14 = vor.u32 %v9267_v6, %v8276_v9  ;;  %v8234_v1 = vld [vmem:[%s15284_s4 + $0x20] sm:$0xf]  ;;  %v9257_v2 = vld [vmem:[%s15284_s4 + $0x28] sm:$0xf0] }
  0x35   : > { %v546_v45 = vmul.f32 %v11149_v42, %v11149_v42  ;;  %v547_v47 = vmul.f32 %v11157_v46, %v11157_v46  ;;  %v8283_v16 = vor.u32 %v9269_v12, %v8282_v11  ;;  %v8239_v53 = vor.u32 %v9259_v51, %v8238_v50  ;;  %v8214_v9 = vld [vmem:[%s15284_s4] sm:$0xf]  ;;  %v9253_v11 = vld [vmem:[%s15284_s4 + $0x8] sm:$0xf0]  ;;  %v9252_v12 = vld [vmem:[%s15284_s4 + $0x4] sm:$0xf] }
  0x36   : > { %984 = vmatpush.bf16.msra.mxu0 %v8275_v7  ;;  %1033 = vmatpush.bf16.msra.mxu1 %v8279_v14  ;;  %v8243_v57 = vor.u32 %v9258_v52, %v8240_v54  ;;  %v8247_v58 = vor.u32 %v9260_v56, %v8246_v55  ;;  %v8227_v63 = vor.u32 %v9256_v61, %v8226_v60 }
  0x37   : > { %1082 = vmatpush.bf16.msra.mxu2 %v8283_v16  ;;  %10170 = vmatpush.bf16.msra.mxu3 %v8279_v14  ;;  %v8231_v4 = vor.u32 %v9255_v62, %v8228_v0  ;;  %v8235_v5 = vor.u32 %v9257_v2, %v8234_v1  ;;  %v8215_v16 = vor.u32 %v9253_v11, %v8214_v9 }
  0x38   : > { %554 = vadd.xlane.f32.xlu1 %v535_v20  ;;  %v8262_v20 = vld [vmem:[%s15284_s4 + $0x60] sm:$0xf] }
  0x39   : > { %550 = vadd.xlane.f32.xlu0 %v533_v21  ;;  %v9265_v21 = vld [vmem:[%s15284_s4 + $0x68] sm:$0xf0] }
  0x3a   : > { %558 = vadd.xlane.f32.xlu2 %v537_v22  ;;  %v9264_v22 = vld [vmem:[%s15284_s4 + $0x64] sm:$0xf]  ;;  %v8263_v23 = vor.u32 %v9265_v21, %v8262_v20  ;;  %v9254_v20 = vld [vmem:[%s15284_s4 + $0x10] sm:$0xf0] }
  0x3b   : > { %v8267_v30 = vor.u32 %v9264_v22, %v8264_v24 }
  0x3c   : > { %985 = vmatpush.bf16.msra.mxu0 %v8263_v23 }
  0x3d   : > { %1034 = vmatpush.bf16.msra.mxu1 %v8267_v30  ;;  %10171 = vmatpush.bf16.msra.mxu3 %v8267_v30 }
  0x40   : > { %562 = vadd.xlane.f32.xlu1 %v539_v28  ;;  %v8270_v28 = vld [vmem:[%s15284_s4 + $0x68] sm:$0xf] }
  0x41   : > { %560 = vadd.xlane.f32.xlu0 %v538_v29  ;;  %v9266_v29 = vld [vmem:[%s15284_s4 + $0x70] sm:$0xf0] }
  0x42   : > { %564 = vadd.xlane.f32.xlu2 %v540_v31  ;;  %v8271_v31 = vor.u32 %v9266_v29, %v8270_v28 }
  0x44   : > { %1083 = vmatpush.bf16.msra.mxu2 %v8271_v31 }
  0x48   : > { %568 = vadd.xlane.f32.xlu1 %v542_v35  ;;  %v582_v35 = vsub.f32 1.0, %v581_v18  ;;  %v8222_v18 = vld [vmem:[%s15284_s4 + $0x8] sm:$0xf] }
  0x49   : > { %566 = vadd.xlane.f32.xlu0 %v541_v36  ;;  %v8250_v36 = vld [vmem:[%s15284_s4 + $0x48] sm:$0xf]  ;;  %v8223_v24 = vor.u32 %v9254_v20, %v8222_v18 }
  0x4a   : > { %570 = vadd.xlane.f32.xlu2 %v543_v38  ;;  %v9261_v38 = vld [vmem:[%s15284_s4 + $0x4c] sm:$0xf]  ;;  %v8251_v39 = vor.u32 %v9262_v37, %v8250_v36  ;;  %v583_v49 = vmul.f32 %v11197_v3, %v582_v35 }
  0x4c   : > { %986 = vmatpush.bf16.msra.mxu0 %v8251_v39  ;;  %v584_v59 = vadd.f32 %v11197_v3, %v583_v49 }
  0x4e   : > { %v11294_v6 = vsel %vm585_vm0, %v11197_v3, %v584_v59  ;;  %v8216_v3 = vld [vmem:[%s15284_s4 + $0xc] sm:$0xf0] }
  0x4f   : > { %15285 = vst [vmem:[#allocation12_spill] sm:$0xff] %v11294_v6  ;;  %v8219_v23 = vor.u32 %v9252_v12, %v8216_v3 }
  0x50   : > { %574 = vadd.xlane.f32.xlu1 %v545_v43  ;;  %v8252_v43 = vld [vmem:[%s15284_s4 + $0x54] sm:$0xf0]  ;;  %987 = vmatpush.bf16.msra.mxu0 %v8239_v53 }
  0x51   : > { %572 = vadd.xlane.f32.xlu0 %v544_v44  ;;  %v8258_v44 = vld [vmem:[%s15284_s4 + $0x50] sm:$0xf] }
  0x52   : > { %576 = vadd.xlane.f32.xlu2 %v546_v45  ;;  %v9263_v45 = vld [vmem:[%s15284_s4 + $0x58] sm:$0xf0] }
  0x53   : > { %v8259_v48 = vor.u32 %v9263_v45, %v8258_v44 }
  0x54   : > { %988 = vmatpush.bf16.msra.mxu0 %v8227_v63 }
  0x55   : > { %1084 = vmatpush.bf16.msra.mxu2 %v8259_v48 }
  0x58   : > { %989 = vmatpush.bf16.msra.mxu0 %v8215_v16 }
  0x59   : > { %578 = vadd.xlane.f32.xlu0 %v547_v47  ;;  %v8255_v47 = vor.u32 %v9261_v38, %v8252_v43  ;;  %1085 = vmatpush.bf16.msra.mxu2 %v8247_v58 }
  0x5b   : > { %1035 = vmatpush.bf16.msra.mxu1 %v8255_v47  ;;  %10172 = vmatpush.bf16.msra.mxu3 %v8255_v47 }
  0x5d   : > { %1086 = vmatpush.bf16.msra.mxu2 %v8235_v5 }
  0x5f   : > { %1036 = vmatpush.bf16.msra.mxu1 %v8243_v57  ;;  %10173 = vmatpush.bf16.msra.mxu3 %v8243_v57 }
  0x61   : > { %1087 = vmatpush.bf16.msra.mxu2 %v8223_v24 }
  0x63   : > { %1037 = vmatpush.bf16.msra.mxu1 %v8231_v4  ;;  %10174 = vmatpush.bf16.msra.mxu3 %v8231_v4 }
  0x67   : > { %1038 = vmatpush.bf16.msra.mxu1 %v8219_v23  ;;  %10175 = vmatpush.bf16.msra.mxu3 %v8219_v23 }
  0xa3   : > { %v553_v7 = vpop.xlane.xlu1 %552 }
  0xa4   : > { %v549_v14 = vpop.xlane.xlu0 %548  ;;  %v589_v28 = vmul.f32 %v11294_v6, %v553_v7 }
  0xa5   : > { %v587_v21 = vmul.f32 %v11294_v6, %v549_v14  ;;  %v557_v22 = vpop.xlane.xlu2 %556 }
  0xa6   : > { %v11316_v30 = vadd.f32 1e-06, %v589_v28  ;;  %v591_v37 = vmul.f32 %v11294_v6, %v557_v22 }
  0xa7   : > { %v603_v29 = vadd.f32 1e-06, %v587_v21 }
  0xa8   : > { %v11325_v48 = vadd.f32 1e-06, %v591_v37  ;;  %vm645_vm9 = vweird.f32 %v11316_v30 }
  0xa9   : > { %10233 = vrsqrt.f32 %v603_v29  ;;  %vm625_vm2 = vweird.f32 %v603_v29 }
  0xaa   : > { %10235 = vrsqrt.f32 %v11316_v30  ;;  %vm665_vm14 = vweird.f32 %v11325_v48 }
  0xab   : > { %v555_v31 = vpop.xlane.xlu1 %554 }
  0xac   : > { %v590_v35 = vmul.f32 %v11294_v6, %v555_v31  ;;  %v551_v36 = vpop.xlane.xlu0 %550 }
  0xad   : > { %v588_v38 = vmul.f32 %v11294_v6, %v551_v36  ;;  %v559_v39 = vpop.xlane.xlu2 %558  ;;  %v11365_v36 = vld [vmem:[%s15288_s3] ss:$0 sm:$0xff] }
  0xae   : > { %v11322_v43 = vadd.f32 1e-06, %v590_v35  ;;  %v592_v53 = vmul.f32 %v11294_v6, %v559_v39 }
  0xaf   : > { %v10234_v44 = vpop.eup %10233  ;;  %v604_v45 = vadd.f32 1e-06, %v588_v38 }
  0xb0   : > { %v620_v47 = vmul.f32 %v10234_v44, %v603_v29  ;;  %10237 = vrsqrt.f32 %v11322_v43  ;;  %v11327_v50 = vpop.eup %10235  ;;  %v11338_v63 = vadd.f32 1e-06, %v592_v53  ;;  %vm626_vm1 = vweird.f32 %v10234_v44 }
  0xb1   : > { %10239 = vrsqrt.f32 %v604_v45  ;;  %v640_v59 = vmul.f32 %v11327_v50, %v11316_v30  ;;  %vm11346_vm3 = vmor %vm625_vm2, %vm626_vm1  ;;  %vm635_vm5 = vweird.f32 %v604_v45  ;;  %vm655_vm7 = vweird.f32 %v11322_v43 }
  0xb2   : > { %v621_v49 = vmul.f32 %v10234_v44, %v620_v47  ;;  %10241 = vrsqrt.f32 %v11325_v48  ;;  %vm646_vm10 = vweird.f32 %v11327_v50 }
  0xb3   : > { %v563_v54 = vpop.xlane.xlu1 %562  ;;  %v641_v4 = vmul.f32 %v11327_v50, %v640_v59  ;;  %10243 = vrsqrt.f32 %v11338_v63  ;;  %vm11422_vm0 = vmor %vm645_vm9, %vm646_vm10 }
  0xb4   : > { %v622_v51 = vmul.f32 0.5, %v621_v49  ;;  %v561_v52 = vpop.xlane.xlu0 %560 }
  0xb5   : > { %v565_v55 = vpop.xlane.xlu2 %564  ;;  %v642_v22 = vmul.f32 0.5, %v641_v4 }
  0xb6   : > { %v11331_v56 = vpop.eup %10237  ;;  %v623_v57 = vsub.f32 1.5, %v622_v51  ;;  %v595_v62 = vmul.f32 %v11294_v6, %v565_v55  ;;  %v593_v55 = vmul.f32 %v11294_v6, %v561_v52 }
  0xb7   : > { %v10240_v58 = vpop.eup %10239  ;;  %v650_v60 = vmul.f32 %v11331_v56, %v11322_v43  ;;  %vm656_vm8 = vweird.f32 %v11331_v56 }
  0xb8   : > { %v630_v61 = vmul.f32 %v10240_v58, %v604_v45  ;;  %v11340_v0 = vpop.eup %10241  ;;  %v624_v1 = vmul.f32 %v10234_v44, %v623_v57  ;;  %v11344_v9 = vadd.f32 1e-06, %v595_v62  ;;  %vm636_vm4 = vweird.f32 %v10240_v58  ;;  %vm11404_vm11 = vmor %vm655_vm7, %vm656_vm8 }
  0xb9   : > { %v651_v5 = vmul.f32 %v11331_v56, %v650_v60  ;;  %v660_v14 = vmul.f32 %v11340_v0, %v11325_v48  ;;  %vm637_vm6 = vmor %vm635_vm5, %vm636_vm4  ;;  %v11369_v39 = vpop.eup %10243  ;;  %v594_v45 = vmul.f32 %v11294_v6, %v563_v54  ;;  %vm666_vm15 = vweird.f32 %v11340_v0 }
  0xba   : > { %v631_v2 = vmul.f32 %v10240_v58, %v630_v61  ;;  %v628_v21 = vsel %vm11346_vm3, %v10234_v44, %v624_v1  ;;  %10245 = vrsqrt.f32 %v11344_v9  ;;  %v670_v54 = vmul.f32 %v11369_v39, %v11338_v63  ;;  %vm11497_vm9 = vmor %vm665_vm14, %vm666_vm15 }
  0xbb   : > { %v569_v18 = vpop.xlane.xlu1 %568  ;;  %v652_v24 = vmul.f32 0.5, %v651_v5  ;;  %v779_v35 = vmul.f32 %v11099_v10, %v628_v21  ;;  %v661_v37 = vmul.f32 %v11340_v0, %v660_v14  ;;  %v643_v10 = vsub.f32 1.5, %v642_v22 }
  0xbc   : > { %v632_v7 = vmul.f32 0.5, %v631_v2  ;;  %v567_v11 = vpop.xlane.xlu0 %566  ;;  %v597_v31 = vmul.f32 %v11294_v6, %v569_v18  ;;  %v11393_v52 = vadd.f32 1e-06, %v594_v45  ;;  %v11408_v5 = vadd.f32 1e-06, %v593_v55 }
  0xbd   : > { %v596_v16 = vmul.f32 %v11294_v6, %v567_v11  ;;  %v571_v3 = vpop.xlane.xlu2 %570  ;;  %v653_v49 = vsub.f32 1.5, %v652_v24  ;;  %v798_v57 = vmul.f32 %v11365_v36, %v779_v35  ;;  %vm705_vm12 = vweird.f32 %v11344_v9 }
  0xbe   : > { %v633_v20 = vsub.f32 1.5, %v632_v7  ;;  %v598_v29 = vmul.f32 %v11294_v6, %v571_v3  ;;  %v11378_v53 = vadd.f32 1e-06, %v597_v31  ;;  %v644_v11 = vmul.f32 %v11327_v50, %v643_v10 }
  0xbf   : > { %v11357_v23 = vadd.f32 1e-06, %v596_v16  ;;  %v654_v1 = vmul.f32 %v11331_v56, %v653_v49  ;;  %v671_v43 = vmul.f32 %v11369_v39, %v670_v54  ;;  %vm675_vm5 = vweird.f32 %v11338_v63 }
  0xc0   : > { %v634_v28 = vmul.f32 %v10240_v58, %v633_v20  ;;  %v11374_v47 = vpop.eup %10245  ;;  %v11376_v51 = vadd.f32 1e-06, %v598_v29  ;;  %v648_v45 = vsel %vm11422_vm0, %v11327_v50, %v644_v11  ;;  %vm725_vm10 = vweird.f32 %v11378_v53 }
  0xc1   : > { %10247 = vrsqrt.f32 %v11357_v23  ;;  %v700_v59 = vmul.f32 %v11374_v47, %v11344_v9  ;;  %vm706_vm13 = vweird.f32 %v11374_v47  ;;  %vm715_vm1 = vweird.f32 %v11357_v23 }
  0xc2   : > { %v638_v38 = vsel %vm637_vm6, %v10240_v58, %v634_v28  ;;  %10249 = vrsqrt.f32 %v11376_v51  ;;  %vm11435_vm2 = vmor %vm705_vm12, %vm706_vm13  ;;  %v658_v28 = vsel %vm11404_vm11, %v11331_v56, %v654_v1  ;;  %vm676_vm6 = vweird.f32 %v11369_v39 }
  0xc3   : > { %v780_v44 = vmul.f32 %v11111_v17, %v638_v38  ;;  %v11386_v17 = vmul.f32 0.5, %v661_v37  ;;  %v701_v62 = vmul.f32 %v11374_v47, %v700_v59  ;;  %10251 = vrsqrt.f32 %v11378_v53  ;;  %v575_v16 = vpop.xlane.xlu1 %574  ;;  %vm11510_vm12 = vmor %vm675_vm5, %vm676_vm6 }
  0xc4   : > { %v573_v3 = vpop.xlane.xlu0 %572  ;;  %10253 = vrsqrt.f32 %v11393_v52  ;;  %v600_v21 = vmul.f32 %v11294_v6, %v575_v16  ;;  %v672_v38 = vmul.f32 0.5, %v671_v43  ;;  %v782_v49 = vmul.f32 %v11107_v15, %v658_v28 }
  0xc5   : > { %v799_v58 = vmul.f32 %v11365_v36, %v780_v44  ;;  %v702_v7 = vmul.f32 0.5, %v701_v62  ;;  %v663_v12 = vsub.f32 1.5, %v11386_v17  ;;  %v599_v29 = vmul.f32 %v11294_v6, %v573_v3 }
  0xc6   : > { %10255 = vrsqrt.f32 %v11408_v5  ;;  %v11450_v37 = vadd.f32 1e-06, %v600_v21  ;;  %v781_v15 = vmul.f32 %v11097_v8, %v648_v45  ;;  %v801_v1 = vmul.f32 %v11365_v36, %v782_v49 }
  0xc7   : > { %v11391_v60 = vpop.eup %10247  ;;  %v814_v61 = vpack.c.bf16 %v799_v58, %v798_v57  ;;  %v703_v20 = vsub.f32 1.5, %v702_v7  ;;  %v11472_v59 = vadd.f32 1e-06, %v599_v29  ;;  %v664_v8 = vmul.f32 %v11340_v0, %v663_v12 }
  0xc8   : > { %v710_v2 = vmul.f32 %v11391_v60, %v11357_v23  ;;  %v11429_v22 = vpop.eup %10249  ;;  %vm716_vm3 = vweird.f32 %v11391_v60  ;;  %10257 = vrsqrt.f32 %v11450_v37  ;;  %vm735_vm7 = vweird.f32 %v11376_v51 }
  0xc9   : > { %990 = vmatmul.bf16.vlgmr.msra.gmra.mxu0 %v814_v61  ;;  %1039 = vmatmul.bf16.vlgmr.msra.gmra.mxu1 %v814_v61  ;;  %v11444_v31 = vpop.eup %10251  ;;  %v704_v35 = vmul.f32 %v11374_v47, %v703_v20  ;;  %v730_v9 = vmul.f32 %v11429_v22, %v11376_v51  ;;  %vm11459_vm4 = vmor %vm715_vm1, %vm716_vm3  ;;  %10259 = vrsqrt.f32 %v11472_v59  ;;  %vm736_vm8 = vweird.f32 %v11429_v22 }
  0xca   : > { %1088 = vmatmul.bf16.vlgmr.msra.gmra.mxu2 %v814_v61  ;;  %v711_v14 = vmul.f32 %v11391_v60, %v710_v2  ;;  %v720_v56 = vmul.f32 %v11444_v31, %v11378_v53  ;;  %v11474_v17 = vpop.eup %10253  ;;  %vm726_vm11 = vweird.f32 %v11444_v31  ;;  %vm11517_vm13 = vmor %vm735_vm7, %vm736_vm8  ;;  %v668_v28 = vsel %vm11497_vm9, %v11340_v0, %v664_v8 }
  0xcb   : > { %v731_v55 = vmul.f32 %v11429_v22, %v730_v9  ;;  %v708_v57 = vsel %vm11435_vm2, %v11374_v47, %v704_v35  ;;  %v673_v47 = vsub.f32 1.5, %v672_v38  ;;  %v690_v24 = vmul.f32 %v11474_v17, %v11393_v52  ;;  %vm11530_vm14 = vmor %vm725_vm10, %vm726_vm11 }
  0xcc   : > { %v712_v30 = vmul.f32 0.5, %v711_v14  ;;  %v721_v58 = vmul.f32 %v11444_v31, %v720_v56  ;;  %v787_v23 = vmul.f32 %v11125_v27, %v708_v57  ;;  %v11483_v27 = vpop.eup %10255  ;;  %v579_v45 = vpop.xlane.xlu0 %578  ;;  %vm695_vm15 = vweird.f32 %v11393_v52 }
  0xcd   : > { %v732_v54 = vmul.f32 0.5, %v731_v55  ;;  %v674_v12 = vmul.f32 %v11369_v39, %v673_v47  ;;  %v680_v63 = vmul.f32 %v11483_v27, %v11408_v5  ;;  %v691_v55 = vmul.f32 %v11474_v17, %v690_v24 }
  0xce   : > { %v713_v44 = vsub.f32 1.5, %v712_v30  ;;  %v722_v61 = vmul.f32 0.5, %v721_v58  ;;  %v806_v7 = vmul.f32 %v11365_v36, %v787_v23  ;;  %v11491_v43 = vpop.eup %10257  ;;  %vm696_vm0 = vweird.f32 %v11474_v17 }
  0xcf   : > { %v733_v2 = vsub.f32 1.5, %v732_v54  ;;  %v750_v16 = vmul.f32 %v11491_v43, %v11450_v37  ;;  %v11524_v21 = vpop.eup %10259  ;;  %v678_v35 = vsel %vm11510_vm12, %v11369_v39, %v674_v12  ;;  %v602_v39 = vmul.f32 %v11294_v6, %v579_v45  ;;  %vm11577_vm7 = vmor %vm695_vm15, %vm696_vm0 }
  0xd0   : > { %v714_v50 = vmul.f32 %v11391_v60, %v713_v44  ;;  %v723_v11 = vsub.f32 1.5, %v722_v61  ;;  %v740_v29 = vmul.f32 %v11524_v21, %v11472_v59  ;;  %v577_v44 = vpop.xlane.xlu2 %576  ;;  %v681_v49 = vmul.f32 %v11483_v27, %v680_v63 }
  0xd1   : > { %v734_v14 = vmul.f32 %v11429_v22, %v733_v2  ;;  %v751_v9 = vmul.f32 %v11491_v43, %v750_v16  ;;  %v601_v10 = vmul.f32 %v11294_v6, %v577_v44  ;;  %v784_v58 = vmul.f32 %v11113_v19, %v678_v35 }
  0xd2   : > { %v718_v62 = vsel %vm11459_vm4, %v11391_v60, %v714_v50  ;;  %v724_v18 = vmul.f32 %v11444_v31, %v723_v11  ;;  %v741_v0 = vmul.f32 %v11524_v21, %v740_v29  ;;  %v11557_v50 = vadd.f32 1e-06, %v602_v39 }
  0xd3   : > { %v788_v4 = vmul.f32 %v11135_v33, %v718_v62  ;;  %v800_v33 = vmul.f32 %v11365_v36, %v781_v15  ;;  %v738_v38 = vsel %vm11517_vm13, %v11429_v22, %v734_v14  ;;  %v11555_v57 = vadd.f32 1e-06, %v601_v10 }
  0xd4   : > { %v728_v56 = vsel %vm11530_vm14, %v11444_v31, %v724_v18  ;;  %v783_v22 = vmul.f32 %v11103_v13, %v668_v28  ;;  %v790_v31 = vmul.f32 %v11137_v34, %v738_v38  ;;  %v752_v15 = vmul.f32 0.5, %v751_v9 }
  0xd5   : > { %v807_v51 = vmul.f32 %v11365_v36, %v788_v4  ;;  %v815_v53 = vpack.c.bf16 %v801_v1, %v800_v33  ;;  %v789_v23 = vmul.f32 %v11133_v32, %v728_v56  ;;  %v742_v54 = vmul.f32 0.5, %v741_v0 }
  0xd6   : > { %10261 = vrsqrt.f32 %v11555_v57  ;;  %v682_v47 = vmul.f32 0.5, %v681_v49  ;;  %v692_v61 = vmul.f32 0.5, %v691_v55  ;;  %v802_v62 = vmul.f32 %v11365_v36, %v783_v22 }
  0xd7   : > { %v11522_v20 = vpack.c.bf16 %v807_v51, %v806_v7  ;;  %10263 = vrsqrt.f32 %v11557_v50  ;;  %v803_v1 = vmul.f32 %v11365_v36, %v784_v58  ;;  %v808_v13 = vmul.f32 %v11365_v36, %v789_v23 }
  0xd8   : > { %v809_v19 = vmul.f32 %v11365_v36, %v790_v31  ;;  %v753_v32 = vsub.f32 1.5, %v752_v15  ;;  %v743_v34 = vsub.f32 1.5, %v742_v54  ;;  %v683_v2 = vsub.f32 1.5, %v682_v47 }
  0xd9   : > { %995 = vmatmul.bf16.gmra.mxu0 %v815_v53  ;;  %1044 = vmatmul.bf16.gmra.mxu1 %v815_v53  ;;  %v693_v4 = vsub.f32 1.5, %v692_v61  ;;  %vm755_vm1 = vweird.f32 %v11450_v37  ;;  %vm756_vm2 = vweird.f32 %v11491_v43  ;;  %vm745_vm3 = vweird.f32 %v11472_v59 }
  0xda   : > { %1093 = vmatmul.bf16.gmra.mxu2 %v815_v53  ;;  %1059 = vmatmul.bf16.vlgmr.msra.gmra.mxu3 %v11522_v20  ;;  %vm746_vm4 = vweird.f32 %v11524_v21  ;;  %vm685_vm5 = vweird.f32 %v11408_v5  ;;  %vm686_vm6 = vweird.f32 %v11483_v27  ;;  %v816_v11 = vpack.c.bf16 %v803_v1, %v802_v62  ;;  %vm11582_vm8 = vmor %vm755_vm1, %vm756_vm2 }
  0xdb   : > { %v819_v60 = vpack.c.bf16 %v809_v19, %v808_v13  ;;  %v754_v37 = vmul.f32 %v11491_v43, %v753_v32  ;;  %v744_v51 = vmul.f32 %v11524_v21, %v743_v34  ;;  %v684_v48 = vmul.f32 %v11483_v27, %v683_v2  ;;  %vm747_vm9 = vmor %vm745_vm3, %vm746_vm4 }
  0xdc   : > { %v10262_v7 = vpop.eup %10261  ;;  %v694_v14 = vmul.f32 %v11474_v17, %v693_v4  ;;  %vm687_vm10 = vmor %vm685_vm5, %vm686_vm6  ;;  %vm765_vm11 = vweird.f32 %v11555_v57  ;;  %vm775_vm13 = vweird.f32 %v11557_v50  ;;  %vm1353_vm1 = vcmask 261120  }
  0xdd   : > { %v10264_v8 = vpop.eup %10263  ;;  %v760_v12 = vmul.f32 %v10262_v7, %v11555_v57  ;;  %v748_v3 = vsel %vm747_vm9, %v11524_v21, %v744_v51  ;;  %v758_v18 = vsel %vm11582_vm8, %v11491_v43, %v754_v37  ;;  %v688_v63 = vsel %vm687_vm10, %v11483_v27, %v684_v48 }
  0xde   : > { %v770_v5 = vmul.f32 %v10264_v8, %v11557_v50  ;;  %v698_v59 = vsel %vm11577_vm7, %v11474_v17, %v694_v14  ;;  %v791_v24 = vmul.f32 %v11147_v41, %v748_v3  ;;  %v792_v30 = vmul.f32 %v11145_v40, %v758_v18 }
  0xdf   : > { %v761_v16 = vmul.f32 %v10262_v7, %v760_v12  ;;  %v785_v28 = vmul.f32 %v11123_v26, %v688_v63  ;;  %v786_v29 = vmul.f32 %v11121_v25, %v698_v59  ;;  %vm766_vm12 = vweird.f32 %v10262_v7 }
  0xe0   : > { %v771_v53 = vmul.f32 %v10264_v8, %v770_v5  ;;  %v810_v9 = vmul.f32 %v11365_v36, %v791_v24  ;;  %v811_v43 = vmul.f32 %v11365_v36, %v792_v30  ;;  %vm776_vm14 = vweird.f32 %v10264_v8  ;;  %vm767_vm15 = vmor %vm765_vm11, %vm766_vm12 }
  0xe1   : > { %v762_v35 = vmul.f32 0.5, %v761_v16  ;;  %v804_v27 = vmul.f32 %v11365_v36, %v785_v28  ;;  %v805_v38 = vmul.f32 %v11365_v36, %v786_v29  ;;  %vm777_vm0 = vmor %vm775_vm13, %vm776_vm14 }
  0xe2   : > { %v772_v21 = vmul.f32 0.5, %v771_v53  ;;  %v820_v26 = vpack.c.bf16 %v811_v43, %v810_v9 }
  0xe3   : > { %v763_v44 = vsub.f32 1.5, %v762_v35  ;;  %v817_v25 = vpack.c.bf16 %v805_v38, %v804_v27 }
  0xe4   : > { %v773_v17 = vsub.f32 1.5, %v772_v21 }
  0xe5   : > { %v764_v40 = vmul.f32 %v10262_v7, %v763_v44 }
  0xe6   : > { %v774_v41 = vmul.f32 %v10264_v8, %v773_v17 }
  0xe7   : > { %v768_v45 = vsel %vm767_vm15, %v10262_v7, %v764_v40 }
  0xe8   : > { %v778_v0 = vsel %vm777_vm0, %v10264_v8, %v774_v41  ;;  %v793_v56 = vmul.f32 %v11149_v42, %v768_v45 }
  0xe9   : > { %1000 = vmatmul.bf16.gmra.mxu0 %v816_v11  ;;  %1049 = vmatmul.bf16.gmra.mxu1 %v816_v11  ;;  %v794_v10 = vmul.f32 %v11157_v46, %v778_v0 }
  0xea   : > { %1098 = vmatmul.bf16.gmra.mxu2 %v816_v11  ;;  %1064 = vmatmul.bf16.gmra.mxu3 %v819_v60  ;;  %v812_v39 = vmul.f32 %v11365_v36, %v793_v56 }
  0xeb   : > { %v813_v49 = vmul.f32 %v11365_v36, %v794_v10 }
  0xed   : > { %v821_v55 = vpack.c.bf16 %v813_v49, %v812_v39 }
  0xf9   : > { %1005 = vmatmul.bf16.gmra.mxu0 %v817_v25  ;;  %1054 = vmatmul.bf16.gmra.mxu1 %v817_v25 }
  0xfa   : > { %1103 = vmatmul.bf16.gmra.mxu2 %v817_v25  ;;  %1069 = vmatmul.bf16.gmra.mxu3 %v820_v26 }
 0x109   : > { %1010 = vmatmul.bf16.gmra.mxu0 %v11522_v20 }
 0x10a   : > { %1108 = vmatmul.bf16.gmra.mxu2 %v11522_v20  ;;  %1074 = vmatmul.bf16.gmra.mxu3 %v821_v55 }
 0x119   : > { %1015 = vmatmul.bf16.gmra.mxu0 %v819_v60 }
 0x11a   : > { %1113 = vmatmul.bf16.gmra.mxu2 %v819_v60 }
 0x129   : > { %1020 = vmatmul.bf16.gmra.mxu0 %v820_v26 }
 0x12a   : > { %1118 = vmatmul.bf16.gmra.mxu2 %v820_v26 }
 0x139   : > { %1025 = vmatmul.bf16.gmra.mxu0 %v821_v55 }
 0x13a   : > { %1123 = vmatmul.bf16.gmra.mxu2 %v821_v55 }
 0x146   : > { %v991_v57 = vpop.f32.mrf.mxu0  ;;  %v1040_v42 = vpop.f32.mrf.mxu1 }
 0x147   : > { %v1129_v50 = vpack.c.bf16 %v1040_v42, %v991_v57 }
 0x149   : > { %1161 = vst [vmem:[#allocation3] sm:$0xff] %v1129_v50 }
 0x14d   : > { %v1089_v46 = vpop.f32.mrf.mxu2 }
 0x14e   : > { %v1130_v22 = vpack.c.bf16 %v1089_v46, %v1089_v46  ;;  %v993_v58 = vpop.f32.mrf.mxu0  ;;  %v1042_v36 = vpop.f32.mrf.mxu1 }
 0x14f   : > { %v1131_v23 = vpack.c.bf16 %v1042_v36, %v993_v58 }
 0x150   : > { %1162 = vst [vmem:[#allocation3 + $0x8] sm:$0xf] %v1130_v22  ;;  %v8342_v61 = vld [vmem:[#allocation3 + $0x4] sm:$0xf]  ;;  %v8310_v62 = vld [vmem:[#allocation3] sm:$0xf] }
 0x151   : > { %1163 = vst [vmem:[#allocation3 + $0xc] sm:$0xff] %v1131_v23 }
 0x155   : > { %v1091_v31 = vpop.f32.mrf.mxu2 }
 0x156   : > { %v1132_v20 = vpack.c.bf16 %v1091_v31, %v1091_v31  ;;  %v996_v15 = vpop.f32.mrf.mxu0  ;;  %v1045_v54 = vpop.f32.mrf.mxu1 }
 0x157   : > { %v1133_v47 = vpack.c.bf16 %v1045_v54, %v996_v15  ;;  %v8382_v10 = vld [vmem:[#allocation3 + $0x8] sm:$0xf] }
 0x158   : > { %1164 = vst [vmem:[#allocation3 + $0x14] sm:$0xf] %v1132_v20  ;;  %v9284_v1 = vld [vmem:[#allocation3 + $0xc] sm:$0xf0]  ;;  %v9276_v13 = vld [vmem:[#allocation3 + $0x8] sm:$0xf0] }
 0x159   : > { %1165 = vst [vmem:[#allocation3 + $0x18] sm:$0xff] %v1133_v47  ;;  %v11617_v19 = vor.u32 %v9284_v1, %v8342_v61  ;;  %v11619_v32 = vor.u32 %v9276_v13, %v8310_v62 }
 0x15b   : > { %1778 = vrot.lane.b32.xlu0 %v11617_v19, %s15269_s24  ;;  %2865 = vrot.lane.b32.xlu1 %v11619_v32, %s15267_s30 }
 0x15d   : > { %v1094_v34 = vpop.f32.mrf.mxu2  ;;  %v1060_v27 = vpop.f32.mrf.mxu3 }
 0x15e   : > { %v1134_v2 = vpack.c.bf16 %v1094_v34, %v1094_v34  ;;  %v998_v4 = vpop.f32.mrf.mxu0  ;;  %v1047_v7 = vpop.f32.mrf.mxu1 }
 0x15f   : > { %v1135_v8 = vpack.c.bf16 %v1047_v7, %v998_v4  ;;  %v9292_v45 = vld [vmem:[#allocation3 + $0x10] sm:$0xf0] }
 0x160   : > { %1166 = vst [vmem:[#allocation3 + $0x20] sm:$0xf] %v1134_v2  ;;  %v8346_v51 = vld [vmem:[#allocation3 + $0x1c] sm:$0xf]  ;;  %v8314_v12 = vld [vmem:[#allocation3 + $0x18] sm:$0xf]  ;;  %v11653_v49 = vor.u32 %v9292_v45, %v8382_v10 }
 0x161   : > { %1167 = vst [vmem:[#allocation3 + $0x24] sm:$0xff] %v1135_v8 }
 0x162   : > { %15310 = vst [vmem:[#allocation14_spill] sm:$0xff] %v11653_v49 }
 0x163   : > { %1762 = vrot.lane.b32.xlu0 %v11619_v32, %s15269_s24 }
 0x165   : > { %v1096_v52 = vpop.f32.mrf.mxu2  ;;  %v1062_v57 = vpop.f32.mrf.mxu3 }
 0x166   : > { %v1136_v11 = vpack.c.bf16 %v1096_v52, %v1096_v52  ;;  %v1001_v60 = vpop.f32.mrf.mxu0  ;;  %v1050_v37 = vpop.f32.mrf.mxu1 }
 0x167   : > { %v1137_v33 = vpack.c.bf16 %v1050_v37, %v1001_v60  ;;  %v8386_v30 = vld [vmem:[#allocation3 + $0x20] sm:$0xf] }
 0x168   : > { %1168 = vst [vmem:[#allocation3 + $0x2c] sm:$0xf] %v1136_v11  ;;  %v9285_v5 = vld [vmem:[#allocation3 + $0x24] sm:$0xf0]  ;;  %v9277_v48 = vld [vmem:[#allocation3 + $0x20] sm:$0xf0] }
 0x169   : > { %1169 = vst [vmem:[#allocation3 + $0x30] sm:$0xff] %v1137_v33  ;;  %v11627_v14 = vor.u32 %v9285_v5, %v8346_v51  ;;  %v11629_v16 = vor.u32 %v9277_v48, %v8314_v12 }
 0x16b   : > { %2364 = vrot.lane.b32.xlu0 %v11617_v19, %s15271_s15  ;;  %1780 = vrot.lane.b32.xlu1 %v11627_v14, %s15269_s24 }
 0x16c   : > { %2350 = vrot.lane.b32.xlu2 %v11629_v16, %s15271_s15 }
 0x16d   : > { %v1099_v53 = vpop.f32.mrf.mxu2  ;;  %v1065_v54 = vpop.f32.mrf.mxu3 }
 0x16e   : > { %v1138_v3 = vpack.c.bf16 %v1099_v53, %v1099_v53  ;;  %v1003_v18 = vpop.f32.mrf.mxu0  ;;  %v1052_v63 = vpop.f32.mrf.mxu1 }
 0x16f   : > { %v1139_v59 = vpack.c.bf16 %v1052_v63, %v1003_v18  ;;  %v9293_v24 = vld [vmem:[#allocation3 + $0x28] sm:$0xf0] }
 0x170   : > { %1170 = vst [vmem:[#allocation3 + $0x38] sm:$0xf] %v1138_v3  ;;  %v11637_v28 = vor.u32 %v9293_v24, %v8386_v30  ;;  %v8350_v38 = vld [vmem:[#allocation3 + $0x34] sm:$0xf]  ;;  %v8318_v39 = vld [vmem:[#allocation3 + $0x30] sm:$0xf] }
 0x171   : > { %1171 = vst [vmem:[#allocation3 + $0x3c] sm:$0xff] %v1139_v59 }
 0x172   : > { %15309 = vst [vmem:[#allocation13_spill] sm:$0xff] %v11637_v28 }
 0x173   : > { %2348 = vrot.lane.b32.xlu0 %v11619_v32, %s15271_s15  ;;  %1764 = vrot.lane.b32.xlu1 %v11629_v16, %s15269_s24 }
 0x174   : > { %2061 = vrot.lane.b32.xlu2 %v11637_v28, %s15269_s24 }
 0x175   : > { %v1101_v29 = vpop.f32.mrf.mxu2  ;;  %v1067_v34 = vpop.f32.mrf.mxu3 }
 0x176   : > { %v1140_v35 = vpack.c.bf16 %v1101_v29, %v1101_v29  ;;  %v1006_v21 = vpop.f32.mrf.mxu0  ;;  %v1055_v9 = vpop.f32.mrf.mxu1 }
 0x177   : > { %v1141_v43 = vpack.c.bf16 %v1055_v9, %v1006_v21 }
 0x178   : > { %1172 = vst [vmem:[#allocation3 + $0x44] sm:$0xf] %v1140_v35  ;;  %v9286_v44 = vld [vmem:[#allocation3 + $0x3c] sm:$0xf0]  ;;  %v9278_v0 = vld [vmem:[#allocation3 + $0x38] sm:$0xf0] }
 0x179   : > { %1173 = vst [vmem:[#allocation3 + $0x48] sm:$0xff] %v1141_v43  ;;  %v11645_v17 = vor.u32 %v9286_v44, %v8350_v38  ;;  %v11655_v55 = vor.u32 %v9278_v0, %v8318_v39 }
 0x17b   : > { %2881 = vrot.lane.b32.xlu0 %v11617_v19, %s15267_s30  ;;  %2366 = vrot.lane.b32.xlu1 %v11627_v14, %s15271_s15 }
 0x17c   : > { %1782 = vrot.lane.b32.xlu2 %v11645_v17, %s15269_s24 }
 0x17d   : > { %v1104_v26 = vpop.f32.mrf.mxu2  ;;  %v1070_v18 = vpop.f32.mrf.mxu3 }
 0x17e   : > { %v1142_v25 = vpack.c.bf16 %v1104_v26, %v1104_v26  ;;  %v1008_v40 = vpop.f32.mrf.mxu0  ;;  %v1057_v41 = vpop.f32.mrf.mxu1 }
 0x17f   : > { %v1143_v56 = vpack.c.bf16 %v1057_v41, %v1008_v40  ;;  %v9294_v41 = vld [vmem:[#allocation3 + $0x40] sm:$0xf0] }
 0x180   : > { %1174 = vst [vmem:[#allocation3 + $0x50] sm:$0xf] %v1142_v25  ;;  %v8354_v58 = vld [vmem:[#allocation3 + $0x4c] sm:$0xf]  ;;  %v8322_v36 = vld [vmem:[#allocation3 + $0x48] sm:$0xf] }
 0x181   : > { %1175 = vst [vmem:[#allocation3 + $0x54] sm:$0xff] %v1143_v56  ;;  %v8390_v56 = vld [vmem:[#allocation3 + $0x38] sm:$0xf] }
 0x182   : > { %v11705_v39 = vor.u32 %v9294_v41, %v8390_v56 }
 0x183   : > { %2059 = vrot.lane.b32.xlu0 %v11653_v49, %s15269_s24  ;;  %2869 = vrot.lane.b32.xlu1 %v11655_v55, %s15267_s30 }
 0x184   : > { %1766 = vrot.lane.b32.xlu2 %v11655_v55, %s15269_s24  ;;  %15312 = vst [vmem:[#allocation16_spill] sm:$0xff] %v11705_v39 }
 0x185   : > { %v1106_v42 = vpop.f32.mrf.mxu2  ;;  %v1072_v44 = vpop.f32.mrf.mxu3 }
 0x186   : > { %v1144_v50 = vpack.c.bf16 %v1106_v42, %v1106_v42  ;;  %v1011_v46 = vpop.f32.mrf.mxu0 }
 0x187   : > { %v1145_v22 = vpack.c.bf16 %v1060_v27, %v1011_v46  ;;  %v8394_v60 = vld [vmem:[#allocation3 + $0x50] sm:$0xf] }
 0x188   : > { %1176 = vst [vmem:[#allocation3 + $0x5c] sm:$0xf] %v1144_v50  ;;  %v9287_v23 = vld [vmem:[#allocation3 + $0x54] sm:$0xf0]  ;;  %v9279_v31 = vld [vmem:[#allocation3 + $0x50] sm:$0xf0] }
 0x189   : > { %1177 = vst [vmem:[#allocation3 + $0x60] sm:$0xff] %v1145_v22  ;;  %v11663_v20 = vor.u32 %v9287_v23, %v8354_v58  ;;  %v11665_v15 = vor.u32 %v9279_v31, %v8322_v36 }
 0x18b   : > { %2883 = vrot.lane.b32.xlu0 %v11627_v14, %s15267_s30  ;;  %2354 = vrot.lane.b32.xlu1 %v11665_v15, %s15271_s15 }
 0x18c   : > { %2370 = vrot.lane.b32.xlu2 %v11663_v20, %s15271_s15 }
 0x18d   : > { %v1109_v47 = vpop.f32.mrf.mxu2  ;;  %v1075_v42 = vpop.f32.mrf.mxu3 }
 0x18e   : > { %v1146_v61 = vpack.c.bf16 %v1109_v47, %v1109_v47  ;;  %v1013_v62 = vpop.f32.mrf.mxu0 }
 0x18f   : > { %v1147_v1 = vpack.c.bf16 %v1062_v57, %v1013_v62  ;;  %v9295_v8 = vld [vmem:[#allocation3 + $0x58] sm:$0xf0] }
 0x190   : > { %1178 = vst [vmem:[#allocation3 + $0x68] sm:$0xf] %v1146_v61  ;;  %v8326_v52 = vld [vmem:[#allocation3 + $0x60] sm:$0xf]  ;;  %v11679_v33 = vor.u32 %v9295_v8, %v8394_v60  ;;  %v8358_v63 = vld [vmem:[#allocation3 + $0x64] sm:$0xf] }
 0x191   : > { %1179 = vst [vmem:[#allocation3 + $0x6c] sm:$0xff] %v1147_v1 }
 0x192   : > { %15311 = vst [vmem:[#allocation15_spill] sm:$0xff] %v11679_v33 }
 0x193   : > { %2867 = vrot.lane.b32.xlu0 %v11629_v16, %s15267_s30 }
 0x194   : > { %2887 = vrot.lane.b32.xlu2 %v11663_v20, %s15267_s30 }
 0x195   : > { %v1111_v13 = vpop.f32.mrf.mxu2  ;;  %v1077_v1 = vpop.f32.mrf.mxu3 }
 0x196   : > { %v1148_v2 = vpack.c.bf16 %v1111_v13, %v1111_v13  ;;  %v1016_v4 = vpop.f32.mrf.mxu0 }
 0x197   : > { %v1149_v7 = vpack.c.bf16 %v1065_v54, %v1016_v4  ;;  %v8398_v59 = vld [vmem:[#allocation3 + $0x68] sm:$0xf] }
 0x198   : > { %1180 = vst [vmem:[#allocation3 + $0x74] sm:$0xf] %v1148_v2  ;;  %v9280_v11 = vld [vmem:[#allocation3 + $0x68] sm:$0xf0]  ;;  %v9288_v48 = vld [vmem:[#allocation3 + $0x6c] sm:$0xf0] }
 0x199   : > { %1181 = vst [vmem:[#allocation3 + $0x78] sm:$0xff] %v1149_v7  ;;  %v11677_v37 = vor.u32 %v9280_v11, %v8326_v52  ;;  %v11687_v24 = vor.u32 %v9288_v48, %v8358_v63 }
 0x19b   : > { %2368 = vrot.lane.b32.xlu0 %v11645_v17, %s15271_s15  ;;  %1770 = vrot.lane.b32.xlu1 %v11677_v37, %s15269_s24  ;;  %v1391_v41 = vsel %vm1353_vm1, %v11687_v24, 0 }
 0x19c   : > { %2065 = vrot.lane.b32.xlu2 %v11679_v33, %s15269_s24 }
 0x19d   : > { %v1114_v51 = vpop.f32.mrf.mxu2 }
 0x19e   : > { %v1150_v12 = vpack.c.bf16 %v1114_v51, %v1114_v51  ;;  %v1018_v5 = vpop.f32.mrf.mxu0 }
 0x19f   : > { %v1151_v53 = vpack.c.bf16 %v1067_v34, %v1018_v5  ;;  %v9296_v3 = vld [vmem:[#allocation3 + $0x70] sm:$0xf0] }
 0x1a0   : > { %1182 = vst [vmem:[#allocation3 + $0x80] sm:$0xf] %v1150_v12  ;;  %v11689_v30 = vor.u32 %v9296_v3, %v8398_v59  ;;  %v8330_v43 = vld [vmem:[#allocation3 + $0x78] sm:$0xf]  ;;  %v8362_v10 = vld [vmem:[#allocation3 + $0x7c] sm:$0xf] }
 0x1a1   : > { %1183 = vst [vmem:[#allocation3 + $0x84] sm:$0xff] %v1151_v53 }
 0x1a3   : > { %2885 = vrot.lane.b32.xlu0 %v11645_v17, %s15267_s30  ;;  %2372 = vrot.lane.b32.xlu1 %v11687_v24, %s15271_s15 }
 0x1a4   : > { %2067 = vrot.lane.b32.xlu2 %v11689_v30, %s15269_s24 }
 0x1a5   : > { %v1116_v29 = vpop.f32.mrf.mxu2 }
 0x1a6   : > { %v1152_v35 = vpack.c.bf16 %v1116_v29, %v1116_v29  ;;  %v1021_v21 = vpop.f32.mrf.mxu0 }
 0x1a7   : > { %v1153_v9 = vpack.c.bf16 %v1070_v18, %v1021_v21  ;;  %v8402_v23 = vld [vmem:[#allocation3 + $0x80] sm:$0xf] }
 0x1a8   : > { %1184 = vst [vmem:[#allocation3 + $0x8c] sm:$0xf] %v1152_v35  ;;  %v9281_v27 = vld [vmem:[#allocation3 + $0x80] sm:$0xf0]  ;;  %v9289_v45 = vld [vmem:[#allocation3 + $0x84] sm:$0xf0] }
 0x1a9   : > { %1185 = vst [vmem:[#allocation3 + $0x90] sm:$0xff] %v1153_v9  ;;  %v11697_v38 = vor.u32 %v9281_v27, %v8330_v43  ;;  %v8363_v57 = vor.u32 %v9289_v45, %v8362_v10  ;;  %v1388_v10 = vsel %vm1353_vm1, %v11663_v20, 0 }
 0x1ab   : > { %2352 = vrot.lane.b32.xlu0 %v11655_v55, %s15271_s15  ;;  %2889 = vrot.lane.b32.xlu1 %v11687_v24, %s15267_s30  ;;  %v1394_v43 = vsel %vm1353_vm1, %v8363_v57, 0 }
 0x1ac   : > { %1772 = vrot.lane.b32.xlu2 %v11697_v38, %s15269_s24 }
 0x1ad   : > { %v1119_v26 = vpop.f32.mrf.mxu2 }
 0x1ae   : > { %v1154_v25 = vpack.c.bf16 %v1119_v26, %v1119_v26  ;;  %v1023_v40 = vpop.f32.mrf.mxu0 }
 0x1af   : > { %v1155_v0 = vpack.c.bf16 %v1072_v44, %v1023_v40  ;;  %v9297_v58 = vld [vmem:[#allocation3 + $0x88] sm:$0xf0] }
 0x1b0   : > { %1186 = vst [vmem:[#allocation3 + $0x98] sm:$0xf] %v1154_v25  ;;  %v8366_v31 = vld [vmem:[#allocation3 + $0x94] sm:$0xf]  ;;  %v11710_v47 = vor.u32 %v9297_v58, %v8402_v23  ;;  %v8334_v25 = vld [vmem:[#allocation3 + $0x90] sm:$0xf] }
 0x1b1   : > { %1187 = vst [vmem:[#allocation3 + $0x9c] sm:$0xff] %v1155_v0 }
 0x1b3   : > { %2063 = vrot.lane.b32.xlu0 %v11705_v39, %s15269_s24  ;;  %2374 = vrot.lane.b32.xlu1 %v8363_v57, %s15271_s15 }
 0x1b5   : > { %v1121_v50 = vpop.f32.mrf.mxu2 }
 0x1b6   : > { %v1156_v46 = vpack.c.bf16 %v1121_v50, %v1121_v50  ;;  %v1026_v22 = vpop.f32.mrf.mxu0 }
 0x1b7   : > { %v1157_v36 = vpack.c.bf16 %v1075_v42, %v1026_v22  ;;  %v8406_v29 = vld [vmem:[#allocation3 + $0x98] sm:$0xf]  ;;  %v1385_v42 = vsel %vm1353_vm1, %v11645_v17, 0  ;;  %v1379_v17 = vsel %vm1353_vm1, %v11617_v19, 0 }
 0x1b8   : > { %1188 = vst [vmem:[#allocation3 + $0xa4] sm:$0xf] %v1156_v46  ;;  %v9290_v54 = vld [vmem:[#allocation3 + $0x9c] sm:$0xf0]  ;;  %v9282_v26 = vld [vmem:[#allocation3 + $0x98] sm:$0xf0] }
 0x1b9   : > { %1189 = vst [vmem:[#allocation3 + $0xa8] sm:$0xff] %v1157_v36  ;;  %v8367_v61 = vor.u32 %v9290_v54, %v8366_v31  ;;  %v11752_v40 = vor.u32 %v9282_v26, %v8334_v25 }
 0x1bb   : > { %1784 = vrot.lane.b32.xlu0 %v11663_v20, %s15269_s24  ;;  %2069 = vrot.lane.b32.xlu1 %v11710_v47, %s15269_s24  ;;  %v1397_v59 = vsel %vm1353_vm1, %v8367_v61, 0  ;;  %v1382_v20 = vsel %vm1353_vm1, %v11627_v14, 0 }
 0x1bc   : > { %1790 = vrot.lane.b32.xlu2 %v8367_v61, %s15269_s24 }
 0x1bd   : > { %v1124_v62 = vpop.f32.mrf.mxu2 }
 0x1be   : > { %v1158_v13 = vpack.c.bf16 %v1124_v62, %v1124_v62  ;;  %v1028_v34 = vpop.f32.mrf.mxu0 }
 0x1bf   : > { %v1159_v2 = vpack.c.bf16 %v1077_v1, %v1028_v34  ;;  %v9298_v63 = vld [vmem:[#allocation3 + $0xa0] sm:$0xf0] }
 0x1c0   : > { %1190 = vst [vmem:[#allocation3 + $0xb0] sm:$0xf] %v1158_v13  ;;  %v8370_v8 = vld [vmem:[#allocation3 + $0xac] sm:$0xf]  ;;  %v8338_v3 = vld [vmem:[#allocation3 + $0xa8] sm:$0xf]  ;;  %v11737_v35 = vor.u32 %v9298_v63, %v8406_v29 }
 0x1c1   : > { %1191 = vst [vmem:[#allocation3 + $0xb4] sm:$0xff] %v1159_v2 }
 0x1c3   : > { %1768 = vrot.lane.b32.xlu0 %v11665_v15, %s15269_s24  ;;  %2376 = vrot.lane.b32.xlu1 %v8367_v61, %s15271_s15 }
 0x1c4   : > { %2893 = vrot.lane.b32.xlu2 %v8367_v61, %s15267_s30 }
 0x1c5   : > { %v1126_v4 = vpop.f32.mrf.mxu2 }
 0x1c6   : > { %v1160_v7 = vpack.c.bf16 %v1126_v4, %v1126_v4  ;;  %v11764_v56 = vpop.permute.xlu2 %2350 }
 0x1c7   : > { %v8410_v5 = vld [vmem:[#allocation3 + $0xb0] sm:$0xf] }
 0x1c8   : > { %1192 = vst [vmem:[#allocation3 + $0xbc] sm:$0xf] %v1160_v7  ;;  %v9291_v52 = vld [vmem:[#allocation3 + $0xb4] sm:$0xf0]  ;;  %v9283_v12 = vld [vmem:[#allocation3 + $0xb0] sm:$0xf0] }
 0x1c9   : > { %v8371_v11 = vor.u32 %v9291_v52, %v8370_v8  ;;  %v11730_v18 = vor.u32 %v9283_v12, %v8338_v3 }
 0x1cb   : > { %1786 = vrot.lane.b32.xlu0 %v11687_v24, %s15269_s24  ;;  %1792 = vrot.lane.b32.xlu1 %v8371_v11, %s15269_s24  ;;  %v1400_v60 = vsel %vm1353_vm1, %v8371_v11, 0 }
 0x1cc   : > { %2378 = vrot.lane.b32.xlu2 %v8371_v11, %s15271_s15  ;;  %1402 = vmatpush.bf16.xpose.msrb.mxu3 %v1400_v60 }
 0x1cd   : > { %v11726_v51 = vpop.permute.xlu0 %1778  ;;  %v11739_v21 = vpop.permute.xlu1 %2865 }
 0x1ce   : > { %15313 = vst [vmem:[#allocation17_spill] sm:$0xff] %v11739_v21  ;;  %v11779_v50 = vpop.permute.xlu2 %2061 }
 0x1cf   : > { %v9299_v48 = vld [vmem:[#allocation3 + $0xb8] sm:$0xf0] }
 0x1d0   : > { %v11728_v53 = vor.u32 %v9299_v48, %v8410_v5 }
 0x1d2   : > { %1668 = vmatpush.bf16.msrb.mxu0 %v11728_v53 }
 0x1d3   : > { %1788 = vrot.lane.b32.xlu0 %v8363_v57, %s15269_s24  ;;  %1776 = vrot.lane.b32.xlu1 %v11730_v18, %s15269_s24 }
 0x1d4   : > { %1403 = vmatpush.bf16.xpose.msrb.mxu3 %v1397_v59 }
 0x1d5   : > { %v11741_v9 = vpop.permute.xlu0 %1762 }
 0x1d6   : > { %1669 = vmatpush.bf16.msrb.mxu0 %v11737_v35  ;;  %v1783_v36 = vpop.permute.xlu2 %1782 }
 0x1da   : > { %1670 = vmatpush.bf16.msrb.mxu0 %v11710_v47 }
 0x1db   : > { %2891 = vrot.lane.b32.xlu0 %v8363_v57, %s15267_s30 }
 0x1dc   : > { %1404 = vmatpush.bf16.xpose.msrb.mxu3 %v1394_v43 }
 0x1dd   : > { %v11747_v27 = vpop.permute.xlu1 %1780  ;;  %v11749_v44 = vpop.permute.xlu0 %2364 }
 0x1de   : > { %1671 = vmatpush.bf16.msrb.mxu0 %v11689_v30  ;;  %v11797_v54 = vpop.permute.xlu2 %1766 }
 0x1e2   : > { %1672 = vmatpush.bf16.msrb.mxu0 %v11679_v33 }
 0x1e3   : > { %1774 = vrot.lane.b32.xlu0 %v11752_v40, %s15269_s24 }
 0x1e4   : > { %1405 = vmatpush.bf16.xpose.msrb.mxu3 %v1391_v41 }
 0x1e5   : > { %v11759_v45 = vpop.permute.xlu0 %2348  ;;  %v11762_v0 = vpop.permute.xlu1 %1764 }
 0x1e6   : > { %1673 = vmatpush.bf16.msrb.mxu0 %v11705_v39  ;;  %v11805_v62 = vpop.permute.xlu2 %2370  ;;  %v12148_v39 = vld [vmem:[%s15317_s1 + $0x90] sm:$0xff]  }
 0x1ea   : > { %1674 = vmatpush.bf16.msrb.mxu0 %v11637_v28 }
 0x1eb   : > { %2071 = vrot.lane.b32.xlu0 %v11737_v35, %s15269_s24 }
 0x1ec   : > { %1406 = vmatpush.bf16.xpose.msrb.mxu3 %v1388_v10 }
 0x1ed   : > { %v11771_v57 = vpop.permute.xlu0 %2881  ;;  %v11774_v24 = vpop.permute.xlu1 %2366 }
 0x1ee   : > { %1675 = vmatpush.bf16.msrb.mxu0 %v11653_v49  ;;  %v11813_v19 = vpop.permute.xlu2 %2887 }
 0x1f3   : > { %2895 = vrot.lane.b32.xlu0 %v8371_v11, %s15267_s30 }
 0x1f4   : > { %1407 = vmatpush.bf16.xpose.msrb.mxu3 %v1385_v42 }
 0x1f5   : > { %v11781_v46 = vpop.permute.xlu0 %2059  ;;  %v11783_v22 = vpop.permute.xlu1 %2869 }
 0x1f6   : > { %15314 = vst [vmem:[#allocation18_spill] sm:$0xff] %v11783_v22  ;;  %v2066_v7 = vpop.permute.xlu2 %2065 }
 0x1fb   : > { %2073 = vrot.lane.b32.xlu0 %v11728_v53, %s15269_s24  ;;  %s8085_s24 = scalar_lea.sflag [#allocation5], %s15182_s22 }
 0x1fc   : > { %1408 = vmatpush.bf16.xpose.msrb.mxu3 %v1382_v20  ;;  %v1825_v20 = vsel %vm1353_vm1, %v1783_v36, 0  ;;  %v1819_v36 = vsel %vm1353_vm1, %v11726_v51, 0  ;;  %v497_v51 = vld [vmem:[%s463_s0] sm:$0x1]  ;;  %s8097_s0 = scalar_lea.hbm %s15248_s12, %s11066_s29 }
 0x1fd   : > { %v11789_v58 = vpop.permute.xlu0 %2883  ;;  %v11793_v23 = vpop.permute.xlu1 %2354 }
 0x1fe   : > { %v2068_v11 = vpop.permute.xlu2 %2067 }
 0x204   : > { %1409 = vmatpush.bf16.xpose.msrb.mxu3 %v1379_v17 }
 0x205   : > { %v11795_v31 = vpop.permute.xlu0 %2867 }
 0x206   : > { %15315 = vst [vmem:[#allocation19_spill] sm:$0xff] %v11795_v31  ;;  %v11823_v5 = vpop.permute.xlu2 %1772 }
 0x20b   : > { %8372 = vmatmul.msk.bf16.vlgmr.msrb.gmra.mxu3 %vm1353_vm1, %v11619_v32 }
 0x20d   : > { %v11801_v61 = vpop.permute.xlu1 %1770  ;;  %v11803_v14 = vpop.permute.xlu0 %2368 }
 0x215   : > { %v11807_v1 = vpop.permute.xlu1 %2372  ;;  %v11809_v13 = vpop.permute.xlu0 %2885 }
 0x216   : > { %v1791_v63 = vpop.permute.xlu2 %1790 }
 0x21b   : > { %8373 = vmatmul.msk.bf16.gmra.mxu3 %vm1353_vm1, %v11629_v16 }
 0x21d   : > { %v11815_v34 = vpop.permute.xlu1 %2889  ;;  %v11817_v2 = vpop.permute.xlu0 %2352 }
 0x21e   : > { %v11843_v17 = vpop.permute.xlu2 %2893 }
 0x225   : > { %v2375_v32 = vpop.permute.xlu1 %2374  ;;  %v2064_v4 = vpop.permute.xlu0 %2063 }
 0x22b   : > { %8374 = vmatmul.msk.bf16.gmra.mxu3 %vm1353_vm1, %v11655_v55  ;;  %v1837_v55 = vsel %vm1353_vm1, %v1791_v63, 0 }
 0x22d   : > { %v2070_v8 = vpop.permute.xlu1 %2069  ;;  %v1785_v52 = vpop.permute.xlu0 %1784 }
 0x22e   : > { %v1828_v10 = vsel %vm1353_vm1, %v1785_v52, 0  ;;  %v2379_v52 = vpop.permute.xlu2 %2378 }
 0x235   : > { %v2377_v60 = vpop.permute.xlu1 %2376  ;;  %v11821_v12 = vpop.permute.xlu0 %1768 }
 0x23b   : > { %8375 = vmatmul.msk.bf16.gmra.mxu3 %vm1353_vm1, %v11665_v15 }
 0x23d   : > { %v1793_v16 = vpop.permute.xlu1 %1792  ;;  %v1787_v48 = vpop.permute.xlu0 %1786 }
 0x23e   : > { %v1840_v3 = vsel %vm1353_vm1, %v1793_v16, 0  ;;  %v1831_v25 = vsel %vm1353_vm1, %v1787_v48, 0  ;;  %v1822_v48 = vsel %vm1353_vm1, %v11747_v27, 0  ;;  %v2423_v27 = vsel %vm1353_vm1, %v2377_v60, 0 }
 0x23f   : > { %1842 = vmatpush.bf16.xpose.msrb.mxu1 %v1840_v3  ;;  %v2426_v3 = vsel %vm1353_vm1, %v2379_v52, 0 }
 0x245   : > { %v1789_v59 = vpop.permute.xlu0 %1788 }
 0x246   : > { %v1834_v43 = vsel %vm1353_vm1, %v1789_v59, 0 }
 0x247   : > { %1843 = vmatpush.bf16.xpose.msrb.mxu1 %v1837_v55 }
 0x24b   : > { %8376 = vmatmul.msk.bf16.gmra.mxu3 %vm1353_vm1, %v11677_v37 }
 0x24d   : > { %v11831_v29 = vpop.permute.xlu0 %2891 }
 0x24f   : > { %1844 = vmatpush.bf16.xpose.msrb.mxu1 %v1834_v43  ;;  %v2414_v43 = vsel %vm1353_vm1, %v11805_v62, 0 }
 0x255   : > { %v11834_v26 = vpop.permute.xlu0 %1774 }
 0x257   : > { %1845 = vmatpush.bf16.xpose.msrb.mxu1 %v1831_v25 }
 0x25b   : > { %8377 = vmatmul.msk.bf16.gmra.mxu3 %vm1353_vm1, %v11697_v38 }
 0x25d   : > { %v2072_v41 = vpop.permute.xlu0 %2071 }
 0x25f   : > { %1846 = vmatpush.bf16.xpose.msrb.mxu1 %v1828_v10 }
 0x265   : > { %v11840_v42 = vpop.permute.xlu0 %2895 }
 0x267   : > { %1847 = vmatpush.bf16.xpose.msrb.mxu1 %v1825_v20  ;;  %v2411_v20 = vsel %vm1353_vm1, %v11803_v14, 0 }
 0x26b   : > { %8378 = vmatmul.msk.bf16.gmra.mxu3 %vm1353_vm1, %v11752_v40 }
 0x26d   : > { %v2074_v16 = vpop.permute.xlu0 %2073 }
 0x26e   : > { %2083 = vmatpush.bf16.msrb.mxu2 %v2074_v16 }
 0x26f   : > { %1848 = vmatpush.bf16.xpose.msrb.mxu1 %v1822_v48 }
 0x272   : > { %2084 = vmatpush.bf16.msrb.mxu2 %v2072_v41 }
 0x276   : > { %2085 = vmatpush.bf16.msrb.mxu2 %v2070_v8  ;;  %v2420_v8 = vsel %vm1353_vm1, %v2375_v32, 0 }
 0x277   : > { %1849 = vmatpush.bf16.xpose.msrb.mxu1 %v1819_v36  ;;  %v2408_v36 = vsel %vm1353_vm1, %v11774_v24, 0 }
 0x27a   : > { %2086 = vmatpush.bf16.msrb.mxu2 %v2068_v11 }
 0x27b   : > { %8379 = vmatmul.msk.bf16.gmra.mxu3 %vm1353_vm1, %v11730_v18 }
 0x27e   : > { %8428 = vmatmul.msk.bf16.vlgmr.msrb.gmra.mxu1 %vm1353_vm1, %v11741_v9  ;;  %2087 = vmatpush.bf16.msrb.mxu2 %v2066_v7  ;;  %v9461_v9 = vld [vmem:[%s15317_s1] sm:$0xff]   ;;  %v498_v7 = vunpack.c.l.bf16 %v497_v51 }
 0x27f   : > { %2428 = vmatpush.bf16.xpose.msra.mxu1 %v2426_v3  ;;  %v9462_v11 = vunpack.c.l.bf16 %v9461_v9  ;;  %v9463_v59 = vunpack.c.h.bf16 %v9461_v9 }
 0x280   : > { %v11868_v60 = vperm.slane %v498_v7, 0 }
 0x282   : > { %2088 = vmatpush.bf16.msrb.mxu2 %v2064_v4 }
 0x286   : > { %2089 = vmatpush.bf16.msrb.mxu2 %v11779_v50  ;;  %v2417_v50 = vsel %vm1353_vm1, %v11807_v1, 0 }
 0x287   : > { %2429 = vmatpush.bf16.xpose.msra.mxu1 %v2423_v27 }
 0x28a   : > { %2090 = vmatpush.bf16.msrb.mxu2 %v11781_v46 }
 0x28e   : > { %v1411_v4 = vpop.f32.mrf.mxu3  ;;  %8429 = vmatmul.msk.bf16.gmra.mxu1 %vm1353_vm1, %v11762_v0  ;;  %v10043_v0 = vld [vmem:[%s15317_s1 + $0x8] sm:$0xff]  }
 0x28f   : > { %2430 = vmatpush.bf16.xpose.msra.mxu1 %v2420_v8  ;;  %v1412_v63 = vadd.f32 %v9462_v11, %v1411_v4  ;;  %v9466_v1 = vunpack.c.l.bf16 %v10043_v0  ;;  %v9467_v16 = vunpack.c.h.bf16 %v10043_v0  ;;  %v2405_v8 = vsel %vm1353_vm1, %v11749_v44, 0  ;;  %v10045_v4 = vld [vmem:[%s15317_s1 + $0x18] sm:$0xff]   ;;  %v10046_v0 = vld [vmem:[%s15317_s1 + $0x20] sm:$0xff]  }
 0x291   : > { %v11875_v32 = vadd.f32 %v11868_v60, %v1412_v63 }
 0x293   : > { %1468 = vmax.xlane.f32.xlu2 %v11875_v32 }
 0x296   : > { %v1413_v55 = vpop.f32.mrf.mxu3 }
 0x297   : > { %2431 = vmatpush.bf16.xpose.msra.mxu1 %v2417_v50  ;;  %v1414_v46 = vadd.f32 %v9463_v59, %v1413_v55  ;;  %v9475_v55 = vunpack.c.h.bf16 %v10045_v4 }
 0x299   : > { %v11884_v25 = vadd.f32 %v11868_v60, %v1414_v46 }
 0x29b   : > { %1470 = vmax.xlane.f32.xlu0 %v11884_v25 }
 0x29e   : > { %v1416_v41 = vpop.f32.mrf.mxu3  ;;  %8430 = vmatmul.msk.bf16.gmra.mxu1 %vm1353_vm1, %v11797_v54  ;;  %v10044_v54 = vld [vmem:[%s15317_s1 + $0x10] sm:$0xff]  }
 0x29f   : > { %2432 = vmatpush.bf16.xpose.msra.mxu1 %v2414_v43  ;;  %v1417_v10 = vadd.f32 %v9466_v1, %v1416_v41  ;;  %v9470_v14 = vunpack.c.l.bf16 %v10044_v54  ;;  %v9471_v9 = vunpack.c.h.bf16 %v10044_v54  ;;  %v9478_v41 = vunpack.c.l.bf16 %v10046_v0 }
 0x2a1   : > { %v11892_v62 = vadd.f32 %v11868_v60, %v1417_v10 }
 0x2a3   : > { %1472 = vmax.xlane.f32.xlu1 %v11892_v62 }
 0x2a6   : > { %v1418_v48 = vpop.f32.mrf.mxu3 }
 0x2a7   : > { %2433 = vmatpush.bf16.xpose.msra.mxu1 %v2411_v20  ;;  %v1419_v52 = vadd.f32 %v9467_v16, %v1418_v48  ;;  %v9479_v16 = vunpack.c.h.bf16 %v10046_v0  ;;  %v10050_v0 = vld [vmem:[%s15317_s1 + $0x40] sm:$0xff]  }
 0x2a9   : > { %v11901_v3 = vadd.f32 %v11868_v60, %v1419_v52 }
 0x2ab   : > { %1474 = vmax.xlane.f32.xlu2 %v11901_v3 }
 0x2ae   : > { %v1421_v27 = vpop.f32.mrf.mxu3  ;;  %8431 = vmatmul.msk.bf16.gmra.mxu1 %vm1353_vm1, %v11821_v12  ;;  %v9474_v12 = vunpack.c.l.bf16 %v10045_v4 }
 0x2af   : > { %2434 = vmatpush.bf16.xpose.msra.mxu1 %v2408_v36  ;;  %v1422_v51 = vadd.f32 %v9470_v14, %v1421_v27  ;;  %v10047_v36 = vld [vmem:[%s15317_s1 + $0x28] sm:$0xff]  }
 0x2b0   : > { %v9482_v14 = vunpack.c.l.bf16 %v10047_v36 }
 0x2b1   : > { %v11909_v24 = vadd.f32 %v11868_v60, %v1422_v51 }
 0x2b3   : > { %1476 = vmax.xlane.f32.xlu0 %v11909_v24 }
 0x2b6   : > { %v1423_v7 = vpop.f32.mrf.mxu3 }
 0x2b7   : > { %2435 = vmatpush.bf16.xpose.msra.mxu1 %v2405_v8  ;;  %v1424_v11 = vadd.f32 %v9471_v9, %v1423_v7  ;;  %v9483_v8 = vunpack.c.h.bf16 %v10047_v36 }
 0x2b9   : > { %v11916_v63 = vadd.f32 %v11868_v60, %v1424_v11  ;;  %v10048_v11 = vld [vmem:[%s15317_s1 + $0x30] sm:$0xff]  }
 0x2bb   : > { %1478 = vmax.xlane.f32.xlu1 %v11916_v63 }
 0x2be   : > { %v1426_v44 = vpop.f32.mrf.mxu3  ;;  %8432 = vmatmul.msk.bf16.gmra.mxu1 %vm1353_vm1, %v11801_v61 }
 0x2bf   : > { %v1427_v50 = vadd.f32 %v9474_v12, %v1426_v44  ;;  %v9486_v12 = vunpack.c.l.bf16 %v10048_v11 }
 0x2c1   : > { %v11922_v59 = vadd.f32 %v11868_v60, %v1427_v50 }
 0x2c3   : > { %1480 = vmax.xlane.f32.xlu0 %v11922_v59 }
 0x2c6   : > { %v1428_v46 = vpop.f32.mrf.mxu3 }
 0x2c7   : > { %v1429_v43 = vadd.f32 %v9475_v55, %v1428_v46  ;;  %v9487_v46 = vunpack.c.h.bf16 %v10048_v11 }
 0x2c9   : > { %v11929_v1 = vadd.f32 %v11868_v60, %v1429_v43 }
 0x2cb   : > { %1482 = vmax.xlane.f32.xlu2 %v11929_v1 }
 0x2ce   : > { %v1431_v61 = vpop.f32.mrf.mxu3  ;;  %8433 = vmatmul.msk.bf16.gmra.mxu1 %vm1353_vm1, %v11823_v5 }
 0x2cf   : > { %v1432_v10 = vadd.f32 %v9478_v41, %v1431_v61  ;;  %v10049_v61 = vld [vmem:[%s15317_s1 + $0x38] sm:$0xff]  }
 0x2d0   : > { %v9491_v11 = vunpack.c.h.bf16 %v10049_v61 }
 0x2d1   : > { %v11935_v20 = vadd.f32 %v11868_v60, %v1432_v10 }
 0x2d3   : > { %1484 = vmax.xlane.f32.xlu1 %v11935_v20 }
 0x2d6   : > { %v1433_v48 = vpop.f32.mrf.mxu3 }
 0x2d7   : > { %v1434_v52 = vadd.f32 %v9479_v16, %v1433_v48  ;;  %v9494_v16 = vunpack.c.l.bf16 %v10050_v0 }
 0x2d9   : > { %v11942_v54 = vadd.f32 %v11868_v60, %v1434_v52  ;;  %v9490_v52 = vunpack.c.l.bf16 %v10049_v61 }
 0x2db   : > { %1486 = vmax.xlane.f32.xlu2 %v11942_v54 }
 0x2de   : > { %v1436_v5 = vpop.f32.mrf.mxu3  ;;  %8434 = vmatmul.msk.bf16.gmra.mxu1 %vm1353_vm1, %v11834_v26  ;;  %v1777_v26 = vpop.permute.xlu1 %1776 }
 0x2df   : > { %v1437_v27 = vadd.f32 %v9482_v14, %v1436_v5 }
 0x2e1   : > { %v11948_v51 = vadd.f32 %v11868_v60, %v1437_v27 }
 0x2e3   : > { %1488 = vmax.xlane.f32.xlu2 %v11948_v51 }
 0x2e6   : > { %v1438_v9 = vpop.f32.mrf.mxu3 }
 0x2e7   : > { %v1439_v7 = vadd.f32 %v9483_v8, %v1438_v9  ;;  %v9495_v8 = vunpack.c.h.bf16 %v10050_v0 }
 0x2e9   : > { %v11955_v4 = vadd.f32 %v11868_v60, %v1439_v7 }
 0x2eb   : > { %1490 = vmax.xlane.f32.xlu1 %v11955_v4 }
 0x2ee   : > { %v1441_v44 = vpop.f32.mrf.mxu3  ;;  %8435 = vmatmul.msk.bf16.gmra.mxu1 %vm1353_vm1, %v1777_v26 }
 0x2ef   : > { %v1442_v50 = vadd.f32 %v9486_v12, %v1441_v44 }
 0x2f1   : > { %v11960_v55 = vadd.f32 %v11868_v60, %v1442_v50 }
 0x2f3   : > { %1492 = vmax.xlane.f32.xlu0 %v11960_v55 }
 0x2f6   : > { %v1443_v43 = vpop.f32.mrf.mxu3 }
 0x2f7   : > { %v1444_v41 = vadd.f32 %v9487_v46, %v1443_v43 }
 0x2f9   : > { %v11970_v10 = vadd.f32 %v11868_v60, %v1444_v41 }
 0x2fb   : > { %1494 = vmax.xlane.f32.xlu2 %v11970_v10  ;;  %v1851_v48 = vpop.f32.mrf.mxu1 }
 0x2fc   : > { %v1852_v36 = vadd.f32 %v9494_v16, %v1851_v48 }
 0x2fe   : > { %v1446_v14 = vpop.f32.mrf.mxu3  ;;  %8488 = vmatmul.msk.bf16.vlgmr.msra.gmra.mxu1 %vm1353_vm1, %v11759_v45  ;;  %v11979_v9 = vadd.f32 %v1852_v36, %v11868_v60  ;;  %v10051_v45 = vld [vmem:[%s15317_s1 + $0x48] sm:$0xff]  }
 0x2ff   : > { %v1447_v5 = vadd.f32 %v9490_v52, %v1446_v14  ;;  %v9498_v41 = vunpack.c.l.bf16 %v10051_v45  ;;  %v9499_v36 = vunpack.c.h.bf16 %v10051_v45 }
 0x301   : > { %v11976_v27 = vadd.f32 %v11868_v60, %v1447_v5 }
 0x303   : > { %1496 = vmax.xlane.f32.xlu1 %v11976_v27  ;;  %v1853_v7 = vpop.f32.mrf.mxu1  ;;  %1907 = vmax.xlane.f32.xlu2 %v11979_v9 }
 0x304   : > { %v1854_v12 = vadd.f32 %v9495_v8, %v1853_v7 }
 0x306   : > { %v1469_v26 = vpop.xlane.xlu2 %1468  ;;  %v1448_v44 = vpop.f32.mrf.mxu3  ;;  %v11991_v16 = vadd.f32 %v1854_v12, %v11868_v60 }
 0x307   : > { %v1500_v50 = vsub.f32 %v11875_v32, %v1469_v26  ;;  %v1449_v46 = vadd.f32 %v9491_v11, %v1448_v44 }
 0x309   : > { %v1516_v43 = vmul.f32 1.442695, %v1500_v50  ;;  %v11988_v0 = vadd.f32 %v11868_v60, %v1449_v46 }
 0x30b   : > { %10265 = vpow2.f32 %v1516_v43  ;;  %1498 = vmax.xlane.f32.xlu0 %v11988_v0  ;;  %v1856_v61 = vpop.f32.mrf.mxu1  ;;  %1909 = vmax.xlane.f32.xlu1 %v11991_v16 }
 0x30c   : > { %v1857_v48 = vadd.f32 %v9498_v41, %v1856_v61 }
 0x30e   : > { %8489 = vmatmul.msk.bf16.gmra.mxu1 %vm1353_vm1, %v11764_v56  ;;  %v1471_v32 = vpop.xlane.xlu0 %1470  ;;  %v12001_v8 = vadd.f32 %v1857_v48, %v11868_v60  ;;  %v10052_v56 = vld [vmem:[%s15317_s1 + $0x50] sm:$0xff]  }
 0x30f   : > { %v1501_v52 = vsub.f32 %v11884_v25, %v1471_v32  ;;  %v9502_v44 = vunpack.c.l.bf16 %v10052_v56 }
 0x311   : > { %v11998_v14 = vpop.eup %10265  ;;  %v1518_v5 = vmul.f32 1.442695, %v1501_v52 }
 0x313   : > { %10267 = vpow2.f32 %v1518_v5  ;;  %v1858_v7 = vpop.f32.mrf.mxu1  ;;  %1911 = vmax.xlane.f32.xlu0 %v12001_v8  ;;  %1548 = vadd.xlane.f32.xlu1 %v11998_v14 }
 0x314   : > { %v1859_v11 = vadd.f32 %v9499_v36, %v1858_v7  ;;  %v10053_v7 = vld [vmem:[%s15317_s1 + $0x58] sm:$0xff]  }
 0x316   : > { %v1473_v12 = vpop.xlane.xlu1 %1472  ;;  %v12009_v25 = vadd.f32 %v1859_v11, %v11868_v60 }
 0x317   : > { %v1502_v26 = vsub.f32 %v11892_v62, %v1473_v12  ;;  %v9503_v62 = vunpack.c.h.bf16 %v10052_v56  ;;  %v9506_v56 = vunpack.c.l.bf16 %v10053_v7 }
 0x318   : > { %1913 = vmax.xlane.f32.xlu2 %v12009_v25 }
 0x319   : > { %v12013_v45 = vpop.eup %10267  ;;  %v1520_v50 = vmul.f32 1.442695, %v1502_v26 }
 0x31b   : > { %10269 = vpow2.f32 %v1520_v50  ;;  %v1861_v46 = vpop.f32.mrf.mxu1  ;;  %1550 = vadd.xlane.f32.xlu0 %v12013_v45 }
 0x31c   : > { %v1862_v43 = vadd.f32 %v9502_v44, %v1861_v46 }
 0x31e   : > { %v1475_v41 = vpop.xlane.xlu2 %1474  ;;  %8490 = vmatmul.msk.bf16.gmra.mxu1 %vm1353_vm1, %v11817_v2  ;;  %v12019_v61 = vadd.f32 %v1862_v43, %v11868_v60 }
 0x31f   : > { %v1503_v32 = vsub.f32 %v11901_v3, %v1475_v41  ;;  %v9507_v41 = vunpack.c.h.bf16 %v10053_v7 }
 0x320   : > { %15318 = vst [vmem:[#allocation20_spill] sm:$0xff] %v12019_v61  ;;  %1915 = vmax.xlane.f32.xlu1 %v12019_v61 }
 0x321   : > { %v12022_v48 = vpop.eup %10269  ;;  %v1522_v5 = vmul.f32 1.442695, %v1503_v32 }
 0x323   : > { %v1863_v52 = vpop.f32.mrf.mxu1  ;;  %1552 = vadd.xlane.f32.xlu0 %v12022_v48  ;;  %10271 = vpow2.f32 %v1522_v5 }
 0x324   : > { %v1864_v36 = vadd.f32 %v9503_v62, %v1863_v52 }
 0x326   : > { %v1477_v2 = vpop.xlane.xlu0 %1476  ;;  %v12030_v11 = vadd.f32 %v1864_v36, %v11868_v60 }
 0x327   : > { %v1504_v12 = vsub.f32 %v11909_v24, %v1477_v2 }
 0x328   : > { %1917 = vmax.xlane.f32.xlu2 %v12030_v11 }
 0x329   : > { %v1524_v44 = vmul.f32 1.442695, %v1504_v12  ;;  %v12039_v43 = vpop.eup %10271 }
 0x32b   : > { %v1866_v3 = vpop.f32.mrf.mxu1  ;;  %10273 = vpow2.f32 %v1524_v44 }
 0x32c   : > { %v1867_v26 = vadd.f32 %v9506_v56, %v1866_v3 }
 0x32e   : > { %v1479_v50 = vpop.xlane.xlu1 %1478  ;;  %8491 = vmatmul.msk.bf16.gmra.mxu1 %vm1353_vm1, %v11793_v23  ;;  %v12037_v46 = vadd.f32 %v1867_v26, %v11868_v60  ;;  %v10054_v23 = vld [vmem:[%s15317_s1 + $0x60] sm:$0xff]  }
 0x32f   : > { %v1505_v24 = vsub.f32 %v11916_v63, %v1479_v50  ;;  %v9510_v7 = vunpack.c.l.bf16 %v10054_v23 }
 0x330   : > { %15319 = vst [vmem:[#allocation21_spill] sm:$0xff] %v12037_v46  ;;  %1554 = vadd.xlane.f32.xlu2 %v12039_v43  ;;  %1919 = vmax.xlane.f32.xlu0 %v12037_v46 }
 0x331   : > { %v1526_v52 = vmul.f32 1.442695, %v1505_v24  ;;  %v12050_v2 = vpop.eup %10273 }
 0x333   : > { %v1868_v62 = vpop.f32.mrf.mxu1  ;;  %10275 = vpow2.f32 %v1526_v52 }
 0x334   : > { %v1869_v32 = vadd.f32 %v9507_v41, %v1868_v62  ;;  %v9511_v41 = vunpack.c.h.bf16 %v10054_v23 }
 0x336   : > { %v1481_v36 = vpop.xlane.xlu0 %1480  ;;  %v12048_v5 = vadd.f32 %v1869_v32, %v11868_v60 }
 0x337   : > { %v1506_v63 = vsub.f32 %v11922_v59, %v1481_v36 }
 0x338   : > { %15320 = vst [vmem:[#allocation22_spill] sm:$0xff] %v12048_v5  ;;  %1921 = vmax.xlane.f32.xlu1 %v12048_v5  ;;  %1556 = vadd.xlane.f32.xlu2 %v12050_v2 }
 0x339   : > { %v1528_v3 = vmul.f32 1.442695, %v1506_v63  ;;  %v12058_v50 = vpop.eup %10275 }
 0x33b   : > { %v1871_v56 = vpop.f32.mrf.mxu1  ;;  %10277 = vpow2.f32 %v1528_v3 }
 0x33c   : > { %v1872_v12 = vadd.f32 %v9510_v7, %v1871_v56 }
 0x33e   : > { %v1483_v26 = vpop.xlane.xlu2 %1482  ;;  %v12056_v44 = vadd.f32 %v1872_v12, %v11868_v60 }
 0x33f   : > { %v1507_v24 = vsub.f32 %v11929_v1, %v1483_v26  ;;  %v10055_v1 = vld [vmem:[%s15317_s1 + $0x68] sm:$0xff]  }
 0x340   : > { %1923 = vmax.xlane.f32.xlu0 %v12056_v44  ;;  %1558 = vadd.xlane.f32.xlu2 %v12058_v50  ;;  %v9514_v12 = vunpack.c.l.bf16 %v10055_v1 }
 0x341   : > { %v1530_v59 = vmul.f32 1.442695, %v1507_v24  ;;  %v12066_v7 = vpop.eup %10277 }
 0x343   : > { %v1873_v62 = vpop.f32.mrf.mxu1  ;;  %10279 = vpow2.f32 %v1530_v59  ;;  %v9515_v59 = vunpack.c.h.bf16 %v10055_v1 }
 0x344   : > { %v1874_v32 = vadd.f32 %v9511_v41, %v1873_v62 }
 0x346   : > { %v1485_v52 = vpop.xlane.xlu1 %1484  ;;  %v12064_v36 = vadd.f32 %v1874_v32, %v11868_v60 }
 0x347   : > { %v1508_v63 = vsub.f32 %v11935_v20, %v1485_v52 }
 0x348   : > { %15321 = vst [vmem:[#allocation23_spill] sm:$0xff] %v12064_v36  ;;  %1925 = vmax.xlane.f32.xlu1 %v12064_v36  ;;  %1560 = vadd.xlane.f32.xlu0 %v12066_v7 }
 0x349   : > { %v1532_v23 = vmul.f32 1.442695, %v1508_v63  ;;  %v12074_v26 = vpop.eup %10279 }
 0x34b   : > { %10281 = vpow2.f32 %v1532_v23  ;;  %v1876_v56 = vpop.f32.mrf.mxu1 }
 0x34c   : > { %v1877_v62 = vadd.f32 %v9514_v12, %v1876_v56 }
 0x34e   : > { %v1487_v3 = vpop.xlane.xlu2 %1486  ;;  %v12082_v52 = vadd.f32 %v1877_v62, %v11868_v60 }
 0x34f   : > { %v1509_v41 = vsub.f32 %v11942_v54, %v1487_v3 }
 0x350   : > { %1562 = vadd.xlane.f32.xlu0 %v12074_v26  ;;  %15322 = vst [vmem:[#allocation24_spill] sm:$0xff] %v12082_v52 }
 0x351   : > { %v12078_v20 = vpop.eup %10281  ;;  %v1534_v24 = vmul.f32 1.442695, %v1509_v41 }
 0x352   : > { %1564 = vadd.xlane.f32.xlu1 %v12078_v20 }
 0x353   : > { %10283 = vpow2.f32 %v1534_v24  ;;  %v1878_v32 = vpop.f32.mrf.mxu1 }
 0x354   : > { %v1879_v63 = vadd.f32 %v9515_v59, %v1878_v32 }
 0x356   : > { %v12093_v56 = vadd.f32 %v1879_v63, %v11868_v60  ;;  %v1489_v32 = vpop.xlane.xlu2 %1488 }
 0x357   : > { %v1510_v6 = vsub.f32 %v11948_v51, %v1489_v32  ;;  %v9300_v51 = vld [vmem:[%s15241_s5] sm:$0xff] }
 0x358   : > { %2356 = vrot.lane.b32.xlu2 %v11677_v37, %s15271_s15  ;;  %1927 = vmax.xlane.f32.xlu0 %v12082_v52  ;;  %15323 = vst [vmem:[#allocation25_spill] sm:$0xff] %v12093_v56 }
 0x359   : > { %v12087_v54 = vpop.eup %10283 }
 0x35a   : > { %1566 = vadd.xlane.f32.xlu1 %v12087_v54 }
 0x35b   : > { %v12090_v23 = vpop.f32.mrf.mxu1 }
 0x35e   : > { %v1491_v62 = vpop.xlane.xlu1 %1490 }
 0x360   : > { %1929 = vmax.xlane.f32.xlu0 %v12093_v56 }
 0x363   : > { %v12096_v1 = vpop.f32.mrf.mxu1 }
 0x366   : > { %v1493_v12 = vpop.xlane.xlu0 %1492 }
 0x367   : > { %v1512_v3 = vsub.f32 %v11960_v55, %v1493_v12  ;;  %v9301_v55 = vld [vmem:[%s15241_s5 + $0x8] sm:$0xff]  ;;  %v1536_v12 = vmul.f32 1.442695, %v1510_v6 }
 0x368   : > { %2272 = vmatpush.bf16.msra.mxu0 %v9301_v55  ;;  %10176 = vmatpush.bf16.msra.mxu2 %v9301_v55 }
 0x369   : > { %v1540_v41 = vmul.f32 1.442695, %v1512_v3 }
 0x36b   : > { %10285 = vpow2.f32 %v1540_v41  ;;  %v12099_v24 = vpop.f32.mrf.mxu1  ;;  %v1511_v41 = vsub.f32 %v11955_v4, %v1491_v62 }
 0x36c   : > { %10287 = vpow2.f32 %v1536_v12  ;;  %2273 = vmatpush.bf16.msra.mxu0 %v9300_v51  ;;  %10177 = vmatpush.bf16.msra.mxu2 %v9300_v51 }
 0x36e   : > { %v1495_v31 = vpop.xlane.xlu2 %1494 }
 0x36f   : > { %v1513_v21 = vsub.f32 %v11970_v10, %v1495_v31  ;;  %v9534_v10 = vunpack.c.l.bf16 %v12148_v39 }
 0x371   : > { %v12101_v59 = vpop.eup %10285  ;;  %v1542_v56 = vmul.f32 1.442695, %v1513_v21  ;;  %v2943_v21 = vsel %vm1353_vm1, %v11840_v42, 0 }
 0x372   : > { %1572 = vadd.xlane.f32.xlu0 %v12101_v59  ;;  %v12122_v28 = vpop.eup %10287 }
 0x373   : > { %2871 = vrot.lane.b32.xlu1 %v11665_v15, %s15267_s30  ;;  %v12107_v63 = vpop.f32.mrf.mxu1  ;;  %v1538_v15 = vmul.f32 1.442695, %v1511_v41 }
 0x375   : > { %10289 = vpow2.f32 %v1538_v15 }
 0x376   : > { %v12112_v3 = vpop.xlane.xlu1 %1496  ;;  %v12136_v51 = vpop.xlane.xlu2 %1907 }
 0x37b   : > { %v12118_v32 = vpop.f32.mrf.mxu1  ;;  %v12133_v62 = vpop.eup %10289 }
 0x37e   : > { %v12120_v22 = vpop.xlane.xlu0 %1498  ;;  %v12124_v6 = vpop.xlane.xlu1 %1909 }
 0x381   : > { %1568 = vadd.xlane.f32.xlu2 %v12122_v28 }
 0x383   : > { %v12127_v55 = vpop.f32.mrf.mxu1 }
 0x386   : > { %2358 = vrot.lane.b32.xlu0 %v11697_v38, %s15271_s15  ;;  %v12131_v4 = vpop.xlane.xlu0 %1911  ;;  %v1549_v12 = vpop.xlane.xlu1 %1548 }
 0x387   : > { %10291 = vrcp.f32 %v1549_v12 }
 0x389   : > { %1570 = vadd.xlane.f32.xlu2 %v12133_v62 }
 0x38b   : > { %v12138_v41 = vpop.f32.mrf.mxu1  ;;  %v12141_v49 = vpop.xlane.xlu2 %1913 }
 0x38d   : > { %v10292_v36 = vpop.eup %10291 }
 0x38e   : > { %v1551_v15 = vpop.xlane.xlu0 %1550  ;;  %v1596_v5 = vmul.f32 %v10292_v36, %v11998_v14 }
 0x38f   : > { %10293 = vrcp.f32 %v1551_v15 }
 0x390   : > { %10295 = vpow2.f32 %v1542_v56 }
 0x393   : > { %v12143_v61 = vpop.f32.mrf.mxu1 }
 0x394   : > { %15324 = vst [vmem:[#allocation26_spill] sm:$0xff] %v12143_v61 }
 0x395   : > { %v10294_v52 = vpop.eup %10293 }
 0x396   : > { %v1597_v12 = vmul.f32 %v10294_v52, %v12013_v45  ;;  %v12157_v46 = vpop.eup %10295  ;;  %v1553_v14 = vpop.xlane.xlu0 %1552  ;;  %v2940_v45 = vsel %vm1353_vm1, %v11843_v17, 0  ;;  %v2937_v17 = vsel %vm1353_vm1, %v11831_v29, 0 }
 0x397   : > { %10297 = vrcp.f32 %v1553_v14 }
 0x398   : > { %v1612_v31 = vpack.c.bf16 %v1597_v12, %v1596_v5  ;;  %v12169_v5 = vld [vmem:[%s15317_s1 + $0x70] sm:$0xff]   ;;  %v10057_v12 = vld [vmem:[%s15317_s1 + $0x78] sm:$0xff]  }
 0x39a   : > { %1676 = vmatmul.bf16.vlgmr.msrb.gmra.mxu0 %v1612_v31 }
 0x39b   : > { %2945 = vmatpush.bf16.xpose.msrb.mxu0 %v2943_v21  ;;  %v12155_v15 = vpop.xlane.xlu2 %1917  ;;  %v2447_v33 = vpop.f32.mrf.mxu1 }
 0x39c   : > { %v12159_v61 = vadd.f32 %v9534_v10, %v2447_v33  ;;  %v9519_v33 = vunpack.c.h.bf16 %v12169_v5 }
 0x39d   : > { %1574 = vadd.xlane.f32.xlu1 %v12157_v46  ;;  %v10298_v36 = vpop.eup %10297 }
 0x39e   : > { %v1884_v56 = vadd.f32 %v9519_v33, %v12096_v1  ;;  %v1598_v10 = vmul.f32 %v10298_v36, %v12022_v48  ;;  %v2934_v33 = vsel %vm1353_vm1, %v11815_v34, 0  ;;  %v1940_v34 = vsub.f32 %v11991_v16, %v12124_v6 }
 0x3a0   : > { %v12187_v1 = vadd.f32 %v1884_v56, %v11868_v60 }
 0x3a1   : > { %2360 = vrot.lane.b32.xlu2 %v11752_v40, %s15271_s15 }
 0x3a3   : > { %2946 = vmatpush.bf16.xpose.msrb.mxu0 %v2940_v45  ;;  %v1555_v42 = vpop.xlane.xlu2 %1554  ;;  %v12180_v31 = vpop.xlane.xlu0 %1919 }
 0x3a4   : > { %10299 = vrcp.f32 %v1555_v42  ;;  %v12184_v45 = vpop.xlane.xlu1 %1915  ;;  %v9522_v42 = vunpack.c.l.bf16 %v10057_v12 }
 0x3a6   : > { %v1887_v29 = vadd.f32 %v9522_v42, %v12099_v24  ;;  %v1957_v42 = vmul.f32 1.442695, %v1940_v34 }
 0x3a8   : > { %v12200_v56 = vadd.f32 %v1887_v29, %v11868_v60 }
 0x3a9   : > { %2877 = vrot.lane.b32.xlu2 %v11752_v40, %s15267_s30 }
 0x3aa   : > { %v10300_v52 = vpop.eup %10299 }
 0x3ab   : > { %2947 = vmatpush.bf16.xpose.msrb.mxu0 %v2937_v17  ;;  %v1599_v21 = vmul.f32 %v10300_v52, %v12039_v43  ;;  %v1557_v14 = vpop.xlane.xlu2 %1556  ;;  %v9523_v52 = vunpack.c.h.bf16 %v10057_v12 }
 0x3ac   : > { %10301 = vrcp.f32 %v1557_v14  ;;  %v12195_v36 = vpop.xlane.xlu1 %1921 }
 0x3ad   : > { %v1613_v40 = vpack.c.bf16 %v1599_v21, %v1598_v10  ;;  %v1889_v17 = vadd.f32 %v9523_v52, %v12107_v63  ;;  %v2931_v10 = vsel %vm1353_vm1, %v11813_v19, 0  ;;  %v1515_v19 = vsub.f32 %v11988_v0, %v12120_v22 }
 0x3ae   : > { %v1514_v0 = vsub.f32 %v11976_v27, %v12112_v3  ;;  %v9518_v27 = vunpack.c.l.bf16 %v12169_v5 }
 0x3af   : > { %1681 = vmatmul.bf16.gmra.mxu0 %v1613_v40  ;;  %v12214_v16 = vadd.f32 %v1889_v17, %v11868_v60  ;;  %v1546_v6 = vmul.f32 1.442695, %v1515_v19 }
 0x3b0   : > { %1933 = vmax.xlane.f32.xlu0 %v12187_v1 }
 0x3b2   : > { %v10302_v24 = vpop.eup %10301 }
 0x3b3   : > { %2948 = vmatpush.bf16.xpose.msrb.mxu0 %v2934_v33  ;;  %v12193_v48 = vpop.xlane.xlu0 %1923  ;;  %v1559_v43 = vpop.xlane.xlu2 %1558 }
 0x3b4   : > { %10303 = vrcp.f32 %v1559_v43 }
 0x3b5   : > { %10305 = vpow2.f32 %v1957_v42  ;;  %v1882_v42 = vadd.f32 %v9518_v27, %v12090_v23 }
 0x3b6   : > { %2873 = vrot.lane.b32.xlu1 %v11677_v37, %s15267_s30  ;;  %v1600_v37 = vmul.f32 %v10302_v24, %v12050_v2  ;;  %v2928_v2 = vsel %vm1353_vm1, %v11809_v13, 0  ;;  %v2925_v13 = vsel %vm1353_vm1, %v11789_v58, 0  ;;  %v2922_v58 = vsel %vm1353_vm1, %v11771_v57, 0 }
 0x3b8   : > { %1935 = vmax.xlane.f32.xlu0 %v12200_v56 }
 0x3ba   : > { %v10304_v21 = vpop.eup %10303 }
 0x3bb   : > { %2949 = vmatpush.bf16.xpose.msrb.mxu0 %v2931_v10  ;;  %v1561_v12 = vpop.xlane.xlu0 %1560  ;;  %v2357_v14 = vpop.permute.xlu2 %2356  ;;  %v1601_v40 = vmul.f32 %v10304_v21, %v12058_v50  ;;  %v1939_v50 = vsub.f32 %v11979_v9, %v12136_v51  ;;  %v1544_v10 = vmul.f32 1.442695, %v1514_v0 }
 0x3bc   : > { %v12210_v29 = vpop.xlane.xlu1 %1925  ;;  %8492 = vmatmul.msk.bf16.gmra.mxu1 %vm1353_vm1, %v2357_v14  ;;  %10307 = vrcp.f32 %v1561_v12  ;;  %v12223_v52 = vpop.eup %10305 }
 0x3bd   : > { %v1614_v33 = vpack.c.bf16 %v1601_v40, %v1600_v37  ;;  %v1955_v24 = vmul.f32 1.442695, %v1939_v50  ;;  %v12254_v50 = vadd.f32 %v1882_v42, %v11868_v60  ;;  %v1942_v42 = vsub.f32 %v12009_v25, %v12141_v49 }
 0x3bf   : > { %1686 = vmatmul.bf16.gmra.mxu0 %v1614_v33 }
 0x3c0   : > { %1937 = vmax.xlane.f32.xlu0 %v12214_v16 }
 0x3c2   : > { %v10308_v34 = vpop.eup %10307 }
 0x3c3   : > { %2950 = vmatpush.bf16.xpose.msrb.mxu0 %v2928_v2  ;;  %v1563_v63 = vpop.xlane.xlu0 %1562  ;;  %v1602_v9 = vmul.f32 %v10308_v34, %v12066_v7 }
 0x3c4   : > { %10309 = vrcp.f32 %v1563_v63 }
 0x3c5   : > { %v1565_v43 = vpop.xlane.xlu1 %1564  ;;  %10311 = vpow2.f32 %v1546_v6 }
 0x3c6   : > { %10313 = vpow2.f32 %v1955_v24 }
 0x3c8   : > { %1989 = vadd.xlane.f32.xlu0 %v12223_v52 }
 0x3ca   : > { %v10310_v22 = vpop.eup %10309 }
 0x3cb   : > { %2951 = vmatpush.bf16.xpose.msrb.mxu0 %v2925_v13  ;;  %v1603_v51 = vmul.f32 %v10310_v22, %v12074_v26  ;;  %v12232_v12 = vpop.eup %10311  ;;  %v10058_v26 = vld [vmem:[%s15317_s1 + $0x80] sm:$0xff]   ;;  %v12251_v5 = vpop.xlane.xlu0 %1927 }
 0x3cc   : > { %v12235_v14 = vpop.eup %10313  ;;  %v9527_v37 = vunpack.c.h.bf16 %v10058_v26  ;;  %v9526_v34 = vunpack.c.l.bf16 %v10058_v26 }
 0x3cd   : > { %v1615_v17 = vpack.c.bf16 %v1603_v51, %v1602_v9  ;;  %v1567_v21 = vpop.xlane.xlu1 %1566 }
 0x3ce   : > { %10315 = vrcp.f32 %v1567_v21  ;;  %v2440_v57 = vadd.f32 %v9527_v37, %v12127_v55  ;;  %v2449_v37 = vpop.f32.mrf.mxu1 }
 0x3cf   : > { %1691 = vmatmul.bf16.gmra.mxu0 %v1615_v17  ;;  %10317 = vpow2.f32 %v1544_v10 }
 0x3d0   : > { %1578 = vadd.xlane.f32.xlu0 %v12232_v12  ;;  %10319 = vrcp.f32 %v1565_v43  ;;  %v12258_v63 = vadd.f32 %v2440_v57, %v11868_v60 }
 0x3d2   : > { %1987 = vadd.xlane.f32.xlu2 %v12235_v14 }
 0x3d3   : > { %2952 = vmatpush.bf16.xpose.msrb.mxu0 %v2922_v58 }
 0x3d4   : > { %v10316_v7 = vpop.eup %10315 }
 0x3d5   : > { %v12244_v3 = vpop.eup %10317  ;;  %v1605_v33 = vmul.f32 %v10316_v7, %v12087_v54  ;;  %v12263_v54 = vpop.xlane.xlu0 %1929  ;;  %v10059_v7 = vld [vmem:[%s15317_s1 + $0x88] sm:$0xff]  }
 0x3d6   : > { %v10320_v40 = vpop.eup %10319  ;;  %v2452_v25 = vpop.f32.mrf.mxu1 }
 0x3d7   : > { %v1604_v19 = vmul.f32 %v10320_v40, %v12078_v20  ;;  %v9530_v40 = vunpack.c.l.bf16 %v10059_v7 }
 0x3d9   : > { %v1616_v2 = vpack.c.bf16 %v1605_v33, %v1604_v19  ;;  %v2443_v19 = vadd.f32 %v9530_v40, %v12138_v41 }
 0x3da   : > { %1576 = vadd.xlane.f32.xlu2 %v12244_v3 }
 0x3db   : > { %v12324_v49 = vadd.f32 %v2443_v19, %v11868_v60  ;;  %v15327_v19 = vld [vmem:[#allocation15_spill] sm:$0xff] }
 0x3df   : > { %1696 = vmatmul.bf16.gmra.mxu0 %v1616_v2  ;;  %v1961_v2 = vmul.f32 1.442695, %v1942_v42 }
 0x3e0   : > { %1931 = vmax.xlane.f32.xlu1 %v12254_v50 }
 0x3e2   : > { %2495 = vmax.xlane.f32.xlu2 %v12258_v63 }
 0x3e4   : > { %2362 = vrot.lane.b32.xlu0 %v11730_v18, %s15271_s15 }
 0x3e5   : > { %v1573_v20 = vpop.xlane.xlu0 %1572  ;;  %v12275_v9 = vpop.permute.xlu1 %2871 }
 0x3f4   : > { %v1569_v23 = vpop.xlane.xlu2 %1568 }
 0x3f5   : > { %10321 = vrcp.f32 %v1569_v23 }
 0x3f8   : > { %v2359_v55 = vpop.permute.xlu0 %2358 }
 0x3f9   : > { %2875 = vrot.lane.b32.xlu1 %v11697_v38, %s15267_s30  ;;  %8493 = vmatmul.msk.bf16.gmra.mxu1 %vm1353_vm1, %v2359_v55  ;;  %v2438_v38 = vadd.f32 %v9526_v34, %v12118_v32  ;;  %v1941_v32 = vsub.f32 %v12001_v8, %v12131_v4 }
 0x3fa   : > { %2659 = vrot.lane.b32.xlu2 %v11728_v53, %s15271_s15 }
 0x3fb   : > { %v10322_v43 = vpop.eup %10321  ;;  %v1959_v10 = vmul.f32 1.442695, %v1941_v32 }
 0x3fc   : > { %v1571_v6 = vpop.xlane.xlu2 %1570  ;;  %v1606_v22 = vmul.f32 %v10322_v43, %v12122_v28 }
 0x3fd   : > { %10323 = vrcp.f32 %v1571_v6  ;;  %v1947_v6 = vsub.f32 %v12056_v44, %v12193_v48 }
 0x3fe   : > { %10325 = vrcp.f32 %v1573_v20 }
 0x401   : > { %2879 = vrot.lane.b32.xlu1 %v11730_v18, %s15267_s30  ;;  %v12281_v18 = vadd.f32 %v2438_v38, %v11868_v60 }
 0x403   : > { %v10324_v24 = vpop.eup %10323 }
 0x404   : > { %v1607_v0 = vmul.f32 %v10324_v24, %v12133_v62  ;;  %v2361_v51 = vpop.permute.xlu2 %2360  ;;  %v10326_v62 = vpop.eup %10325 }
 0x405   : > { %v1608_v21 = vmul.f32 %v10326_v62, %v12101_v59 }
 0x406   : > { %v1617_v13 = vpack.c.bf16 %v1607_v0, %v1606_v22 }
 0x408   : > { %1701 = vmatmul.bf16.gmra.mxu0 %v1617_v13  ;;  %v1971_v13 = vmul.f32 1.442695, %v1947_v6 }
 0x409   : > { %2655 = vrot.lane.b32.xlu1 %v11710_v47, %s15271_s15  ;;  %8494 = vmatmul.msk.bf16.gmra.mxu1 %vm1353_vm1, %v2361_v51 }
 0x40c   : > { %v12305_v4 = vpop.permute.xlu2 %2877 }
 0x40e   : > { %2493 = vmax.xlane.f32.xlu0 %v12281_v18 }
 0x410   : > { %v1575_v28 = vpop.xlane.xlu1 %1574 }
 0x411   : > { %10327 = vrcp.f32 %v1575_v28  ;;  %3176 = vrot.lane.b32.xlu1 %v11728_v53, %s15267_s30 }
 0x412   : > { %10329 = vpow2.f32 %v1959_v10 }
 0x417   : > { %v10328_v17 = vpop.eup %10327  ;;  %v1677_v38 = vpop.f32.mrf.mxu0 }
 0x418   : > { %v1609_v58 = vmul.f32 %v10328_v17, %v12157_v46  ;;  %v12294_v53 = vpop.eup %10329 }
 0x419   : > { %2653 = vrot.lane.b32.xlu1 %v11689_v30, %s15271_s15 }
 0x41a   : > { %v1618_v27 = vpack.c.bf16 %v1609_v58, %v1608_v21 }
 0x41c   : > { %1706 = vmatmul.bf16.gmra.mxu0 %v1618_v27  ;;  %v9531_v27 = vunpack.c.h.bf16 %v10059_v7 }
 0x421   : > { %3174 = vrot.lane.b32.xlu1 %v11737_v35, %s15267_s30 }
 0x422   : > { %2657 = vrot.lane.b32.xlu0 %v11737_v35, %s15271_s15  ;;  %v9535_v35 = vunpack.c.h.bf16 %v12148_v39 }
 0x423   : > { %1991 = vadd.xlane.f32.xlu2 %v12294_v53  ;;  %v12299_v8 = vpop.xlane.xlu0 %1933 }
 0x424   : > { %v2450_v33 = vadd.f32 %v9535_v35, %v2449_v37 }
 0x426   : > { %v12321_v39 = vadd.f32 %v2450_v33, %v11868_v60 }
 0x428   : > { %v12347_v37 = vpop.permute.xlu1 %2873 }
 0x42b   : > { %v1936_v59 = vpop.xlane.xlu0 %1935 }
 0x42c   : > { %v1953_v32 = vsub.f32 %v12200_v56, %v1936_v59  ;;  %v1944_v56 = vsub.f32 %v12030_v11, %v12155_v15 }
 0x42e   : > { %v1983_v21 = vmul.f32 1.442695, %v1953_v32  ;;  %v1965_v35 = vmul.f32 1.442695, %v1944_v56 }
 0x433   : > { %v12301_v46 = vpop.xlane.xlu0 %1937 }
 0x43b   : > { %3172 = vrot.lane.b32.xlu2 %v11710_v47, %s15267_s30  ;;  %v1990_v26 = vpop.xlane.xlu0 %1989  ;;  %v12317_v47 = vld [vmem:[%s15317_s1 + $0x98] sm:$0xff]  }
 0x43c   : > { %10331 = vrcp.f32 %v1990_v26  ;;  %v9538_v20 = vunpack.c.l.bf16 %v12317_v47  ;;  %v1679_v26 = vpop.f32.mrf.mxu0 }
 0x43d   : > { %v1717_v15 = vpack.c.bf16 %v1679_v26, %v1677_v38 }
 0x43e   : > { %v2453_v43 = vadd.f32 %v9538_v20, %v2452_v25  ;;  %v15328_v25 = vld [vmem:[#allocation22_spill] sm:$0xff] }
 0x440   : > { %v12333_v51 = vadd.f32 %v2453_v43, %v11868_v60 }
 0x442   : > { %v10332_v55 = vpop.eup %10331 }
 0x443   : > { %v1579_v23 = vpop.xlane.xlu0 %1578  ;;  %v2036_v22 = vmul.f32 %v10332_v55, %v12223_v52 }
 0x444   : > { %v1682_v42 = vpop.f32.mrf.mxu0 }
 0x445   : > { %v1988_v57 = vpop.xlane.xlu2 %1987 }
 0x446   : > { %10333 = vrcp.f32 %v1988_v57  ;;  %v15326_v57 = vld [vmem:[#allocation21_spill] sm:$0xff] }
 0x447   : > { %10335 = vrcp.f32 %v1579_v23  ;;  %v1945_v11 = vsub.f32 %v15326_v57, %v12180_v31  ;;  %v15333_v57 = vld [vmem:[#allocation23_spill] sm:$0xff] }
 0x448   : > { %10337 = vpow2.f32 %v1961_v2 }
 0x449   : > { %v1967_v2 = vmul.f32 1.442695, %v1945_v11  ;;  %v1948_v11 = vsub.f32 %v15333_v57, %v12210_v29 }
 0x44b   : > { %2503 = vmax.xlane.f32.xlu1 %v12321_v39 }
 0x44c   : > { %v10334_v41 = vpop.eup %10333  ;;  %2497 = vmax.xlane.f32.xlu0 %v12324_v49  ;;  %v1684_v55 = vpop.f32.mrf.mxu0 }
 0x44d   : > { %v1577_v24 = vpop.xlane.xlu2 %1576  ;;  %v2035_v34 = vmul.f32 %v10334_v41, %v12235_v14  ;;  %v10336_v28 = vpop.eup %10335  ;;  %v1946_v41 = vsub.f32 %v15328_v25, %v12195_v36  ;;  %v15329_v36 = vld [vmem:[#allocation16_spill] sm:$0xff] }
 0x44e   : > { %10339 = vrcp.f32 %v1577_v24  ;;  %v12335_v44 = vpop.eup %10337  ;;  %v1611_v62 = vmul.f32 %v10336_v28, %v12232_v12  ;;  %v15325_v12 = vld [vmem:[#allocation26_spill] sm:$0xff]  ;;  %v15330_v28 = vld [vmem:[#allocation24_spill] sm:$0xff] }
 0x44f   : > { %v2051_v0 = vpack.c.bf16 %v2036_v22, %v2035_v34  ;;  %10341 = vpow2.f32 %v1971_v13  ;;  %v2445_v59 = vadd.f32 %v9531_v27, %v15325_v12  ;;  %v1969_v6 = vmul.f32 1.442695, %v1946_v41  ;;  %v2454_v13 = vpop.f32.mrf.mxu1 }
 0x450   : > { %10343 = vpow2.f32 %v1983_v21  ;;  %v1718_v34 = vpack.c.bf16 %v1684_v55, %v1682_v42  ;;  %v9539_v22 = vunpack.c.h.bf16 %v12317_v47  ;;  %v15331_v47 = vld [vmem:[#allocation20_spill] sm:$0xff]  ;;  %v1973_v55 = vmul.f32 1.442695, %v1948_v11 }
 0x451   : > { %2091 = vmatmul.bf16.vlgmr.msrb.gmra.mxu2 %v2051_v0  ;;  %v12356_v33 = vadd.f32 %v2445_v59, %v11868_v60  ;;  %10345 = vpow2.f32 %v1965_v35  ;;  %v12415_v41 = vadd.f32 %v12159_v61, %v11868_v60 }
 0x452   : > { %10347 = vpow2.f32 %v1967_v2  ;;  %v2455_v32 = vadd.f32 %v9539_v22, %v2454_v13 }
 0x453   : > { %2505 = vmax.xlane.f32.xlu1 %v12333_v51  ;;  %v1932_v7 = vpop.xlane.xlu1 %1931  ;;  %10349 = vpow2.f32 %v1969_v6  ;;  %v15334_v6 = vld [vmem:[#allocation25_spill] sm:$0xff] }
 0x454   : > { %v10340_v48 = vpop.eup %10339  ;;  %1993 = vadd.xlane.f32.xlu0 %v12335_v44  ;;  %v1687_v24 = vpop.f32.mrf.mxu0  ;;  %v1951_v27 = vsub.f32 %v12254_v50, %v1932_v7  ;;  %v1952_v50 = vsub.f32 %v12187_v1, %v12299_v8 }
 0x455   : > { %v12340_v52 = vpop.xlane.xlu2 %2495  ;;  %v1610_v14 = vmul.f32 %v10340_v48, %v12244_v3  ;;  %v12345_v58 = vpop.eup %10341  ;;  %v1949_v48 = vsub.f32 %v15330_v28, %v12251_v5  ;;  %v15335_v28 = vld [vmem:[#allocation17_spill] sm:$0xff] }
 0x456   : > { %v2363_v17 = vpop.permute.xlu0 %2362  ;;  %v12353_v40 = vpop.eup %10343  ;;  %v1979_v56 = vmul.f32 1.442695, %v1951_v27  ;;  %v1981_v42 = vmul.f32 1.442695, %v1952_v50  ;;  %v15336_v27 = vld [vmem:[#allocation19_spill] sm:$0xff] }
 0x457   : > { %8495 = vmatmul.msk.bf16.gmra.mxu1 %vm1353_vm1, %v2363_v17  ;;  %v1619_v10 = vpack.c.bf16 %v1611_v62, %v1610_v14  ;;  %v12365_v20 = vpop.eup %10345  ;;  %v1975_v62 = vmul.f32 1.442695, %v1949_v48  ;;  %v12387_v17 = vadd.f32 %v2455_v32, %v11868_v60 }
 0x458   : > { %v12372_v31 = vpop.eup %10347 }
 0x459   : > { %1711 = vmatmul.bf16.gmra.mxu0 %v1619_v10  ;;  %v12379_v0 = vpop.eup %10349  ;;  %v1943_v10 = vsub.f32 %v15331_v47, %v12184_v45  ;;  %10351 = vpow2.f32 %v1975_v62 }
 0x45b   : > { %2003 = vadd.xlane.f32.xlu1 %v12345_v58  ;;  %v1963_v5 = vmul.f32 1.442695, %v1943_v10 }
 0x45c   : > { %v1689_v14 = vpop.f32.mrf.mxu0 }
 0x45d   : > { %v2660_v3 = vpop.permute.xlu2 %2659  ;;  %v1719_v26 = vpack.c.bf16 %v1689_v14, %v1687_v24  ;;  %10353 = vpow2.f32 %v1963_v5  ;;  %v1950_v24 = vsub.f32 %v15334_v6, %v12263_v54  ;;  %v12436_v54 = vld [vmem:[%s15317_s1 + $0xa0] sm:$0xff]   ;;  %v2457_v14 = vpop.f32.mrf.mxu1 }
 0x45e   : > { %2669 = vmatpush.bf16.msrb.mxu2 %v2660_v3  ;;  %10355 = vpow2.f32 %v1979_v56  ;;  %v9542_v32 = vunpack.c.l.bf16 %v12436_v54 }
 0x45f   : > { %v12396_v12 = vpop.eup %10351  ;;  %10357 = vpow2.f32 %v1981_v42  ;;  %v1977_v22 = vmul.f32 1.442695, %v1950_v24  ;;  %v15338_v42 = vld [vmem:[#allocation18_spill] sm:$0xff]  ;;  %v2526_v24 = vsub.f32 %v12258_v63, %v12340_v52 }
 0x460   : > { %10359 = vpow2.f32 %v1973_v55  ;;  %v2458_v62 = vadd.f32 %v9542_v32, %v2457_v14 }
 0x461   : > { %10361 = vpow2.f32 %v1977_v22 }
 0x462   : > { %v12447_v10 = vadd.f32 %v2458_v62, %v11868_v60 }
 0x463   : > { %2015 = vadd.xlane.f32.xlu1 %v12353_v40  ;;  %v12405_v35 = vpop.eup %10353 }
 0x464   : > { %2499 = vmax.xlane.f32.xlu2 %v12356_v33  ;;  %v1692_v3 = vpop.f32.mrf.mxu0  ;;  %v12408_v7 = vpop.eup %10355 }
 0x465   : > { %v12419_v29 = vpop.eup %10357 }
 0x466   : > { %v12426_v61 = vpop.eup %10359 }
 0x468   : > { %2651 = vrot.lane.b32.xlu0 %v15327_v19, %s15271_s15 }
 0x469   : > { %8464 = vmatmul.msk.bf16.vlgmr.msra.gmra.mxu0 %vm1353_vm1, %v1717_v15 }
 0x46b   : > { %v12367_v23 = vpop.permute.xlu1 %2875 }
 0x46c   : > { %1997 = vadd.xlane.f32.xlu2 %v12365_v20  ;;  %v1694_v2 = vpop.f32.mrf.mxu0 }
 0x46d   : > { %v1720_v25 = vpack.c.bf16 %v1694_v2, %v1692_v3 }
 0x473   : > { %v12374_v43 = vpop.permute.xlu1 %2879 }
 0x474   : > { %1999 = vadd.xlane.f32.xlu2 %v12372_v31  ;;  %v12424_v13 = vpop.f32.mrf.mxu0 }
 0x479   : > { %8465 = vmatmul.msk.bf16.gmra.mxu0 %vm1353_vm1, %v1718_v34 }
 0x47b   : > { %v2656_v38 = vpop.permute.xlu1 %2655 }
 0x47c   : > { %2001 = vadd.xlane.f32.xlu2 %v12379_v0  ;;  %2649 = vrot.lane.b32.xlu1 %v15329_v36, %s15271_s15  ;;  %v12438_v48 = vpop.f32.mrf.mxu0 }
 0x481   : > { %v12398_v59 = vpop.xlane.xlu0 %2493 }
 0x483   : > { %v3177_v21 = vpop.permute.xlu1 %3176 }
 0x484   : > { %3186 = vmatpush.bf16.msrb.mxu1 %v3177_v21  ;;  %2507 = vmax.xlane.f32.xlu2 %v12387_v17  ;;  %v9303_v21 = vld [vmem:[%s15241_s5 + $0x18] sm:$0xff] }
 0x485   : > { %3170 = vrot.lane.b32.xlu1 %v11689_v30, %s15267_s30  ;;  %v15332_v30 = vld [vmem:[#allocation14_spill] sm:$0xff]  ;;  %v12442_v47 = vpop.f32.mrf.mxu0  ;;  %2187 = vmatpush.bf16.msra.mxu3 %v9303_v21 }
 0x489   : > { %8466 = vmatmul.msk.bf16.gmra.mxu0 %vm1353_vm1, %v1719_v26  ;;  %v9302_v26 = vld [vmem:[%s15241_s5 + $0x10] sm:$0xff] }
 0x48a   : > { %2188 = vmatpush.bf16.msra.mxu3 %v9302_v26 }
 0x48b   : > { %v2654_v45 = vpop.permute.xlu1 %2653 }
 0x48c   : > { %2007 = vadd.xlane.f32.xlu2 %v12396_v12 }
 0x48d   : > { %2645 = vrot.lane.b32.xlu1 %v15332_v30, %s15271_s15  ;;  %v12455_v5 = vpop.f32.mrf.mxu0 }
 0x492   : > { %1995 = vadd.xlane.f32.xlu0 %v12405_v35 }
 0x493   : > { %v3175_v15 = vpop.permute.xlu1 %3174 }
 0x494   : > { %3187 = vmatpush.bf16.msrb.mxu1 %v3175_v15  ;;  %2011 = vadd.xlane.f32.xlu2 %v12408_v7  ;;  %v2658_v1 = vpop.permute.xlu0 %2657  ;;  %v1954_v15 = vsub.f32 %v12214_v16, %v12301_v46 }
 0x495   : > { %2670 = vmatpush.bf16.msrb.mxu2 %v2658_v1 }
 0x496   : > { %v1992_v8 = vpop.xlane.xlu2 %1991 }
 0x497   : > { %10363 = vrcp.f32 %v1992_v8 }
 0x499   : > { %8467 = vmatmul.msk.bf16.gmra.mxu0 %vm1353_vm1, %v1720_v25  ;;  %2671 = vmatpush.bf16.msrb.mxu2 %v2656_v38  ;;  %v12429_v38 = vpop.eup %10361  ;;  %v12464_v3 = vpop.f32.mrf.mxu0 }
 0x49a   : > { %2501 = vmax.xlane.f32.xlu0 %v12415_v41 }
 0x49c   : > { %2013 = vadd.xlane.f32.xlu2 %v12419_v29 }
 0x49d   : > { %2672 = vmatpush.bf16.msrb.mxu2 %v2654_v45  ;;  %v10364_v57 = vpop.eup %10363 }
 0x49e   : > { %v3173_v34 = vpop.permute.xlu2 %3172  ;;  %v2037_v1 = vmul.f32 %v10364_v57, %v12294_v53  ;;  %v2543_v53 = vmul.f32 1.442695, %v2526_v24 }
 0x49f   : > { %3188 = vmatpush.bf16.msrb.mxu1 %v3173_v34 }
 0x4a1   : > { %v12474_v2 = vpop.f32.mrf.mxu0 }
 0x4a2   : > { %2005 = vadd.xlane.f32.xlu0 %v12426_v61 }
 0x4a9   : > { %8532 = vmatmul.msk.bf16.vlgmr.msrb.gmra.mxu0 %vm1353_vm1, %v15335_v28 }
 0x4aa   : > { %2009 = vadd.xlane.f32.xlu0 %v12429_v38 }
 0x4b4   : > { %3168 = vrot.lane.b32.xlu2 %v15327_v19, %s15267_s30  ;;  %v15337_v19 = vld [vmem:[#allocation13_spill] sm:$0xff] }
 0x4b7   : > { %2509 = vmax.xlane.f32.xlu1 %v12447_v10 }
 0x4b9   : > { %8533 = vmatmul.msk.bf16.gmra.mxu0 %vm1353_vm1, %v15336_v27 }
 0x4be   : > { %2647 = vrot.lane.b32.xlu0 %v15337_v19, %s15271_s15  ;;  %v12468_v50 = vpop.xlane.xlu1 %2503  ;;  %s448_s15 = scalar_lea.vmem [#allocation4], %s15182_s22 }
 0x4bf   : > { %v12462_v56 = vpop.xlane.xlu0 %2497  ;;  %s8099_s17 = sshll.u32 %s448_s15, 4  ;;  %s8100_s17 = int_to_ptr.vmem [resolvable:$true] %s8099_s17 }
 0x4c6   : > { %3166 = vrot.lane.b32.xlu0 %v15329_v36, %s15267_s30  ;;  %v1985_v36 = vmul.f32 1.442695, %v1954_v15  ;;  %v12478_v25 = vpop.xlane.xlu1 %2505 }
 0x4c7   : > { %v1994_v45 = vpop.xlane.xlu0 %1993 }
 0x4c8   : > { %10365 = vrcp.f32 %v1994_v45 }
 0x4c9   : > { %8534 = vmatmul.msk.bf16.gmra.mxu0 %vm1353_vm1, %v15338_v42  ;;  %10367 = vpow2.f32 %v1985_v36 }
 0x4ce   : > { %v10366_v11 = vpop.eup %10365  ;;  %v12489_v32 = vpop.xlane.xlu1 %2003 }
 0x4cf   : > { %v2038_v8 = vmul.f32 %v10366_v11, %v12335_v44  ;;  %v12487_v28 = vpop.eup %10367 }
 0x4d1   : > { %v2052_v55 = vpack.c.bf16 %v2038_v8, %v2037_v1  ;;  %v2459_v1 = vpop.f32.mrf.mxu1 }
 0x4d3   : > { %2096 = vmatmul.bf16.gmra.mxu2 %v2052_v55 }
 0x4d4   : > { %v2092_v6 = vpop.f32.mrf.mxu2 }
 0x4d6   : > { %v12482_v34 = vpop.f32.mrf.mxu0  ;;  %v12505_v45 = vpop.xlane.xlu1 %2015 }
 0x4d7   : > { %v2500_v22 = vpop.xlane.xlu2 %2499 }
 0x4d8   : > { %v2528_v16 = vsub.f32 %v12356_v33, %v2500_v22  ;;  %v2525_v33 = vsub.f32 %v12281_v18, %v12398_v59  ;;  %v9543_v18 = vunpack.c.h.bf16 %v12436_v54 }
 0x4d9   : > { %8535 = vmatmul.msk.bf16.gmra.mxu0 %vm1353_vm1, %v12275_v9 }
 0x4da   : > { %v2547_v46 = vmul.f32 1.442695, %v2528_v16  ;;  %v2652_v44 = vpop.permute.xlu0 %2651  ;;  %v2541_v26 = vmul.f32 1.442695, %v2525_v33  ;;  %v2460_v55 = vadd.f32 %v9543_v18, %v2459_v1 }
 0x4db   : > { %2673 = vmatpush.bf16.msrb.mxu2 %v2652_v44 }
 0x4dc   : > { %10369 = vpow2.f32 %v2547_v46  ;;  %v2094_v14 = vpop.f32.mrf.mxu2  ;;  %v12518_v36 = vadd.f32 %v2460_v55, %v11868_v60 }
 0x4dd   : > { %v2132_v62 = vpack.c.bf16 %v2094_v14, %v2092_v6  ;;  %2017 = vadd.xlane.f32.xlu2 %v12487_v28  ;;  %10371 = vpow2.f32 %v2543_v53 }
 0x4de   : > { %v12492_v63 = vpop.f32.mrf.mxu0  ;;  %10373 = vpow2.f32 %v2541_v26 }
 0x4df   : > { %v1724_v52 = vpack.c.bf16 %v12492_v63, %v12482_v34  ;;  %v1998_v9 = vpop.xlane.xlu2 %1997  ;;  %8448 = vmatmul.msk.bf16.vlgmr.msra.gmra.mxu3 %vm1353_vm1, %v2132_v62 }
 0x4e0   : > { %10375 = vrcp.f32 %v1998_v9 }
 0x4e2   : > { %v12499_v21 = vpop.eup %10369 }
 0x4e3   : > { %2579 = vadd.xlane.f32.xlu1 %v12499_v21  ;;  %v12502_v27 = vpop.eup %10371 }
 0x4e4   : > { %v12514_v15 = vpop.eup %10373 }
 0x4e5   : > { %2575 = vadd.xlane.f32.xlu2 %v12502_v27 }
 0x4e6   : > { %v12507_v42 = vpop.f32.mrf.mxu0  ;;  %v10376_v44 = vpop.eup %10375 }
 0x4e7   : > { %v2000_v57 = vpop.xlane.xlu2 %1999  ;;  %v2040_v62 = vmul.f32 %v10376_v44, %v12365_v20 }
 0x4e9   : > { %8536 = vmatmul.msk.bf16.gmra.mxu0 %vm1353_vm1, %v12347_v37 }
 0x4ee   : > { %v2650_v59 = vpop.permute.xlu1 %2649  ;;  %v12512_v11 = vpop.f32.mrf.mxu0 }
 0x4ef   : > { %v2002_v8 = vpop.xlane.xlu2 %2001  ;;  %2674 = vmatpush.bf16.msrb.mxu2 %v2650_v59 }
 0x4f0   : > { %2573 = vadd.xlane.f32.xlu0 %v12514_v15 }
 0x4f6   : > { %v12520_v6 = vpop.f32.mrf.mxu0 }
 0x4f7   : > { %v3171_v24 = vpop.permute.xlu1 %3170  ;;  %v12522_v37 = vpop.xlane.xlu2 %2507 }
 0x4f8   : > { %3189 = vmatpush.bf16.msrb.mxu1 %v3171_v24  ;;  %2511 = vmax.xlane.f32.xlu0 %v12518_v36 }
 0x4f9   : > { %8537 = vmatmul.msk.bf16.gmra.mxu0 %vm1353_vm1, %v12367_v23 }
 0x4fd   : > { %3164 = vrot.lane.b32.xlu2 %v15337_v19, %s15267_s30 }
 0x4fe   : > { %v12529_v54 = vpop.f32.mrf.mxu0 }
 0x4ff   : > { %v2008_v22 = vpop.xlane.xlu2 %2007 }
 0x505   : > { %v1996_v16 = vpop.xlane.xlu0 %1995 }
 0x506   : > { %10377 = vrcp.f32 %v1996_v16  ;;  %v12531_v53 = vpop.f32.mrf.mxu0 }
 0x507   : > { %v12533_v46 = vpop.xlane.xlu2 %2011  ;;  %10379 = vrcp.f32 %v2002_v8 }
 0x508   : > { %10381 = vrcp.f32 %v2000_v57  ;;  %v10066_v57 = vld [vmem:[%s15317_s1 + $0xc0] sm:$0xff]  }
 0x509   : > { %8538 = vmatmul.msk.bf16.gmra.mxu0 %vm1353_vm1, %v12305_v4  ;;  %v9558_v16 = vunpack.c.l.bf16 %v10066_v57 }
 0x50c   : > { %v10378_v14 = vpop.eup %10377 }
 0x50d   : > { %v2039_v23 = vmul.f32 %v10378_v14, %v12405_v35  ;;  %v12543_v26 = vpop.xlane.xlu0 %2501  ;;  %v10380_v4 = vpop.eup %10379 }
 0x50e   : > { %v12539_v19 = vpop.f32.mrf.mxu0  ;;  %v10382_v35 = vpop.eup %10381  ;;  %v2042_v20 = vmul.f32 %v10380_v4, %v12379_v0 }
 0x50f   : > { %v12541_v33 = vpop.xlane.xlu2 %2013  ;;  %v2053_v9 = vpack.c.bf16 %v2040_v62, %v2039_v23  ;;  %v2041_v1 = vmul.f32 %v10382_v35, %v12372_v31  ;;  %v2527_v62 = vsub.f32 %v12324_v49, %v12462_v56 }
 0x511   : > { %2101 = vmatmul.bf16.gmra.mxu2 %v2053_v9  ;;  %v2054_v8 = vpack.c.bf16 %v2042_v20, %v2041_v1  ;;  %v9559_v9 = vunpack.c.h.bf16 %v10066_v57 }
 0x515   : > { %v2006_v55 = vpop.xlane.xlu0 %2005 }
 0x516   : > { %v12545_v18 = vpop.f32.mrf.mxu0  ;;  %10383 = vrcp.f32 %v2006_v55 }
 0x517   : > { %v3169_v59 = vpop.permute.xlu2 %3168  ;;  %10385 = vrcp.f32 %v12489_v32  ;;  %v2545_v32 = vmul.f32 1.442695, %v2527_v62 }
 0x518   : > { %3190 = vmatpush.bf16.msrb.mxu1 %v3169_v59 }
 0x519   : > { %8539 = vmatmul.msk.bf16.gmra.mxu0 %vm1353_vm1, %v12374_v43 }
 0x51c   : > { %v10384_v14 = vpop.eup %10383 }
 0x51d   : > { %v2010_v23 = vpop.xlane.xlu0 %2009  ;;  %v10386_v31 = vpop.eup %10385  ;;  %v2044_v59 = vmul.f32 %v10384_v14, %v12426_v61 }
 0x51e   : > { %v12551_v24 = vpop.f32.mrf.mxu0  ;;  %v2043_v4 = vmul.f32 %v10386_v31, %v12345_v58  ;;  %10387 = vrcp.f32 %v2010_v23  ;;  %v2646_v58 = vpop.permute.xlu1 %2645 }
 0x51f   : > { %10389 = vpow2.f32 %v2545_v32 }
 0x520   : > { %v2055_v1 = vpack.c.bf16 %v2044_v59, %v2043_v4  ;;  %10391 = vrcp.f32 %v2008_v22 }
 0x521   : > { %2106 = vmatmul.bf16.gmra.mxu2 %v2054_v8  ;;  %v10067_v8 = vld [vmem:[%s15317_s1 + $0xc8] sm:$0xff]   ;;  %10393 = vrcp.f32 %v12541_v33 }
 0x522   : > { %v9562_v49 = vunpack.c.l.bf16 %v10067_v8  ;;  %v9563_v23 = vunpack.c.h.bf16 %v10067_v8  ;;  %10395 = vrcp.f32 %v12533_v46 }
 0x524   : > { %v10388_v57 = vpop.eup %10387 }
 0x525   : > { %v2046_v22 = vmul.f32 %v10388_v57, %v12429_v38 }
 0x526   : > { %v2954_v44 = vpop.f32.mrf.mxu0 }
 0x527   : > { %v2955_v43 = vadd.f32 %v9558_v16, %v2954_v44 }
 0x529   : > { %v12558_v0 = vadd.f32 %v2955_v43, %v11868_v60  ;;  %v12572_v43 = vpop.eup %10389 }
 0x52a   : > { %v10392_v31 = vpop.eup %10391 }
 0x52b   : > { %3010 = vmax.xlane.f32.xlu0 %v12558_v0  ;;  %v2045_v62 = vmul.f32 %v10392_v31, %v12396_v12  ;;  %v10069_v31 = vld [vmem:[%s15317_s1 + $0xd8] sm:$0xff]  }
 0x52d   : > { %v2056_v4 = vpack.c.bf16 %v2046_v22, %v2045_v62 }
 0x52e   : > { %v2956_v35 = vpop.f32.mrf.mxu0 }
 0x52f   : > { %v2957_v20 = vadd.f32 %v9559_v9, %v2956_v35  ;;  %v10068_v35 = vld [vmem:[%s15317_s1 + $0xd0] sm:$0xff]  }
 0x530   : > { %v2648_v55 = vpop.permute.xlu0 %2647 }
 0x531   : > { %v12569_v16 = vadd.f32 %v2957_v20, %v11868_v60  ;;  %2111 = vmatmul.bf16.gmra.mxu2 %v2055_v1  ;;  %v9566_v20 = vunpack.c.l.bf16 %v10068_v35  ;;  %v10394_v1 = vpop.eup %10393 }
 0x532   : > { %2675 = vmatpush.bf16.msrb.mxu2 %v2648_v55  ;;  %v10396_v8 = vpop.eup %10395 }
 0x533   : > { %3012 = vmax.xlane.f32.xlu2 %v12569_v16 }
 0x536   : > { %2676 = vmatpush.bf16.msrb.mxu2 %v2646_v58  ;;  %v2959_v61 = vpop.f32.mrf.mxu0  ;;  %v2048_v58 = vmul.f32 %v10394_v1, %v12419_v29  ;;  %v9570_v29 = vunpack.c.l.bf16 %v10069_v31 }
 0x537   : > { %v2960_v56 = vadd.f32 %v9562_v49, %v2959_v61  ;;  %v9567_v49 = vunpack.c.h.bf16 %v10068_v35  ;;  %v2047_v61 = vmul.f32 %v10396_v8, %v12408_v7 }
 0x538   : > { %v3167_v44 = vpop.permute.xlu0 %3166 }
 0x539   : > { %v12575_v14 = vadd.f32 %v2960_v56, %v11868_v60  ;;  %3191 = vmatpush.bf16.msrb.mxu1 %v3167_v44  ;;  %v2057_v57 = vpack.c.bf16 %v2048_v58, %v2047_v61  ;;  %v10070_v61 = vld [vmem:[%s15317_s1 + $0xe0] sm:$0xff]  }
 0x53b   : > { %3014 = vmax.xlane.f32.xlu0 %v12575_v14  ;;  %2577 = vadd.xlane.f32.xlu2 %v12572_v43 }
 0x53e   : > { %v2961_v9 = vpop.f32.mrf.mxu0 }
 0x53f   : > { %v2962_v59 = vadd.f32 %v9563_v23, %v2961_v9 }
 0x541   : > { %v12585_v32 = vadd.f32 %v2962_v59, %v11868_v60  ;;  %2116 = vmatmul.bf16.gmra.mxu2 %v2056_v4 }
 0x543   : > { %3016 = vmax.xlane.f32.xlu2 %v12585_v32 }
 0x546   : > { %v2964_v38 = vpop.f32.mrf.mxu0 }
 0x547   : > { %v2965_v12 = vadd.f32 %v9566_v20, %v2964_v38  ;;  %v9571_v20 = vunpack.c.h.bf16 %v10069_v31  ;;  %v1721_v31 = vpack.c.bf16 %v12438_v48, %v12424_v13  ;;  %v1723_v13 = vpack.c.bf16 %v12474_v2, %v12464_v3  ;;  %v2462_v3 = vpop.f32.mrf.mxu1 }
 0x549   : > { %v12591_v55 = vadd.f32 %v2965_v12, %v11868_v60 }
 0x54b   : > { %3018 = vmax.xlane.f32.xlu0 %v12591_v55 }
 0x54e   : > { %v2966_v33 = vpop.f32.mrf.mxu0 }
 0x54f   : > { %v2967_v56 = vadd.f32 %v9567_v49, %v2966_v33 }
 0x550   : > { %v2018_v44 = vpop.xlane.xlu2 %2017 }
 0x551   : > { %v12597_v46 = vadd.f32 %v2967_v56, %v11868_v60  ;;  %2121 = vmatmul.bf16.gmra.mxu2 %v2057_v57  ;;  %10397 = vrcp.f32 %v2018_v44  ;;  %v9575_v44 = vunpack.c.h.bf16 %v10070_v61 }
 0x552   : > { %10399 = vrcp.f32 %v12505_v45 }
 0x553   : > { %3020 = vmax.xlane.f32.xlu2 %v12597_v46 }
 0x556   : > { %v2097_v23 = vpop.f32.mrf.mxu2  ;;  %v2969_v7 = vpop.f32.mrf.mxu0 }
 0x557   : > { %v10398_v22 = vpop.eup %10397  ;;  %v2970_v62 = vadd.f32 %v9570_v29, %v2969_v7 }
 0x558   : > { %v2576_v9 = vpop.xlane.xlu2 %2575  ;;  %v10400_v59 = vpop.eup %10399  ;;  %v2050_v35 = vmul.f32 %v10398_v22, %v12487_v28  ;;  %v1722_v22 = vpack.c.bf16 %v12455_v5, %v12442_v47 }
 0x559   : > { %v12605_v4 = vadd.f32 %v2970_v62, %v11868_v60  ;;  %v2049_v38 = vmul.f32 %v10400_v59, %v12353_v40  ;;  %v9574_v40 = vunpack.c.l.bf16 %v10070_v61 }
 0x55b   : > { %3022 = vmax.xlane.f32.xlu1 %v12605_v4  ;;  %v2058_v8 = vpack.c.bf16 %v2050_v35, %v2049_v38 }
 0x55e   : > { %v2099_v12 = vpop.f32.mrf.mxu2  ;;  %v2971_v45 = vpop.f32.mrf.mxu0 }
 0x55f   : > { %v2133_v1 = vpack.c.bf16 %v2099_v12, %v2097_v23  ;;  %v2972_v49 = vadd.f32 %v9571_v20, %v2971_v45 }
 0x560   : > { %v3165_v58 = vpop.permute.xlu2 %3164 }
 0x561   : > { %2126 = vmatmul.bf16.gmra.mxu2 %v2058_v8  ;;  %8449 = vmatmul.msk.bf16.gmra.mxu3 %vm1353_vm1, %v2133_v1  ;;  %v12615_v28 = vadd.f32 %v2972_v49, %v11868_v60 }
 0x562   : > { %3192 = vmatpush.bf16.msrb.mxu1 %v3165_v58 }
 0x563   : > { %3024 = vmax.xlane.f32.xlu2 %v12615_v28  ;;  %v2574_v62 = vpop.xlane.xlu0 %2573 }
 0x564   : > { %10401 = vrcp.f32 %v2574_v62 }
 0x566   : > { %v2974_v33 = vpop.f32.mrf.mxu0 }
 0x567   : > { %v2975_v56 = vadd.f32 %v9574_v40, %v2974_v33  ;;  %v10063_v40 = vld [vmem:[%s15317_s1 + $0xa8] sm:$0xff]  }
 0x569   : > { %v12619_v57 = vadd.f32 %v2975_v56, %v11868_v60 }
 0x56a   : > { %v10402_v1 = vpop.eup %10401 }
 0x56b   : > { %3026 = vmax.xlane.f32.xlu0 %v12619_v57  ;;  %v12637_v59 = vpop.xlane.xlu0 %2511  ;;  %v2621_v34 = vmul.f32 %v10402_v1, %v12514_v15 }
 0x56e   : > { %v2976_v29 = vpop.f32.mrf.mxu0 }
 0x56f   : > { %v2977_v23 = vadd.f32 %v9575_v44, %v2976_v29  ;;  %v9547_v44 = vunpack.c.h.bf16 %v10063_v40 }
 0x571   : > { %8468 = vmatmul.msk.bf16.vlgmr.msra.gmra.mxu2 %vm1353_vm1, %v1721_v31  ;;  %v12626_v7 = vadd.f32 %v2977_v23, %v11868_v60  ;;  %v2464_v31 = vpop.f32.mrf.mxu1 }
 0x573   : > { %3028 = vmax.xlane.f32.xlu0 %v12626_v7 }
 0x574   : > { %3162 = vrot.lane.b32.xlu1 %v15332_v30, %s15267_s30 }
 0x576   : > { %v12652_v63 = vpop.f32.mrf.mxu0 }
 0x581   : > { %8469 = vmatmul.msk.bf16.gmra.mxu2 %vm1353_vm1, %v1722_v22  ;;  %v2465_v22 = vadd.f32 %v9547_v44, %v2464_v31 }
 0x591   : > { %8470 = vmatmul.msk.bf16.gmra.mxu2 %vm1353_vm1, %v1723_v13 }
 0x594   : > { %v2102_v48 = vpop.f32.mrf.mxu2 }
 0x59c   : > { %v2104_v35 = vpop.f32.mrf.mxu2 }
 0x59d   : > { %v2134_v20 = vpack.c.bf16 %v2104_v35, %v2102_v48 }
 0x59e   : > { %v3011_v38 = vpop.xlane.xlu0 %3010 }
 0x59f   : > { %v3042_v12 = vsub.f32 %v12558_v0, %v3011_v38  ;;  %8450 = vmatmul.msk.bf16.gmra.mxu3 %vm1353_vm1, %v2134_v20  ;;  %v12648_v0 = vpop.xlane.xlu1 %2509  ;;  %v12667_v38 = vadd.f32 %v2465_v22, %v11868_v60 }
 0x5a1   : > { %v3058_v30 = vmul.f32 1.442695, %v3042_v12  ;;  %8471 = vmatmul.msk.bf16.gmra.mxu2 %vm1353_vm1, %v1724_v52 }
 0x5a3   : > { %10403 = vpow2.f32 %v3058_v30  ;;  %v9546_v30 = vunpack.c.l.bf16 %v10063_v40  ;;  %v10072_v40 = vld [vmem:[%s15317_s1 + $0xf0] sm:$0xff]  }
 0x5a4   : > { %10405 = vrcp.f32 %v2576_v9  ;;  %v2107_v47 = vpop.f32.mrf.mxu2  ;;  %v9583_v44 = vunpack.c.h.bf16 %v10072_v40 }
 0x5a5   : > { %v2463_v1 = vadd.f32 %v9546_v30, %v2462_v3 }
 0x5a6   : > { %v3013_v5 = vpop.xlane.xlu2 %3012 }
 0x5a7   : > { %v3043_v2 = vsub.f32 %v12569_v16, %v3013_v5  ;;  %v2580_v29 = vpop.xlane.xlu1 %2579  ;;  %v2529_v5 = vsub.f32 %v12415_v41, %v12543_v26  ;;  %v12690_v3 = vadd.f32 %v2463_v1, %v11868_v60 }
 0x5a9   : > { %v12646_v45 = vpop.eup %10403  ;;  %v3060_v8 = vmul.f32 1.442695, %v3043_v2 }
 0x5aa   : > { %v10406_v49 = vpop.eup %10405  ;;  %3090 = vadd.xlane.f32.xlu0 %v12646_v45 }
 0x5ab   : > { %10407 = vpow2.f32 %v3060_v8  ;;  %v2622_v9 = vmul.f32 %v10406_v49, %v12502_v27  ;;  %v2530_v27 = vsub.f32 %v12321_v39, %v12468_v50 }
 0x5ac   : > { %v2109_v52 = vpop.f32.mrf.mxu2 }
 0x5ad   : > { %v2135_v58 = vpack.c.bf16 %v2109_v52, %v2107_v47  ;;  %v2637_v33 = vpack.c.bf16 %v2622_v9, %v2621_v34  ;;  %v2551_v13 = vmul.f32 1.442695, %v2530_v27  ;;  %v2531_v47 = vsub.f32 %v12333_v51, %v12478_v25  ;;  %v2467_v34 = vpop.f32.mrf.mxu1  ;;  %v10071_v9 = vld [vmem:[%s15317_s1 + $0xe8] sm:$0xff]  }
 0x5ae   : > { %v2578_v61 = vpop.xlane.xlu2 %2577  ;;  %v3015_v16 = vpop.xlane.xlu0 %3014  ;;  %v9579_v41 = vunpack.c.h.bf16 %v10071_v9  ;;  %v9578_v27 = vunpack.c.l.bf16 %v10071_v9 }
 0x5af   : > { %v3044_v56 = vsub.f32 %v12575_v14, %v3015_v16  ;;  %8451 = vmatmul.msk.bf16.gmra.mxu3 %vm1353_vm1, %v2135_v58  ;;  %10409 = vrcp.f32 %v2578_v61  ;;  %v2981_v14 = vpop.f32.mrf.mxu0  ;;  %v2553_v52 = vmul.f32 1.442695, %v2531_v47  ;;  %v10064_v16 = vld [vmem:[%s15317_s1 + $0xb0] sm:$0xff]  }
 0x5b0   : > { %v2980_v30 = vadd.f32 %v9578_v27, %v12652_v63  ;;  %v2534_v63 = vsub.f32 %v12518_v36, %v12637_v59 }
 0x5b1   : > { %v12660_v15 = vpop.eup %10407  ;;  %v3062_v23 = vmul.f32 1.442695, %v3044_v56  ;;  %2677 = vmatmul.bf16.vlgmr.msrb.gmra.mxu2 %v2637_v33  ;;  %v9551_v33 = vunpack.c.h.bf16 %v10064_v16 }
 0x5b2   : > { %3092 = vadd.xlane.f32.xlu2 %v12660_v15  ;;  %v12727_v1 = vadd.f32 %v2980_v30, %v11868_v60 }
 0x5b3   : > { %10411 = vpow2.f32 %v3062_v23 }
 0x5b4   : > { %10413 = vrcp.f32 %v2580_v29  ;;  %v2112_v62 = vpop.f32.mrf.mxu2 }
 0x5b5   : > { %v10410_v20 = vpop.eup %10409  ;;  %10415 = vpow2.f32 %v2551_v13  ;;  %v2469_v23 = vpop.f32.mrf.mxu1 }
 0x5b6   : > { %v3017_v48 = vpop.xlane.xlu2 %3016  ;;  %v2470_v13 = vadd.f32 %v9551_v33, %v2469_v23 }
 0x5b7   : > { %v3045_v35 = vsub.f32 %v12585_v32, %v3017_v48  ;;  %v2623_v32 = vmul.f32 %v10410_v20, %v12572_v43  ;;  %v12682_v58 = vpop.f32.mrf.mxu0  ;;  %v2549_v43 = vmul.f32 1.442695, %v2529_v5  ;;  %v12715_v20 = vld [vmem:[%s15317_s1 + $0xb8] sm:$0xff]   ;;  %v9550_v5 = vunpack.c.l.bf16 %v10064_v16 }
 0x5b8   : > { %v12720_v47 = vadd.f32 %v2470_v13, %v11868_v60 }
 0x5b9   : > { %v12669_v12 = vpop.eup %10411  ;;  %v3064_v39 = vmul.f32 1.442695, %v3045_v35  ;;  %v2468_v9 = vadd.f32 %v9550_v5, %v2467_v34 }
 0x5ba   : > { %v10414_v50 = vpop.eup %10413  ;;  %2515 = vmax.xlane.f32.xlu2 %v12667_v38  ;;  %3094 = vadd.xlane.f32.xlu0 %v12669_v12 }
 0x5bb   : > { %10417 = vpow2.f32 %v3064_v39  ;;  %v2624_v49 = vmul.f32 %v10414_v50, %v12499_v21  ;;  %v12685_v25 = vpop.eup %10415  ;;  %v2982_v21 = vadd.f32 %v9579_v41, %v2981_v14  ;;  %v12742_v36 = vadd.f32 %v2468_v9, %v11868_v60 }
 0x5bc   : > { %v2114_v2 = vpop.f32.mrf.mxu2  ;;  %10419 = vpow2.f32 %v2553_v52 }
 0x5bd   : > { %v2136_v8 = vpack.c.bf16 %v2114_v2, %v2112_v62  ;;  %v2638_v51 = vpack.c.bf16 %v2624_v49, %v2623_v32  ;;  %10421 = vpow2.f32 %v2549_v43  ;;  %v12702_v56 = vadd.f32 %v2982_v21, %v11868_v60  ;;  %v2472_v2 = vpop.f32.mrf.mxu1 }
 0x5be   : > { %v2532_v49 = vsub.f32 %v12387_v17, %v12522_v37  ;;  %v3019_v43 = vpop.xlane.xlu0 %3018 }
 0x5bf   : > { %8452 = vmatmul.msk.bf16.gmra.mxu3 %vm1353_vm1, %v2136_v8  ;;  %v2986_v22 = vpop.f32.mrf.mxu0  ;;  %v3046_v59 = vsub.f32 %v12591_v55, %v3019_v43 }
 0x5c0   : > { %v2987_v48 = vadd.f32 %v9583_v44, %v2986_v22  ;;  %v2555_v21 = vmul.f32 1.442695, %v2532_v49  ;;  %v10073_v49 = vld [vmem:[%s15317_s1 + $0xf8] sm:$0xff]  }
 0x5c1   : > { %v12687_v26 = vpop.eup %10417  ;;  %2682 = vmatmul.bf16.gmra.mxu2 %v2638_v51  ;;  %v2559_v51 = vmul.f32 1.442695, %v2534_v63  ;;  %v3066_v44 = vmul.f32 1.442695, %v3046_v59 }
 0x5c2   : > { %2583 = vadd.xlane.f32.xlu2 %v12685_v25  ;;  %3096 = vadd.xlane.f32.xlu1 %v12687_v26  ;;  %v12704_v29 = vpop.eup %10419  ;;  %v12724_v32 = vadd.f32 %v2987_v48, %v11868_v60 }
 0x5c3   : > { %2513 = vmax.xlane.f32.xlu0 %v12690_v3  ;;  %v12706_v62 = vpop.eup %10421 }
 0x5c4   : > { %v2117_v61 = vpop.f32.mrf.mxu2 }
 0x5c6   : > { %v3021_v31 = vpop.xlane.xlu2 %3020 }
 0x5c7   : > { %v3047_v14 = vsub.f32 %v12597_v46, %v3021_v31  ;;  %v9554_v46 = vunpack.c.l.bf16 %v12715_v20 }
 0x5c9   : > { %v3068_v50 = vmul.f32 1.442695, %v3047_v14  ;;  %v2473_v8 = vadd.f32 %v9554_v46, %v2472_v2  ;;  %v9555_v46 = vunpack.c.h.bf16 %v12715_v20  ;;  %v2474_v2 = vpop.f32.mrf.mxu1  ;;  %v9587_v20 = vunpack.c.h.bf16 %v10073_v49 }
 0x5ca   : > { %3032 = vmax.xlane.f32.xlu2 %v12702_v56  ;;  %2585 = vadd.xlane.f32.xlu1 %v12704_v29 }
 0x5cb   : > { %2581 = vadd.xlane.f32.xlu0 %v12706_v62  ;;  %10423 = vpow2.f32 %v3068_v50  ;;  %v12737_v41 = vadd.f32 %v2473_v8, %v11868_v60  ;;  %v2475_v63 = vadd.f32 %v9555_v46, %v2474_v2 }
 0x5cc   : > { %v2119_v35 = vpop.f32.mrf.mxu2  ;;  %10425 = vpow2.f32 %v2559_v51 }
 0x5cd   : > { %v2137_v39 = vpack.c.bf16 %v2119_v35, %v2117_v61  ;;  %v9582_v61 = vunpack.c.l.bf16 %v10072_v40  ;;  %10427 = vpow2.f32 %v2555_v21  ;;  %v12782_v51 = vadd.f32 %v2475_v63, %v11868_v60 }
 0x5ce   : > { %v3023_v31 = vpop.xlane.xlu1 %3022  ;;  %10429 = vpow2.f32 %v3066_v44 }
 0x5cf   : > { %8453 = vmatmul.msk.bf16.gmra.mxu3 %vm1353_vm1, %v2137_v39  ;;  %v2985_v37 = vadd.f32 %v9582_v61, %v12682_v58  ;;  %v2533_v58 = vsub.f32 %v12447_v10, %v12648_v0  ;;  %v3048_v10 = vsub.f32 %v12605_v4, %v3023_v31 }
 0x5d1   : > { %v12739_v33 = vpop.eup %10423  ;;  %v12752_v55 = vadd.f32 %v2985_v37, %v11868_v60  ;;  %v2557_v35 = vmul.f32 1.442695, %v2533_v58 }
 0x5d2   : > { %2519 = vmax.xlane.f32.xlu2 %v12720_v47  ;;  %3036 = vmax.xlane.f32.xlu1 %v12724_v32  ;;  %v12755_v14 = vpop.eup %10425 }
 0x5d3   : > { %3030 = vmax.xlane.f32.xlu0 %v12727_v1 }
 0x5d4   : > { %v2122_v52 = vpop.f32.mrf.mxu2 }
 0x5d6   : > { %v3025_v16 = vpop.xlane.xlu2 %3024 }
 0x5d7   : > { %v3049_v17 = vsub.f32 %v12615_v28, %v3025_v16  ;;  %v12757_v28 = vpop.eup %10427  ;;  %v9586_v16 = vunpack.c.l.bf16 %v10073_v49 }
 0x5d8   : > { %v12764_v39 = vpop.eup %10429 }
 0x5d9   : > { %v3072_v23 = vmul.f32 1.442695, %v3049_v17 }
 0x5da   : > { %2521 = vmax.xlane.f32.xlu1 %v12737_v41  ;;  %3100 = vadd.xlane.f32.xlu2 %v12739_v33 }
 0x5db   : > { %2517 = vmax.xlane.f32.xlu0 %v12742_v36  ;;  %10431 = vpow2.f32 %v3072_v23 }
 0x5dc   : > { %v2124_v34 = vpop.f32.mrf.mxu2 }
 0x5dd   : > { %v2138_v40 = vpack.c.bf16 %v2124_v34, %v2122_v52  ;;  %v3070_v52 = vmul.f32 1.442695, %v3048_v10 }
 0x5de   : > { %v3027_v27 = vpop.xlane.xlu0 %3026 }
 0x5df   : > { %8454 = vmatmul.msk.bf16.gmra.mxu3 %vm1353_vm1, %v2138_v40  ;;  %v3050_v22 = vsub.f32 %v12619_v57, %v3027_v27  ;;  %v2989_v57 = vpop.f32.mrf.mxu0 }
 0x5e0   : > { %v2990_v40 = vadd.f32 %v9586_v16, %v2989_v57 }
 0x5e1   : > { %v3074_v13 = vmul.f32 1.442695, %v3050_v22  ;;  %v12766_v50 = vpop.eup %10431 }
 0x5e2   : > { %3034 = vmax.xlane.f32.xlu2 %v12752_v55  ;;  %2591 = vadd.xlane.f32.xlu1 %v12755_v14  ;;  %v12799_v31 = vadd.f32 %v2990_v40, %v11868_v60 }
 0x5e3   : > { %2587 = vadd.xlane.f32.xlu0 %v12757_v28  ;;  %10433 = vpow2.f32 %v3074_v13 }
 0x5e4   : > { %v2127_v48 = vpop.f32.mrf.mxu2  ;;  %10435 = vpow2.f32 %v2557_v35 }
 0x5e5   : > { %10437 = vpow2.f32 %v3070_v52 }
 0x5e6   : > { %v3163_v30 = vpop.permute.xlu1 %3162  ;;  %v3029_v59 = vpop.xlane.xlu0 %3028 }
 0x5e7   : > { %3193 = vmatpush.bf16.msrb.mxu1 %v3163_v30  ;;  %v2991_v43 = vpop.f32.mrf.mxu0  ;;  %v3051_v37 = vsub.f32 %v12626_v7, %v3029_v59  ;;  %v9305_v7 = vld [vmem:[%s15241_s5 + $0x28] sm:$0xff] }
 0x5e8   : > { %v2992_v4 = vadd.f32 %v9587_v20, %v2991_v43  ;;  %2773 = vmatpush.bf16.msrb.mxu3 %v9305_v7 }
 0x5e9   : > { %v12769_v5 = vpop.eup %10433  ;;  %v3076_v44 = vmul.f32 1.442695, %v3051_v37 }
 0x5ea   : > { %3104 = vadd.xlane.f32.xlu2 %v12766_v50  ;;  %3106 = vadd.xlane.f32.xlu1 %v12769_v5  ;;  %v12779_v9 = vpop.eup %10435  ;;  %v12789_v61 = vadd.f32 %v2992_v4, %v11868_v60 }
 0x5eb   : > { %3098 = vadd.xlane.f32.xlu0 %v12764_v39  ;;  %v12791_v17 = vpop.eup %10437  ;;  %10439 = vpow2.f32 %v3076_v44 }
 0x5ec   : > { %v2129_v0 = vpop.f32.mrf.mxu2 }
 0x5ed   : > { %v2139_v8 = vpack.c.bf16 %v2129_v0, %v2127_v48  ;;  %v9304_v48 = vld [vmem:[%s15241_s5 + $0x20] sm:$0xff] }
 0x5ee   : > { %2774 = vmatpush.bf16.msrb.mxu3 %v9304_v48 }
 0x5ef   : > { %8455 = vmatmul.msk.bf16.gmra.mxu3 %vm1353_vm1, %v2139_v8 }
 0x5f1   : > { %v12804_v27 = vpop.eup %10439 }
 0x5f2   : > { %2589 = vadd.xlane.f32.xlu2 %v12779_v9 }
 0x5f3   : > { %2523 = vmax.xlane.f32.xlu0 %v12782_v51 }
 0x5f4   : > { %v12786_v21 = vpop.f32.mrf.mxu2 }
 0x5fa   : > { %3040 = vmax.xlane.f32.xlu2 %v12789_v61 }
 0x5fb   : > { %3102 = vadd.xlane.f32.xlu0 %v12791_v17 }
 0x5fc   : > { %v12796_v34 = vpop.f32.mrf.mxu2 }
 0x603   : > { %3038 = vmax.xlane.f32.xlu0 %v12799_v31 }
 0x604   : > { %v12802_v23 = vpop.f32.mrf.mxu2 }
 0x60b   : > { %3108 = vadd.xlane.f32.xlu0 %v12804_v27 }
 0x60c   : > { %v12807_v22 = vpop.f32.mrf.mxu2 }
 0x614   : > { %v12809_v13 = vpop.f32.mrf.mxu2 }
 0x61c   : > { %v12814_v58 = vpop.f32.mrf.mxu2 }
 0x61d   : > { %v3091_v35 = vpop.xlane.xlu0 %3090 }
 0x61e   : > { %10441 = vrcp.f32 %v3091_v35 }
 0x624   : > { %v12819_v57 = vpop.f32.mrf.mxu2  ;;  %v10442_v46 = vpop.eup %10441 }
 0x625   : > { %v3093_v30 = vpop.xlane.xlu2 %3092  ;;  %v3138_v0 = vmul.f32 %v10442_v46, %v12646_v45 }
 0x626   : > { %10443 = vrcp.f32 %v3093_v30 }
 0x62c   : > { %v10444_v2 = vpop.eup %10443  ;;  %v12821_v10 = vpop.f32.mrf.mxu2 }
 0x62d   : > { %v3139_v63 = vmul.f32 %v10444_v2, %v12660_v15  ;;  %v2516_v8 = vpop.xlane.xlu2 %2515  ;;  %v3095_v49 = vpop.xlane.xlu0 %3094 }
 0x62e   : > { %v2536_v20 = vsub.f32 %v12667_v38, %v2516_v8 }
 0x62f   : > { %v3154_v52 = vpack.c.bf16 %v3139_v63, %v3138_v0 }
 0x630   : > { %v2563_v43 = vmul.f32 1.442695, %v2536_v20 }
 0x631   : > { %3194 = vmatmul.bf16.vlgmr.msrb.gmra.mxu1 %v3154_v52 }
 0x632   : > { %10445 = vpow2.f32 %v2563_v43 }
 0x633   : > { %10447 = vrcp.f32 %v3095_v49 }
 0x634   : > { %v2678_v4 = vpop.f32.mrf.mxu2 }
 0x635   : > { %v3097_v16 = vpop.xlane.xlu1 %3096  ;;  %v2584_v59 = vpop.xlane.xlu2 %2583 }
 0x636   : > { %10449 = vrcp.f32 %v3097_v16  ;;  %v2514_v37 = vpop.xlane.xlu0 %2513 }
 0x637   : > { %v2535_v40 = vsub.f32 %v12690_v3, %v2514_v37 }
 0x638   : > { %v12827_v44 = vpop.eup %10445 }
 0x639   : > { %v2561_v45 = vmul.f32 1.442695, %v2535_v40  ;;  %2595 = vadd.xlane.f32.xlu1 %v12827_v44  ;;  %v10448_v15 = vpop.eup %10447 }
 0x63a   : > { %v3140_v46 = vmul.f32 %v10448_v15, %v12669_v12 }
 0x63b   : > { %10451 = vpow2.f32 %v2561_v45 }
 0x63c   : > { %v10450_v38 = vpop.eup %10449  ;;  %v2680_v7 = vpop.f32.mrf.mxu2  ;;  %10453 = vrcp.f32 %v2584_v59 }
 0x63d   : > { %v2718_v48 = vpack.c.bf16 %v2680_v7, %v2678_v4  ;;  %v2586_v35 = vpop.xlane.xlu1 %2585  ;;  %v3033_v30 = vpop.xlane.xlu2 %3032  ;;  %v3141_v2 = vmul.f32 %v10450_v38, %v12687_v26 }
 0x63e   : > { %v3053_v0 = vsub.f32 %v12702_v56, %v3033_v30  ;;  %v2582_v3 = vpop.xlane.xlu0 %2581 }
 0x63f   : > { %10455 = vrcp.f32 %v2582_v3  ;;  %8508 = vmatmul.msk.bf16.vlgmr.msrb.gmra.mxu3 %vm1353_vm1, %v2718_v48  ;;  %v3155_v63 = vpack.c.bf16 %v3141_v2, %v3140_v46 }
 0x640   : > { %v3080_v8 = vmul.f32 1.442695, %v3053_v0 }
 0x641   : > { %v12834_v49 = vpop.eup %10451  ;;  %3199 = vmatmul.bf16.gmra.mxu1 %v3155_v63 }
 0x642   : > { %10457 = vpow2.f32 %v3080_v8  ;;  %2593 = vadd.xlane.f32.xlu2 %v12834_v49  ;;  %v10454_v20 = vpop.eup %10453 }
 0x643   : > { %v2626_v56 = vmul.f32 %v10454_v20, %v12685_v25 }
 0x644   : > { %v2683_v52 = vpop.f32.mrf.mxu2 }
 0x645   : > { %v10456_v43 = vpop.eup %10455  ;;  %v2520_v12 = vpop.xlane.xlu2 %2519 }
 0x646   : > { %v3031_v4 = vpop.xlane.xlu0 %3030  ;;  %v2625_v26 = vmul.f32 %v10456_v43, %v12706_v62  ;;  %v3037_v16 = vpop.xlane.xlu1 %3036  ;;  %v2538_v15 = vsub.f32 %v12720_v47, %v2520_v12 }
 0x647   : > { %v3052_v59 = vsub.f32 %v12727_v1, %v3031_v4  ;;  %v3055_v0 = vsub.f32 %v12724_v32, %v3037_v16 }
 0x648   : > { %v12840_v37 = vpop.eup %10457  ;;  %v2639_v40 = vpack.c.bf16 %v2626_v56, %v2625_v26  ;;  %v2567_v25 = vmul.f32 1.442695, %v2538_v15 }
 0x649   : > { %v3078_v45 = vmul.f32 1.442695, %v3052_v59  ;;  %v3084_v8 = vmul.f32 1.442695, %v3055_v0 }
 0x64a   : > { %3112 = vadd.xlane.f32.xlu2 %v12840_v37  ;;  %2687 = vmatmul.bf16.gmra.mxu2 %v2639_v40 }
 0x64b   : > { %10459 = vpow2.f32 %v3078_v45 }
 0x64c   : > { %v2685_v38 = vpop.f32.mrf.mxu2 }
 0x64d   : > { %v2719_v7 = vpack.c.bf16 %v2685_v38, %v2683_v52  ;;  %v3101_v48 = vpop.xlane.xlu2 %3100 }
 0x64e   : > { %v2518_v30 = vpop.xlane.xlu0 %2517  ;;  %v2522_v1 = vpop.xlane.xlu1 %2521 }
 0x64f   : > { %v2537_v62 = vsub.f32 %v12742_v36, %v2518_v30  ;;  %8509 = vmatmul.msk.bf16.gmra.mxu3 %vm1353_vm1, %v2719_v7  ;;  %v2539_v47 = vsub.f32 %v12737_v41, %v2522_v1 }
 0x651   : > { %v2565_v46 = vmul.f32 1.442695, %v2537_v62  ;;  %v12846_v2 = vpop.eup %10459  ;;  %v2569_v20 = vmul.f32 1.442695, %v2539_v47 }
 0x652   : > { %3110 = vadd.xlane.f32.xlu0 %v12846_v2 }
 0x653   : > { %10461 = vpow2.f32 %v2565_v46 }
 0x654   : > { %10463 = vpow2.f32 %v2567_v25 }
 0x655   : > { %10465 = vrcp.f32 %v2586_v35  ;;  %v3035_v3 = vpop.xlane.xlu2 %3034 }
 0x656   : > { %v3054_v63 = vsub.f32 %v12752_v55, %v3035_v3  ;;  %v2588_v36 = vpop.xlane.xlu0 %2587  ;;  %v2592_v40 = vpop.xlane.xlu1 %2591 }
 0x657   : > { %10467 = vrcp.f32 %v2588_v36 }
 0x658   : > { %v3082_v52 = vmul.f32 1.442695, %v3054_v63 }
 0x659   : > { %v12852_v43 = vpop.eup %10461 }
 0x65a   : > { %v12854_v12 = vpop.eup %10463  ;;  %10469 = vpow2.f32 %v3082_v52  ;;  %2597 = vadd.xlane.f32.xlu1 %v12852_v43 }
 0x65b   : > { %v10466_v32 = vpop.eup %10465  ;;  %10471 = vpow2.f32 %v3084_v8  ;;  %2599 = vadd.xlane.f32.xlu0 %v12854_v12 }
 0x65c   : > { %10473 = vpow2.f32 %v2569_v20  ;;  %v2627_v4 = vmul.f32 %v10466_v32, %v12704_v29 }
 0x65d   : > { %v10468_v41 = vpop.eup %10467  ;;  %v3105_v35 = vpop.xlane.xlu2 %3104  ;;  %10475 = vrcp.f32 %v3101_v48 }
 0x65e   : > { %v3099_v55 = vpop.xlane.xlu0 %3098  ;;  %v2628_v26 = vmul.f32 %v10468_v41, %v12757_v28 }
 0x65f   : > { %10477 = vrcp.f32 %v3099_v55  ;;  %v3107_v55 = vpop.xlane.xlu1 %3106 }
 0x660   : > { %v12860_v56 = vpop.eup %10469  ;;  %v2640_v16 = vpack.c.bf16 %v2628_v26, %v2627_v4  ;;  %10479 = vrcp.f32 %v2592_v40 }
 0x661   : > { %v12862_v59 = vpop.eup %10471  ;;  %3114 = vadd.xlane.f32.xlu2 %v12860_v56 }
 0x662   : > { %v12865_v45 = vpop.eup %10473  ;;  %3116 = vadd.xlane.f32.xlu1 %v12862_v59  ;;  %2692 = vmatmul.bf16.gmra.mxu2 %v2640_v16 }
 0x663   : > { %2601 = vadd.xlane.f32.xlu0 %v12865_v45  ;;  %v10476_v15 = vpop.eup %10475 }
 0x664   : > { %v3143_v30 = vmul.f32 %v10476_v15, %v12739_v33 }
 0x665   : > { %v2590_v29 = vpop.xlane.xlu2 %2589  ;;  %v10478_v28 = vpop.eup %10477 }
 0x666   : > { %10481 = vrcp.f32 %v2590_v29  ;;  %v2524_v38 = vpop.xlane.xlu0 %2523  ;;  %v3142_v48 = vmul.f32 %v10478_v28, %v12764_v39  ;;  %v10480_v1 = vpop.eup %10479 }
 0x667   : > { %v2540_v7 = vsub.f32 %v12782_v51, %v2524_v38  ;;  %v2630_v3 = vmul.f32 %v10480_v1, %v12755_v14  ;;  %v9307_v38 = vld [vmem:[%s15241_s5 + $0x38] sm:$0xff] }
 0x668   : > { %v3156_v25 = vpack.c.bf16 %v3143_v30, %v3142_v48  ;;  %3290 = vmatpush.bf16.msra.mxu2 %v9307_v38 }
 0x669   : > { %v2571_v62 = vmul.f32 1.442695, %v2540_v7 }
 0x66a   : > { %3204 = vmatmul.bf16.gmra.mxu1 %v3156_v25 }
 0x66b   : > { %10483 = vpow2.f32 %v2571_v62 }
 0x66c   : > { %v10482_v46 = vpop.eup %10481  ;;  %10485 = vrcp.f32 %v3105_v35 }
 0x66d   : > { %v3041_v0 = vpop.xlane.xlu2 %3040  ;;  %v2629_v47 = vmul.f32 %v10482_v46, %v12779_v9 }
 0x66e   : > { %v3057_v63 = vsub.f32 %v12789_v61, %v3041_v0  ;;  %v3103_v36 = vpop.xlane.xlu0 %3102 }
 0x66f   : > { %10487 = vrcp.f32 %v3103_v36  ;;  %v2641_v51 = vpack.c.bf16 %v2630_v3, %v2629_v47 }
 0x670   : > { %v3088_v39 = vmul.f32 1.442695, %v3057_v63 }
 0x671   : > { %v12875_v8 = vpop.eup %10483 }
 0x672   : > { %10489 = vpow2.f32 %v3088_v39  ;;  %2697 = vmatmul.bf16.gmra.mxu2 %v2641_v51  ;;  %2603 = vadd.xlane.f32.xlu2 %v12875_v8  ;;  %v10486_v33 = vpop.eup %10485 }
 0x673   : > { %v3145_v9 = vmul.f32 %v10486_v33, %v12766_v50 }
 0x675   : > { %v10488_v20 = vpop.eup %10487 }
 0x676   : > { %v3039_v52 = vpop.xlane.xlu0 %3038  ;;  %v3144_v32 = vmul.f32 %v10488_v20, %v12791_v17 }
 0x677   : > { %v3056_v14 = vsub.f32 %v12799_v31, %v3039_v52 }
 0x678   : > { %v12881_v61 = vpop.eup %10489  ;;  %v3157_v41 = vpack.c.bf16 %v3145_v9, %v3144_v32  ;;  %v12898_v9 = vpop.f32.mrf.mxu3 }
 0x679   : > { %v3086_v35 = vmul.f32 1.442695, %v3056_v14  ;;  %3120 = vadd.xlane.f32.xlu0 %v12881_v61 }
 0x67a   : > { %3209 = vmatmul.bf16.gmra.mxu1 %v3157_v41 }
 0x67b   : > { %10491 = vpow2.f32 %v3086_v35 }
 0x67c   : > { %10493 = vrcp.f32 %v3107_v55 }
 0x67e   : > { %v3109_v4 = vpop.xlane.xlu0 %3108 }
 0x67f   : > { %10495 = vrcp.f32 %v3109_v4 }
 0x681   : > { %v12884_v26 = vpop.eup %10491 }
 0x682   : > { %3118 = vadd.xlane.f32.xlu1 %v12884_v26  ;;  %v10494_v17 = vpop.eup %10493 }
 0x683   : > { %v3146_v31 = vmul.f32 %v10494_v17, %v12769_v5 }
 0x685   : > { %v10496_v50 = vpop.eup %10495 }
 0x686   : > { %v3147_v16 = vmul.f32 %v10496_v50, %v12804_v27 }
 0x688   : > { %v3158_v40 = vpack.c.bf16 %v3147_v16, %v3146_v31 }
 0x68a   : > { %3214 = vmatmul.bf16.gmra.mxu1 %v3158_v40 }
 0x6ac   : > { %v2596_v15 = vpop.xlane.xlu1 %2595 }
 0x6ad   : > { %10497 = vrcp.f32 %v2596_v15 }
 0x6ae   : > { %v3195_v17 = vpop.f32.mrf.mxu1 }
 0x6b3   : > { %v10498_v28 = vpop.eup %10497 }
 0x6b4   : > { %v2632_v30 = vmul.f32 %v10498_v28, %v12827_v44 }
 0x6b5   : > { %v2594_v29 = vpop.xlane.xlu2 %2593 }
 0x6b6   : > { %10499 = vrcp.f32 %v2594_v29  ;;  %v3197_v28 = vpop.f32.mrf.mxu1 }
 0x6bc   : > { %v10500_v7 = vpop.eup %10499 }
 0x6bd   : > { %v2631_v48 = vmul.f32 %v10500_v7, %v12834_v49  ;;  %v3113_v27 = vpop.xlane.xlu2 %3112 }
 0x6be   : > { %10501 = vrcp.f32 %v3113_v27 }
 0x6bf   : > { %v2642_v5 = vpack.c.bf16 %v2632_v30, %v2631_v48 }
 0x6c1   : > { %2702 = vmatmul.bf16.gmra.mxu2 %v2642_v5 }
 0x6c4   : > { %v10502_v25 = vpop.eup %10501 }
 0x6c5   : > { %v3111_v62 = vpop.xlane.xlu0 %3110  ;;  %v3149_v63 = vmul.f32 %v10502_v25, %v12840_v37 }
 0x6c6   : > { %10503 = vrcp.f32 %v3111_v62  ;;  %v3200_v62 = vpop.f32.mrf.mxu1 }
 0x6cc   : > { %v10504_v1 = vpop.eup %10503 }
 0x6cd   : > { %v2688_v46 = vpop.f32.mrf.mxu2  ;;  %v2598_v0 = vpop.xlane.xlu1 %2597  ;;  %v3148_v3 = vmul.f32 %v10504_v1, %v12846_v2 }
 0x6ce   : > { %10505 = vrcp.f32 %v2598_v0  ;;  %v2600_v47 = vpop.xlane.xlu0 %2599 }
 0x6cf   : > { %10507 = vrcp.f32 %v2600_v47  ;;  %v3159_v49 = vpack.c.bf16 %v3149_v63, %v3148_v3  ;;  %v3235_v3 = vpack.c.bf16 %v3197_v28, %v3195_v17 }
 0x6d1   : > { %3219 = vmatmul.bf16.gmra.mxu1 %v3159_v49  ;;  %v3202_v49 = vpop.f32.mrf.mxu1 }
 0x6d4   : > { %v10506_v44 = vpop.eup %10505  ;;  %v3115_v36 = vpop.xlane.xlu2 %3114 }
 0x6d5   : > { %v10508_v51 = vpop.eup %10507  ;;  %10509 = vrcp.f32 %v3115_v36  ;;  %v2690_v39 = vpop.f32.mrf.mxu2  ;;  %v2633_v20 = vmul.f32 %v10506_v44, %v12852_v43  ;;  %v9306_v43 = vld [vmem:[%s15241_s5 + $0x30] sm:$0xff] }
 0x6d6   : > { %v3117_v33 = vpop.xlane.xlu1 %3116  ;;  %v2720_v52 = vpack.c.bf16 %v2690_v39, %v2688_v46  ;;  %v2634_v32 = vmul.f32 %v10508_v51, %v12854_v12  ;;  %3291 = vmatpush.bf16.msra.mxu2 %v9306_v43  ;;  %v2602_v4 = vpop.xlane.xlu0 %2601  ;;  %v3236_v51 = vpack.c.bf16 %v3202_v49, %v3200_v62 }
 0x6d7   : > { %10511 = vrcp.f32 %v3117_v33  ;;  %v12906_v12 = vpop.f32.mrf.mxu3 }
 0x6d8   : > { %8510 = vmatmul.msk.bf16.gmra.mxu3 %vm1353_vm1, %v2720_v52  ;;  %v2643_v37 = vpack.c.bf16 %v2634_v32, %v2633_v20  ;;  %10513 = vrcp.f32 %v2602_v4 }
 0x6da   : > { %2707 = vmatmul.bf16.gmra.mxu2 %v2643_v37 }
 0x6db   : > { %v10510_v2 = vpop.eup %10509 }
 0x6dc   : > { %v3150_v41 = vmul.f32 %v10510_v2, %v12860_v56 }
 0x6dd   : > { %v10512_v14 = vpop.eup %10511 }
 0x6de   : > { %v3151_v35 = vmul.f32 %v10512_v14, %v12862_v59  ;;  %v10514_v16 = vpop.eup %10513 }
 0x6df   : > { %v12908_v40 = vpop.f32.mrf.mxu3  ;;  %v2635_v15 = vmul.f32 %v10514_v16, %v12865_v45 }
 0x6e0   : > { %v3160_v55 = vpack.c.bf16 %v3151_v35, %v3150_v41 }
 0x6e2   : > { %3224 = vmatmul.bf16.gmra.mxu1 %v3160_v55 }
 0x6e5   : > { %v2693_v50 = vpop.f32.mrf.mxu2  ;;  %v2604_v31 = vpop.xlane.xlu2 %2603 }
 0x6e6   : > { %10515 = vrcp.f32 %v2604_v31 }
 0x6e7   : > { %v12913_v30 = vpop.f32.mrf.mxu3  ;;  %v3205_v36 = vpop.f32.mrf.mxu1 }
 0x6ec   : > { %v10516_v56 = vpop.eup %10515  ;;  %v3121_v48 = vpop.xlane.xlu0 %3120 }
 0x6ed   : > { %v2695_v59 = vpop.f32.mrf.mxu2  ;;  %v2636_v29 = vmul.f32 %v10516_v56, %v12875_v8  ;;  %10517 = vrcp.f32 %v3121_v48 }
 0x6ee   : > { %v2721_v38 = vpack.c.bf16 %v2695_v59, %v2693_v50 }
 0x6ef   : > { %v2644_v7 = vpack.c.bf16 %v2636_v29, %v2635_v15  ;;  %v12915_v46 = vpop.f32.mrf.mxu3 }
 0x6f0   : > { %8511 = vmatmul.msk.bf16.gmra.mxu3 %vm1353_vm1, %v2721_v38 }
 0x6f1   : > { %2712 = vmatmul.bf16.gmra.mxu2 %v2644_v7 }
 0x6f3   : > { %v10518_v25 = vpop.eup %10517 }
 0x6f4   : > { %v3153_v0 = vmul.f32 %v10518_v25, %v12881_v61 }
 0x6f5   : > { %v2698_v5 = vpop.f32.mrf.mxu2  ;;  %v3119_v27 = vpop.xlane.xlu1 %3118 }
 0x6f6   : > { %10519 = vrcp.f32 %v3119_v27 }
 0x6f7   : > { %v12921_v44 = vpop.f32.mrf.mxu3 }
 0x6fc   : > { %v10520_v1 = vpop.eup %10519 }
 0x6fd   : > { %v2700_v45 = vpop.f32.mrf.mxu2  ;;  %v3152_v8 = vmul.f32 %v10520_v1, %v12884_v26  ;;  %v3207_v26 = vpop.f32.mrf.mxu1 }
 0x6fe   : > { %v2722_v47 = vpack.c.bf16 %v2700_v45, %v2698_v5  ;;  %v3237_v20 = vpack.c.bf16 %v3207_v26, %v3205_v36  ;;  %v2276_v36 = vadd.f32 %v12507_v42, %v12898_v9  ;;  %v9589_v26 = vld [vmem:[#allocation2] sm:$0xff]  }
 0x6ff   : > { %v3161_v63 = vpack.c.bf16 %v3153_v0, %v3152_v8  ;;  %v12923_v39 = vpop.f32.mrf.mxu3 }
 0x700   : > { %8512 = vmatmul.msk.bf16.gmra.mxu3 %vm1353_vm1, %v2722_v47 }
 0x701   : > { %3229 = vmatmul.bf16.gmra.mxu1 %v3161_v63  ;;  %8552 = vmatmul.msk.bf16.vlgmr.msra.gmra.mxu2 %vm1353_vm1, %v3235_v3 }
 0x705   : > { %v3210_v61 = vpop.f32.mrf.mxu1 }
 0x707   : > { %v12926_v33 = vpop.f32.mrf.mxu3 }
 0x70d   : > { %v3212_v32 = vpop.f32.mrf.mxu1 }
 0x70e   : > { %v3238_v2 = vpack.c.bf16 %v3212_v32, %v3210_v61  ;;  %v2278_v61 = vadd.f32 %v12512_v11, %v12906_v12 }
 0x70f   : > { %v12929_v52 = vpop.f32.mrf.mxu3 }
 0x711   : > { %8553 = vmatmul.msk.bf16.gmra.mxu2 %vm1353_vm1, %v3236_v51 }
 0x715   : > { %v3215_v14 = vpop.f32.mrf.mxu1 }
 0x717   : > { %v12931_v37 = vpop.f32.mrf.mxu3 }
 0x71d   : > { %v3217_v35 = vpop.f32.mrf.mxu1 }
 0x71e   : > { %v3239_v43 = vpack.c.bf16 %v3217_v35, %v3215_v14  ;;  %v9590_v14 = vunpack.c.l.bf16 %v9589_v26  ;;  %v9591_v35 = vunpack.c.h.bf16 %v9589_v26 }
 0x71f   : > { %v12934_v41 = vpop.f32.mrf.mxu3 }
 0x721   : > { %8554 = vmatmul.msk.bf16.gmra.mxu2 %vm1353_vm1, %v3237_v20 }
 0x727   : > { %v12937_v55 = vpop.f32.mrf.mxu3 }
 0x72f   : > { %v12939_v17 = vpop.f32.mrf.mxu3 }
 0x731   : > { %8555 = vmatmul.msk.bf16.gmra.mxu2 %vm1353_vm1, %v3238_v2 }
 0x737   : > { %v12942_v56 = vpop.f32.mrf.mxu3 }
 0x73f   : > { %v12945_v38 = vpop.f32.mrf.mxu3 }
 0x741   : > { %8556 = vmatmul.msk.bf16.gmra.mxu2 %vm1353_vm1, %v3239_v43 }
 0x744   : > { %v2703_v4 = vpop.f32.mrf.mxu2 }
 0x747   : > { %v12948_v62 = vpop.f32.mrf.mxu3 }
 0x74c   : > { %v2705_v50 = vpop.f32.mrf.mxu2 }
 0x74d   : > { %v2723_v31 = vpack.c.bf16 %v2705_v50, %v2703_v4 }
 0x74e   : > { %v3220_v16 = vpop.f32.mrf.mxu1 }
 0x74f   : > { %8513 = vmatmul.msk.bf16.gmra.mxu3 %vm1353_vm1, %v2723_v31  ;;  %v2776_v25 = vpop.f32.mrf.mxu3 }
 0x750   : > { %v2816_v20 = vadd.f32 %v2776_v25, %v2276_v36 }
 0x756   : > { %v3222_v59 = vpop.f32.mrf.mxu1 }
 0x757   : > { %v3240_v15 = vpack.c.bf16 %v3222_v59, %v3220_v16  ;;  %v2778_v45 = vpop.f32.mrf.mxu3 }
 0x758   : > { %v2817_v32 = vadd.f32 %v2778_v45, %v2278_v61  ;;  %v2288_v61 = vadd.f32 %v12539_v19, %v12921_v44 }
 0x759   : > { %8557 = vmatmul.msk.bf16.gmra.mxu2 %vm1353_vm1, %v3240_v15 }
 0x75d   : > { %v2708_v29 = vpop.f32.mrf.mxu2 }
 0x75f   : > { %v3225_v28 = vpop.f32.mrf.mxu1  ;;  %v2781_v63 = vpop.f32.mrf.mxu3 }
 0x765   : > { %v2710_v7 = vpop.f32.mrf.mxu2 }
 0x766   : > { %v2724_v48 = vpack.c.bf16 %v2710_v7, %v2708_v29  ;;  %v2281_v29 = vadd.f32 %v12520_v6, %v12908_v40  ;;  %v10074_v7 = vld [vmem:[#allocation2 + $0x8] sm:$0xff]  }
 0x767   : > { %v3227_v5 = vpop.f32.mrf.mxu1  ;;  %v2783_v16 = vpop.f32.mrf.mxu3  ;;  %v9595_v45 = vunpack.c.h.bf16 %v10074_v7 }
 0x768   : > { %v3241_v27 = vpack.c.bf16 %v3227_v5, %v3225_v28  ;;  %8514 = vmatmul.msk.bf16.gmra.mxu3 %vm1353_vm1, %v2724_v48  ;;  %v2283_v48 = vadd.f32 %v12529_v54, %v12913_v30  ;;  %v2818_v5 = vadd.f32 %v2781_v63, %v2281_v29  ;;  %v2286_v30 = vadd.f32 %v12531_v53, %v12915_v46  ;;  %v10075_v63 = vld [vmem:[#allocation2 + $0x10] sm:$0xff]   ;;  %v10076_v29 = vld [vmem:[#allocation2 + $0x18] sm:$0xff]  }
 0x76a   : > { %8558 = vmatmul.msk.bf16.gmra.mxu2 %vm1353_vm1, %v3241_v27  ;;  %v2819_v27 = vadd.f32 %v2783_v16, %v2283_v48 }
 0x76f   : > { %v2786_v28 = vpop.f32.mrf.mxu3 }
 0x774   : > { %v2713_v1 = vpop.f32.mrf.mxu2 }
 0x777   : > { %v2788_v36 = vpop.f32.mrf.mxu3 }
 0x77c   : > { %v2715_v8 = vpop.f32.mrf.mxu2 }
 0x77d   : > { %v2725_v0 = vpack.c.bf16 %v2715_v8, %v2713_v1  ;;  %v9594_v1 = vunpack.c.l.bf16 %v10074_v7 }
 0x77e   : > { %v3230_v47 = vpop.f32.mrf.mxu1 }
 0x77f   : > { %8515 = vmatmul.msk.bf16.gmra.mxu3 %vm1353_vm1, %v2725_v0 }
 0x784   : > { %v3293_v3 = vpop.f32.mrf.mxu2 }
 0x785   : > { %v3333_v2 = vadd.f32 %v3293_v3, %v2816_v20  ;;  %v2820_v20 = vadd.f32 %v2786_v28, %v2286_v30  ;;  %v2293_v28 = vadd.f32 %v12551_v24, %v12926_v33  ;;  %v2296_v33 = vadd.f32 %v12786_v21, %v12929_v52 }
 0x786   : > { %v3232_v49 = vpop.f32.mrf.mxu1 }
 0x787   : > { %v3242_v51 = vpack.c.bf16 %v3232_v49, %v3230_v47  ;;  %v3381_v50 = vadd.f32 %v9590_v14, %v3333_v2  ;;  %v2821_v2 = vadd.f32 %v2788_v36, %v2288_v61 }
 0x789   : > { %8559 = vmatmul.msk.bf16.gmra.mxu2 %vm1353_vm1, %v3242_v51 }
 0x78c   : > { %v3295_v43 = vpop.f32.mrf.mxu2 }
 0x78d   : > { %v3334_v4 = vadd.f32 %v3295_v43, %v2817_v32  ;;  %v2791_v32 = vpop.f32.mrf.mxu3  ;;  %v9599_v43 = vunpack.c.h.bf16 %v10075_v63 }
 0x78f   : > { %v3382_v31 = vadd.f32 %v9591_v35, %v3334_v4  ;;  %v9598_v35 = vunpack.c.l.bf16 %v10075_v63 }
 0x791   : > { %v9623_v59 = vpack.c.bf16 %v3382_v31, %v3381_v50 }
 0x793   : > { %v12957_v15 = vunpack.c.h.bf16 %v9623_v59  ;;  %v12959_v42 = vunpack.c.l.bf16 %v9623_v59 }
 0x794   : > { %v3298_v9 = vpop.f32.mrf.mxu2 }
 0x795   : > { %v3463_v11 = vmul.f32 %v12957_v15, %v12957_v15  ;;  %v3462_v12 = vmul.f32 %v12959_v42, %v12959_v42  ;;  %v3335_v25 = vadd.f32 %v3298_v9, %v2818_v5  ;;  %v2793_v46 = vpop.f32.mrf.mxu3 }
 0x796   : > { %v2823_v48 = vadd.f32 %v2793_v46, %v2293_v28  ;;  %v9322_v28 = vld [vmem:[%s15243_s7 + $0x74] sm:$0xf] }
 0x797   : > { %3480 = vadd.xlane.f32.xlu1 %v3463_v11  ;;  %3478 = vadd.xlane.f32.xlu2 %v3462_v12  ;;  %v3383_v47 = vadd.f32 %v9594_v1, %v3335_v25  ;;  %v2291_v12 = vadd.f32 %v12545_v18, %v12923_v39  ;;  %v9603_v25 = vunpack.c.h.bf16 %v10076_v29 }
 0x799   : > { %v2822_v7 = vadd.f32 %v2791_v32, %v2291_v12  ;;  %v8618_v12 = vld [vmem:[%s15243_s7 + $0x70] sm:$0xf] }
 0x79c   : > { %v3300_v8 = vpop.f32.mrf.mxu2 }
 0x79d   : > { %v3336_v0 = vadd.f32 %v3300_v8, %v2819_v27  ;;  %v9602_v27 = vunpack.c.l.bf16 %v10076_v29  ;;  %v2796_v8 = vpop.f32.mrf.mxu3  ;;  %v9323_v29 = vld [vmem:[%s15243_s7 + $0x74] sm:$0xf0] }
 0x79e   : > { %v2824_v30 = vadd.f32 %v2796_v8, %v2296_v33  ;;  %v8610_v8 = vld [vmem:[%s15243_s7 + $0x60] sm:$0xf] }
 0x79f   : > { %v3384_v3 = vadd.f32 %v9595_v45, %v3336_v0 }
 0x7a1   : > { %v9628_v49 = vpack.c.bf16 %v3384_v3, %v3383_v47 }
 0x7a3   : > { %v12969_v51 = vunpack.c.h.bf16 %v9628_v49  ;;  %v12971_v6 = vunpack.c.l.bf16 %v9628_v49 }
 0x7a4   : > { %v3303_v40 = vpop.f32.mrf.mxu2 }
 0x7a5   : > { %v3465_v26 = vmul.f32 %v12969_v51, %v12969_v51  ;;  %v3464_v54 = vmul.f32 %v12971_v6, %v12971_v6  ;;  %v3337_v14 = vadd.f32 %v3303_v40, %v2820_v20  ;;  %v2798_v40 = vpop.f32.mrf.mxu3 }
 0x7a7   : > { %3484 = vadd.xlane.f32.xlu2 %v3465_v26  ;;  %3482 = vadd.xlane.f32.xlu0 %v3464_v54  ;;  %v3385_v31 = vadd.f32 %v9598_v35, %v3337_v14  ;;  %v10077_v26 = vld [vmem:[#allocation2 + $0x20] sm:$0xff]   ;;  %v2298_v54 = vadd.f32 %v12796_v34, %v12931_v37 }
 0x7a8   : > { %v9606_v20 = vunpack.c.l.bf16 %v10077_v26  ;;  %v9607_v32 = vunpack.c.h.bf16 %v10077_v26 }
 0x7a9   : > { %v2825_v63 = vadd.f32 %v2798_v40, %v2298_v54  ;;  %v2306_v54 = vadd.f32 %v12809_v13, %v12939_v17  ;;  %v8604_v17 = vld [vmem:[%s15243_s7 + $0x58] sm:$0xf0] }
 0x7ac   : > { %v3305_v4 = vpop.f32.mrf.mxu2 }
 0x7ad   : > { %v3338_v50 = vadd.f32 %v3305_v4, %v2821_v2 }
 0x7af   : > { %v3386_v16 = vadd.f32 %v9599_v43, %v3338_v50 }
 0x7b1   : > { %v9633_v59 = vpack.c.bf16 %v3386_v16, %v3385_v31  ;;  %v2301_v16 = vadd.f32 %v12802_v23, %v12934_v41 }
 0x7b3   : > { %v12981_v9 = vunpack.c.h.bf16 %v9633_v59  ;;  %v12983_v53 = vunpack.c.l.bf16 %v9633_v59  ;;  %v10078_v59 = vld [vmem:[#allocation2 + $0x28] sm:$0xff]  }
 0x7b4   : > { %v3308_v11 = vpop.f32.mrf.mxu2 }
 0x7b5   : > { %v3467_v19 = vmul.f32 %v12981_v9, %v12981_v9  ;;  %v3466_v44 = vmul.f32 %v12983_v53, %v12983_v53  ;;  %v3339_v5 = vadd.f32 %v3308_v11, %v2822_v7  ;;  %v2303_v11 = vadd.f32 %v12807_v22, %v12937_v55  ;;  %v8620_v22 = vld [vmem:[%s15243_s7 + $0x78] sm:$0xf0] }
 0x7b6   : > { %v9611_v7 = vunpack.c.h.bf16 %v10078_v59 }
 0x7b7   : > { %3488 = vadd.xlane.f32.xlu0 %v3467_v19  ;;  %3486 = vadd.xlane.f32.xlu1 %v3466_v44  ;;  %v3387_v0 = vadd.f32 %v9602_v27, %v3339_v5  ;;  %v9610_v44 = vunpack.c.l.bf16 %v10078_v59  ;;  %v8623_v5 = vor.u32 %v9322_v28, %v8620_v22  ;;  %v9314_v28 = vld [vmem:[%s15243_s7 + $0x34] sm:$0xf] }
 0x7b9   : > { %3890 = vmatpush.bf16.msra.mxu0 %v8623_v5  ;;  %v8578_v5 = vld [vmem:[%s15243_s7 + $0x20] sm:$0xf] }
 0x7bc   : > { %v3310_v1 = vpop.f32.mrf.mxu2 }
 0x7bd   : > { %v3340_v45 = vadd.f32 %v3310_v1, %v2823_v48  ;;  %v8619_v48 = vor.u32 %v9323_v29, %v8618_v12  ;;  %v8586_v12 = vld [vmem:[%s15243_s7 + $0x30] sm:$0xf]  ;;  %v9315_v29 = vld [vmem:[%s15243_s7 + $0x34] sm:$0xf0] }
 0x7bf   : > { %v3388_v47 = vadd.f32 %v9603_v25, %v3340_v45  ;;  %3841 = vmatpush.bf16.msra.mxu3 %v8619_v48 }
 0x7c1   : > { %v9638_v3 = vpack.c.bf16 %v3388_v47, %v3387_v0  ;;  %v9321_v0 = vld [vmem:[%s15243_s7 + $0x64] sm:$0xf0]  ;;  %v9320_v47 = vld [vmem:[%s15243_s7 + $0x64] sm:$0xf] }
 0x7c3   : > { %v12993_v49 = vunpack.c.h.bf16 %v9638_v3  ;;  %v12995_v18 = vunpack.c.l.bf16 %v9638_v3 }
 0x7c4   : > { %v3313_v39 = vpop.f32.mrf.mxu2 }
 0x7c5   : > { %v3469_v36 = vmul.f32 %v12993_v49, %v12993_v49  ;;  %v3468_v24 = vmul.f32 %v12995_v18, %v12995_v18  ;;  %v3341_v61 = vadd.f32 %v3313_v39, %v2824_v30  ;;  %v8611_v39 = vor.u32 %v9321_v0, %v8610_v8 }
 0x7c7   : > { %3492 = vadd.xlane.f32.xlu1 %v3469_v36  ;;  %3490 = vadd.xlane.f32.xlu2 %v3468_v24  ;;  %v3389_v35 = vadd.f32 %v9606_v20, %v3341_v61  ;;  %v8612_v36 = vld [vmem:[%s15243_s7 + $0x68] sm:$0xf0]  ;;  %v8602_v61 = vld [vmem:[%s15243_s7 + $0x50] sm:$0xf]  ;;  %v9319_v20 = vld [vmem:[%s15243_s7 + $0x54] sm:$0xf0] }
 0x7c8   : > { %v8615_v40 = vor.u32 %v9320_v47, %v8612_v36  ;;  %3842 = vmatpush.bf16.msra.mxu3 %v8611_v39  ;;  %v8603_v13 = vor.u32 %v9319_v20, %v8602_v61  ;;  %v8570_v36 = vld [vmem:[%s15243_s7 + $0x10] sm:$0xf]  ;;  %v8562_v61 = vld [vmem:[%s15243_s7] sm:$0xf]  ;;  %v9309_v20 = vld [vmem:[%s15243_s7 + $0x4] sm:$0xf0] }
 0x7ca   : > { %3891 = vmatpush.bf16.msra.mxu0 %v8615_v40  ;;  %v9311_v40 = vld [vmem:[%s15243_s7 + $0x14] sm:$0xf0] }
 0x7cc   : > { %v3315_v2 = vpop.f32.mrf.mxu2  ;;  %3843 = vmatpush.bf16.msra.mxu3 %v8603_v13  ;;  %v8563_v13 = vor.u32 %v9309_v20, %v8562_v61  ;;  %v13152_v20 = vld [vmem:[%s15242_s6] ss:$0 sm:$0xff] }
 0x7cd   : > { %v3342_v14 = vadd.f32 %v3315_v2, %v2825_v63 }
 0x7cf   : > { %v3390_v43 = vadd.f32 %v9607_v32, %v3342_v14  ;;  %v9318_v32 = vld [vmem:[%s15243_s7 + $0x54] sm:$0xf] }
 0x7d0   : > { %v10079_v14 = vld [vmem:[#allocation2 + $0x30] sm:$0xff]  }
 0x7d1   : > { %v9643_v4 = vpack.c.bf16 %v3390_v43, %v3389_v35  ;;  %v8607_v35 = vor.u32 %v9318_v32, %v8604_v17  ;;  %v2308_v43 = vadd.f32 %v12814_v58, %v12942_v56  ;;  %v8596_v58 = vld [vmem:[%s15243_s7 + $0x48] sm:$0xf0]  ;;  %v9308_v32 = vld [vmem:[%s15243_s7 + $0x4] sm:$0xf] }
 0x7d2   : > { %v2801_v37 = vpop.f32.mrf.mxu3  ;;  %v8564_v17 = vld [vmem:[%s15243_s7 + $0x8] sm:$0xf0] }
 0x7d3   : > { %v13005_v50 = vunpack.c.h.bf16 %v9643_v4  ;;  %v13007_v21 = vunpack.c.l.bf16 %v9643_v4  ;;  %v2826_v19 = vadd.f32 %v2801_v37, %v2301_v16  ;;  %3892 = vmatpush.bf16.msra.mxu0 %v8607_v35  ;;  %v8594_v4 = vld [vmem:[%s15243_s7 + $0x40] sm:$0xf]  ;;  %v9614_v37 = vunpack.c.l.bf16 %v10079_v14 }
 0x7d5   : > { %v3471_v52 = vmul.f32 %v13005_v50, %v13005_v50  ;;  %v3470_v34 = vmul.f32 %v13007_v21, %v13007_v21 }
 0x7d7   : > { %3496 = vadd.xlane.f32.xlu2 %v3471_v52  ;;  %3494 = vadd.xlane.f32.xlu0 %v3470_v34  ;;  %v9317_v52 = vld [vmem:[%s15243_s7 + $0x44] sm:$0xf0]  ;;  %v9316_v34 = vld [vmem:[%s15243_s7 + $0x44] sm:$0xf] }
 0x7d8   : > { %v8595_v16 = vor.u32 %v9317_v52, %v8594_v4 }
 0x7da   : > { %v2803_v46 = vpop.f32.mrf.mxu3  ;;  %3844 = vmatpush.bf16.msra.mxu3 %v8595_v16 }
 0x7db   : > { %v2827_v23 = vadd.f32 %v2803_v46, %v2303_v11  ;;  %v9615_v46 = vunpack.c.h.bf16 %v10079_v14  ;;  %v8599_v11 = vor.u32 %v9316_v34, %v8596_v58  ;;  %v2311_v58 = vadd.f32 %v12819_v57, %v12945_v38 }
 0x7dc   : > { %v3318_v31 = vpop.f32.mrf.mxu2 }
 0x7dd   : > { %v3343_v41 = vadd.f32 %v3318_v31, %v2826_v19  ;;  %3893 = vmatpush.bf16.msra.mxu0 %v8599_v11 }
 0x7df   : > { %v3391_v25 = vadd.f32 %v9610_v44, %v3343_v41  ;;  %v8588_v41 = vld [vmem:[%s15243_s7 + $0x38] sm:$0xf0] }
 0x7e0   : > { %v8591_v22 = vor.u32 %v9314_v28, %v8588_v41 }
 0x7e2   : > { %3894 = vmatpush.bf16.msra.mxu0 %v8591_v22 }
 0x7e4   : > { %v3320_v55 = vpop.f32.mrf.mxu2 }
 0x7e5   : > { %v3344_v27 = vadd.f32 %v3320_v55, %v2827_v23  ;;  %v8587_v23 = vor.u32 %v9315_v29, %v8586_v12 }
 0x7e7   : > { %v3392_v1 = vadd.f32 %v9611_v7, %v3344_v27  ;;  %3845 = vmatpush.bf16.msra.mxu3 %v8587_v23  ;;  %v9313_v27 = vld [vmem:[%s15243_s7 + $0x24] sm:$0xf0] }
 0x7e9   : > { %v9648_v45 = vpack.c.bf16 %v3392_v1, %v3391_v25  ;;  %v9312_v25 = vld [vmem:[%s15243_s7 + $0x24] sm:$0xf]  ;;  %v8579_v1 = vor.u32 %v9313_v27, %v8578_v5 }
 0x7eb   : > { %v2806_v3 = vpop.f32.mrf.mxu3  ;;  %v13041_v24 = vunpack.c.h.bf16 %v9648_v45  ;;  %v13043_v33 = vunpack.c.l.bf16 %v9648_v45  ;;  %v8580_v45 = vld [vmem:[%s15243_s7 + $0x28] sm:$0xf0]  ;;  %3846 = vmatpush.bf16.msra.mxu3 %v8579_v1 }
 0x7ec   : > { %v2828_v2 = vadd.f32 %v2806_v3, %v2306_v54  ;;  %v8583_v47 = vor.u32 %v9312_v25, %v8580_v45  ;;  %v8571_v54 = vor.u32 %v9311_v40, %v8570_v36 }
 0x7ed   : > { %v3323_v26 = vpop.f32.mrf.mxu2  ;;  %v3473_v30 = vmul.f32 %v13041_v24, %v13041_v24  ;;  %v3472_v63 = vmul.f32 %v13043_v33, %v13043_v33 }
 0x7ee   : > { %v3345_v56 = vadd.f32 %v3323_v26, %v2828_v2  ;;  %3895 = vmatpush.bf16.msra.mxu0 %v8583_v47  ;;  %v9310_v26 = vld [vmem:[%s15243_s7 + $0x14] sm:$0xf]  ;;  %v8567_v2 = vor.u32 %v9308_v32, %v8564_v17 }
 0x7ef   : > { %3500 = vadd.xlane.f32.xlu0 %v3473_v30  ;;  %3498 = vadd.xlane.f32.xlu1 %v3472_v63  ;;  %v8572_v30 = vld [vmem:[%s15243_s7 + $0x18] sm:$0xf0] }
 0x7f0   : > { %v3393_v7 = vadd.f32 %v9614_v37, %v3345_v56  ;;  %v8575_v63 = vor.u32 %v9310_v26, %v8572_v30  ;;  %3847 = vmatpush.bf16.msra.mxu3 %v8571_v54 }
 0x7f2   : > { %3896 = vmatpush.bf16.msra.mxu0 %v8575_v63 }
 0x7f3   : > { %v2808_v31 = vpop.f32.mrf.mxu3 }
 0x7f4   : > { %v2829_v59 = vadd.f32 %v2808_v31, %v2308_v43  ;;  %3848 = vmatpush.bf16.msra.mxu3 %v8563_v13  ;;  %v15339_v43 = vld [vmem:[#allocation12_spill] sm:$0xff] }
 0x7f5   : > { %v3325_v19 = vpop.f32.mrf.mxu2 }
 0x7f6   : > { %v3346_v44 = vadd.f32 %v3325_v19, %v2829_v59  ;;  %3897 = vmatpush.bf16.msra.mxu0 %v8567_v2  ;;  %v10080_v59 = vld [vmem:[#allocation2 + $0x38] sm:$0xff]  }
 0x7f7   : > { %v9618_v12 = vunpack.c.l.bf16 %v10080_v59  ;;  %v9619_v29 = vunpack.c.h.bf16 %v10080_v59 }
 0x7f8   : > { %v3394_v48 = vadd.f32 %v9615_v46, %v3346_v44  ;;  %v2313_v46 = vadd.f32 %v12821_v10, %v12948_v62 }
 0x7fa   : > { %v9653_v55 = vpack.c.bf16 %v3394_v48, %v3393_v7 }
 0x7fc   : > { %v13101_v8 = vunpack.c.h.bf16 %v9653_v55  ;;  %v13103_v0 = vunpack.c.l.bf16 %v9653_v55 }
 0x7fe   : > { %v3475_v3 = vmul.f32 %v13101_v8, %v13101_v8  ;;  %v3474_v39 = vmul.f32 %v13103_v0, %v13103_v0 }
 0x800   : > { %3504 = vadd.xlane.f32.xlu1 %v3475_v3  ;;  %3502 = vadd.xlane.f32.xlu2 %v3474_v39 }
 0x802   : > { %v2811_v14 = vpop.f32.mrf.mxu3 }
 0x803   : > { %v2830_v11 = vadd.f32 %v2811_v14, %v2311_v58 }
 0x80a   : > { %v3481_v35 = vpop.xlane.xlu1 %3480  ;;  %v3479_v52 = vpop.xlane.xlu2 %3478 }
 0x80b   : > { %v3511_v4 = vmul.f32 %v3481_v35, %v15339_v43  ;;  %v3510_v37 = vmul.f32 %v3479_v52, %v15339_v43  ;;  %v2813_v56 = vpop.f32.mrf.mxu3 }
 0x80c   : > { %v3328_v34 = vpop.f32.mrf.mxu2  ;;  %v2831_v19 = vadd.f32 %v2813_v56, %v2313_v46 }
 0x80d   : > { %v3527_v31 = vadd.f32 1e-06, %v3511_v4  ;;  %v3526_v16 = vadd.f32 1e-06, %v3510_v37  ;;  %v3347_v44 = vadd.f32 %v3328_v34, %v2830_v11 }
 0x80f   : > { %10521 = vrsqrt.f32 %v3527_v31  ;;  %v3395_v22 = vadd.f32 %v9618_v12, %v3347_v44  ;;  %vm3558_vm4 = vweird.f32 %v3527_v31  ;;  %vm3548_vm6 = vweird.f32 %v3526_v16 }
 0x810   : > { %10523 = vrsqrt.f32 %v3526_v16 }
 0x814   : > { %v3330_v28 = vpop.f32.mrf.mxu2 }
 0x815   : > { %v10522_v23 = vpop.eup %10521  ;;  %v3348_v41 = vadd.f32 %v3330_v28, %v2831_v19 }
 0x816   : > { %v10524_v7 = vpop.eup %10523  ;;  %v3553_v48 = vmul.f32 %v10522_v23, %v3527_v31  ;;  %vm3559_vm2 = vweird.f32 %v10522_v23 }
 0x817   : > { %v3543_v55 = vmul.f32 %v10524_v7, %v3526_v16  ;;  %v3396_v57 = vadd.f32 %v9619_v29, %v3348_v41  ;;  %vm3549_vm3 = vweird.f32 %v10524_v7  ;;  %vm3560_vm5 = vmor %vm3558_vm4, %vm3559_vm2 }
 0x818   : > { %v3554_v38 = vmul.f32 %v10522_v23, %v3553_v48  ;;  %vm3550_vm7 = vmor %vm3548_vm6, %vm3549_vm3 }
 0x819   : > { %v3544_v5 = vmul.f32 %v10524_v7, %v3543_v55  ;;  %v9658_v27 = vpack.c.bf16 %v3396_v57, %v3395_v22 }
 0x81a   : > { %v3555_v25 = vmul.f32 0.5, %v3554_v38  ;;  %v3485_v1 = vpop.xlane.xlu2 %3484  ;;  %v3483_v45 = vpop.xlane.xlu0 %3482 }
 0x81b   : > { %v3545_v10 = vmul.f32 0.5, %v3544_v5  ;;  %v3513_v62 = vmul.f32 %v3485_v1, %v15339_v43  ;;  %v3512_v47 = vmul.f32 %v3483_v45, %v15339_v43  ;;  %v13141_v3 = vunpack.c.h.bf16 %v9658_v27 }
 0x81c   : > { %v3556_v39 = vsub.f32 1.5, %v3555_v25  ;;  %v13143_v36 = vunpack.c.l.bf16 %v9658_v27 }
 0x81d   : > { %v3546_v40 = vsub.f32 1.5, %v3545_v10  ;;  %v3529_v26 = vadd.f32 1e-06, %v3513_v62  ;;  %v3528_v54 = vadd.f32 1e-06, %v3512_v47  ;;  %v3477_v30 = vmul.f32 %v13141_v3, %v13141_v3 }
 0x81e   : > { %v3557_v63 = vmul.f32 %v10522_v23, %v3556_v39  ;;  %v3476_v61 = vmul.f32 %v13143_v36, %v13143_v36 }
 0x81f   : > { %v3547_v32 = vmul.f32 %v10524_v7, %v3546_v40  ;;  %10525 = vrsqrt.f32 %v3529_v26  ;;  %3508 = vadd.xlane.f32.xlu2 %v3477_v30  ;;  %vm3578_vm10 = vweird.f32 %v3529_v26  ;;  %vm3568_vm12 = vweird.f32 %v3528_v54 }
 0x820   : > { %v3561_v13 = vsel %vm3560_vm5, %v10522_v23, %v3557_v63  ;;  %10527 = vrsqrt.f32 %v3528_v54  ;;  %3506 = vadd.xlane.f32.xlu0 %v3476_v61 }
 0x821   : > { %v3703_v17 = vmul.f32 %v12957_v15, %v3561_v13  ;;  %v3551_v2 = vsel %vm3550_vm7, %v10524_v7, %v3547_v32 }
 0x822   : > { %v3702_v14 = vmul.f32 %v12959_v42, %v3551_v2 }
 0x823   : > { %v3722_v35 = vmul.f32 %v13152_v20, %v3703_v17 }
 0x824   : > { %v3721_v4 = vmul.f32 %v13152_v20, %v3702_v14 }
 0x825   : > { %v10526_v52 = vpop.eup %10525 }
 0x826   : > { %v10528_v34 = vpop.eup %10527  ;;  %v3573_v37 = vmul.f32 %v10526_v52, %v3529_v26  ;;  %v3737_v31 = vpack.c.bf16 %v3722_v35, %v3721_v4  ;;  %vm3579_vm8 = vweird.f32 %v10526_v52 }
 0x827   : > { %v3563_v16 = vmul.f32 %v10528_v34, %v3528_v54  ;;  %vm3569_vm9 = vweird.f32 %v10528_v34  ;;  %vm3580_vm11 = vmor %vm3578_vm10, %vm3579_vm8 }
 0x828   : > { %v3574_v58 = vmul.f32 %v10526_v52, %v3573_v37  ;;  %3849 = vmatmul.bf16.vlgmr.msra.gmra.mxu3 %v3737_v31  ;;  %3898 = vmatmul.bf16.vlgmr.msra.gmra.mxu0 %v3737_v31  ;;  %vm3570_vm13 = vmor %vm3568_vm12, %vm3569_vm9 }
 0x829   : > { %v3564_v56 = vmul.f32 %v10528_v34, %v3563_v16 }
 0x82a   : > { %v3575_v59 = vmul.f32 0.5, %v3574_v58  ;;  %v3487_v46 = vpop.xlane.xlu1 %3486  ;;  %v3489_v11 = vpop.xlane.xlu0 %3488 }
 0x82b   : > { %v3565_v19 = vmul.f32 0.5, %v3564_v56  ;;  %v3514_v44 = vmul.f32 %v3487_v46, %v15339_v43  ;;  %v3515_v12 = vmul.f32 %v3489_v11, %v15339_v43 }
 0x82c   : > { %v3576_v29 = vsub.f32 1.5, %v3575_v59 }
 0x82d   : > { %v3566_v28 = vsub.f32 1.5, %v3565_v19  ;;  %v3530_v23 = vadd.f32 1e-06, %v3514_v44  ;;  %v3531_v41 = vadd.f32 1e-06, %v3515_v12 }
 0x82e   : > { %v3577_v7 = vmul.f32 %v10526_v52, %v3576_v29 }
 0x82f   : > { %v3567_v48 = vmul.f32 %v10528_v34, %v3566_v28  ;;  %10529 = vrsqrt.f32 %v3530_v23  ;;  %vm3588_vm0 = vweird.f32 %v3530_v23  ;;  %vm3598_vm3 = vweird.f32 %v3531_v41 }
 0x830   : > { %10531 = vrsqrt.f32 %v3531_v41  ;;  %v3581_v22 = vsel %vm3580_vm11, %v10526_v52, %v3577_v7 }
 0x831   : > { %v3571_v55 = vsel %vm3570_vm13, %v10528_v34, %v3567_v48  ;;  %v3705_v57 = vmul.f32 %v12969_v51, %v3581_v22 }
 0x832   : > { %v3704_v38 = vmul.f32 %v12971_v6, %v3571_v55 }
 0x833   : > { %v3724_v5 = vmul.f32 %v13152_v20, %v3705_v57 }
 0x834   : > { %v3723_v27 = vmul.f32 %v13152_v20, %v3704_v38 }
 0x835   : > { %v10530_v25 = vpop.eup %10529 }
 0x836   : > { %v10532_v1 = vpop.eup %10531  ;;  %v3583_v45 = vmul.f32 %v10530_v25, %v3530_v23  ;;  %v3738_v10 = vpack.c.bf16 %v3724_v5, %v3723_v27  ;;  %vm3589_vm14 = vweird.f32 %v10530_v25 }
 0x837   : > { %v3593_v62 = vmul.f32 %v10532_v1, %v3531_v41  ;;  %vm3599_vm15 = vweird.f32 %v10532_v1  ;;  %vm3590_vm2 = vmor %vm3588_vm0, %vm3589_vm14 }
 0x838   : > { %v3584_v47 = vmul.f32 %v10530_v25, %v3583_v45  ;;  %3854 = vmatmul.bf16.gmra.mxu3 %v3738_v10  ;;  %3903 = vmatmul.bf16.gmra.mxu0 %v3738_v10  ;;  %vm3600_vm4 = vmor %vm3598_vm3, %vm3599_vm15 }
 0x839   : > { %v3594_v39 = vmul.f32 %v10532_v1, %v3593_v62 }
 0x83a   : > { %v3585_v40 = vmul.f32 0.5, %v3584_v47  ;;  %v3493_v26 = vpop.xlane.xlu1 %3492  ;;  %v3491_v54 = vpop.xlane.xlu2 %3490 }
 0x83b   : > { %v3595_v30 = vmul.f32 0.5, %v3594_v39  ;;  %v3517_v63 = vmul.f32 %v3493_v26, %v15339_v43  ;;  %v3516_v61 = vmul.f32 %v3491_v54, %v15339_v43 }
 0x83c   : > { %v3586_v32 = vsub.f32 1.5, %v3585_v40 }
 0x83d   : > { %v3596_v13 = vsub.f32 1.5, %v3595_v30  ;;  %v3533_v17 = vadd.f32 1e-06, %v3517_v63  ;;  %v3532_v2 = vadd.f32 1e-06, %v3516_v61 }
 0x83e   : > { %v3587_v14 = vmul.f32 %v10530_v25, %v3586_v32 }
 0x83f   : > { %v3597_v35 = vmul.f32 %v10532_v1, %v3596_v13  ;;  %10533 = vrsqrt.f32 %v3533_v17  ;;  %vm3618_vm7 = vweird.f32 %v3533_v17  ;;  %vm3608_vm9 = vweird.f32 %v3532_v2 }
 0x840   : > { %10535 = vrsqrt.f32 %v3532_v2  ;;  %v3591_v4 = vsel %vm3590_vm2, %v10530_v25, %v3587_v14 }
 0x841   : > { %v3601_v52 = vsel %vm3600_vm4, %v10532_v1, %v3597_v35  ;;  %v3706_v34 = vmul.f32 %v12983_v53, %v3591_v4 }
 0x842   : > { %v3707_v37 = vmul.f32 %v12981_v9, %v3601_v52 }
 0x843   : > { %v3725_v31 = vmul.f32 %v13152_v20, %v3706_v34 }
 0x844   : > { %v3726_v16 = vmul.f32 %v13152_v20, %v3707_v37 }
 0x845   : > { %v10534_v58 = vpop.eup %10533 }
 0x846   : > { %v10536_v56 = vpop.eup %10535  ;;  %v3613_v59 = vmul.f32 %v10534_v58, %v3533_v17  ;;  %v3739_v46 = vpack.c.bf16 %v3726_v16, %v3725_v31  ;;  %vm3619_vm5 = vweird.f32 %v10534_v58 }
 0x847   : > { %v3603_v11 = vmul.f32 %v10536_v56, %v3532_v2  ;;  %vm3609_vm6 = vweird.f32 %v10536_v56  ;;  %vm3620_vm8 = vmor %vm3618_vm7, %vm3619_vm5 }
 0x848   : > { %v3614_v19 = vmul.f32 %v10534_v58, %v3613_v59  ;;  %3859 = vmatmul.bf16.gmra.mxu3 %v3739_v46  ;;  %3908 = vmatmul.bf16.gmra.mxu0 %v3739_v46  ;;  %vm3610_vm10 = vmor %vm3608_vm9, %vm3609_vm6 }
 0x849   : > { %v3604_v44 = vmul.f32 %v10536_v56, %v3603_v11 }
 0x84a   : > { %v3615_v12 = vmul.f32 0.5, %v3614_v19  ;;  %v3497_v29 = vpop.xlane.xlu2 %3496  ;;  %v3495_v28 = vpop.xlane.xlu0 %3494 }
 0x84b   : > { %v3605_v23 = vmul.f32 0.5, %v3604_v44  ;;  %v3519_v41 = vmul.f32 %v3497_v29, %v15339_v43  ;;  %v3518_v7 = vmul.f32 %v3495_v28, %v15339_v43  ;;  %v9339_v44 = vld [vmem:[%s15244_s8 + $0x78] sm:$0xff] }
 0x84c   : > { %v3616_v48 = vsub.f32 1.5, %v3615_v12  ;;  %4164 = vmatpush.bf16.msrb.mxu2 %v9339_v44 }
 0x84d   : > { %v3606_v22 = vsub.f32 1.5, %v3605_v23  ;;  %v3535_v55 = vadd.f32 1e-06, %v3519_v41  ;;  %v3534_v57 = vadd.f32 1e-06, %v3518_v7  ;;  %v9331_v7 = vld [vmem:[%s15244_s8 + $0x38] sm:$0xff] }
 0x84e   : > { %v3617_v38 = vmul.f32 %v10534_v58, %v3616_v48  ;;  %4115 = vmatpush.bf16.msra.mxu1 %v9331_v7  ;;  %v9333_v7 = vld [vmem:[%s15244_s8 + $0x48] sm:$0xff] }
 0x84f   : > { %v3607_v5 = vmul.f32 %v10536_v56, %v3606_v22  ;;  %10537 = vrsqrt.f32 %v3535_v55  ;;  %vm3638_vm13 = vweird.f32 %v3535_v55  ;;  %vm3628_vm15 = vweird.f32 %v3534_v57 }
 0x850   : > { %10539 = vrsqrt.f32 %v3534_v57  ;;  %v3621_v27 = vsel %vm3620_vm8, %v10534_v58, %v3617_v38 }
 0x851   : > { %v3611_v25 = vsel %vm3610_vm10, %v10536_v56, %v3607_v5  ;;  %v3709_v1 = vmul.f32 %v12993_v49, %v3621_v27 }
 0x852   : > { %v3708_v45 = vmul.f32 %v12995_v18, %v3611_v25 }
 0x853   : > { %v3728_v10 = vmul.f32 %v13152_v20, %v3709_v1 }
 0x854   : > { %v3727_v62 = vmul.f32 %v13152_v20, %v3708_v45 }
 0x855   : > { %v10538_v47 = vpop.eup %10537 }
 0x856   : > { %v10540_v39 = vpop.eup %10539  ;;  %v3633_v40 = vmul.f32 %v10538_v47, %v3535_v55  ;;  %v3740_v26 = vpack.c.bf16 %v3728_v10, %v3727_v62  ;;  %vm3639_vm11 = vweird.f32 %v10538_v47  ;;  %v9338_v62 = vld [vmem:[%s15244_s8 + $0x70] sm:$0xff] }
 0x857   : > { %v3623_v54 = vmul.f32 %v10540_v39, %v3534_v57  ;;  %vm3629_vm12 = vweird.f32 %v10540_v39  ;;  %vm3640_vm14 = vmor %vm3638_vm13, %vm3639_vm11  ;;  %4165 = vmatpush.bf16.msrb.mxu2 %v9338_v62  ;;  %v9324_v62 = vld [vmem:[%s15244_s8] sm:$0xff] }
 0x858   : > { %v3634_v30 = vmul.f32 %v10538_v47, %v3633_v40  ;;  %3864 = vmatmul.bf16.gmra.mxu3 %v3740_v26  ;;  %3913 = vmatmul.bf16.gmra.mxu0 %v3740_v26  ;;  %vm3630_vm0 = vmor %vm3628_vm15, %vm3629_vm12 }
 0x859   : > { %v3624_v63 = vmul.f32 %v10540_v39, %v3623_v54 }
 0x85a   : > { %v3635_v61 = vmul.f32 0.5, %v3634_v30  ;;  %v9337_v30 = vld [vmem:[%s15244_s8 + $0x68] sm:$0xff] }
 0x85b   : > { %v3625_v32 = vmul.f32 0.5, %v3624_v63  ;;  %4166 = vmatpush.bf16.msrb.mxu2 %v9337_v30 }
 0x85c   : > { %v3636_v13 = vsub.f32 1.5, %v3635_v61 }
 0x85d   : > { %v3626_v17 = vsub.f32 1.5, %v3625_v32  ;;  %v9330_v32 = vld [vmem:[%s15244_s8 + $0x30] sm:$0xff] }
 0x85e   : > { %v3637_v2 = vmul.f32 %v10538_v47, %v3636_v13  ;;  %4116 = vmatpush.bf16.msra.mxu1 %v9330_v32 }
 0x85f   : > { %v3627_v14 = vmul.f32 %v10540_v39, %v3626_v17 }
 0x860   : > { %v3641_v35 = vsel %vm3640_vm14, %v10538_v47, %v3637_v2  ;;  %v9336_v2 = vld [vmem:[%s15244_s8 + $0x60] sm:$0xff] }
 0x861   : > { %v3631_v4 = vsel %vm3630_vm0, %v10540_v39, %v3627_v14  ;;  %v3711_v52 = vmul.f32 %v13005_v50, %v3641_v35  ;;  %4167 = vmatpush.bf16.msrb.mxu2 %v9336_v2 }
 0x862   : > { %v3710_v34 = vmul.f32 %v13007_v21, %v3631_v4  ;;  %v3499_v37 = vpop.xlane.xlu1 %3498  ;;  %v3501_v31 = vpop.xlane.xlu0 %3500 }
 0x863   : > { %v3730_v16 = vmul.f32 %v13152_v20, %v3711_v52  ;;  %v3520_v58 = vmul.f32 %v3499_v37, %v15339_v43  ;;  %v3521_v56 = vmul.f32 %v3501_v31, %v15339_v43 }
 0x864   : > { %v3729_v59 = vmul.f32 %v13152_v20, %v3710_v34  ;;  %v9329_v34 = vld [vmem:[%s15244_s8 + $0x28] sm:$0xff] }
 0x865   : > { %v3536_v46 = vadd.f32 1e-06, %v3520_v58  ;;  %v3537_v11 = vadd.f32 1e-06, %v3521_v56  ;;  %4117 = vmatpush.bf16.msra.mxu1 %v9329_v34 }
 0x866   : > { %v3741_v19 = vpack.c.bf16 %v3730_v16, %v3729_v59  ;;  %v9335_v16 = vld [vmem:[%s15244_s8 + $0x58] sm:$0xff]  ;;  %v9328_v59 = vld [vmem:[%s15244_s8 + $0x20] sm:$0xff] }
 0x867   : > { %10541 = vrsqrt.f32 %v3536_v46  ;;  %vm3648_vm4 = vweird.f32 %v3536_v46  ;;  %vm3658_vm6 = vweird.f32 %v3537_v11  ;;  %4168 = vmatpush.bf16.msrb.mxu2 %v9335_v16 }
 0x868   : > { %3869 = vmatmul.bf16.gmra.mxu3 %v3741_v19  ;;  %3918 = vmatmul.bf16.gmra.mxu0 %v3741_v19  ;;  %10543 = vrsqrt.f32 %v3537_v11  ;;  %v9334_v19 = vld [vmem:[%s15244_s8 + $0x50] sm:$0xff] }
 0x869   : > { %4118 = vmatpush.bf16.msra.mxu1 %v9328_v59 }
 0x86b   : > { %4169 = vmatpush.bf16.msrb.mxu2 %v9334_v19 }
 0x86d   : > { %v10542_v12 = vpop.eup %10541 }
 0x86e   : > { %v10544_v29 = vpop.eup %10543  ;;  %v3643_v28 = vmul.f32 %v10542_v12, %v3536_v46  ;;  %vm3649_vm2 = vweird.f32 %v10542_v12 }
 0x86f   : > { %v3653_v23 = vmul.f32 %v10544_v29, %v3537_v11  ;;  %vm3659_vm3 = vweird.f32 %v10544_v29  ;;  %vm3650_vm5 = vmor %vm3648_vm4, %vm3649_vm2  ;;  %4170 = vmatpush.bf16.msrb.mxu2 %v9333_v7 }
 0x870   : > { %v3644_v41 = vmul.f32 %v10542_v12, %v3643_v28  ;;  %vm3660_vm7 = vmor %vm3658_vm6, %vm3659_vm3 }
 0x871   : > { %v3654_v48 = vmul.f32 %v10544_v29, %v3653_v23 }
 0x872   : > { %v3645_v22 = vmul.f32 0.5, %v3644_v41 }
 0x873   : > { %v3505_v55 = vpop.xlane.xlu1 %3504  ;;  %v3503_v57 = vpop.xlane.xlu2 %3502  ;;  %v3655_v38 = vmul.f32 0.5, %v3654_v48 }
 0x874   : > { %v3523_v5 = vmul.f32 %v3505_v55, %v15339_v43  ;;  %v3522_v27 = vmul.f32 %v3503_v57, %v15339_v43  ;;  %v3646_v25 = vsub.f32 1.5, %v3645_v22  ;;  %v9326_v55 = vld [vmem:[%s15244_s8 + $0x10] sm:$0xff] }
 0x875   : > { %v3656_v1 = vsub.f32 1.5, %v3655_v38  ;;  %v9332_v38 = vld [vmem:[%s15244_s8 + $0x40] sm:$0xff] }
 0x876   : > { %v3539_v45 = vadd.f32 1e-06, %v3523_v5  ;;  %v3538_v10 = vadd.f32 1e-06, %v3522_v27  ;;  %v3647_v47 = vmul.f32 %v10542_v12, %v3646_v25  ;;  %4171 = vmatpush.bf16.msrb.mxu2 %v9332_v38  ;;  %v9325_v27 = vld [vmem:[%s15244_s8 + $0x8] sm:$0xff] }
 0x877   : > { %v3657_v39 = vmul.f32 %v10544_v29, %v3656_v1 }
 0x878   : > { %10545 = vrsqrt.f32 %v3539_v45  ;;  %v3651_v40 = vsel %vm3650_vm5, %v10542_v12, %v3647_v47  ;;  %vm3678_vm10 = vweird.f32 %v3539_v45  ;;  %v9327_v12 = vld [vmem:[%s15244_s8 + $0x18] sm:$0xff]  ;;  %vm3668_vm12 = vweird.f32 %v3538_v10 }
 0x879   : > { %10547 = vrsqrt.f32 %v3538_v10  ;;  %v3661_v26 = vsel %vm3660_vm7, %v10544_v29, %v3657_v39  ;;  %v3712_v54 = vmul.f32 %v13043_v33, %v3651_v40  ;;  %4119 = vmatpush.bf16.msra.mxu1 %v9327_v12 }
 0x87a   : > { %v3713_v63 = vmul.f32 %v13041_v24, %v3661_v26 }
 0x87b   : > { %v3731_v61 = vmul.f32 %v13152_v20, %v3712_v54 }
 0x87c   : > { %v3732_v13 = vmul.f32 %v13152_v20, %v3713_v63 }
 0x87d   : > { %4120 = vmatpush.bf16.msra.mxu1 %v9326_v55 }
 0x87e   : > { %v10546_v17 = vpop.eup %10545  ;;  %v3742_v4 = vpack.c.bf16 %v3732_v13, %v3731_v61 }
 0x87f   : > { %v10548_v14 = vpop.eup %10547  ;;  %v3673_v35 = vmul.f32 %v10546_v17, %v3539_v45  ;;  %vm3679_vm8 = vweird.f32 %v10546_v17 }
 0x880   : > { %v3663_v52 = vmul.f32 %v10548_v14, %v3538_v10  ;;  %3874 = vmatmul.bf16.gmra.mxu3 %v3742_v4  ;;  %3923 = vmatmul.bf16.gmra.mxu0 %v3742_v4  ;;  %vm3669_vm9 = vweird.f32 %v10548_v14  ;;  %vm3680_vm11 = vmor %vm3678_vm10, %vm3679_vm8 }
 0x881   : > { %v3674_v37 = vmul.f32 %v10546_v17, %v3673_v35  ;;  %vm3670_vm13 = vmor %vm3668_vm12, %vm3669_vm9  ;;  %4121 = vmatpush.bf16.msra.mxu1 %v9325_v27 }
 0x882   : > { %v3664_v31 = vmul.f32 %v10548_v14, %v3663_v52 }
 0x883   : > { %v3675_v58 = vmul.f32 0.5, %v3674_v37 }
 0x884   : > { %v3665_v56 = vmul.f32 0.5, %v3664_v31 }
 0x885   : > { %v3676_v46 = vsub.f32 1.5, %v3675_v58  ;;  %4122 = vmatpush.bf16.msra.mxu1 %v9324_v62 }
 0x886   : > { %v3666_v11 = vsub.f32 1.5, %v3665_v56 }
 0x887   : > { %v3677_v44 = vmul.f32 %v10546_v17, %v3676_v46 }
 0x888   : > { %v3667_v29 = vmul.f32 %v10548_v14, %v3666_v11 }
 0x889   : > { %v3681_v28 = vsel %vm3680_vm11, %v10546_v17, %v3677_v44 }
 0x88a   : > { %v3671_v23 = vsel %vm3670_vm13, %v10548_v14, %v3667_v29  ;;  %v3715_v41 = vmul.f32 %v13101_v8, %v3681_v28 }
 0x88b   : > { %v3714_v48 = vmul.f32 %v13103_v0, %v3671_v23 }
 0x88c   : > { %v3734_v22 = vmul.f32 %v13152_v20, %v3715_v41 }
 0x88d   : > { %v3733_v57 = vmul.f32 %v13152_v20, %v3714_v48 }
 0x88f   : > { %v3743_v5 = vpack.c.bf16 %v3734_v22, %v3733_v57 }
 0x891   : > { %3879 = vmatmul.bf16.gmra.mxu3 %v3743_v5  ;;  %3928 = vmatmul.bf16.gmra.mxu0 %v3743_v5 }
 0x892   : > { %v3509_v25 = vpop.xlane.xlu2 %3508 }
 0x893   : > { %v3525_v1 = vmul.f32 %v3509_v25, %v15339_v43  ;;  %v3507_v45 = vpop.xlane.xlu0 %3506 }
 0x894   : > { %v3524_v10 = vmul.f32 %v3507_v45, %v15339_v43 }
 0x895   : > { %v3541_v47 = vadd.f32 1e-06, %v3525_v1 }
 0x896   : > { %v3540_v39 = vadd.f32 1e-06, %v3524_v10 }
 0x897   : > { %10549 = vrsqrt.f32 %v3541_v47  ;;  %vm3698_vm0 = vweird.f32 %v3541_v47 }
 0x898   : > { %10551 = vrsqrt.f32 %v3540_v39  ;;  %vm3688_vm3 = vweird.f32 %v3540_v39 }
 0x89d   : > { %v10550_v40 = vpop.eup %10549 }
 0x89e   : > { %v10552_v26 = vpop.eup %10551  ;;  %v3693_v54 = vmul.f32 %v10550_v40, %v3541_v47  ;;  %vm3699_vm14 = vweird.f32 %v10550_v40 }
 0x89f   : > { %v3683_v30 = vmul.f32 %v10552_v26, %v3540_v39  ;;  %vm3689_vm15 = vweird.f32 %v10552_v26  ;;  %vm3700_vm2 = vmor %vm3698_vm0, %vm3699_vm14 }
 0x8a0   : > { %v3694_v63 = vmul.f32 %v10550_v40, %v3693_v54  ;;  %vm3690_vm4 = vmor %vm3688_vm3, %vm3689_vm15 }
 0x8a1   : > { %v3684_v61 = vmul.f32 %v10552_v26, %v3683_v30 }
 0x8a2   : > { %v3695_v32 = vmul.f32 0.5, %v3694_v63 }
 0x8a3   : > { %v3685_v13 = vmul.f32 0.5, %v3684_v61 }
 0x8a4   : > { %v3696_v17 = vsub.f32 1.5, %v3695_v32 }
 0x8a5   : > { %v3686_v2 = vsub.f32 1.5, %v3685_v13  ;;  %v3899_v14 = vpop.f32.mrf.mxu0 }
 0x8a6   : > { %v3697_v35 = vmul.f32 %v10550_v40, %v3696_v17  ;;  %v3940_v46 = vmax.f32 %v3899_v14, 0.0 }
 0x8a7   : > { %v3687_v4 = vmul.f32 %v10552_v26, %v3686_v2 }
 0x8a8   : > { %v3701_v52 = vsel %vm3700_vm2, %v10550_v40, %v3697_v35 }
 0x8a9   : > { %v3691_v34 = vsel %vm3690_vm4, %v10552_v26, %v3687_v4  ;;  %v3717_v37 = vmul.f32 %v13141_v3, %v3701_v52 }
 0x8aa   : > { %v3716_v31 = vmul.f32 %v13143_v36, %v3691_v34 }
 0x8ab   : > { %v3850_v16 = vpop.f32.mrf.mxu3  ;;  %v3736_v58 = vmul.f32 %v13152_v20, %v3717_v37 }
 0x8ac   : > { %v3735_v56 = vmul.f32 %v13152_v20, %v3716_v31  ;;  %v3939_v29 = vmax.f32 %v3850_v16, 0.0 }
 0x8ad   : > { %v3901_v59 = vpop.f32.mrf.mxu0 }
 0x8ae   : > { %v3942_v11 = vmax.f32 %v3901_v59, 0.0  ;;  %v3744_v19 = vpack.c.bf16 %v3736_v58, %v3735_v56 }
 0x8b0   : > { %v3972_v44 = vpack.c.bf16 %v3942_v11, %v3940_v46  ;;  %3884 = vmatmul.bf16.gmra.mxu3 %v3744_v19  ;;  %3933 = vmatmul.bf16.gmra.mxu0 %v3744_v19 }
 0x8b2   : > { %4172 = vmatmul.bf16.vlgmr.msrb.gmra.mxu2 %v3972_v44 }
 0x8b3   : > { %v3852_v12 = vpop.f32.mrf.mxu3 }
 0x8b4   : > { %v3941_v28 = vmax.f32 %v3852_v12, 0.0 }
 0x8b5   : > { %v3904_v23 = vpop.f32.mrf.mxu0 }
 0x8b6   : > { %v3971_v41 = vpack.c.bf16 %v3941_v28, %v3939_v29  ;;  %v3944_v22 = vmax.f32 %v3904_v23, 0.0 }
 0x8b8   : > { %4123 = vmatmul.bf16.vlgmr.msra.gmra.mxu1 %v3971_v41 }
 0x8bb   : > { %v3855_v7 = vpop.f32.mrf.mxu3 }
 0x8bc   : > { %v3943_v38 = vmax.f32 %v3855_v7, 0.0 }
 0x8bd   : > { %v3906_v48 = vpop.f32.mrf.mxu0 }
 0x8be   : > { %v3946_v55 = vmax.f32 %v3906_v48, 0.0 }
 0x8c0   : > { %v3974_v57 = vpack.c.bf16 %v3946_v55, %v3944_v22 }
 0x8c2   : > { %4177 = vmatmul.bf16.gmra.mxu2 %v3974_v57 }
 0x8c3   : > { %v3857_v20 = vpop.f32.mrf.mxu3 }
 0x8c4   : > { %v3945_v5 = vmax.f32 %v3857_v20, 0.0 }
 0x8c5   : > { %v3909_v27 = vpop.f32.mrf.mxu0 }
 0x8c6   : > { %v3973_v25 = vpack.c.bf16 %v3945_v5, %v3943_v38  ;;  %v3948_v10 = vmax.f32 %v3909_v27, 0.0 }
 0x8c8   : > { %4128 = vmatmul.bf16.gmra.mxu1 %v3973_v25 }
 0x8cb   : > { %v3860_v1 = vpop.f32.mrf.mxu3 }
 0x8cc   : > { %v3947_v40 = vmax.f32 %v3860_v1, 0.0 }
 0x8cd   : > { %v3911_v45 = vpop.f32.mrf.mxu0 }
 0x8ce   : > { %v3950_v62 = vmax.f32 %v3911_v45, 0.0 }
 0x8d0   : > { %v3976_v47 = vpack.c.bf16 %v3950_v62, %v3948_v10 }
 0x8d2   : > { %4182 = vmatmul.bf16.gmra.mxu2 %v3976_v47 }
 0x8d3   : > { %v3862_v39 = vpop.f32.mrf.mxu3 }
 0x8d4   : > { %v3949_v26 = vmax.f32 %v3862_v39, 0.0 }
 0x8d5   : > { %v3914_v54 = vpop.f32.mrf.mxu0 }
 0x8d6   : > { %v3975_v30 = vpack.c.bf16 %v3949_v26, %v3947_v40  ;;  %v3952_v32 = vmax.f32 %v3914_v54, 0.0 }
 0x8d8   : > { %4133 = vmatmul.bf16.gmra.mxu1 %v3975_v30 }
 0x8db   : > { %v3865_v63 = vpop.f32.mrf.mxu3 }
 0x8dc   : > { %v3951_v14 = vmax.f32 %v3865_v63, 0.0 }
 0x8dd   : > { %v3916_v61 = vpop.f32.mrf.mxu0 }
 0x8de   : > { %v3954_v13 = vmax.f32 %v3916_v61, 0.0 }
 0x8e0   : > { %v3978_v17 = vpack.c.bf16 %v3954_v13, %v3952_v32 }
 0x8e2   : > { %4187 = vmatmul.bf16.gmra.mxu2 %v3978_v17 }
 0x8e3   : > { %v3867_v2 = vpop.f32.mrf.mxu3 }
 0x8e4   : > { %v3953_v35 = vmax.f32 %v3867_v2, 0.0 }
 0x8e5   : > { %v3919_v4 = vpop.f32.mrf.mxu0 }
 0x8e6   : > { %v3977_v52 = vpack.c.bf16 %v3953_v35, %v3951_v14  ;;  %v3956_v31 = vmax.f32 %v3919_v4, 0.0 }
 0x8e8   : > { %4138 = vmatmul.bf16.gmra.mxu1 %v3977_v52 }
 0x8eb   : > { %v3870_v34 = vpop.f32.mrf.mxu3 }
 0x8ec   : > { %v3955_v59 = vmax.f32 %v3870_v34, 0.0 }
 0x8ed   : > { %v3921_v37 = vpop.f32.mrf.mxu0 }
 0x8ee   : > { %v3958_v16 = vmax.f32 %v3921_v37, 0.0 }
 0x8f0   : > { %v3980_v58 = vpack.c.bf16 %v3958_v16, %v3956_v31 }
 0x8f2   : > { %4192 = vmatmul.bf16.gmra.mxu2 %v3980_v58 }
 0x8f3   : > { %v3872_v56 = vpop.f32.mrf.mxu3 }
 0x8f4   : > { %v3957_v46 = vmax.f32 %v3872_v56, 0.0 }
 0x8f6   : > { %v3979_v11 = vpack.c.bf16 %v3957_v46, %v3955_v59 }
 0x8f8   : > { %4143 = vmatmul.bf16.gmra.mxu1 %v3979_v11 }
 0x8fd   : > { %v3924_v19 = vpop.f32.mrf.mxu0 }
 0x8fe   : > { %v3960_v29 = vmax.f32 %v3924_v19, 0.0 }
 0x903   : > { %v3875_v44 = vpop.f32.mrf.mxu3 }
 0x904   : > { %v3959_v7 = vmax.f32 %v3875_v44, 0.0 }
 0x905   : > { %v3926_v12 = vpop.f32.mrf.mxu0 }
 0x906   : > { %v3962_v28 = vmax.f32 %v3926_v12, 0.0 }
 0x908   : > { %v3982_v23 = vpack.c.bf16 %v3962_v28, %v3960_v29 }
 0x90a   : > { %4197 = vmatmul.bf16.gmra.mxu2 %v3982_v23 }
 0x90b   : > { %v3877_v41 = vpop.f32.mrf.mxu3 }
 0x90c   : > { %v3961_v48 = vmax.f32 %v3877_v41, 0.0 }
 0x90e   : > { %v3929_v22 = vpop.f32.mrf.mxu0  ;;  %v3981_v55 = vpack.c.bf16 %v3961_v48, %v3959_v7 }
 0x90f   : > { %v3964_v38 = vmax.f32 %v3929_v22, 0.0 }
 0x910   : > { %4148 = vmatmul.bf16.gmra.mxu1 %v3981_v55 }
 0x914   : > { %v3880_v57 = vpop.f32.mrf.mxu3 }
 0x915   : > { %v3963_v1 = vmax.f32 %v3880_v57, 0.0 }
 0x916   : > { %v3931_v20 = vpop.f32.mrf.mxu0 }
 0x917   : > { %v3966_v5 = vmax.f32 %v3931_v20, 0.0 }
 0x919   : > { %v3984_v27 = vpack.c.bf16 %v3966_v5, %v3964_v38 }
 0x91b   : > { %4202 = vmatmul.bf16.gmra.mxu2 %v3984_v27 }
 0x91c   : > { %v3882_v25 = vpop.f32.mrf.mxu3 }
 0x91d   : > { %v3965_v45 = vmax.f32 %v3882_v25, 0.0 }
 0x91f   : > { %v3983_v10 = vpack.c.bf16 %v3965_v45, %v3963_v1 }
 0x921   : > { %4153 = vmatmul.bf16.gmra.mxu1 %v3983_v10 }
 0x92d   : > { %v3934_v62 = vpop.f32.mrf.mxu0 }
 0x92e   : > { %v3968_v26 = vmax.f32 %v3934_v62, 0.0 }
 0x933   : > { %v3885_v47 = vpop.f32.mrf.mxu3 }
 0x934   : > { %v3967_v32 = vmax.f32 %v3885_v47, 0.0 }
 0x935   : > { %v3936_v39 = vpop.f32.mrf.mxu0  ;;  %v4124_v40 = vpop.f32.mrf.mxu1 }
 0x936   : > { %v3970_v54 = vmax.f32 %v3936_v39, 0.0  ;;  %v4173_v30 = vpop.f32.mrf.mxu2 }
 0x937   : > { %v4174_v17 = vadd.f32 %v4173_v30, %v4124_v40 }
 0x938   : > { %v3986_v63 = vpack.c.bf16 %v3970_v54, %v3968_v26 }
 0x939   : > { %v4213_v52 = vadd.f32 %v12959_v42, %v4174_v17 }
 0x93a   : > { %4207 = vmatmul.bf16.gmra.mxu2 %v3986_v63 }
 0x93b   : > { %v3887_v61 = vpop.f32.mrf.mxu3 }
 0x93c   : > { %v3969_v13 = vmax.f32 %v3887_v61, 0.0 }
 0x93d   : > { %v4126_v2 = vpop.f32.mrf.mxu1 }
 0x93e   : > { %v3985_v14 = vpack.c.bf16 %v3969_v13, %v3967_v32  ;;  %v4175_v35 = vpop.f32.mrf.mxu2 }
 0x93f   : > { %v4176_v4 = vadd.f32 %v4175_v35, %v4126_v2 }
 0x940   : > { %4158 = vmatmul.bf16.gmra.mxu1 %v3985_v14 }
 0x941   : > { %v4214_v34 = vadd.f32 %v12957_v15, %v4176_v4 }
 0x943   : > { %v9695_v37 = vpack.c.bf16 %v4214_v34, %v4213_v52 }
 0x945   : > { %9696 = vst [vmem:[#allocation2] sm:$0xff] %v9695_v37   ;;  %v4129_v31 = vpop.f32.mrf.mxu1  ;;  %v13249_v16 = vunpack.c.l.bf16 %v9695_v37  ;;  %v13251_v58 = vunpack.c.h.bf16 %v9695_v37 }
 0x946   : > { %v4178_v56 = vpop.f32.mrf.mxu2 }
 0x947   : > { %v4295_v59 = vmul.f32 %v13249_v16, %v13249_v16  ;;  %v4296_v46 = vmul.f32 %v13251_v58, %v13251_v58  ;;  %v4179_v11 = vadd.f32 %v4178_v56, %v4129_v31 }
 0x949   : > { %4311 = vadd.xlane.f32.xlu1 %v4295_v59  ;;  %4313 = vadd.xlane.f32.xlu0 %v4296_v46  ;;  %v4215_v44 = vadd.f32 %v12971_v6, %v4179_v11 }
 0x94d   : > { %v4131_v42 = vpop.f32.mrf.mxu1 }
 0x94e   : > { %v4180_v19 = vpop.f32.mrf.mxu2 }
 0x94f   : > { %v4181_v15 = vadd.f32 %v4180_v19, %v4131_v42 }
 0x951   : > { %v4216_v12 = vadd.f32 %v12969_v51, %v4181_v15 }
 0x953   : > { %v9700_v29 = vpack.c.bf16 %v4216_v12, %v4215_v44  ;;  %v9361_v12 = vld [vmem:[%s15284_s4 + $0x16c] sm:$0xf] }
 0x955   : > { %10095 = vst [vmem:[#allocation2 + $0x8] sm:$0xff] %v9700_v29   ;;  %v4134_v28 = vpop.f32.mrf.mxu1  ;;  %v13259_v23 = vunpack.c.h.bf16 %v9700_v29  ;;  %v13261_v41 = vunpack.c.l.bf16 %v9700_v29  ;;  %v8809_v29 = vld [vmem:[%s15284_s4 + $0x174] sm:$0xf0] }
 0x956   : > { %v4183_v7 = vpop.f32.mrf.mxu2 }
 0x957   : > { %v4298_v48 = vmul.f32 %v13259_v23, %v13259_v23  ;;  %v4297_v22 = vmul.f32 %v13261_v41, %v13261_v41  ;;  %v4184_v55 = vadd.f32 %v4183_v7, %v4134_v28  ;;  %v8815_v28 = vld [vmem:[%s15284_s4 + $0x170] sm:$0xf]  ;;  %v8812_v7 = vor.u32 %v9361_v12, %v8809_v29  ;;  %v9349_v12 = vld [vmem:[%s15284_s4 + $0x10c] sm:$0xf] }
 0x959   : > { %4317 = vadd.xlane.f32.xlu1 %v4298_v48  ;;  %4315 = vadd.xlane.f32.xlu2 %v4297_v22  ;;  %v4217_v20 = vadd.f32 %v12983_v53, %v4184_v55  ;;  %v9363_v48 = vld [vmem:[%s15284_s4 + $0x178] sm:$0xf0] }
 0x95a   : > { %4788 = vmatpush.bf16.msrb.mxu0 %v8812_v7 }
 0x95d   : > { %v4136_v6 = vpop.f32.mrf.mxu1 }
 0x95e   : > { %v4185_v57 = vpop.f32.mrf.mxu2 }
 0x95f   : > { %v4186_v51 = vadd.f32 %v4185_v57, %v4136_v6  ;;  %v8816_v6 = vor.u32 %v9363_v48, %v8815_v28  ;;  %v8761_v48 = vld [vmem:[%s15284_s4 + $0x114] sm:$0xf0] }
 0x961   : > { %v4218_v38 = vadd.f32 %v12981_v9, %v4186_v51  ;;  %4837 = vmatpush.bf16.msrb.mxu1 %v8816_v6  ;;  %v8795_v51 = vld [vmem:[%s15284_s4 + $0x150] sm:$0xf]  ;;  %v8764_v6 = vor.u32 %v9349_v12, %v8761_v48 }
 0x963   : > { %v9705_v5 = vpack.c.bf16 %v4218_v38, %v4217_v20  ;;  %v9359_v20 = vld [vmem:[%s15284_s4 + $0x158] sm:$0xf0]  ;;  %v9358_v38 = vld [vmem:[%s15284_s4 + $0x154] sm:$0xf] }
 0x965   : > { %10096 = vst [vmem:[#allocation2 + $0x10] sm:$0xff] %v9705_v5   ;;  %v4139_v27 = vpop.f32.mrf.mxu1  ;;  %v13269_v25 = vunpack.c.h.bf16 %v9705_v5  ;;  %v13271_v1 = vunpack.c.l.bf16 %v9705_v5  ;;  %v8796_v5 = vor.u32 %v9359_v20, %v8795_v51  ;;  %v9346_v20 = vld [vmem:[%s15284_s4 + $0xf4] sm:$0xf] }
 0x966   : > { %v4188_v45 = vpop.f32.mrf.mxu2 }
 0x967   : > { %v4300_v10 = vmul.f32 %v13269_v25, %v13269_v25  ;;  %v4299_v62 = vmul.f32 %v13271_v1, %v13271_v1  ;;  %v4189_v47 = vadd.f32 %v4188_v45, %v4139_v27  ;;  %v8797_v27 = vld [vmem:[%s15284_s4 + $0x15c] sm:$0xf0]  ;;  %v8803_v45 = vld [vmem:[%s15284_s4 + $0x158] sm:$0xf] }
 0x969   : > { %4321 = vadd.xlane.f32.xlu2 %v4300_v10  ;;  %4319 = vadd.xlane.f32.xlu0 %v4299_v62  ;;  %v4219_v40 = vadd.f32 %v12995_v18, %v4189_v47  ;;  %v8800_v47 = vor.u32 %v9358_v38, %v8797_v27 }
 0x96b   : > { %4789 = vmatpush.bf16.msrb.mxu0 %v8800_v47  ;;  %v9348_v47 = vld [vmem:[%s15284_s4 + $0x100] sm:$0xf0] }
 0x96d   : > { %v4141_v53 = vpop.f32.mrf.mxu1 }
 0x96e   : > { %v4190_v39 = vpop.f32.mrf.mxu2 }
 0x96f   : > { %v4191_v9 = vadd.f32 %v4190_v39, %v4141_v53  ;;  %v9360_v53 = vld [vmem:[%s15284_s4 + $0x160] sm:$0xf0] }
 0x971   : > { %v4220_v26 = vadd.f32 %v12993_v49, %v4191_v9 }
 0x973   : > { %v9710_v54 = vpack.c.bf16 %v4220_v26, %v4219_v40  ;;  %v8804_v40 = vor.u32 %v9360_v53, %v8803_v45  ;;  %v8783_v26 = vld [vmem:[%s15284_s4 + $0x138] sm:$0xf]  ;;  %v8749_v45 = vld [vmem:[%s15284_s4 + $0xfc] sm:$0xf0] }
 0x975   : > { %10097 = vst [vmem:[#allocation2 + $0x18] sm:$0xff] %v9710_v54   ;;  %v4144_v30 = vpop.f32.mrf.mxu1  ;;  %v13279_v63 = vunpack.c.h.bf16 %v9710_v54  ;;  %v13281_v61 = vunpack.c.l.bf16 %v9710_v54  ;;  %v9356_v54 = vld [vmem:[%s15284_s4 + $0x140] sm:$0xf0]  ;;  %4838 = vmatpush.bf16.msrb.mxu1 %v8804_v40  ;;  %v8735_v40 = vld [vmem:[%s15284_s4 + $0xd8] sm:$0xf] }
 0x976   : > { %v4193_v32 = vpop.f32.mrf.mxu2 }
 0x977   : > { %v4302_v13 = vmul.f32 %v13279_v63, %v13279_v63  ;;  %v4301_v17 = vmul.f32 %v13281_v61, %v13281_v61  ;;  %v4194_v2 = vadd.f32 %v4193_v32, %v4144_v30  ;;  %v8784_v30 = vor.u32 %v9356_v54, %v8783_v26  ;;  %v9355_v32 = vld [vmem:[%s15284_s4 + $0x13c] sm:$0xf]  ;;  %v9344_v26 = vld [vmem:[%s15284_s4 + $0xe0] sm:$0xf0] }
 0x978   : > { %v9343_v54 = vld [vmem:[%s15284_s4 + $0xdc] sm:$0xf] }
 0x979   : > { %4325 = vadd.xlane.f32.xlu0 %v4302_v13  ;;  %4323 = vadd.xlane.f32.xlu1 %v4301_v17  ;;  %v4221_v35 = vadd.f32 %v13007_v21, %v4194_v2  ;;  %v9362_v21 = vld [vmem:[%s15284_s4 + $0x170] sm:$0xf0]  ;;  %v8785_v13 = vld [vmem:[%s15284_s4 + $0x144] sm:$0xf0]  ;;  %v8791_v17 = vld [vmem:[%s15284_s4 + $0x140] sm:$0xf] }
 0x97a   : > { %v8788_v2 = vor.u32 %v9355_v32, %v8785_v13  ;;  %v8737_v32 = vld [vmem:[%s15284_s4 + $0xe4] sm:$0xf0]  ;;  %v8743_v13 = vld [vmem:[%s15284_s4 + $0xe0] sm:$0xf] }
 0x97c   : > { %4790 = vmatpush.bf16.msrb.mxu0 %v8788_v2  ;;  %v8740_v2 = vor.u32 %v9343_v54, %v8737_v32 }
 0x97d   : > { %v4146_v18 = vpop.f32.mrf.mxu1 }
 0x97e   : > { %v4195_v14 = vpop.f32.mrf.mxu2 }
 0x97f   : > { %v4196_v49 = vadd.f32 %v4195_v14, %v4146_v18  ;;  %v9357_v18 = vld [vmem:[%s15284_s4 + $0x148] sm:$0xf0] }
 0x980   : > { %v8792_v14 = vor.u32 %v9357_v18, %v8791_v17  ;;  %v9345_v17 = vld [vmem:[%s15284_s4 + $0xe8] sm:$0xf0] }
 0x981   : > { %v4222_v4 = vadd.f32 %v13005_v50, %v4196_v49  ;;  %v8807_v50 = vld [vmem:[%s15284_s4 + $0x168] sm:$0xf]  ;;  %v8771_v49 = vld [vmem:[%s15284_s4 + $0x120] sm:$0xf]  ;;  %v8744_v18 = vor.u32 %v9345_v17, %v8743_v13 }
 0x982   : > { %v8808_v11 = vor.u32 %v9362_v21, %v8807_v50  ;;  %4839 = vmatpush.bf16.msrb.mxu1 %v8792_v14  ;;  %v8723_v14 = vld [vmem:[%s15284_s4 + $0xc0] sm:$0xf] }
 0x983   : > { %v9715_v52 = vpack.c.bf16 %v4222_v4, %v4221_v35  ;;  %v9353_v35 = vld [vmem:[%s15284_s4 + $0x128] sm:$0xf0]  ;;  %v9352_v4 = vld [vmem:[%s15284_s4 + $0x124] sm:$0xf]  ;;  %v13478_v17 = vld [vmem:[%s15288_s3 + $0x1] ss:$0 sm:$0xff] }
 0x984   : > { %4739 = vmatpush.bf16.msrb.mxu3 %v8808_v11 }
 0x985   : > { %10098 = vst [vmem:[#allocation2 + $0x20] sm:$0xff] %v9715_v52   ;;  %v13289_v34 = vunpack.c.h.bf16 %v9715_v52  ;;  %v13291_v37 = vunpack.c.l.bf16 %v9715_v52 }
 0x987   : > { %v4304_v31 = vmul.f32 %v13289_v34, %v13289_v34  ;;  %v4303_v56 = vmul.f32 %v13291_v37, %v13291_v37 }
 0x988   : > { %4740 = vmatpush.bf16.msrb.mxu3 %v8796_v5 }
 0x989   : > { %4329 = vadd.xlane.f32.xlu1 %v4304_v31  ;;  %4327 = vadd.xlane.f32.xlu2 %v4303_v56  ;;  %v8772_v31 = vor.u32 %v9353_v35, %v8771_v49  ;;  %v8773_v56 = vld [vmem:[%s15284_s4 + $0x12c] sm:$0xf0]  ;;  %v9341_v49 = vld [vmem:[%s15284_s4 + $0xc8] sm:$0xf0]  ;;  %v9340_v35 = vld [vmem:[%s15284_s4 + $0xc4] sm:$0xf] }
 0x98a   : > { %v8776_v11 = vor.u32 %v9352_v4, %v8773_v56  ;;  %v8724_v4 = vor.u32 %v9341_v49, %v8723_v14  ;;  %v9342_v56 = vld [vmem:[%s15284_s4 + $0xd0] sm:$0xf0] }
 0x98c   : > { %4741 = vmatpush.bf16.msrb.mxu3 %v8784_v30  ;;  %4791 = vmatpush.bf16.msrb.mxu0 %v8776_v11  ;;  %v8736_v30 = vor.u32 %v9344_v26, %v8735_v40 }
 0x98d   : > { %v4149_v59 = vpop.f32.mrf.mxu1  ;;  %v4198_v46 = vpop.f32.mrf.mxu2 }
 0x98e   : > { %v4199_v42 = vadd.f32 %v4198_v46, %v4149_v59  ;;  %v8779_v59 = vld [vmem:[%s15284_s4 + $0x128] sm:$0xf]  ;;  %v9354_v46 = vld [vmem:[%s15284_s4 + $0x130] sm:$0xf0] }
 0x990   : > { %v4223_v22 = vadd.f32 %v13043_v33, %v4199_v42  ;;  %v8780_v42 = vor.u32 %v9354_v46, %v8779_v59  ;;  %4742 = vmatpush.bf16.msrb.mxu3 %v8772_v31  ;;  %4792 = vmatpush.bf16.msrb.mxu0 %v8764_v6  ;;  %v8731_v31 = vld [vmem:[%s15284_s4 + $0xc8] sm:$0xf] }
 0x991   : > { %v8732_v46 = vor.u32 %v9342_v56, %v8731_v31 }
 0x992   : > { %4840 = vmatpush.bf16.msrb.mxu1 %v8780_v42 }
 0x995   : > { %v4151_v19 = vpop.f32.mrf.mxu1  ;;  %v4200_v15 = vpop.f32.mrf.mxu2 }
 0x996   : > { %v4201_v44 = vadd.f32 %v4200_v15, %v4151_v19  ;;  %v8759_v15 = vld [vmem:[%s15284_s4 + $0x108] sm:$0xf] }
 0x998   : > { %v4224_v55 = vadd.f32 %v13041_v24, %v4201_v44  ;;  %v9350_v44 = vld [vmem:[%s15284_s4 + $0x110] sm:$0xf0] }
 0x999   : > { %v8760_v7 = vor.u32 %v9350_v44, %v8759_v15 }
 0x99a   : > { %v9720_v57 = vpack.c.bf16 %v4224_v55, %v4223_v22  ;;  %v8767_v22 = vld [vmem:[%s15284_s4 + $0x110] sm:$0xf]  ;;  %v9351_v55 = vld [vmem:[%s15284_s4 + $0x118] sm:$0xf0] }
 0x99b   : > { %4743 = vmatpush.bf16.msrb.mxu3 %v8760_v7 }
 0x99c   : > { %10099 = vst [vmem:[#allocation2 + $0x28] sm:$0xff] %v9720_v57   ;;  %v13326_v33 = vunpack.c.h.bf16 %v9720_v57  ;;  %v13328_v24 = vunpack.c.l.bf16 %v9720_v57  ;;  %v8768_v57 = vor.u32 %v9351_v55, %v8767_v22 }
 0x99e   : > { %v4154_v10 = vpop.f32.mrf.mxu1  ;;  %v4203_v62 = vpop.f32.mrf.mxu2  ;;  %v4306_v39 = vmul.f32 %v13326_v33, %v13326_v33  ;;  %v4305_v9 = vmul.f32 %v13328_v24, %v13328_v24  ;;  %4841 = vmatpush.bf16.msrb.mxu1 %v8768_v57 }
 0x99f   : > { %v4204_v52 = vadd.f32 %v4203_v62, %v4154_v10  ;;  %v8755_v10 = vld [vmem:[%s15284_s4 + $0xf8] sm:$0xf]  ;;  %v8752_v62 = vor.u32 %v9346_v20, %v8749_v45 }
 0x9a0   : > { %4333 = vadd.xlane.f32.xlu2 %v4306_v39  ;;  %4331 = vadd.xlane.f32.xlu0 %v4305_v9  ;;  %v8756_v9 = vor.u32 %v9348_v47, %v8755_v10 }
 0x9a1   : > { %v4225_v29 = vadd.f32 %v13103_v0, %v4204_v52  ;;  %v9347_v0 = vld [vmem:[%s15284_s4 + $0xf8] sm:$0xf0]  ;;  %4793 = vmatpush.bf16.msrb.mxu0 %v8752_v62  ;;  %v8725_v52 = vld [vmem:[%s15284_s4 + $0xcc] sm:$0xf0] }
 0x9a2   : > { %4842 = vmatpush.bf16.msrb.mxu1 %v8756_v9  ;;  %v8728_v59 = vor.u32 %v9340_v35, %v8725_v52 }
 0x9a5   : > { %4794 = vmatpush.bf16.msrb.mxu0 %v8740_v2 }
 0x9a6   : > { %v4156_v50 = vpop.f32.mrf.mxu1  ;;  %v4205_v21 = vpop.f32.mrf.mxu2  ;;  %4843 = vmatpush.bf16.msrb.mxu1 %v8744_v18 }
 0x9a7   : > { %v4206_v19 = vadd.f32 %v4205_v21, %v4156_v50 }
 0x9a9   : > { %v4226_v28 = vadd.f32 %v13101_v8, %v4206_v19  ;;  %v8747_v8 = vld [vmem:[%s15284_s4 + $0xf0] sm:$0xf]  ;;  %4795 = vmatpush.bf16.msrb.mxu0 %v8728_v59 }
 0x9aa   : > { %v8748_v27 = vor.u32 %v9347_v0, %v8747_v8  ;;  %4844 = vmatpush.bf16.msrb.mxu1 %v8732_v46 }
 0x9ab   : > { %v9725_v51 = vpack.c.bf16 %v4226_v28, %v4225_v29 }
 0x9ac   : > { %4744 = vmatpush.bf16.msrb.mxu3 %v8748_v27 }
 0x9ad   : > { %10100 = vst [vmem:[#allocation2 + $0x30] sm:$0xff] %v9725_v51   ;;  %v13408_v38 = vunpack.c.h.bf16 %v9725_v51  ;;  %v13410_v5 = vunpack.c.l.bf16 %v9725_v51 }
 0x9af   : > { %v4308_v53 = vmul.f32 %v13408_v38, %v13408_v38  ;;  %v4307_v39 = vmul.f32 %v13410_v5, %v13410_v5 }
 0x9b0   : > { %4745 = vmatpush.bf16.msrb.mxu3 %v8736_v30 }
 0x9b1   : > { %4337 = vadd.xlane.f32.xlu0 %v4308_v53  ;;  %4335 = vadd.xlane.f32.xlu1 %v4307_v39 }
 0x9b4   : > { %4746 = vmatpush.bf16.msrb.mxu3 %v8724_v4 }
 0x9bc   : > { %v4312_v50 = vpop.xlane.xlu1 %4311  ;;  %v4314_v21 = vpop.xlane.xlu0 %4313 }
 0x9bd   : > { %v4159_v11 = vpop.f32.mrf.mxu1  ;;  %v4208_v42 = vpop.f32.mrf.mxu2  ;;  %v4343_v19 = vmul.f32 %v4312_v50, %v15339_v43  ;;  %v4344_v15 = vmul.f32 %v4314_v21, %v15339_v43 }
 0x9be   : > { %v4209_v29 = vadd.f32 %v4208_v42, %v4159_v11 }
 0x9bf   : > { %v4359_v44 = vadd.f32 1e-06, %v4343_v19  ;;  %v4360_v12 = vadd.f32 1e-06, %v4344_v15 }
 0x9c0   : > { %v4227_v6 = vadd.f32 %v13143_v36, %v4209_v29 }
 0x9c1   : > { %10553 = vrsqrt.f32 %v4359_v44  ;;  %vm4381_vm7 = vweird.f32 %v4359_v44  ;;  %vm4391_vm9 = vweird.f32 %v4360_v12 }
 0x9c2   : > { %10555 = vrsqrt.f32 %v4360_v12 }
 0x9c5   : > { %v4161_v28 = vpop.f32.mrf.mxu1  ;;  %v4210_v7 = vpop.f32.mrf.mxu2 }
 0x9c6   : > { %v4211_v48 = vadd.f32 %v4210_v7, %v4161_v28 }
 0x9c7   : > { %v10554_v22 = vpop.eup %10553 }
 0x9c8   : > { %v10556_v55 = vpop.eup %10555  ;;  %v4376_v57 = vmul.f32 %v10554_v22, %v4359_v44  ;;  %v4228_v51 = vadd.f32 %v13141_v3, %v4211_v48  ;;  %vm4382_vm5 = vweird.f32 %v10554_v22 }
 0x9c9   : > { %v4386_v8 = vmul.f32 %v10556_v55, %v4360_v12  ;;  %vm4392_vm6 = vweird.f32 %v10556_v55  ;;  %vm4383_vm8 = vmor %vm4381_vm7, %vm4382_vm5 }
 0x9ca   : > { %v4377_v0 = vmul.f32 %v10554_v22, %v4376_v57  ;;  %v9730_v20 = vpack.c.bf16 %v4228_v51, %v4227_v6  ;;  %vm4393_vm10 = vmor %vm4391_vm9, %vm4392_vm6 }
 0x9cb   : > { %v4387_v27 = vmul.f32 %v10556_v55, %v4386_v8 }
 0x9cc   : > { %v4378_v45 = vmul.f32 0.5, %v4377_v0  ;;  %10101 = vst [vmem:[#allocation2 + $0x38] sm:$0xff] %v9730_v20   ;;  %v4318_v10 = vpop.xlane.xlu1 %4317  ;;  %v4316_v62 = vpop.xlane.xlu2 %4315  ;;  %v13465_v47 = vunpack.c.h.bf16 %v9730_v20  ;;  %v13467_v53 = vunpack.c.l.bf16 %v9730_v20 }
 0x9cd   : > { %v4388_v39 = vmul.f32 0.5, %v4387_v27  ;;  %v4346_v9 = vmul.f32 %v4318_v10, %v15339_v43  ;;  %v4345_v36 = vmul.f32 %v4316_v62, %v15339_v43 }
 0x9ce   : > { %v4379_v40 = vsub.f32 1.5, %v4378_v45  ;;  %v4310_v3 = vmul.f32 %v13465_v47, %v13465_v47  ;;  %v4309_v26 = vmul.f32 %v13467_v53, %v13467_v53 }
 0x9cf   : > { %v4389_v54 = vsub.f32 1.5, %v4388_v39  ;;  %v4362_v30 = vadd.f32 1e-06, %v4346_v9  ;;  %v4361_v32 = vadd.f32 1e-06, %v4345_v36 }
 0x9d0   : > { %v4380_v13 = vmul.f32 %v10554_v22, %v4379_v40  ;;  %4341 = vadd.xlane.f32.xlu1 %v4310_v3  ;;  %4339 = vadd.xlane.f32.xlu2 %v4309_v26 }
 0x9d1   : > { %v4390_v2 = vmul.f32 %v10556_v55, %v4389_v54  ;;  %10557 = vrsqrt.f32 %v4362_v30  ;;  %vm4411_vm13 = vweird.f32 %v4362_v30  ;;  %vm4401_vm15 = vweird.f32 %v4361_v32 }
 0x9d2   : > { %v4384_v18 = vsel %vm4383_vm8, %v10554_v22, %v4380_v13  ;;  %10559 = vrsqrt.f32 %v4361_v32 }
 0x9d3   : > { %v4535_v14 = vmul.f32 %v13249_v16, %v4384_v18  ;;  %v4394_v49 = vsel %vm4393_vm10, %v10556_v55, %v4390_v2 }
 0x9d4   : > { %v4536_v35 = vmul.f32 %v13251_v58, %v4394_v49 }
 0x9d5   : > { %v4554_v4 = vmul.f32 %v13478_v17, %v4535_v14 }
 0x9d6   : > { %v4555_v52 = vmul.f32 %v13478_v17, %v4536_v35 }
 0x9d7   : > { %v10558_v31 = vpop.eup %10557 }
 0x9d8   : > { %v10560_v56 = vpop.eup %10559  ;;  %v4406_v59 = vmul.f32 %v10558_v31, %v4362_v30  ;;  %v4570_v46 = vpack.c.bf16 %v4555_v52, %v4554_v4  ;;  %vm4412_vm11 = vweird.f32 %v10558_v31 }
 0x9d9   : > { %v4396_v50 = vmul.f32 %v10560_v56, %v4361_v32  ;;  %vm4402_vm12 = vweird.f32 %v10560_v56  ;;  %vm4413_vm14 = vmor %vm4411_vm13, %vm4412_vm11 }
 0x9da   : > { %v4407_v21 = vmul.f32 %v10558_v31, %v4406_v59  ;;  %4747 = vmatmul.bf16.vlgmr.msrb.gmra.mxu3 %v4570_v46  ;;  %4796 = vmatmul.bf16.vlgmr.msrb.gmra.mxu0 %v4570_v46  ;;  %vm4403_vm0 = vmor %vm4401_vm15, %vm4402_vm12 }
 0x9db   : > { %v4397_v11 = vmul.f32 %v10560_v56, %v4396_v50  ;;  %4845 = vmatmul.bf16.vlgmr.msrb.gmra.mxu1 %v4570_v46 }
 0x9dc   : > { %v4408_v42 = vmul.f32 0.5, %v4407_v21  ;;  %v4322_v19 = vpop.xlane.xlu2 %4321  ;;  %v4320_v16 = vpop.xlane.xlu0 %4319 }
 0x9dd   : > { %v4398_v15 = vmul.f32 0.5, %v4397_v11  ;;  %v4348_v58 = vmul.f32 %v4322_v19, %v15339_v43  ;;  %v4347_v44 = vmul.f32 %v4320_v16, %v15339_v43 }
 0x9de   : > { %v4409_v12 = vsub.f32 1.5, %v4408_v42 }
 0x9df   : > { %v4399_v29 = vsub.f32 1.5, %v4398_v15  ;;  %v4364_v28 = vadd.f32 1e-06, %v4348_v58  ;;  %v4363_v7 = vadd.f32 1e-06, %v4347_v44 }
 0x9e0   : > { %v4410_v48 = vmul.f32 %v10558_v31, %v4409_v12 }
 0x9e1   : > { %v4400_v22 = vmul.f32 %v10560_v56, %v4399_v29  ;;  %10561 = vrsqrt.f32 %v4364_v28  ;;  %vm4431_vm4 = vweird.f32 %v4364_v28  ;;  %vm4421_vm6 = vweird.f32 %v4363_v7 }
 0x9e2   : > { %10563 = vrsqrt.f32 %v4363_v7  ;;  %v4414_v55 = vsel %vm4413_vm14, %v10558_v31, %v4410_v48 }
 0x9e3   : > { %v4404_v6 = vsel %vm4403_vm0, %v10560_v56, %v4400_v22  ;;  %v4538_v57 = vmul.f32 %v13259_v23, %v4414_v55 }
 0x9e4   : > { %v4537_v51 = vmul.f32 %v13261_v41, %v4404_v6 }
 0x9e5   : > { %v4557_v8 = vmul.f32 %v13478_v17, %v4538_v57 }
 0x9e6   : > { %v4556_v0 = vmul.f32 %v13478_v17, %v4537_v51 }
 0x9e7   : > { %v10562_v20 = vpop.eup %10561 }
 0x9e8   : > { %v10564_v27 = vpop.eup %10563  ;;  %v4426_v45 = vmul.f32 %v10562_v20, %v4364_v28  ;;  %v4571_v10 = vpack.c.bf16 %v4557_v8, %v4556_v0  ;;  %vm4432_vm2 = vweird.f32 %v10562_v20 }
 0x9e9   : > { %v4416_v62 = vmul.f32 %v10564_v27, %v4363_v7  ;;  %vm4422_vm3 = vweird.f32 %v10564_v27  ;;  %vm4433_vm5 = vmor %vm4431_vm4, %vm4432_vm2 }
 0x9ea   : > { %v4427_v39 = vmul.f32 %v10562_v20, %v4426_v45  ;;  %4752 = vmatmul.bf16.gmra.mxu3 %v4571_v10  ;;  %4801 = vmatmul.bf16.gmra.mxu0 %v4571_v10  ;;  %vm4423_vm7 = vmor %vm4421_vm6, %vm4422_vm3 }
 0x9eb   : > { %v4417_v9 = vmul.f32 %v10564_v27, %v4416_v62  ;;  %4850 = vmatmul.bf16.gmra.mxu1 %v4571_v10 }
 0x9ec   : > { %v4428_v36 = vmul.f32 0.5, %v4427_v39  ;;  %v4324_v40 = vpop.xlane.xlu1 %4323  ;;  %v4326_v3 = vpop.xlane.xlu0 %4325 }
 0x9ed   : > { %v4418_v23 = vmul.f32 0.5, %v4417_v9  ;;  %v4349_v41 = vmul.f32 %v4324_v40, %v15339_v43  ;;  %v4350_v26 = vmul.f32 %v4326_v3, %v15339_v43 }
 0x9ee   : > { %v4429_v54 = vsub.f32 1.5, %v4428_v36 }
 0x9ef   : > { %v4419_v30 = vsub.f32 1.5, %v4418_v23  ;;  %v4365_v32 = vadd.f32 1e-06, %v4349_v41  ;;  %v4366_v13 = vadd.f32 1e-06, %v4350_v26 }
 0x9f0   : > { %v4430_v2 = vmul.f32 %v10562_v20, %v4429_v54 }
 0x9f1   : > { %v4420_v18 = vmul.f32 %v10564_v27, %v4419_v30  ;;  %10565 = vrsqrt.f32 %v4365_v32  ;;  %vm4441_vm10 = vweird.f32 %v4365_v32  ;;  %vm4451_vm12 = vweird.f32 %v4366_v13 }
 0x9f2   : > { %10567 = vrsqrt.f32 %v4366_v13  ;;  %v4434_v14 = vsel %vm4433_vm5, %v10562_v20, %v4430_v2 }
 0x9f3   : > { %v4424_v49 = vsel %vm4423_vm7, %v10564_v27, %v4420_v18  ;;  %v4540_v35 = vmul.f32 %v13269_v25, %v4434_v14 }
 0x9f4   : > { %v4539_v4 = vmul.f32 %v13271_v1, %v4424_v49 }
 0x9f5   : > { %v4559_v52 = vmul.f32 %v13478_v17, %v4540_v35 }
 0x9f6   : > { %v4558_v31 = vmul.f32 %v13478_v17, %v4539_v4 }
 0x9f7   : > { %v10566_v56 = vpop.eup %10565 }
 0x9f8   : > { %v10568_v59 = vpop.eup %10567  ;;  %v4436_v46 = vmul.f32 %v10566_v56, %v4365_v32  ;;  %v4572_v50 = vpack.c.bf16 %v4559_v52, %v4558_v31  ;;  %vm4442_vm8 = vweird.f32 %v10566_v56 }
 0x9f9   : > { %v4446_v21 = vmul.f32 %v10568_v59, %v4366_v13  ;;  %vm4452_vm9 = vweird.f32 %v10568_v59  ;;  %vm4443_vm11 = vmor %vm4441_vm10, %vm4442_vm8 }
 0x9fa   : > { %v4437_v11 = vmul.f32 %v10566_v56, %v4436_v46  ;;  %4757 = vmatmul.bf16.gmra.mxu3 %v4572_v50  ;;  %4806 = vmatmul.bf16.gmra.mxu0 %v4572_v50  ;;  %vm4453_vm13 = vmor %vm4451_vm12, %vm4452_vm9 }
 0x9fb   : > { %v4447_v42 = vmul.f32 %v10568_v59, %v4446_v21  ;;  %4855 = vmatmul.bf16.gmra.mxu1 %v4572_v50 }
 0x9fc   : > { %v4438_v19 = vmul.f32 0.5, %v4437_v11  ;;  %v4330_v16 = vpop.xlane.xlu1 %4329  ;;  %v4328_v15 = vpop.xlane.xlu2 %4327 }
 0x9fd   : > { %v4448_v25 = vmul.f32 0.5, %v4447_v42  ;;  %v4352_v1 = vmul.f32 %v4330_v16, %v15339_v43  ;;  %v4351_v58 = vmul.f32 %v4328_v15, %v15339_v43 }
 0x9fe   : > { %v4439_v44 = vsub.f32 1.5, %v4438_v19 }
 0x9ff   : > { %v4449_v12 = vsub.f32 1.5, %v4448_v25  ;;  %v4368_v29 = vadd.f32 1e-06, %v4352_v1  ;;  %v4367_v28 = vadd.f32 1e-06, %v4351_v58 }
 0xa00   : > { %v4440_v7 = vmul.f32 %v10566_v56, %v4439_v44 }
 0xa01   : > { %v4450_v48 = vmul.f32 %v10568_v59, %v4449_v12  ;;  %10569 = vrsqrt.f32 %v4368_v29  ;;  %vm4471_vm0 = vweird.f32 %v4368_v29  ;;  %vm4461_vm3 = vweird.f32 %v4367_v28 }
 0xa02   : > { %10571 = vrsqrt.f32 %v4367_v28  ;;  %v4444_v22 = vsel %vm4443_vm11, %v10566_v56, %v4440_v7 }
 0xa03   : > { %v4454_v55 = vsel %vm4453_vm13, %v10568_v59, %v4450_v48  ;;  %v4541_v6 = vmul.f32 %v13281_v61, %v4444_v22 }
 0xa04   : > { %v4542_v57 = vmul.f32 %v13279_v63, %v4454_v55 }
 0xa05   : > { %v4560_v51 = vmul.f32 %v13478_v17, %v4541_v6 }
 0xa06   : > { %v4561_v8 = vmul.f32 %v13478_v17, %v4542_v57 }
 0xa07   : > { %v10570_v0 = vpop.eup %10569 }
 0xa08   : > { %v10572_v20 = vpop.eup %10571  ;;  %v4466_v27 = vmul.f32 %v10570_v0, %v4368_v29  ;;  %v4573_v45 = vpack.c.bf16 %v4561_v8, %v4560_v51  ;;  %vm4472_vm14 = vweird.f32 %v10570_v0 }
 0xa09   : > { %v4456_v10 = vmul.f32 %v10572_v20, %v4367_v28  ;;  %vm4462_vm15 = vweird.f32 %v10572_v20  ;;  %vm4473_vm2 = vmor %vm4471_vm0, %vm4472_vm14 }
 0xa0a   : > { %v4467_v62 = vmul.f32 %v10570_v0, %v4466_v27  ;;  %4762 = vmatmul.bf16.gmra.mxu3 %v4573_v45  ;;  %4811 = vmatmul.bf16.gmra.mxu0 %v4573_v45  ;;  %vm4463_vm4 = vmor %vm4461_vm3, %vm4462_vm15 }
 0xa0b   : > { %v4457_v39 = vmul.f32 %v10572_v20, %v4456_v10  ;;  %4860 = vmatmul.bf16.gmra.mxu1 %v4573_v45 }
 0xa0c   : > { %v4468_v9 = vmul.f32 0.5, %v4467_v62 }
 0xa0d   : > { %v4458_v36 = vmul.f32 0.5, %v4457_v39 }
 0xa0e   : > { %v4469_v40 = vsub.f32 1.5, %v4468_v9 }
 0xa0f   : > { %v4459_v61 = vsub.f32 1.5, %v4458_v36 }
 0xa10   : > { %v4470_v63 = vmul.f32 %v10570_v0, %v4469_v40 }
 0xa11   : > { %v4460_v3 = vmul.f32 %v10572_v20, %v4459_v61 }
 0xa12   : > { %v4474_v23 = vsel %vm4473_vm2, %v10570_v0, %v4470_v63 }
 0xa13   : > { %v4464_v41 = vsel %vm4463_vm4, %v10572_v20, %v4460_v3  ;;  %v4544_v26 = vmul.f32 %v13289_v34, %v4474_v23  ;;  %v4334_v54 = vpop.xlane.xlu2 %4333  ;;  %v4332_v30 = vpop.xlane.xlu0 %4331 }
 0xa14   : > { %v4543_v32 = vmul.f32 %v13291_v37, %v4464_v41  ;;  %v4354_v13 = vmul.f32 %v4334_v54, %v15339_v43  ;;  %v4353_v2 = vmul.f32 %v4332_v30, %v15339_v43 }
 0xa15   : > { %v4563_v18 = vmul.f32 %v13478_v17, %v4544_v26 }
 0xa16   : > { %v4562_v14 = vmul.f32 %v13478_v17, %v4543_v32  ;;  %v4370_v49 = vadd.f32 1e-06, %v4354_v13  ;;  %v4369_v35 = vadd.f32 1e-06, %v4353_v2 }
 0xa18   : > { %v4574_v4 = vpack.c.bf16 %v4563_v18, %v4562_v14  ;;  %10573 = vrsqrt.f32 %v4370_v49  ;;  %vm4491_vm7 = vweird.f32 %v4370_v49  ;;  %vm4481_vm9 = vweird.f32 %v4369_v35 }
 0xa19   : > { %10575 = vrsqrt.f32 %v4369_v35 }
 0xa1a   : > { %4767 = vmatmul.bf16.gmra.mxu3 %v4574_v4  ;;  %4816 = vmatmul.bf16.gmra.mxu0 %v4574_v4 }
 0xa1b   : > { %4865 = vmatmul.bf16.gmra.mxu1 %v4574_v4 }
 0xa1e   : > { %v10574_v34 = vpop.eup %10573 }
 0xa1f   : > { %v10576_v52 = vpop.eup %10575  ;;  %v4486_v31 = vmul.f32 %v10574_v34, %v4370_v49  ;;  %vm4492_vm5 = vweird.f32 %v10574_v34 }
 0xa20   : > { %v4476_v37 = vmul.f32 %v10576_v52, %v4369_v35  ;;  %vm4482_vm6 = vweird.f32 %v10576_v52  ;;  %vm4493_vm8 = vmor %vm4491_vm7, %vm4492_vm5 }
 0xa21   : > { %v4487_v56 = vmul.f32 %v10574_v34, %v4486_v31  ;;  %vm4483_vm10 = vmor %vm4481_vm9, %vm4482_vm6 }
 0xa22   : > { %v4477_v59 = vmul.f32 %v10576_v52, %v4476_v37 }
 0xa23   : > { %v4488_v46 = vmul.f32 0.5, %v4487_v56 }
 0xa24   : > { %v4336_v50 = vpop.xlane.xlu1 %4335  ;;  %v4338_v21 = vpop.xlane.xlu0 %4337  ;;  %v4478_v11 = vmul.f32 0.5, %v4477_v59 }
 0xa25   : > { %v4355_v42 = vmul.f32 %v4336_v50, %v15339_v43  ;;  %v4356_v19 = vmul.f32 %v4338_v21, %v15339_v43  ;;  %v4489_v16 = vsub.f32 1.5, %v4488_v46 }
 0xa26   : > { %v4479_v15 = vsub.f32 1.5, %v4478_v11 }
 0xa27   : > { %v4371_v25 = vadd.f32 1e-06, %v4355_v42  ;;  %v4372_v1 = vadd.f32 1e-06, %v4356_v19  ;;  %v4490_v58 = vmul.f32 %v10574_v34, %v4489_v16 }
 0xa28   : > { %v4480_v44 = vmul.f32 %v10576_v52, %v4479_v15 }
 0xa29   : > { %10577 = vrsqrt.f32 %v4371_v25  ;;  %v4494_v12 = vsel %vm4493_vm8, %v10574_v34, %v4490_v58  ;;  %vm4501_vm13 = vweird.f32 %v4371_v25  ;;  %vm4511_vm15 = vweird.f32 %v4372_v1 }
 0xa2a   : > { %10579 = vrsqrt.f32 %v4372_v1  ;;  %v4484_v29 = vsel %vm4483_vm10, %v10576_v52, %v4480_v44  ;;  %v4546_v28 = vmul.f32 %v13326_v33, %v4494_v12 }
 0xa2b   : > { %v4545_v7 = vmul.f32 %v13328_v24, %v4484_v29 }
 0xa2c   : > { %v4565_v48 = vmul.f32 %v13478_v17, %v4546_v28 }
 0xa2d   : > { %v4564_v22 = vmul.f32 %v13478_v17, %v4545_v7 }
 0xa2f   : > { %v10578_v55 = vpop.eup %10577  ;;  %v4575_v51 = vpack.c.bf16 %v4565_v48, %v4564_v22 }
 0xa30   : > { %v10580_v6 = vpop.eup %10579  ;;  %v4496_v57 = vmul.f32 %v10578_v55, %v4371_v25  ;;  %vm4502_vm11 = vweird.f32 %v10578_v55 }
 0xa31   : > { %v4506_v8 = vmul.f32 %v10580_v6, %v4372_v1  ;;  %4772 = vmatmul.bf16.gmra.mxu3 %v4575_v51  ;;  %4821 = vmatmul.bf16.gmra.mxu0 %v4575_v51  ;;  %vm4512_vm12 = vweird.f32 %v10580_v6  ;;  %vm4503_vm14 = vmor %vm4501_vm13, %vm4502_vm11 }
 0xa32   : > { %v4497_v0 = vmul.f32 %v10578_v55, %v4496_v57  ;;  %4870 = vmatmul.bf16.gmra.mxu1 %v4575_v51  ;;  %vm4513_vm0 = vmor %vm4511_vm15, %vm4512_vm12 }
 0xa33   : > { %v4507_v20 = vmul.f32 %v10580_v6, %v4506_v8 }
 0xa34   : > { %v4498_v27 = vmul.f32 0.5, %v4497_v0 }
 0xa35   : > { %v4508_v45 = vmul.f32 0.5, %v4507_v20 }
 0xa36   : > { %v4499_v10 = vsub.f32 1.5, %v4498_v27 }
 0xa37   : > { %v4509_v33 = vsub.f32 1.5, %v4508_v45 }
 0xa38   : > { %v4500_v24 = vmul.f32 %v10578_v55, %v4499_v10 }
 0xa39   : > { %v4510_v62 = vmul.f32 %v10580_v6, %v4509_v33 }
 0xa3a   : > { %v4504_v39 = vsel %vm4503_vm14, %v10578_v55, %v4500_v24 }
 0xa3b   : > { %v4514_v9 = vsel %vm4513_vm0, %v10580_v6, %v4510_v62  ;;  %v4547_v36 = vmul.f32 %v13410_v5, %v4504_v39 }
 0xa3c   : > { %v4548_v40 = vmul.f32 %v13408_v38, %v4514_v9 }
 0xa3d   : > { %v4566_v61 = vmul.f32 %v13478_v17, %v4547_v36 }
 0xa3e   : > { %v4567_v63 = vmul.f32 %v13478_v17, %v4548_v40 }
 0xa40   : > { %v4576_v3 = vpack.c.bf16 %v4567_v63, %v4566_v61 }
 0xa42   : > { %4777 = vmatmul.bf16.gmra.mxu3 %v4576_v3  ;;  %4826 = vmatmul.bf16.gmra.mxu0 %v4576_v3 }
 0xa43   : > { %4875 = vmatmul.bf16.gmra.mxu1 %v4576_v3  ;;  %v4342_v23 = vpop.xlane.xlu1 %4341  ;;  %v4340_v41 = vpop.xlane.xlu2 %4339 }
 0xa44   : > { %v4358_v26 = vmul.f32 %v4342_v23, %v15339_v43  ;;  %v4357_v54 = vmul.f32 %v4340_v41, %v15339_v43 }
 0xa46   : > { %v4374_v30 = vadd.f32 1e-06, %v4358_v26  ;;  %v4373_v32 = vadd.f32 1e-06, %v4357_v54 }
 0xa48   : > { %10581 = vrsqrt.f32 %v4374_v30  ;;  %vm4531_vm4 = vweird.f32 %v4374_v30  ;;  %vm4521_vm6 = vweird.f32 %v4373_v32 }
 0xa49   : > { %10583 = vrsqrt.f32 %v4373_v32 }
 0xa4e   : > { %v10582_v5 = vpop.eup %10581 }
 0xa4f   : > { %v10584_v38 = vpop.eup %10583  ;;  %v4526_v13 = vmul.f32 %v10582_v5, %v4374_v30  ;;  %vm4532_vm2 = vweird.f32 %v10582_v5 }
 0xa50   : > { %v4516_v2 = vmul.f32 %v10584_v38, %v4373_v32  ;;  %vm4522_vm3 = vweird.f32 %v10584_v38  ;;  %vm4533_vm5 = vmor %vm4531_vm4, %vm4532_vm2 }
 0xa51   : > { %v4527_v18 = vmul.f32 %v10582_v5, %v4526_v13  ;;  %vm4523_vm7 = vmor %vm4521_vm6, %vm4522_vm3 }
 0xa52   : > { %v4517_v14 = vmul.f32 %v10584_v38, %v4516_v2 }
 0xa53   : > { %v4528_v49 = vmul.f32 0.5, %v4527_v18 }
 0xa54   : > { %v4518_v35 = vmul.f32 0.5, %v4517_v14 }
 0xa55   : > { %v4529_v4 = vsub.f32 1.5, %v4528_v49 }
 0xa56   : > { %v4519_v34 = vsub.f32 1.5, %v4518_v35 }
 0xa57   : > { %v4530_v52 = vmul.f32 %v10582_v5, %v4529_v4  ;;  %v4797_v31 = vpop.f32.mrf.mxu0 }
 0xa58   : > { %v4520_v37 = vmul.f32 %v10584_v38, %v4519_v34  ;;  %v4846_v56 = vpop.f32.mrf.mxu1 }
 0xa59   : > { %v4887_v59 = vpack.c.bf16 %v4846_v56, %v4846_v56  ;;  %v4534_v46 = vsel %vm4533_vm5, %v10582_v5, %v4530_v52 }
 0xa5a   : > { %v4524_v50 = vsel %vm4523_vm7, %v10584_v38, %v4520_v37  ;;  %v4550_v21 = vmul.f32 %v13465_v47, %v4534_v46 }
 0xa5b   : > { %4919 = vst [vmem:[#allocation3 + $0x8] sm:$0xf] %v4887_v59  ;;  %v4549_v11 = vmul.f32 %v13467_v53, %v4524_v50 }
 0xa5c   : > { %v4569_v42 = vmul.f32 %v13478_v17, %v4550_v21 }
 0xa5d   : > { %v4748_v19 = vpop.f32.mrf.mxu3  ;;  %v4568_v16 = vmul.f32 %v13478_v17, %v4549_v11 }
 0xa5e   : > { %v4886_v15 = vpack.c.bf16 %v4797_v31, %v4748_v19 }
 0xa5f   : > { %v4799_v25 = vpop.f32.mrf.mxu0  ;;  %v4577_v1 = vpack.c.bf16 %v4569_v42, %v4568_v16 }
 0xa60   : > { %4918 = vst [vmem:[#allocation3] sm:$0xff] %v4886_v15  ;;  %v4848_v58 = vpop.f32.mrf.mxu1 }
 0xa61   : > { %v4889_v44 = vpack.c.bf16 %v4848_v58, %v4848_v58  ;;  %4782 = vmatmul.bf16.gmra.mxu3 %v4577_v1  ;;  %4831 = vmatmul.bf16.gmra.mxu0 %v4577_v1 }
 0xa62   : > { %4880 = vmatmul.bf16.gmra.mxu1 %v4577_v1 }
 0xa63   : > { %4921 = vst [vmem:[#allocation3 + $0x14] sm:$0xf] %v4889_v44 }
 0xa65   : > { %v4750_v12 = vpop.f32.mrf.mxu3 }
 0xa66   : > { %v4888_v47 = vpack.c.bf16 %v4799_v25, %v4750_v12 }
 0xa67   : > { %v4802_v29 = vpop.f32.mrf.mxu0  ;;  %v8851_v17 = vld [vmem:[#allocation3 + $0x4] sm:$0xf]  ;;  %v8819_v6 = vld [vmem:[#allocation3] sm:$0xf] }
 0xa68   : > { %4920 = vst [vmem:[#allocation3 + $0xc] sm:$0xff] %v4888_v47  ;;  %v4851_v53 = vpop.f32.mrf.mxu1 }
 0xa69   : > { %v4891_v28 = vpack.c.bf16 %v4851_v53, %v4851_v53 }
 0xa6b   : > { %4923 = vst [vmem:[#allocation3 + $0x20] sm:$0xf] %v4891_v28 }
 0xa6d   : > { %v4753_v7 = vpop.f32.mrf.mxu3 }
 0xa6e   : > { %v4890_v48 = vpack.c.bf16 %v4802_v29, %v4753_v7 }
 0xa6f   : > { %v4804_v22 = vpop.f32.mrf.mxu0  ;;  %v9372_v55 = vld [vmem:[#allocation3 + $0xc] sm:$0xf0]  ;;  %v9364_v57 = vld [vmem:[#allocation3 + $0x8] sm:$0xf0] }
 0xa70   : > { %4922 = vst [vmem:[#allocation3 + $0x18] sm:$0xff] %v4890_v48  ;;  %v4853_v51 = vpop.f32.mrf.mxu1  ;;  %v13524_v8 = vor.u32 %v9372_v55, %v8851_v17  ;;  %v13526_v0 = vor.u32 %v9364_v57, %v8819_v6 }
 0xa71   : > { %v4893_v20 = vpack.c.bf16 %v4853_v51, %v4853_v51 }
 0xa72   : > { %6118 = vrot.lane.b32.xlu0 %v13524_v8, %s15340_s16  ;;  %5533 = vrot.lane.b32.xlu2 %v13524_v8, %s15341_s20 }
 0xa73   : > { %4925 = vst [vmem:[#allocation3 + $0x2c] sm:$0xf] %v4893_v20  ;;  %5517 = vrot.lane.b32.xlu1 %v13526_v0, %s15341_s20 }
 0xa75   : > { %v4755_v27 = vpop.f32.mrf.mxu3 }
 0xa76   : > { %v4892_v45 = vpack.c.bf16 %v4804_v22, %v4755_v27 }
 0xa77   : > { %v4807_v10 = vpop.f32.mrf.mxu0  ;;  %v8855_v9 = vld [vmem:[#allocation3 + $0x1c] sm:$0xf]  ;;  %v8823_v61 = vld [vmem:[#allocation3 + $0x18] sm:$0xf] }
 0xa78   : > { %4924 = vst [vmem:[#allocation3 + $0x24] sm:$0xff] %v4892_v45  ;;  %v4856_v33 = vpop.f32.mrf.mxu1 }
 0xa79   : > { %v4895_v24 = vpack.c.bf16 %v4856_v33, %v4856_v33 }
 0xa7a   : > { %6618 = vrot.lane.b32.xlu0 %v13526_v0, %s15342_s21  ;;  %6102 = vrot.lane.b32.xlu2 %v13526_v0, %s15340_s16 }
 0xa7b   : > { %4927 = vst [vmem:[#allocation3 + $0x38] sm:$0xf] %v4895_v24  ;;  %6634 = vrot.lane.b32.xlu1 %v13524_v8, %s15342_s21 }
 0xa7d   : > { %v4758_v62 = vpop.f32.mrf.mxu3 }
 0xa7e   : > { %v4894_v39 = vpack.c.bf16 %v4807_v10, %v4758_v62 }
 0xa7f   : > { %v4809_v36 = vpop.f32.mrf.mxu0  ;;  %v9373_v40 = vld [vmem:[#allocation3 + $0x24] sm:$0xf0]  ;;  %v9365_v63 = vld [vmem:[#allocation3 + $0x20] sm:$0xf0] }
 0xa80   : > { %4926 = vst [vmem:[#allocation3 + $0x30] sm:$0xff] %v4894_v39  ;;  %v4858_v3 = vpop.f32.mrf.mxu1  ;;  %v13540_v23 = vor.u32 %v9373_v40, %v8855_v9  ;;  %v13542_v41 = vor.u32 %v9365_v63, %v8823_v61 }
 0xa81   : > { %v4897_v26 = vpack.c.bf16 %v4858_v3, %v4858_v3 }
 0xa82   : > { %6636 = vrot.lane.b32.xlu2 %v13540_v23, %s15342_s21  ;;  %5519 = vrot.lane.b32.xlu0 %v13542_v41, %s15341_s20 }
 0xa83   : > { %4929 = vst [vmem:[#allocation3 + $0x44] sm:$0xf] %v4897_v26  ;;  %5535 = vrot.lane.b32.xlu1 %v13540_v23, %s15341_s20 }
 0xa85   : > { %v4760_v54 = vpop.f32.mrf.mxu3 }
 0xa86   : > { %v4896_v30 = vpack.c.bf16 %v4809_v36, %v4760_v54 }
 0xa87   : > { %v4812_v32 = vpop.f32.mrf.mxu0  ;;  %v8859_v18 = vld [vmem:[#allocation3 + $0x34] sm:$0xf]  ;;  %v8827_v59 = vld [vmem:[#allocation3 + $0x30] sm:$0xf] }
 0xa88   : > { %4928 = vst [vmem:[#allocation3 + $0x3c] sm:$0xff] %v4896_v30  ;;  %v4861_v5 = vpop.f32.mrf.mxu1 }
 0xa89   : > { %v4899_v38 = vpack.c.bf16 %v4861_v5, %v4861_v5 }
 0xa8b   : > { %4931 = vst [vmem:[#allocation3 + $0x50] sm:$0xf] %v4899_v38  ;;  %6120 = vrot.lane.b32.xlu1 %v13540_v23, %s15340_s16 }
 0xa8d   : > { %v4763_v13 = vpop.f32.mrf.mxu3 }
 0xa8e   : > { %v4898_v2 = vpack.c.bf16 %v4812_v32, %v4763_v13 }
 0xa8f   : > { %v9374_v14 = vld [vmem:[#allocation3 + $0x3c] sm:$0xf0]  ;;  %v4814_v4 = vpop.f32.mrf.mxu0  ;;  %v9366_v37 = vld [vmem:[#allocation3 + $0x38] sm:$0xf0] }
 0xa90   : > { %4930 = vst [vmem:[#allocation3 + $0x48] sm:$0xff] %v4898_v2  ;;  %v4863_v49 = vpop.f32.mrf.mxu1  ;;  %v13552_v35 = vor.u32 %v9374_v14, %v8859_v18  ;;  %v13558_v50 = vor.u32 %v9366_v37, %v8827_v59 }
 0xa91   : > { %v4901_v34 = vpack.c.bf16 %v4863_v49, %v4863_v49 }
 0xa92   : > { %6638 = vrot.lane.b32.xlu2 %v13552_v35, %s15342_s21 }
 0xa93   : > { %4933 = vst [vmem:[#allocation3 + $0x5c] sm:$0xf] %v4901_v34  ;;  %5537 = vrot.lane.b32.xlu1 %v13552_v35, %s15341_s20 }
 0xa95   : > { %v4765_v52 = vpop.f32.mrf.mxu3 }
 0xa96   : > { %v4900_v31 = vpack.c.bf16 %v4814_v4, %v4765_v52 }
 0xa97   : > { %v4817_v21 = vpop.f32.mrf.mxu0  ;;  %v8863_v19 = vld [vmem:[#allocation3 + $0x4c] sm:$0xf]  ;;  %v8831_v22 = vld [vmem:[#allocation3 + $0x48] sm:$0xf] }
 0xa98   : > { %4932 = vst [vmem:[#allocation3 + $0x54] sm:$0xff] %v4900_v31  ;;  %v4866_v56 = vpop.f32.mrf.mxu1 }
 0xa99   : > { %v4903_v46 = vpack.c.bf16 %v4866_v56, %v4866_v56 }
 0xa9b   : > { %4935 = vst [vmem:[#allocation3 + $0x68] sm:$0xf] %v4903_v46  ;;  %5521 = vrot.lane.b32.xlu1 %v13558_v50, %s15341_s20 }
 0xa9d   : > { %v4768_v11 = vpop.f32.mrf.mxu3 }
 0xa9e   : > { %v4902_v42 = vpack.c.bf16 %v4817_v21, %v4768_v11 }
 0xa9f   : > { %v9375_v16 = vld [vmem:[#allocation3 + $0x54] sm:$0xf0]  ;;  %v4819_v58 = vpop.f32.mrf.mxu0  ;;  %v9367_v47 = vld [vmem:[#allocation3 + $0x50] sm:$0xf0] }
 0xaa0   : > { %4934 = vst [vmem:[#allocation3 + $0x60] sm:$0xff] %v4902_v42  ;;  %v4868_v15 = vpop.f32.mrf.mxu1  ;;  %v13562_v25 = vor.u32 %v9375_v16, %v8863_v19  ;;  %v13576_v51 = vor.u32 %v9367_v47, %v8831_v22 }
 0xaa1   : > { %v4905_v1 = vpack.c.bf16 %v4868_v15, %v4868_v15 }
 0xaa2   : > { %6640 = vrot.lane.b32.xlu0 %v13562_v25, %s15342_s21  ;;  %6124 = vrot.lane.b32.xlu2 %v13562_v25, %s15340_s16 }
 0xaa3   : > { %4937 = vst [vmem:[#allocation3 + $0x74] sm:$0xf] %v4905_v1  ;;  %6122 = vrot.lane.b32.xlu1 %v13552_v35, %s15340_s16 }
 0xaa5   : > { %v4770_v44 = vpop.f32.mrf.mxu3 }
 0xaa6   : > { %v4904_v12 = vpack.c.bf16 %v4819_v58, %v4770_v44 }
 0xaa7   : > { %v8867_v29 = vld [vmem:[#allocation3 + $0x64] sm:$0xf]  ;;  %v8835_v7 = vld [vmem:[#allocation3 + $0x60] sm:$0xf] }
 0xaa8   : > { %4936 = vst [vmem:[#allocation3 + $0x6c] sm:$0xff] %v4904_v12 }
 0xaab   : > { %5539 = vrot.lane.b32.xlu1 %v13562_v25, %s15341_s20 }
 0xaae   : > { %v4822_v53 = vpop.f32.mrf.mxu0 }
 0xaaf   : > { %v9376_v28 = vld [vmem:[#allocation3 + $0x6c] sm:$0xf0]  ;;  %v9368_v48 = vld [vmem:[#allocation3 + $0x68] sm:$0xf0]  ;;  %v4871_v17 = vpop.f32.mrf.mxu1 }
 0xab0   : > { %v13572_v55 = vor.u32 %v9376_v28, %v8867_v29  ;;  %v13574_v6 = vor.u32 %v9368_v48, %v8835_v7  ;;  %v4907_v57 = vpack.c.bf16 %v4871_v17, %v4871_v17 }
 0xab2   : > { %6642 = vrot.lane.b32.xlu0 %v13572_v55, %s15342_s21  ;;  %5525 = vrot.lane.b32.xlu2 %v13574_v6, %s15341_s20  ;;  %4939 = vst [vmem:[#allocation3 + $0x80] sm:$0xf] %v4907_v57 }
 0xab3   : > { %5523 = vrot.lane.b32.xlu1 %v13576_v51, %s15341_s20 }
 0xab4   : > { %v4773_v20 = vpop.f32.mrf.mxu3 }
 0xab5   : > { %v4906_v27 = vpack.c.bf16 %v4822_v53, %v4773_v20 }
 0xab6   : > { %v4824_v10 = vpop.f32.mrf.mxu0 }
 0xab7   : > { %4938 = vst [vmem:[#allocation3 + $0x78] sm:$0xff] %v4906_v27  ;;  %v4873_v45 = vpop.f32.mrf.mxu1 }
 0xab8   : > { %v4909_v33 = vpack.c.bf16 %v4873_v45, %v4873_v45 }
 0xab9   : > { %v8911_v27 = vld [vmem:[#allocation3 + $0x80] sm:$0xf] }
 0xaba   : > { %6126 = vrot.lane.b32.xlu2 %v13572_v55, %s15340_s16  ;;  %4941 = vst [vmem:[#allocation3 + $0x8c] sm:$0xf] %v4909_v33 }
 0xabb   : > { %5541 = vrot.lane.b32.xlu1 %v13572_v55, %s15341_s20 }
 0xabc   : > { %v4775_v24 = vpop.f32.mrf.mxu3 }
 0xabd   : > { %v4908_v62 = vpack.c.bf16 %v4824_v10, %v4775_v24  ;;  %v9384_v24 = vld [vmem:[#allocation3 + $0x70] sm:$0xf0] }
 0xabe   : > { %v8871_v63 = vld [vmem:[#allocation3 + $0x7c] sm:$0xf]  ;;  %v8839_v26 = vld [vmem:[#allocation3 + $0x78] sm:$0xf] }
 0xabf   : > { %4940 = vst [vmem:[#allocation3 + $0x84] sm:$0xff] %v4908_v62  ;;  %v4827_v36 = vpop.f32.mrf.mxu0  ;;  %v8907_v62 = vld [vmem:[#allocation3 + $0x68] sm:$0xf] }
 0xac0   : > { %v4876_v39 = vpop.f32.mrf.mxu1 }
 0xac1   : > { %v4911_v9 = vpack.c.bf16 %v4876_v39, %v4876_v39  ;;  %v9385_v7 = vld [vmem:[#allocation3 + $0x88] sm:$0xf0]  ;;  %v13627_v39 = vor.u32 %v9384_v24, %v8907_v62 }
 0xac2   : > { %v13622_v33 = vor.u32 %v9385_v7, %v8911_v27 }
 0xac3   : > { %4943 = vst [vmem:[#allocation3 + $0x98] sm:$0xf] %v4911_v9  ;;  %v9383_v9 = vld [vmem:[#allocation3 + $0x58] sm:$0xf0] }
 0xac5   : > { %v4778_v40 = vpop.f32.mrf.mxu3 }
 0xac6   : > { %v4910_v61 = vpack.c.bf16 %v4827_v36, %v4778_v40  ;;  %v9377_v3 = vld [vmem:[#allocation3 + $0x84] sm:$0xf0]  ;;  %v9369_v54 = vld [vmem:[#allocation3 + $0x80] sm:$0xf0]  ;;  %v8903_v36 = vld [vmem:[#allocation3 + $0x50] sm:$0xf] }
 0xac7   : > { %v13588_v32 = vor.u32 %v9377_v3, %v8871_v63  ;;  %v13590_v5 = vor.u32 %v9369_v54, %v8839_v26  ;;  %v4829_v13 = vpop.f32.mrf.mxu0  ;;  %v9382_v63 = vld [vmem:[#allocation3 + $0x40] sm:$0xf0]  ;;  %v8899_v26 = vld [vmem:[#allocation3 + $0x38] sm:$0xf] }
 0xac8   : > { %4942 = vst [vmem:[#allocation3 + $0x90] sm:$0xff] %v4910_v61  ;;  %v4878_v30 = vpop.f32.mrf.mxu1  ;;  %v13632_v61 = vor.u32 %v9383_v9, %v8903_v36  ;;  %v13637_v54 = vor.u32 %v9382_v63, %v8899_v26 }
 0xac9   : > { %v4913_v38 = vpack.c.bf16 %v4878_v30, %v4878_v30  ;;  %6644 = vrot.lane.b32.xlu1 %v13588_v32, %s15342_s21  ;;  %5543 = vrot.lane.b32.xlu0 %v13588_v32, %s15341_s20  ;;  %v9381_v30 = vld [vmem:[#allocation3 + $0x28] sm:$0xf0] }
 0xaca   : > { %5527 = vrot.lane.b32.xlu2 %v13590_v5, %s15341_s20  ;;  %v8915_v29 = vld [vmem:[#allocation3 + $0x98] sm:$0xf] }
 0xacb   : > { %4945 = vst [vmem:[#allocation3 + $0xa4] sm:$0xf] %v4913_v38  ;;  %v8895_v38 = vld [vmem:[#allocation3 + $0x20] sm:$0xf] }
 0xacd   : > { %v4780_v2 = vpop.f32.mrf.mxu3 }
 0xace   : > { %v4912_v18 = vpack.c.bf16 %v4829_v13, %v4780_v2  ;;  %v5150_v13 = vsel %vm1353_vm1, %v13588_v32, 0  ;;  %v13642_v2 = vor.u32 %v9381_v30, %v8895_v38 }
 0xacf   : > { %v8875_v14 = vld [vmem:[#allocation3 + $0x94] sm:$0xf]  ;;  %v8843_v21 = vld [vmem:[#allocation3 + $0x90] sm:$0xf] }
 0xad0   : > { %4944 = vst [vmem:[#allocation3 + $0x9c] sm:$0xff] %v4912_v18  ;;  %v9380_v18 = vld [vmem:[#allocation3 + $0x10] sm:$0xf0] }
 0xad1   : > { %6128 = vrot.lane.b32.xlu0 %v13588_v32, %s15340_s16 }
 0xad2   : > { %v9386_v47 = vld [vmem:[#allocation3 + $0xa0] sm:$0xf0] }
 0xad3   : > { %v13612_v53 = vor.u32 %v9386_v47, %v8915_v29 }
 0xad7   : > { %v9378_v49 = vld [vmem:[#allocation3 + $0x9c] sm:$0xf0]  ;;  %v9370_v59 = vld [vmem:[#allocation3 + $0x98] sm:$0xf0] }
 0xad8   : > { %v8876_v4 = vor.u32 %v9378_v49, %v8875_v14  ;;  %v13603_v42 = vor.u32 %v9370_v59, %v8843_v21  ;;  %v8891_v14 = vld [vmem:[#allocation3 + $0x8] sm:$0xf]  ;;  %v5534_v49 = vpop.permute.xlu2 %5533 }
 0xad9   : > { %v5574_v38 = vsel %vm1353_vm1, %v5534_v49, 0 }
 0xada   : > { %6130 = vrot.lane.b32.xlu0 %v8876_v4, %s15340_s16  ;;  %5545 = vrot.lane.b32.xlu1 %v8876_v4, %s15341_s20  ;;  %v5153_v40 = vsel %vm1353_vm1, %v8876_v4, 0 }
 0xade   : > { %v4832_v31 = vpop.f32.mrf.mxu0 }
 0xadf   : > { %v4881_v34 = vpop.f32.mrf.mxu1 }
 0xae0   : > { %v4915_v52 = vpack.c.bf16 %v4881_v34, %v4881_v34  ;;  %v13647_v34 = vor.u32 %v9380_v18, %v8891_v14 }
 0xae2   : > { %4947 = vst [vmem:[#allocation3 + $0xb0] sm:$0xf] %v4915_v52  ;;  %6646 = vrot.lane.b32.xlu1 %v8876_v4, %s15342_s21  ;;  %v5147_v52 = vsel %vm1353_vm1, %v13572_v55, 0  ;;  %v5138_v55 = vsel %vm1353_vm1, %v13540_v23, 0 }
 0xae4   : > { %v4783_v37 = vpop.f32.mrf.mxu3 }
 0xae5   : > { %v4914_v56 = vpack.c.bf16 %v4832_v31, %v4783_v37  ;;  %v13607_v1 = vpop.permute.xlu1 %5517  ;;  %v13652_v31 = vpop.permute.xlu2 %6102  ;;  %v5144_v37 = vsel %vm1353_vm1, %v13562_v25, 0  ;;  %v5135_v25 = vsel %vm1353_vm1, %v13524_v8, 0 }
 0xae6   : > { %v4834_v19 = vpop.f32.mrf.mxu0 }
 0xae7   : > { %4946 = vst [vmem:[#allocation3 + $0xa8] sm:$0xff] %v4914_v56  ;;  %v4883_v46 = vpop.f32.mrf.mxu1 }
 0xae8   : > { %v4917_v11 = vpack.c.bf16 %v4883_v46, %v4883_v46  ;;  %v5141_v46 = vsel %vm1353_vm1, %v13552_v35, 0 }
 0xae9   : > { %v8919_v58 = vld [vmem:[#allocation3 + $0xb0] sm:$0xf] }
 0xaea   : > { %4949 = vst [vmem:[#allocation3 + $0xbc] sm:$0xf] %v4917_v11  ;;  %5529 = vrot.lane.b32.xlu1 %v13603_v42, %s15341_s20 }
 0xaec   : > { %v4785_v16 = vpop.f32.mrf.mxu3 }
 0xaed   : > { %v4916_v15 = vpack.c.bf16 %v4834_v19, %v4785_v16  ;;  %v13617_v45 = vpop.permute.xlu1 %6634  ;;  %v13656_v56 = vpop.permute.xlu2 %6636 }
 0xaee   : > { %v8879_v28 = vld [vmem:[#allocation3 + $0xac] sm:$0xf]  ;;  %v8847_v17 = vld [vmem:[#allocation3 + $0xa8] sm:$0xf]  ;;  %v13668_v16 = vpop.permute.xlu0 %6118 }
 0xaef   : > { %4948 = vst [vmem:[#allocation3 + $0xb4] sm:$0xff] %v4916_v15 }
 0xaf1   : > { %v9387_v44 = vld [vmem:[#allocation3 + $0xb8] sm:$0xf0] }
 0xaf2   : > { %v13609_v12 = vor.u32 %v9387_v44, %v8919_v58 }
 0xaf4   : > { %5423 = vmatpush.bf16.msra.mxu3 %v13609_v12 }
 0xaf5   : > { %v13634_v3 = vpop.permute.xlu1 %5535  ;;  %v13662_v21 = vpop.permute.xlu2 %6638 }
 0xaf6   : > { %v9379_v48 = vld [vmem:[#allocation3 + $0xb4] sm:$0xf0]  ;;  %v9371_v22 = vld [vmem:[#allocation3 + $0xb0] sm:$0xf0]  ;;  %v13674_v35 = vpop.permute.xlu0 %6618  ;;  %v5577_v63 = vsel %vm1353_vm1, %v13634_v3, 0 }
 0xaf7   : > { %v8880_v57 = vor.u32 %v9379_v48, %v8879_v28  ;;  %v13615_v20 = vor.u32 %v9371_v22, %v8847_v17 }
 0xaf8   : > { %5424 = vmatpush.bf16.msra.mxu3 %v13612_v53 }
 0xaf9   : > { %6132 = vrot.lane.b32.xlu1 %v8880_v57, %s15340_s16  ;;  %5547 = vrot.lane.b32.xlu2 %v8880_v57, %s15341_s20  ;;  %v5156_v10 = vsel %vm1353_vm1, %v8880_v57, 0 }
 0xafa   : > { %5531 = vrot.lane.b32.xlu0 %v13615_v20, %s15341_s20  ;;  %5158 = vmatpush.bf16.xpose.msra.mxu2 %v5156_v10 }
 0xafc   : > { %5425 = vmatpush.bf16.msra.mxu3 %v13622_v33 }
 0xafd   : > { %v13645_v4 = vpop.permute.xlu1 %6120  ;;  %v6125_v19 = vpop.permute.xlu2 %6124 }
 0xafe   : > { %v5520_v47 = vpop.permute.xlu0 %5519 }
 0xb00   : > { %5426 = vmatpush.bf16.msra.mxu3 %v13627_v39 }
 0xb01   : > { %6648 = vrot.lane.b32.xlu2 %v8880_v57, %s15342_s21 }
 0xb02   : > { %5159 = vmatpush.bf16.xpose.msra.mxu2 %v5153_v40 }
 0xb04   : > { %5427 = vmatpush.bf16.msra.mxu3 %v13632_v61 }
 0xb05   : > { %v5538_v32 = vpop.permute.xlu1 %5537 }
 0xb06   : > { %v5580_v36 = vsel %vm1353_vm1, %v5538_v32, 0  ;;  %v9765_v32 = vld [vmem:[%s15317_s1] sm:$0xff]  }
 0xb08   : > { %5428 = vmatpush.bf16.msra.mxu3 %v13637_v54 }
 0xb0a   : > { %5160 = vmatpush.bf16.xpose.msra.mxu2 %v5150_v13 }
 0xb0c   : > { %5429 = vmatpush.bf16.msra.mxu3 %v13642_v2  ;;  %v13670_v58 = vpop.permute.xlu2 %5525 }
 0xb0d   : > { %v13658_v59 = vpop.permute.xlu1 %5521 }
 0xb10   : > { %5430 = vmatpush.bf16.msra.mxu3 %v13647_v34 }
 0xb12   : > { %5161 = vmatpush.bf16.xpose.msra.mxu2 %v5147_v52  ;;  %v6168_v52 = vsel %vm1353_vm1, %v6125_v19, 0 }
 0xb14   : > { %v6127_v23 = vpop.permute.xlu2 %6126  ;;  %v13682_v28 = vpop.permute.xlu0 %6640 }
 0xb15   : > { %v6123_v11 = vpop.permute.xlu1 %6122  ;;  %v6171_v49 = vsel %vm1353_vm1, %v6127_v23, 0  ;;  %v6159_v23 = vsel %vm1353_vm1, %v13668_v16, 0 }
 0xb1a   : > { %5162 = vmatpush.bf16.xpose.msra.mxu2 %v5144_v37  ;;  %v9766_v37 = vunpack.c.l.bf16 %v9765_v32 }
 0xb1d   : > { %v5540_v15 = vpop.permute.xlu1 %5539 }
 0xb1e   : > { %v5583_v62 = vsel %vm1353_vm1, %v5540_v15, 0 }
 0xb22   : > { %5163 = vmatpush.bf16.xpose.msra.mxu2 %v5141_v46 }
 0xb24   : > { %v13680_v8 = vpop.permute.xlu2 %5527 }
 0xb25   : > { %v13676_v44 = vpop.permute.xlu1 %5523 }
 0xb2a   : > { %5164 = vmatpush.bf16.xpose.msra.mxu2 %v5138_v55 }
 0xb2d   : > { %v5542_v29 = vpop.permute.xlu1 %5541 }
 0xb2e   : > { %v5586_v24 = vsel %vm1353_vm1, %v5542_v29, 0 }
 0xb32   : > { %5165 = vmatpush.bf16.xpose.msra.mxu2 %v5135_v25  ;;  %v6162_v25 = vsel %vm1353_vm1, %v13645_v4, 0  ;;  %v10109_v4 = vld [vmem:[%s15317_s1 + $0x8] sm:$0xff]  }
 0xb33   : > { %v9770_v29 = vunpack.c.l.bf16 %v10109_v4 }
 0xb39   : > { %8881 = vmatmul.msk.bf16.vlgmr.msra.gmra.mxu2 %vm1353_vm1, %v13526_v0  ;;  %v13687_v0 = vpop.permute.xlu0 %6642 }
 0xb3b   : > { %v13684_v7 = vpop.permute.xlu1 %6644 }
 0xb41   : > { %v5544_v27 = vpop.permute.xlu0 %5543 }
 0xb42   : > { %v5589_v10 = vsel %vm1353_vm1, %v5544_v27, 0  ;;  %v10110_v27 = vld [vmem:[%s15317_s1 + $0x10] sm:$0xff]  }
 0xb49   : > { %8882 = vmatmul.msk.bf16.gmra.mxu2 %vm1353_vm1, %v13542_v41  ;;  %v6129_v26 = vpop.permute.xlu0 %6128 }
 0xb4a   : > { %v6174_v3 = vsel %vm1353_vm1, %v6129_v26, 0  ;;  %v9775_v26 = vunpack.c.h.bf16 %v10110_v27 }
 0xb4c   : > { %v5546_v22 = vpop.permute.xlu1 %5545 }
 0xb4d   : > { %v5592_v57 = vsel %vm1353_vm1, %v5546_v22, 0 }
 0xb51   : > { %v6131_v18 = vpop.permute.xlu0 %6130 }
 0xb52   : > { %v6177_v14 = vsel %vm1353_vm1, %v6131_v18, 0 }
 0xb53   : > { %v5548_v48 = vpop.permute.xlu2 %5547 }
 0xb54   : > { %v5595_v17 = vsel %vm1353_vm1, %v5548_v48, 0  ;;  %v13697_v9 = vpop.permute.xlu1 %6646 }
 0xb55   : > { %5597 = vmatpush.bf16.xpose.msra.mxu0 %v5595_v17 }
 0xb59   : > { %8883 = vmatmul.msk.bf16.gmra.mxu2 %vm1353_vm1, %v13558_v50 }
 0xb5c   : > { %v13702_v40 = vpop.permute.xlu1 %5529 }
 0xb5d   : > { %5598 = vmatpush.bf16.xpose.msra.mxu0 %v5592_v57 }
 0xb65   : > { %5599 = vmatpush.bf16.xpose.msra.mxu0 %v5589_v10 }
 0xb69   : > { %8884 = vmatmul.msk.bf16.gmra.mxu2 %vm1353_vm1, %v13576_v51 }
 0xb6b   : > { %v6133_v30 = vpop.permute.xlu1 %6132 }
 0xb6c   : > { %v6180_v13 = vsel %vm1353_vm1, %v6133_v30, 0 }
 0xb6d   : > { %5600 = vmatpush.bf16.xpose.msra.mxu0 %v5586_v24  ;;  %v9774_v24 = vunpack.c.l.bf16 %v10110_v27 }
 0xb75   : > { %5601 = vmatpush.bf16.xpose.msra.mxu0 %v5583_v62 }
 0xb79   : > { %8885 = vmatmul.msk.bf16.gmra.mxu2 %vm1353_vm1, %v13574_v6 }
 0xb7d   : > { %5602 = vmatpush.bf16.xpose.msra.mxu0 %v5580_v36 }
 0xb85   : > { %5603 = vmatpush.bf16.xpose.msra.mxu0 %v5577_v63 }
 0xb89   : > { %8886 = vmatmul.msk.bf16.gmra.mxu2 %vm1353_vm1, %v13590_v5 }
 0xb8d   : > { %5604 = vmatpush.bf16.xpose.msra.mxu0 %v5574_v38  ;;  %v10111_v38 = vld [vmem:[%s15317_s1 + $0x18] sm:$0xff]  }
 0xb8e   : > { %v9778_v18 = vunpack.c.l.bf16 %v10111_v38 }
 0xb94   : > { %8941 = vmatmul.msk.bf16.vlgmr.msra.gmra.mxu0 %vm1353_vm1, %v13607_v1  ;;  %v6165_v1 = vsel %vm1353_vm1, %v6123_v11, 0 }
 0xb95   : > { %6182 = vmatpush.bf16.xpose.msrb.mxu0 %v6180_v13 }
 0xb99   : > { %8887 = vmatmul.msk.bf16.gmra.mxu2 %vm1353_vm1, %v13603_v42 }
 0xb9d   : > { %6183 = vmatpush.bf16.xpose.msrb.mxu0 %v6177_v14 }
 0xba4   : > { %8942 = vmatmul.msk.bf16.gmra.mxu0 %vm1353_vm1, %v5520_v47 }
 0xba5   : > { %6184 = vmatpush.bf16.xpose.msrb.mxu0 %v6174_v3 }
 0xba9   : > { %8888 = vmatmul.msk.bf16.gmra.mxu2 %vm1353_vm1, %v13615_v20 }
 0xbad   : > { %6185 = vmatpush.bf16.xpose.msrb.mxu0 %v6171_v49 }
 0xbb4   : > { %8943 = vmatmul.msk.bf16.gmra.mxu0 %vm1353_vm1, %v13658_v59  ;;  %v9767_v59 = vunpack.c.h.bf16 %v9765_v32  ;;  %v10112_v32 = vld [vmem:[%s15317_s1 + $0x20] sm:$0xff]  }
 0xbb5   : > { %6186 = vmatpush.bf16.xpose.msrb.mxu0 %v6168_v52  ;;  %v9779_v52 = vunpack.c.h.bf16 %v10111_v38 }
 0xbbc   : > { %v5167_v46 = vpop.f32.mrf.mxu2 }
 0xbbd   : > { %6187 = vmatpush.bf16.xpose.msrb.mxu0 %v6165_v1  ;;  %v5168_v55 = vadd.f32 %v9766_v37, %v5167_v46  ;;  %v9782_v46 = vunpack.c.l.bf16 %v10112_v32 }
 0xbbf   : > { %v13730_v19 = vadd.f32 %v5168_v55, %v11868_v60 }
 0xbc1   : > { %5223 = vmax.xlane.f32.xlu0 %v13730_v19 }
 0xbc4   : > { %v5169_v15 = vpop.f32.mrf.mxu2  ;;  %8944 = vmatmul.msk.bf16.gmra.mxu0 %vm1353_vm1, %v13676_v44  ;;  %v9771_v44 = vunpack.c.h.bf16 %v10109_v4  ;;  %v10113_v4 = vld [vmem:[%s15317_s1 + $0x28] sm:$0xff]  }
 0xbc5   : > { %6188 = vmatpush.bf16.xpose.msrb.mxu0 %v6162_v25  ;;  %v5170_v11 = vadd.f32 %v9767_v59, %v5169_v15  ;;  %v9783_v15 = vunpack.c.h.bf16 %v10112_v32 }
 0xbc7   : > { %v13741_v47 = vadd.f32 %v5170_v11, %v11868_v60 }
 0xbc9   : > { %5225 = vmax.xlane.f32.xlu2 %v13741_v47 }
 0xbcc   : > { %v5172_v48 = vpop.f32.mrf.mxu2 }
 0xbcd   : > { %6189 = vmatpush.bf16.xpose.msrb.mxu0 %v6159_v23  ;;  %v5173_v17 = vadd.f32 %v9770_v29, %v5172_v48  ;;  %v9786_v48 = vunpack.c.l.bf16 %v10113_v4 }
 0xbcf   : > { %v13745_v22 = vadd.f32 %v5173_v17, %v11868_v60 }
 0xbd1   : > { %5227 = vmax.xlane.f32.xlu1 %v13745_v22 }
 0xbd4   : > { %v5174_v16 = vpop.f32.mrf.mxu2  ;;  %8945 = vmatmul.msk.bf16.gmra.mxu0 %vm1353_vm1, %v13670_v58 }
 0xbd5   : > { %v5175_v57 = vadd.f32 %v9771_v44, %v5174_v16 }
 0xbd7   : > { %v13754_v10 = vadd.f32 %v5175_v57, %v11868_v60  ;;  %v9787_v57 = vunpack.c.h.bf16 %v10113_v4 }
 0xbd9   : > { %5229 = vmax.xlane.f32.xlu0 %v13754_v10 }
 0xbdc   : > { %v5177_v62 = vpop.f32.mrf.mxu2 }
 0xbdd   : > { %v5178_v36 = vadd.f32 %v9774_v24, %v5177_v62  ;;  %v10114_v62 = vld [vmem:[%s15317_s1 + $0x30] sm:$0xff]  }
 0xbdf   : > { %v13758_v63 = vadd.f32 %v5178_v36, %v11868_v60 }
 0xbe1   : > { %5231 = vmax.xlane.f32.xlu2 %v13758_v63 }
 0xbe4   : > { %v5179_v58 = vpop.f32.mrf.mxu2  ;;  %8946 = vmatmul.msk.bf16.gmra.mxu0 %vm1353_vm1, %v13680_v8 }
 0xbe5   : > { %v5180_v30 = vadd.f32 %v9775_v26, %v5179_v58  ;;  %v9790_v26 = vunpack.c.l.bf16 %v10114_v62 }
 0xbe7   : > { %v13767_v13 = vadd.f32 %v5180_v30, %v11868_v60 }
 0xbe9   : > { %5233 = vmax.xlane.f32.xlu1 %v13767_v13 }
 0xbec   : > { %v5182_v14 = vpop.f32.mrf.mxu2 }
 0xbed   : > { %v5183_v3 = vadd.f32 %v9778_v18, %v5182_v14  ;;  %v9791_v18 = vunpack.c.h.bf16 %v10114_v62 }
 0xbef   : > { %v13771_v49 = vadd.f32 %v5183_v3, %v11868_v60  ;;  %v10115_v3 = vld [vmem:[%s15317_s1 + $0x38] sm:$0xff]  }
 0xbf1   : > { %5235 = vmax.xlane.f32.xlu0 %v13771_v49 }
 0xbf4   : > { %v5184_v8 = vpop.f32.mrf.mxu2  ;;  %8947 = vmatmul.msk.bf16.gmra.mxu0 %vm1353_vm1, %v13702_v40  ;;  %v5532_v40 = vpop.permute.xlu0 %5531 }
 0xbf5   : > { %v5185_v1 = vadd.f32 %v9779_v52, %v5184_v8  ;;  %v9794_v8 = vunpack.c.l.bf16 %v10115_v3 }
 0xbf7   : > { %v13780_v37 = vadd.f32 %v5185_v1, %v11868_v60 }
 0xbf9   : > { %5237 = vmax.xlane.f32.xlu2 %v13780_v37 }
 0xbfc   : > { %v5187_v55 = vpop.f32.mrf.mxu2 }
 0xbfd   : > { %v5188_v25 = vadd.f32 %v9782_v46, %v5187_v55  ;;  %v9795_v55 = vunpack.c.h.bf16 %v10115_v3 }
 0xbff   : > { %v13784_v59 = vadd.f32 %v5188_v25, %v11868_v60  ;;  %v13823_v25 = vpop.permute.xlu2 %6648 }
 0xc01   : > { %5239 = vmax.xlane.f32.xlu2 %v13784_v59 }
 0xc04   : > { %v5189_v11 = vpop.f32.mrf.mxu2  ;;  %8948 = vmatmul.msk.bf16.gmra.mxu0 %vm1353_vm1, %v5532_v40 }
 0xc05   : > { %v5190_v23 = vadd.f32 %v9783_v15, %v5189_v11 }
 0xc07   : > { %v13792_v29 = vadd.f32 %v5190_v23, %v11868_v60 }
 0xc09   : > { %5241 = vmax.xlane.f32.xlu1 %v13792_v29 }
 0xc0c   : > { %v5192_v17 = vpop.f32.mrf.mxu2 }
 0xc0d   : > { %v5193_v44 = vadd.f32 %v9786_v48, %v5192_v17 }
 0xc0f   : > { %v13796_v16 = vadd.f32 %v5193_v44, %v11868_v60 }
 0xc11   : > { %5243 = vmax.xlane.f32.xlu1 %v13796_v16 }
 0xc14   : > { %v5194_v27 = vpop.f32.mrf.mxu2  ;;  %9001 = vmatmul.msk.bf16.vlgmr.msrb.gmra.mxu0 %vm1353_vm1, %v13652_v31 }
 0xc15   : > { %v5195_v24 = vadd.f32 %v9787_v57, %v5194_v27 }
 0xc17   : > { %v13805_v36 = vadd.f32 %v5195_v24, %v11868_v60 }
 0xc19   : > { %5245 = vmax.xlane.f32.xlu0 %v13805_v36 }
 0xc1c   : > { %v5197_v58 = vpop.f32.mrf.mxu2 }
 0xc1d   : > { %v5198_v30 = vadd.f32 %v9790_v26, %v5197_v58 }
 0xc1f   : > { %v13809_v38 = vadd.f32 %v5198_v30, %v11868_v60 }
 0xc21   : > { %5247 = vmax.xlane.f32.xlu0 %v13809_v38 }
 0xc24   : > { %v5199_v31 = vpop.f32.mrf.mxu2 }
 0xc25   : > { %v5200_v14 = vadd.f32 %v9791_v18, %v5199_v31 }
 0xc27   : > { %v13816_v52 = vadd.f32 %v5200_v14, %v11868_v60 }
 0xc29   : > { %5249 = vmax.xlane.f32.xlu2 %v13816_v52 }
 0xc2c   : > { %v5202_v1 = vpop.f32.mrf.mxu2 }
 0xc2d   : > { %v5203_v32 = vadd.f32 %v9794_v8, %v5202_v1 }
 0xc2f   : > { %v13820_v46 = vadd.f32 %v5203_v32, %v11868_v60 }
 0xc31   : > { %5251 = vmax.xlane.f32.xlu2 %v13820_v46 }
 0xc34   : > { %v5204_v15 = vpop.f32.mrf.mxu2  ;;  %v5224_v40 = vpop.xlane.xlu0 %5223 }
 0xc35   : > { %v5205_v11 = vadd.f32 %v9795_v55, %v5204_v15  ;;  %v5255_v23 = vsub.f32 %v13730_v19, %v5224_v40 }
 0xc37   : > { %v13827_v4 = vadd.f32 %v5205_v11, %v11868_v60  ;;  %v5271_v48 = vmul.f32 1.442695, %v5255_v23 }
 0xc39   : > { %10585 = vpow2.f32 %v5271_v48  ;;  %5253 = vmax.xlane.f32.xlu1 %v13827_v4 }
 0xc3c   : > { %v5226_v17 = vpop.xlane.xlu2 %5225 }
 0xc3d   : > { %v5256_v44 = vsub.f32 %v13741_v47, %v5226_v17 }
 0xc3f   : > { %v13831_v57 = vpop.eup %10585  ;;  %v5273_v27 = vmul.f32 1.442695, %v5256_v44 }
 0xc41   : > { %10587 = vpow2.f32 %v5273_v27  ;;  %5303 = vadd.xlane.f32.xlu1 %v13831_v57 }
 0xc44   : > { %v5228_v24 = vpop.xlane.xlu1 %5227 }
 0xc45   : > { %v5257_v62 = vsub.f32 %v13745_v22, %v5228_v24 }
 0xc47   : > { %v13835_v19 = vpop.eup %10587  ;;  %v5275_v26 = vmul.f32 1.442695, %v5257_v62 }
 0xc48   : > { %5305 = vadd.xlane.f32.xlu0 %v13835_v19 }
 0xc49   : > { %10589 = vpow2.f32 %v5275_v26  ;;  %6620 = vrot.lane.b32.xlu2 %v13542_v41, %s15342_s21 }
 0xc4c   : > { %v5230_v47 = vpop.xlane.xlu0 %5229 }
 0xc4d   : > { %v5258_v30 = vsub.f32 %v13754_v10, %v5230_v47  ;;  %v9388_v47 = vld [vmem:[%s15241_s5 + $0x40] sm:$0xff] }
 0xc4f   : > { %v13840_v58 = vpop.eup %10589  ;;  %v5277_v18 = vmul.f32 1.442695, %v5258_v30 }
 0xc50   : > { %5307 = vadd.xlane.f32.xlu0 %v13840_v58 }
 0xc51   : > { %10591 = vpow2.f32 %v5277_v18 }
 0xc54   : > { %v5232_v22 = vpop.xlane.xlu2 %5231 }
 0xc55   : > { %v5259_v31 = vsub.f32 %v13758_v63, %v5232_v22 }
 0xc57   : > { %v5279_v8 = vmul.f32 1.442695, %v5259_v31  ;;  %v13848_v32 = vpop.eup %10591 }
 0xc5a   : > { %6104 = vrot.lane.b32.xlu1 %v13542_v41, %s15340_s16 }
 0xc5c   : > { %v5234_v55 = vpop.xlane.xlu1 %5233 }
 0xc5d   : > { %v5260_v41 = vsub.f32 %v13767_v13, %v5234_v55 }
 0xc5f   : > { %v5281_v63 = vmul.f32 1.442695, %v5260_v41 }
 0xc64   : > { %v5236_v40 = vpop.xlane.xlu0 %5235 }
 0xc65   : > { %v5261_v11 = vsub.f32 %v13771_v49, %v5236_v40 }
 0xc67   : > { %v5283_v17 = vmul.f32 1.442695, %v5261_v11 }
 0xc6c   : > { %v5238_v14 = vpop.xlane.xlu2 %5237 }
 0xc6d   : > { %v5262_v3 = vsub.f32 %v13780_v37, %v5238_v14  ;;  %v5606_v14 = vpop.f32.mrf.mxu0 }
 0xc6f   : > { %v5285_v1 = vmul.f32 1.442695, %v5262_v3  ;;  %v10116_v3 = vld [vmem:[%s15317_s1 + $0x40] sm:$0xff]  }
 0xc71   : > { %10593 = vpow2.f32 %v5285_v1 }
 0xc72   : > { %5309 = vadd.xlane.f32.xlu2 %v13848_v32  ;;  %10595 = vpow2.f32 %v5279_v8  ;;  %v9798_v8 = vunpack.c.l.bf16 %v10116_v3 }
 0xc73   : > { %10597 = vpow2.f32 %v5281_v63 }
 0xc74   : > { %v5607_v41 = vadd.f32 %v9798_v8, %v5606_v14 }
 0xc77   : > { %v13852_v10 = vpop.eup %10593 }
 0xc78   : > { %5317 = vadd.xlane.f32.xlu0 %v13852_v10  ;;  %v13855_v15 = vpop.eup %10595 }
 0xc79   : > { %v13860_v13 = vpop.eup %10597 }
 0xc7a   : > { %5311 = vadd.xlane.f32.xlu2 %v13855_v15 }
 0xc7c   : > { %v5242_v37 = vpop.xlane.xlu1 %5241 }
 0xc7d   : > { %v5264_v23 = vsub.f32 %v13792_v29, %v5242_v37  ;;  %v9389_v29 = vld [vmem:[%s15241_s5 + $0x48] sm:$0xff]  ;;  %v13898_v37 = vadd.f32 %v5607_v41, %v11868_v60 }
 0xc7e   : > { %6027 = vmatpush.bf16.msrb.mxu3 %v9389_v29 }
 0xc7f   : > { %v5289_v48 = vmul.f32 1.442695, %v5264_v23 }
 0xc81   : > { %10599 = vpow2.f32 %v5289_v48 }
 0xc82   : > { %10601 = vpow2.f32 %v5283_v17  ;;  %6028 = vmatpush.bf16.msrb.mxu3 %v9388_v47  ;;  %v6696_v47 = vsel %vm1353_vm1, %v13823_v25, 0 }
 0xc84   : > { %v5244_v44 = vpop.xlane.xlu1 %5243  ;;  %5313 = vadd.xlane.f32.xlu1 %v13860_v13 }
 0xc85   : > { %v5265_v27 = vsub.f32 %v13796_v16, %v5244_v44  ;;  %v5240_v16 = vpop.xlane.xlu2 %5239 }
 0xc86   : > { %v5263_v30 = vsub.f32 %v13784_v59, %v5240_v16 }
 0xc87   : > { %v13864_v24 = vpop.eup %10599  ;;  %v5291_v62 = vmul.f32 1.442695, %v5265_v27 }
 0xc88   : > { %5321 = vadd.xlane.f32.xlu2 %v13864_v24  ;;  %v13867_v26 = vpop.eup %10601  ;;  %v5287_v18 = vmul.f32 1.442695, %v5263_v30 }
 0xc89   : > { %10603 = vpow2.f32 %v5291_v62 }
 0xc8a   : > { %10605 = vpow2.f32 %v5287_v18 }
 0xc8c   : > { %6106 = vrot.lane.b32.xlu0 %v13558_v50, %s15340_s16  ;;  %5315 = vadd.xlane.f32.xlu1 %v13867_v26  ;;  %v5246_v22 = vpop.xlane.xlu0 %5245 }
 0xc8f   : > { %v13872_v49 = vpop.eup %10603 }
 0xc90   : > { %v13893_v1 = vpop.eup %10605 }
 0xc94   : > { %5323 = vadd.xlane.f32.xlu1 %v13872_v49  ;;  %v5248_v59 = vpop.xlane.xlu0 %5247 }
 0xc9c   : > { %v5250_v11 = vpop.xlane.xlu2 %5249 }
 0xc9d   : > { %v5268_v23 = vsub.f32 %v13816_v52, %v5250_v11  ;;  %v5267_v52 = vsub.f32 %v13809_v38, %v5248_v59 }
 0xc9f   : > { %v5295_v18 = vmul.f32 1.442695, %v5267_v52  ;;  %v6684_v52 = vsel %vm1353_vm1, %v13682_v28, 0 }
 0xca0   : > { %6108 = vrot.lane.b32.xlu2 %v13576_v51, %s15340_s16 }
 0xca4   : > { %v5252_v30 = vpop.xlane.xlu2 %5251 }
 0xca8   : > { %6624 = vrot.lane.b32.xlu2 %v13576_v51, %s15342_s21  ;;  %v5266_v51 = vsub.f32 %v13805_v36, %v5246_v22  ;;  %v5297_v36 = vmul.f32 1.442695, %v5268_v23  ;;  %v5269_v22 = vsub.f32 %v13820_v46, %v5252_v30  ;;  %v6693_v46 = vsel %vm1353_vm1, %v13697_v9, 0 }
 0xca9   : > { %v6690_v9 = vsel %vm1353_vm1, %v13684_v7, 0 }
 0xcaa   : > { %v5293_v63 = vmul.f32 1.442695, %v5266_v51  ;;  %v5299_v25 = vmul.f32 1.442695, %v5269_v22 }
 0xcac   : > { %v5254_v31 = vpop.xlane.xlu1 %5253 }
 0xcad   : > { %6622 = vrot.lane.b32.xlu1 %v13558_v50, %s15342_s21  ;;  %v5608_v50 = vpop.f32.mrf.mxu0  ;;  %v5270_v38 = vsub.f32 %v13827_v4, %v5254_v31 }
 0xcb0   : > { %6110 = vrot.lane.b32.xlu2 %v13574_v6, %s15340_s16 }
 0xcb4   : > { %v5304_v55 = vpop.xlane.xlu1 %5303 }
 0xcb5   : > { %10607 = vrcp.f32 %v5304_v55  ;;  %v5611_v44 = vpop.f32.mrf.mxu0  ;;  %v5301_v55 = vmul.f32 1.442695, %v5270_v38 }
 0xcb6   : > { %5319 = vadd.xlane.f32.xlu0 %v13893_v1 }
 0xcbb   : > { %v5306_v40 = vpop.xlane.xlu0 %5305  ;;  %v10608_v48 = vpop.eup %10607 }
 0xcbc   : > { %10609 = vrcp.f32 %v5306_v40  ;;  %v5351_v27 = vmul.f32 %v10608_v48, %v13831_v57  ;;  %v10117_v57 = vld [vmem:[%s15317_s1 + $0x48] sm:$0xff]  }
 0xcbd   : > { %10611 = vpow2.f32 %v5293_v63  ;;  %v5613_v51 = vpop.f32.mrf.mxu0  ;;  %v9799_v63 = vunpack.c.h.bf16 %v10116_v3  ;;  %v9802_v11 = vunpack.c.l.bf16 %v10117_v57  ;;  %v13936_v3 = vld [vmem:[%s15317_s1 + $0x50] sm:$0xff]  }
 0xcbe   : > { %5662 = vmax.xlane.f32.xlu0 %v13898_v37  ;;  %10613 = vpow2.f32 %v5297_v36  ;;  %v13943_v36 = vpop.permute.xlu2 %6620 }
 0xcbf   : > { %10615 = vpow2.f32 %v5295_v18  ;;  %v5609_v31 = vadd.f32 %v9799_v63, %v5608_v50  ;;  %v5612_v23 = vadd.f32 %v9802_v11, %v5611_v44  ;;  %v9806_v50 = vunpack.c.l.bf16 %v13936_v3 }
 0xcc0   : > { %10617 = vpow2.f32 %v5299_v25  ;;  %v6687_v44 = vsel %vm1353_vm1, %v13687_v0, 0  ;;  %v6675_v63 = vsel %vm1353_vm1, %v13617_v45, 0 }
 0xcc1   : > { %10619 = vpow2.f32 %v5301_v55  ;;  %v13947_v7 = vadd.f32 %v5612_v23, %v11868_v60 }
 0xcc2   : > { %v10610_v17 = vpop.eup %10609 }
 0xcc3   : > { %v5352_v62 = vmul.f32 %v10610_v17, %v13835_v19  ;;  %v13904_v29 = vpop.eup %10611  ;;  %v9803_v19 = vunpack.c.h.bf16 %v10117_v57  ;;  %v13941_v17 = vadd.f32 %v5609_v31, %v11868_v60 }
 0xcc4   : > { %v13914_v8 = vpop.eup %10613 }
 0xcc5   : > { %v5367_v16 = vpack.c.bf16 %v5352_v62, %v5351_v27  ;;  %v5614_v59 = vadd.f32 %v9803_v19, %v5613_v51  ;;  %v13924_v40 = vpop.eup %10615  ;;  %v5616_v27 = vpop.f32.mrf.mxu0 }
 0xcc6   : > { %5325 = vadd.xlane.f32.xlu0 %v13904_v29  ;;  %v13930_v4 = vpop.eup %10617  ;;  %v5308_v62 = vpop.xlane.xlu0 %5307 }
 0xcc7   : > { %5431 = vmatmul.bf16.vlgmr.msra.gmra.mxu3 %v5367_v16  ;;  %v13922_v41 = vadd.f32 %v5614_v59, %v11868_v60  ;;  %v13938_v48 = vpop.eup %10619  ;;  %v5617_v16 = vadd.f32 %v9806_v50, %v5616_v27  ;;  %10621 = vrcp.f32 %v5308_v62  ;;  %v6678_v59 = vsel %vm1353_vm1, %v13656_v56, 0 }
 0xcc8   : > { %6698 = vmatpush.bf16.xpose.msra.mxu3 %v6696_v47  ;;  %v9807_v27 = vunpack.c.h.bf16 %v13936_v3  ;;  %v10119_v3 = vld [vmem:[%s15317_s1 + $0x58] sm:$0xff]  }
 0xcc9   : > { %v13955_v30 = vadd.f32 %v5617_v16, %v11868_v60 }
 0xccc   : > { %v6105_v14 = vpop.permute.xlu1 %6104 }
 0xccd   : > { %9002 = vmatmul.msk.bf16.gmra.mxu0 %vm1353_vm1, %v6105_v14  ;;  %v10622_v22 = vpop.eup %10621  ;;  %v5618_v0 = vpop.f32.mrf.mxu0  ;;  %v6681_v14 = vsel %vm1353_vm1, %v13662_v21, 0 }
 0xcce   : > { %5329 = vadd.xlane.f32.xlu0 %v13914_v8  ;;  %v5353_v19 = vmul.f32 %v10622_v22, %v13840_v58 }
 0xcd0   : > { %6699 = vmatpush.bf16.xpose.msra.mxu3 %v6693_v46 }
 0xcd5   : > { %v5621_v25 = vpop.f32.mrf.mxu0 }
 0xcd6   : > { %5668 = vmax.xlane.f32.xlu0 %v13922_v41 }
 0xcd7   : > { %5327 = vadd.xlane.f32.xlu1 %v13924_v40 }
 0xcd8   : > { %6700 = vmatpush.bf16.xpose.msra.mxu3 %v6690_v9 }
 0xcd9   : > { %5331 = vadd.xlane.f32.xlu2 %v13930_v4 }
 0xcde   : > { %5333 = vadd.xlane.f32.xlu0 %v13938_v48 }
 0xcdf   : > { %5664 = vmax.xlane.f32.xlu1 %v13941_v17 }
 0xce0   : > { %6701 = vmatpush.bf16.xpose.msra.mxu3 %v6687_v44 }
 0xce1   : > { %5666 = vmax.xlane.f32.xlu2 %v13947_v7 }
 0xce5   : > { %v5310_v47 = vpop.xlane.xlu2 %5309 }
 0xce6   : > { %10623 = vrcp.f32 %v5310_v47  ;;  %v5619_v47 = vadd.f32 %v9807_v27, %v5618_v0  ;;  %v9810_v0 = vunpack.c.l.bf16 %v10119_v3 }
 0xce8   : > { %6702 = vmatpush.bf16.xpose.msra.mxu3 %v6684_v52 }
 0xce9   : > { %5670 = vmax.xlane.f32.xlu2 %v13955_v30 }
 0xceb   : > { %v5318_v38 = vpop.xlane.xlu0 %5317 }
 0xcec   : > { %v10624_v57 = vpop.eup %10623 }
 0xced   : > { %v5354_v18 = vmul.f32 %v10624_v57, %v13848_v32  ;;  %v5312_v28 = vpop.xlane.xlu2 %5311  ;;  %v5623_v32 = vpop.f32.mrf.mxu0 }
 0xcee   : > { %10625 = vrcp.f32 %v5312_v28 }
 0xcef   : > { %v5368_v51 = vpack.c.bf16 %v5354_v18, %v5353_v19  ;;  %v5622_v19 = vadd.f32 %v9810_v0, %v5621_v25  ;;  %v9811_v25 = vunpack.c.h.bf16 %v10119_v3 }
 0xcf0   : > { %6703 = vmatpush.bf16.xpose.msra.mxu3 %v6681_v14 }
 0xcf1   : > { %5436 = vmatmul.bf16.gmra.mxu3 %v5368_v51  ;;  %v14010_v51 = vadd.f32 %v5622_v19, %v11868_v60 }
 0xcf2   : > { %6112 = vrot.lane.b32.xlu0 %v13590_v5, %s15340_s16 }
 0xcf4   : > { %v10626_v21 = vpop.eup %10625 }
 0xcf5   : > { %v5355_v11 = vmul.f32 %v10626_v21, %v13855_v15  ;;  %v13979_v23 = vpop.f32.mrf.mxu0 }
 0xcf7   : > { %v5314_v46 = vpop.xlane.xlu1 %5313 }
 0xcf8   : > { %10627 = vrcp.f32 %v5314_v46  ;;  %6704 = vmatpush.bf16.xpose.msra.mxu3 %v6678_v59  ;;  %6626 = vrot.lane.b32.xlu1 %v13574_v6, %s15342_s21 }
 0xcfb   : > { %v5322_v31 = vpop.xlane.xlu2 %5321 }
 0xcfd   : > { %v13991_v62 = vpop.f32.mrf.mxu0 }
 0xcfe   : > { %v10628_v58 = vpop.eup %10627  ;;  %v6107_v55 = vpop.permute.xlu0 %6106 }
 0xcff   : > { %9003 = vmatmul.msk.bf16.gmra.mxu0 %vm1353_vm1, %v6107_v55  ;;  %v5356_v9 = vmul.f32 %v10628_v58, %v13860_v13  ;;  %v5316_v56 = vpop.xlane.xlu1 %5315 }
 0xd00   : > { %6705 = vmatpush.bf16.xpose.msra.mxu3 %v6675_v63  ;;  %6628 = vrot.lane.b32.xlu1 %v13590_v5, %s15342_s21  ;;  %10629 = vrcp.f32 %v5316_v56 }
 0xd01   : > { %5828 = vrot.lane.b32.xlu2 %v13609_v12, %s15341_s20  ;;  %v5369_v6 = vpack.c.bf16 %v5356_v9, %v5355_v11  ;;  %10631 = vrcp.f32 %v5318_v38  ;;  %v5624_v11 = vadd.f32 %v9811_v25, %v5623_v32 }
 0xd02   : > { %10633 = vrcp.f32 %v5322_v31 }
 0xd03   : > { %5441 = vmatmul.bf16.gmra.mxu3 %v5369_v6  ;;  %v6109_v15 = vpop.permute.xlu2 %6108 }
 0xd05   : > { %v14000_v52 = vpop.f32.mrf.mxu0 }
 0xd06   : > { %v10630_v45 = vpop.eup %10629 }
 0xd07   : > { %v10632_v13 = vpop.eup %10631  ;;  %v5357_v5 = vmul.f32 %v10630_v45, %v13867_v26  ;;  %v13998_v26 = vadd.f32 %v5619_v47, %v11868_v60  ;;  %v5324_v58 = vpop.xlane.xlu1 %5323 }
 0xd08   : > { %5826 = vrot.lane.b32.xlu1 %v13612_v53, %s15341_s20  ;;  %v5358_v50 = vmul.f32 %v10632_v13, %v13852_v10  ;;  %v10634_v18 = vpop.eup %10633 }
 0xd09   : > { %5822 = vrot.lane.b32.xlu2 %v13627_v39, %s15341_s20  ;;  %v5360_v59 = vmul.f32 %v10634_v18, %v13864_v24 }
 0xd0a   : > { %v5370_v44 = vpack.c.bf16 %v5358_v50, %v5357_v5 }
 0xd0b   : > { %v13993_v16 = vpop.permute.xlu2 %6624 }
 0xd0d   : > { %v14007_v22 = vpop.f32.mrf.mxu0 }
 0xd0f   : > { %9004 = vmatmul.msk.bf16.gmra.mxu0 %vm1353_vm1, %v6109_v15 }
 0xd10   : > { %5824 = vrot.lane.b32.xlu1 %v13622_v33, %s15341_s20 }
 0xd13   : > { %5446 = vmatmul.bf16.gmra.mxu3 %v5370_v44  ;;  %v6111_v10 = vpop.permute.xlu2 %6110 }
 0xd15   : > { %v14012_v28 = vpop.f32.mrf.mxu0 }
 0xd18   : > { %6114 = vrot.lane.b32.xlu1 %v13603_v42, %s15340_s16 }
 0xd1c   : > { %5672 = vmax.xlane.f32.xlu0 %v13998_v26 }
 0xd1d   : > { %v14021_v63 = vpop.f32.mrf.mxu0 }
 0xd1f   : > { %9005 = vmatmul.msk.bf16.gmra.mxu0 %vm1353_vm1, %v6111_v10  ;;  %v14028_v45 = vpop.permute.xlu1 %6622 }
 0xd25   : > { %v14031_v15 = vpop.f32.mrf.mxu0 }
 0xd29   : > { %v5320_v57 = vpop.xlane.xlu0 %5319 }
 0xd2a   : > { %10635 = vrcp.f32 %v5320_v57 }
 0xd2b   : > { %10637 = vrcp.f32 %v5324_v58 }
 0xd2d   : > { %v14035_v50 = vpop.f32.mrf.mxu0 }
 0xd30   : > { %v10636_v14 = vpop.eup %10635  ;;  %5820 = vrot.lane.b32.xlu0 %v13632_v61, %s15341_s20 }
 0xd31   : > { %v5663_v38 = vpop.xlane.xlu0 %5662  ;;  %v5359_v46 = vmul.f32 %v10636_v14, %v13893_v1  ;;  %v10638_v9 = vpop.eup %10637  ;;  %v14024_v1 = vadd.f32 %v5624_v11, %v11868_v60 }
 0xd32   : > { %5674 = vmax.xlane.f32.xlu2 %v14010_v51  ;;  %v5361_v56 = vmul.f32 %v10638_v9, %v13872_v49  ;;  %v5694_v10 = vsub.f32 %v13898_v37, %v5663_v38  ;;  %v10120_v38 = vld [vmem:[%s15317_s1 + $0x60] sm:$0xff]  }
 0xd33   : > { %v5371_v21 = vpack.c.bf16 %v5360_v59, %v5359_v46  ;;  %v9815_v59 = vunpack.c.h.bf16 %v10120_v38 }
 0xd34   : > { %v5710_v14 = vmul.f32 1.442695, %v5694_v10 }
 0xd35   : > { %5451 = vmatmul.bf16.gmra.mxu3 %v5371_v21  ;;  %v14043_v46 = vpop.f32.mrf.mxu0  ;;  %v5629_v9 = vadd.f32 %v9815_v59, %v13991_v62 }
 0xd38   : > { %6630 = vrot.lane.b32.xlu0 %v13603_v42, %s15342_s21 }
 0xd39   : > { %v5326_v55 = vpop.xlane.xlu0 %5325 }
 0xd3a   : > { %10639 = vrcp.f32 %v5326_v55 }
 0xd3d   : > { %v14058_v25 = vpop.f32.mrf.mxu0 }
 0xd40   : > { %v10640_v31 = vpop.eup %10639 }
 0xd41   : > { %v5330_v24 = vpop.xlane.xlu0 %5329  ;;  %v5362_v6 = vmul.f32 %v10640_v31, %v13904_v29 }
 0xd42   : > { %5676 = vmax.xlane.f32.xlu1 %v14024_v1  ;;  %10641 = vrcp.f32 %v5330_v24 }
 0xd43   : > { %v5372_v42 = vpack.c.bf16 %v5362_v6, %v5361_v56  ;;  %v14070_v6 = vadd.f32 %v5629_v9, %v11868_v60 }
 0xd45   : > { %5456 = vmatmul.bf16.gmra.mxu3 %v5372_v42 }
 0xd48   : > { %v10642_v44 = vpop.eup %10641 }
 0xd49   : > { %v14033_v32 = vpop.xlane.xlu0 %5668  ;;  %v5364_v47 = vmul.f32 %v10642_v44, %v13914_v8 }
 0xd4a   : > { %v5328_v13 = vpop.xlane.xlu1 %5327  ;;  %v5432_v55 = vpop.f32.mrf.mxu3 }
 0xd4b   : > { %10643 = vrcp.f32 %v5328_v13  ;;  %v14072_v42 = vpop.f32.mrf.mxu0 }
 0xd4c   : > { %v5332_v5 = vpop.xlane.xlu2 %5331 }
 0xd51   : > { %v10644_v49 = vpop.eup %10643  ;;  %v5334_v3 = vpop.xlane.xlu0 %5333 }
 0xd52   : > { %v5665_v27 = vpop.xlane.xlu1 %5664  ;;  %v5363_v29 = vmul.f32 %v10644_v49, %v13924_v40  ;;  %10645 = vrcp.f32 %v5334_v3 }
 0xd53   : > { %v5695_v0 = vsub.f32 %v13941_v17, %v5665_v27 }
 0xd54   : > { %v14041_v57 = vpop.xlane.xlu2 %5666  ;;  %v5373_v19 = vpack.c.bf16 %v5364_v47, %v5363_v29  ;;  %v14085_v47 = vpop.f32.mrf.mxu0 }
 0xd55   : > { %v5712_v18 = vmul.f32 1.442695, %v5695_v0 }
 0xd56   : > { %5461 = vmatmul.bf16.gmra.mxu3 %v5373_v19 }
 0xd57   : > { %10647 = vpow2.f32 %v5712_v18 }
 0xd58   : > { %10649 = vrcp.f32 %v5332_v5  ;;  %v10646_v8 = vpop.eup %10645  ;;  %v5434_v5 = vpop.f32.mrf.mxu3 }
 0xd59   : > { %10651 = vpow2.f32 %v5710_v14  ;;  %v5366_v21 = vmul.f32 %v10646_v8, %v13938_v48  ;;  %v10121_v48 = vld [vmem:[%s15317_s1 + $0x68] sm:$0xff]   ;;  %v5472_v10 = vpack.c.bf16 %v5434_v5, %v5432_v55  ;;  %v10123_v8 = vld [vmem:[%s15317_s1 + $0x78] sm:$0xff]  }
 0xd5a   : > { %v9819_v49 = vunpack.c.h.bf16 %v10121_v48 }
 0xd5b   : > { %5818 = vrot.lane.b32.xlu1 %v13637_v54, %s15341_s20 }
 0xd5c   : > { %v14047_v37 = vpop.xlane.xlu2 %5670  ;;  %v5634_v29 = vadd.f32 %v9819_v49, %v14007_v22 }
 0xd5d   : > { %v14049_v40 = vpop.eup %10647 }
 0xd5e   : > { %5744 = vadd.xlane.f32.xlu2 %v14049_v40  ;;  %v10650_v17 = vpop.eup %10649  ;;  %v14094_v0 = vadd.f32 %v5634_v29, %v11868_v60 }
 0xd5f   : > { %v14056_v58 = vpop.eup %10651  ;;  %v5365_v11 = vmul.f32 %v10650_v17, %v13930_v4  ;;  %v9818_v4 = vunpack.c.l.bf16 %v10121_v48  ;;  %v14118_v48 = vld [vmem:[%s15317_s1 + $0x98] sm:$0xff]  }
 0xd61   : > { %v5374_v56 = vpack.c.bf16 %v5366_v21, %v5365_v11  ;;  %v5632_v62 = vadd.f32 %v9818_v4, %v14000_v52  ;;  %v10122_v52 = vld [vmem:[%s15317_s1 + $0x70] sm:$0xff]   ;;  %v9826_v21 = vunpack.c.l.bf16 %v10123_v8  ;;  %v9814_v11 = vunpack.c.l.bf16 %v10120_v38 }
 0xd62   : > { %5742 = vadd.xlane.f32.xlu0 %v14056_v58  ;;  %v9823_v19 = vunpack.c.h.bf16 %v10122_v52  ;;  %v9842_v4 = vunpack.c.l.bf16 %v14118_v48  ;;  %v9822_v5 = vunpack.c.l.bf16 %v10122_v52 }
 0xd63   : > { %5814 = vrot.lane.b32.xlu1 %v13647_v34, %s15341_s20  ;;  %v14079_v44 = vadd.f32 %v5632_v62, %v11868_v60  ;;  %v5627_v38 = vadd.f32 %v9814_v11, %v13979_v23 }
 0xd64   : > { %v5829_v31 = vpop.permute.xlu2 %5828  ;;  %v6113_v24 = vpop.permute.xlu0 %6112  ;;  %v5639_v22 = vadd.f32 %v9823_v19, %v14021_v63  ;;  %v5642_v63 = vadd.f32 %v9826_v21, %v14031_v15  ;;  %v9827_v19 = vunpack.c.h.bf16 %v10123_v8 }
 0xd65   : > { %5838 = vmatpush.bf16.msra.mxu1 %v5829_v31  ;;  %9006 = vmatmul.msk.bf16.gmra.mxu0 %vm1353_vm1, %v6113_v24 }
 0xd66   : > { %5466 = vmatmul.bf16.gmra.mxu3 %v5374_v56  ;;  %v14106_v59 = vadd.f32 %v5639_v22, %v11868_v60  ;;  %v14122_v15 = vadd.f32 %v5642_v63, %v11868_v60  ;;  %v5644_v52 = vadd.f32 %v9827_v19, %v14035_v50 }
 0xd6a   : > { %v14074_v13 = vpop.permute.xlu1 %6626  ;;  %5680 = vmax.xlane.f32.xlu0 %v14070_v6 }
 0xd6c   : > { %v5823_v24 = vpop.permute.xlu2 %5822 }
 0xd72   : > { %v14081_v27 = vpop.permute.xlu1 %6628  ;;  %5682 = vmax.xlane.f32.xlu0 %v14079_v44 }
 0xd74   : > { %v5437_v3 = vpop.f32.mrf.mxu3 }
 0xd76   : > { %5816 = vrot.lane.b32.xlu2 %v13642_v2, %s15341_s20  ;;  %8977 = vmatmul.msk.bf16.vlgmr.msrb.gmra.mxu3 %vm1353_vm1, %v5472_v10  ;;  %v5637_v10 = vadd.f32 %v9822_v5, %v14012_v28 }
 0xd7a   : > { %v5827_v18 = vpop.permute.xlu1 %5826  ;;  %5684 = vmax.xlane.f32.xlu0 %v14094_v0 }
 0xd7b   : > { %5839 = vmatpush.bf16.msra.mxu1 %v5827_v18 }
 0xd7c   : > { %v14098_v14 = vpop.f32.mrf.mxu0  ;;  %v5439_v17 = vpop.f32.mrf.mxu3 }
 0xd7d   : > { %v5473_v9 = vpack.c.bf16 %v5439_v17, %v5437_v3  ;;  %v14135_v3 = vadd.f32 %v5637_v10, %v11868_v60  ;;  %v10124_v17 = vld [vmem:[%s15317_s1 + $0x80] sm:$0xff]  }
 0xd7e   : > { %6116 = vrot.lane.b32.xlu2 %v13615_v20, %s15340_s16  ;;  %v9830_v28 = vunpack.c.l.bf16 %v10124_v17 }
 0xd80   : > { %v6192_v8 = vadd.f32 %v9830_v28, %v14043_v46 }
 0xd82   : > { %v5825_v55 = vpop.permute.xlu1 %5824  ;;  %5688 = vmax.xlane.f32.xlu0 %v14106_v59  ;;  %v14151_v50 = vadd.f32 %v6192_v8, %v11868_v60 }
 0xd83   : > { %5840 = vmatpush.bf16.msra.mxu1 %v5825_v55  ;;  %v14144_v55 = vadd.f32 %v5644_v52, %v11868_v60 }
 0xd84   : > { %v14110_v31 = vpop.f32.mrf.mxu0 }
 0xd86   : > { %6632 = vrot.lane.b32.xlu2 %v13615_v20, %s15342_s21  ;;  %v5442_v56 = vpop.f32.mrf.mxu3  ;;  %8978 = vmatmul.msk.bf16.gmra.mxu3 %vm1353_vm1, %v5473_v9  ;;  %v14127_v20 = vadd.f32 %v5627_v38, %v11868_v60 }
 0xd87   : > { %5841 = vmatpush.bf16.msra.mxu1 %v5823_v24  ;;  %v9831_v24 = vunpack.c.h.bf16 %v10124_v17 }
 0xd8a   : > { %v6115_v62 = vpop.permute.xlu1 %6114  ;;  %5690 = vmax.xlane.f32.xlu0 %v14122_v15 }
 0xd8b   : > { %9007 = vmatmul.msk.bf16.gmra.mxu0 %vm1353_vm1, %v6115_v62 }
 0xd8c   : > { %v6206_v49 = vpop.f32.mrf.mxu0 }
 0xd8d   : > { %v14130_v29 = vadd.f32 %v9842_v4, %v6206_v49  ;;  %5678 = vmax.xlane.f32.xlu1 %v14127_v20  ;;  %v5696_v49 = vsub.f32 %v13947_v7, %v14041_v57 }
 0xd8e   : > { %v5444_v23 = vpop.f32.mrf.mxu3 }
 0xd8f   : > { %v5474_v18 = vpack.c.bf16 %v5444_v23, %v5442_v56  ;;  %v5673_v21 = vpop.xlane.xlu0 %5672  ;;  %v6194_v56 = vadd.f32 %v9831_v24, %v14058_v25  ;;  %v5714_v10 = vmul.f32 1.442695, %v5696_v49 }
 0xd91   : > { %v14159_v38 = vadd.f32 %v6194_v56, %v11868_v60  ;;  %10653 = vpow2.f32 %v5714_v10 }
 0xd95   : > { %5686 = vmax.xlane.f32.xlu1 %v14135_v3 }
 0xd96   : > { %8979 = vmatmul.msk.bf16.gmra.mxu3 %vm1353_vm1, %v5474_v18  ;;  %v5447_v22 = vpop.f32.mrf.mxu3 }
 0xd9d   : > { %5692 = vmax.xlane.f32.xlu1 %v14144_v55 }
 0xd9e   : > { %6413 = vrot.lane.b32.xlu0 %v13609_v12, %s15340_s16  ;;  %v5449_v11 = vpop.f32.mrf.mxu3 }
 0xd9f   : > { %v5475_v9 = vpack.c.bf16 %v5449_v11, %v5447_v22 }
 0xda2   : > { %v5821_v63 = vpop.permute.xlu0 %5820 }
 0xda3   : > { %5842 = vmatpush.bf16.msra.mxu1 %v5821_v63 }
 0xda5   : > { %6247 = vmax.xlane.f32.xlu1 %v14151_v50  ;;  %v14175_v23 = vpop.xlane.xlu2 %5674 }
 0xda6   : > { %6405 = vrot.lane.b32.xlu0 %v13632_v61, %s15340_s16  ;;  %8980 = vmatmul.msk.bf16.gmra.mxu3 %vm1353_vm1, %v5475_v9 }
 0xdaa   : > { %v14177_v19 = vpop.permute.xlu0 %6630 }
 0xdae   : > { %6401 = vrot.lane.b32.xlu0 %v13642_v2, %s15340_s16 }
 0xdaf   : > { %6249 = vmax.xlane.f32.xlu2 %v14159_v38 }
 0xdb5   : > { %v14167_v5 = vpop.xlane.xlu1 %5676 }
 0xdb8   : > { %v5452_v46 = vpop.f32.mrf.mxu3 }
 0xdbe   : > { %6411 = vrot.lane.b32.xlu1 %v13612_v53, %s15340_s16 }
 0xdc0   : > { %v5454_v4 = vpop.f32.mrf.mxu3 }
 0xdc1   : > { %v5476_v62 = vpack.c.bf16 %v5454_v4, %v5452_v46 }
 0xdc3   : > { %8981 = vmatmul.msk.bf16.gmra.mxu3 %vm1353_vm1, %v5476_v62 }
 0xdc6   : > { %6925 = vrot.lane.b32.xlu1 %v13622_v33, %s15342_s21 }
 0xdc7   : > { %6409 = vrot.lane.b32.xlu2 %v13622_v33, %s15340_s16  ;;  %v5698_v33 = vsub.f32 %v13955_v30, %v14047_v37 }
 0xdc8   : > { %v5457_v25 = vpop.f32.mrf.mxu3 }
 0xdc9   : > { %v5718_v57 = vmul.f32 1.442695, %v5698_v33 }
 0xdcd   : > { %v5819_v18 = vpop.permute.xlu1 %5818 }
 0xdce   : > { %6921 = vrot.lane.b32.xlu1 %v13632_v61, %s15342_s21  ;;  %5843 = vmatpush.bf16.msra.mxu1 %v5819_v18  ;;  %v14188_v61 = vpop.eup %10653 }
 0xdcf   : > { %6929 = vrot.lane.b32.xlu2 %v13609_v12, %s15342_s21  ;;  %v5699_v12 = vsub.f32 %v13998_v26, %v5673_v21 }
 0xdd0   : > { %v5459_v52 = vpop.f32.mrf.mxu3 }
 0xdd1   : > { %v5477_v22 = vpack.c.bf16 %v5459_v52, %v5457_v25  ;;  %v5745_v7 = vpop.xlane.xlu2 %5744  ;;  %v5720_v11 = vmul.f32 1.442695, %v5699_v12 }
 0xdd2   : > { %10655 = vrcp.f32 %v5745_v7 }
 0xdd3   : > { %8982 = vmatmul.msk.bf16.gmra.mxu3 %vm1353_vm1, %v5477_v22 }
 0xdd5   : > { %v5743_v17 = vpop.xlane.xlu0 %5742  ;;  %v5815_v9 = vpop.permute.xlu1 %5814 }
 0xdd6   : > { %10657 = vrcp.f32 %v5743_v17  ;;  %6399 = vrot.lane.b32.xlu1 %v13647_v34, %s15340_s16 }
 0xdd7   : > { %6407 = vrot.lane.b32.xlu2 %v13627_v39, %s15340_s16  ;;  %10659 = vpow2.f32 %v5718_v57  ;;  %v10128_v57 = vld [vmem:[%s15317_s1 + $0xa0] sm:$0xff]  }
 0xdd8   : > { %5746 = vadd.xlane.f32.xlu0 %v14188_v61  ;;  %v10656_v28 = vpop.eup %10655  ;;  %10661 = vpow2.f32 %v5720_v11 }
 0xdd9   : > { %v5817_v30 = vpop.permute.xlu2 %5816  ;;  %v5462_v37 = vpop.f32.mrf.mxu3  ;;  %v5791_v63 = vmul.f32 %v10656_v28, %v14049_v40 }
 0xdda   : > { %5844 = vmatpush.bf16.msra.mxu1 %v5817_v30  ;;  %v6208_v40 = vpop.f32.mrf.mxu0 }
 0xddc   : > { %v10658_v8 = vpop.eup %10657 }
 0xddd   : > { %v5790_v24 = vmul.f32 %v10658_v8, %v14056_v58  ;;  %v14196_v56 = vpop.eup %10659  ;;  %v5681_v4 = vpop.xlane.xlu0 %5680  ;;  %v9843_v58 = vunpack.c.h.bf16 %v14118_v48 }
 0xdde   : > { %5845 = vmatpush.bf16.msra.mxu1 %v5815_v9  ;;  %v14204_v25 = vpop.eup %10661  ;;  %v14238_v9 = vld [vmem:[%s15317_s1 + $0x90] sm:$0xff]  }
 0xddf   : > { %v5806_v46 = vpack.c.bf16 %v5791_v63, %v5790_v24  ;;  %6927 = vrot.lane.b32.xlu2 %v13612_v53, %s15342_s21  ;;  %v5703_v53 = vsub.f32 %v14070_v6, %v5681_v4  ;;  %v6209_v10 = vadd.f32 %v9843_v58, %v6208_v40  ;;  %v14219_v6 = vld [vmem:[%s15317_s1 + $0x88] sm:$0xff]  }
 0xde0   : > { %5750 = vadd.xlane.f32.xlu0 %v14196_v56  ;;  %v9834_v12 = vunpack.c.l.bf16 %v14219_v6 }
 0xde1   : > { %v6117_v26 = vpop.permute.xlu2 %6116  ;;  %v5464_v21 = vpop.f32.mrf.mxu3  ;;  %5846 = vmatmul.bf16.vlgmr.msra.gmra.mxu1 %v5806_v46  ;;  %v5728_v33 = vmul.f32 1.442695, %v5703_v53  ;;  %v14211_v22 = vadd.f32 %v6209_v10, %v11868_v60 }
 0xde2   : > { %v5478_v62 = vpack.c.bf16 %v5464_v21, %v5462_v37  ;;  %9008 = vmatmul.msk.bf16.gmra.mxu0 %vm1353_vm1, %v6117_v26  ;;  %v6211_v52 = vpop.f32.mrf.mxu0  ;;  %v6197_v11 = vadd.f32 %v9834_v12, %v14072_v42  ;;  %v5700_v42 = vsub.f32 %v14010_v51, %v14175_v23 }
 0xde3   : > { %10663 = vpow2.f32 %v5728_v33  ;;  %v5697_v33 = vsub.f32 %v13922_v41, %v14033_v32 }
 0xde4   : > { %8983 = vmatmul.msk.bf16.gmra.mxu3 %vm1353_vm1, %v5478_v62  ;;  %v14241_v46 = vadd.f32 %v6197_v11, %v11868_v60  ;;  %v5722_v40 = vmul.f32 1.442695, %v5700_v42 }
 0xde5   : > { %v5683_v18 = vpop.xlane.xlu0 %5682 }
 0xde6   : > { %v5704_v28 = vsub.f32 %v14079_v44, %v5683_v18 }
 0xde7   : > { %6403 = vrot.lane.b32.xlu2 %v13637_v54, %s15340_s16 }
 0xde8   : > { %5752 = vadd.xlane.f32.xlu0 %v14204_v25  ;;  %v5730_v24 = vmul.f32 1.442695, %v5704_v28 }
 0xde9   : > { %v5467_v49 = vpop.f32.mrf.mxu3  ;;  %v14226_v30 = vpop.eup %10663 }
 0xdea   : > { %v6213_v37 = vpop.f32.mrf.mxu0  ;;  %10665 = vpow2.f32 %v5730_v24  ;;  %v9835_v24 = vunpack.c.h.bf16 %v14219_v6 }
 0xdeb   : > { %10667 = vpow2.f32 %v5722_v40 }
 0xded   : > { %v5685_v17 = vpop.xlane.xlu0 %5684 }
 0xdef   : > { %6923 = vrot.lane.b32.xlu2 %v13627_v39, %s15342_s21  ;;  %v9847_v39 = vunpack.c.h.bf16 %v10128_v57 }
 0xdf0   : > { %6261 = vmax.xlane.f32.xlu0 %v14211_v22  ;;  %v14261_v53 = vpop.eup %10665 }
 0xdf1   : > { %v5469_v48 = vpop.f32.mrf.mxu3  ;;  %v6214_v63 = vadd.f32 %v9847_v39, %v6213_v37  ;;  %v14268_v18 = vpop.eup %10667  ;;  %v5716_v37 = vmul.f32 1.442695, %v5697_v33 }
 0xdf2   : > { %v5479_v7 = vpack.c.bf16 %v5469_v48, %v5467_v49 }
 0xdf3   : > { %v14245_v4 = vadd.f32 %v6214_v63, %v11868_v60 }
 0xdf4   : > { %8984 = vmatmul.msk.bf16.gmra.mxu3 %vm1353_vm1, %v5479_v7  ;;  %v5705_v7 = vsub.f32 %v14094_v0, %v5685_v17  ;;  %v14289_v17 = vpop.permute.xlu2 %6632 }
 0xdf5   : > { %v5689_v44 = vpop.xlane.xlu0 %5688 }
 0xdf6   : > { %v5707_v0 = vsub.f32 %v14106_v59, %v5689_v44 }
 0xdf7   : > { %6919 = vrot.lane.b32.xlu2 %v13637_v54, %s15342_s21  ;;  %v9838_v54 = vunpack.c.l.bf16 %v14238_v9 }
 0xdf8   : > { %5760 = vadd.xlane.f32.xlu0 %v14226_v30  ;;  %v5736_v11 = vmul.f32 1.442695, %v5707_v0 }
 0xdf9   : > { %v14232_v8 = vpop.f32.mrf.mxu3  ;;  %v6202_v21 = vadd.f32 %v9838_v54, %v14098_v14 }
 0xdfb   : > { %v14259_v58 = vadd.f32 %v6202_v21, %v11868_v60 }
 0xdfd   : > { %v5691_v51 = vpop.xlane.xlu0 %5690 }
 0xdfe   : > { %v5708_v59 = vsub.f32 %v14122_v15, %v5691_v51 }
 0xe00   : > { %6251 = vmax.xlane.f32.xlu1 %v14241_v46  ;;  %v14248_v26 = vpop.xlane.xlu1 %5678  ;;  %6265 = vmax.xlane.f32.xlu0 %v14245_v4  ;;  %v5738_v6 = vmul.f32 1.442695, %v5708_v59 }
 0xe01   : > { %v14254_v62 = vpop.f32.mrf.mxu3 }
 0xe04   : > { %9045 = vmatmul.msk.bf16.vlgmr.msra.gmra.mxu3 %vm1353_vm1, %v13674_v35  ;;  %v9846_v35 = vunpack.c.l.bf16 %v10128_v57  ;;  %v5732_v57 = vmul.f32 1.442695, %v5705_v7  ;;  %v5701_v7 = vsub.f32 %v14024_v1, %v14167_v5  ;;  %v5702_v1 = vsub.f32 %v14127_v20, %v14248_v26  ;;  %v9391_v20 = vld [vmem:[%s15241_s5 + $0x58] sm:$0xff] }
 0xe05   : > { %5942 = vmatpush.bf16.msrb.mxu2 %v9391_v20 }
 0xe06   : > { %v6212_v39 = vadd.f32 %v9846_v35, %v6211_v52 }
 0xe08   : > { %v5687_v49 = vpop.xlane.xlu1 %5686  ;;  %6255 = vmax.xlane.f32.xlu1 %v14259_v58  ;;  %5762 = vadd.xlane.f32.xlu0 %v14261_v53  ;;  %v14282_v41 = vadd.f32 %v6212_v39, %v11868_v60  ;;  %v14334_v39 = vadd.f32 %v14130_v29, %v11868_v60 }
 0xe09   : > { %v5706_v14 = vsub.f32 %v14135_v3, %v5687_v49  ;;  %v14266_v10 = vpop.f32.mrf.mxu3  ;;  %v9839_v49 = vunpack.c.h.bf16 %v14238_v9 }
 0xe0b   : > { %v5734_v23 = vmul.f32 1.442695, %v5706_v14  ;;  %v6204_v15 = vadd.f32 %v9839_v49, %v14110_v31 }
 0xe0d   : > { %10669 = vpow2.f32 %v5734_v23  ;;  %v14320_v35 = vadd.f32 %v6204_v15, %v11868_v60 }
 0xe0e   : > { %10671 = vpow2.f32 %v5716_v37 }
 0xe0f   : > { %10673 = vpow2.f32 %v5732_v57  ;;  %v5726_v57 = vmul.f32 1.442695, %v5702_v1 }
 0xe10   : > { %v14272_v48 = vpop.xlane.xlu1 %5692  ;;  %5754 = vadd.xlane.f32.xlu1 %v14268_v18  ;;  %v6414_v12 = vpop.permute.xlu0 %6413 }
 0xe11   : > { %6423 = vmatpush.bf16.msrb.mxu1 %v6414_v12  ;;  %v14284_v32 = vpop.f32.mrf.mxu3  ;;  %v5724_v12 = vmul.f32 1.442695, %v5701_v7  ;;  %v5709_v29 = vsub.f32 %v14144_v55, %v14272_v48 }
 0xe13   : > { %v14276_v3 = vpop.eup %10669 }
 0xe14   : > { %9046 = vmatmul.msk.bf16.gmra.mxu3 %vm1353_vm1, %v13943_v36  ;;  %5766 = vadd.xlane.f32.xlu0 %v14276_v3  ;;  %v14291_v63 = vpop.eup %10671 }
 0xe15   : > { %v14294_v54 = vpop.eup %10673 }
 0xe18   : > { %v6248_v28 = vpop.xlane.xlu1 %6247  ;;  %6263 = vmax.xlane.f32.xlu1 %v14282_v41 }
 0xe19   : > { %v6279_v52 = vsub.f32 %v14151_v50, %v6248_v28  ;;  %v14296_v42 = vpop.f32.mrf.mxu3  ;;  %v6199_v50 = vadd.f32 %v9835_v24, %v14085_v47 }
 0xe1b   : > { %v6295_v36 = vmul.f32 1.442695, %v6279_v52  ;;  %v14308_v40 = vadd.f32 %v6199_v50, %v11868_v60 }
 0xe1d   : > { %10675 = vpow2.f32 %v6295_v36  ;;  %v5740_v36 = vmul.f32 1.442695, %v5709_v29 }
 0xe1e   : > { %10677 = vpow2.f32 %v5736_v11  ;;  %v9390_v11 = vld [vmem:[%s15241_s5 + $0x50] sm:$0xff] }
 0xe1f   : > { %10679 = vpow2.f32 %v5738_v6  ;;  %5943 = vmatpush.bf16.msrb.mxu2 %v9390_v11 }
 0xe20   : > { %5748 = vadd.xlane.f32.xlu2 %v14291_v63  ;;  %5764 = vadd.xlane.f32.xlu1 %v14294_v54 }
 0xe22   : > { %v6250_v44 = vpop.xlane.xlu2 %6249 }
 0xe23   : > { %v14302_v21 = vpop.eup %10675  ;;  %v6280_v47 = vsub.f32 %v14159_v38, %v6250_v44 }
 0xe24   : > { %9047 = vmatmul.msk.bf16.gmra.mxu3 %vm1353_vm1, %v14028_v45  ;;  %6327 = vadd.xlane.f32.xlu0 %v14302_v21  ;;  %v14311_v14 = vpop.eup %10677  ;;  %v14317_v45 = vpop.f32.mrf.mxu3 }
 0xe25   : > { %v6297_v23 = vmul.f32 1.442695, %v6280_v47  ;;  %v14322_v33 = vpop.eup %10679 }
 0xe27   : > { %10681 = vpow2.f32 %v6297_v23 }
 0xe28   : > { %6253 = vmax.xlane.f32.xlu2 %v14308_v40  ;;  %5768 = vadd.xlane.f32.xlu1 %v14311_v14  ;;  %10683 = vpow2.f32 %v5724_v12 }
 0xe29   : > { %10685 = vpow2.f32 %v5726_v57 }
 0xe2a   : > { %v6410_v51 = vpop.permute.xlu2 %6409  ;;  %10687 = vpow2.f32 %v5740_v36 }
 0xe2c   : > { %v14328_v38 = vpop.f32.mrf.mxu3 }
 0xe2d   : > { %v14336_v37 = vpop.eup %10681 }
 0xe2e   : > { %v14344_v52 = vpop.eup %10683 }
 0xe2f   : > { %v14359_v59 = vpop.eup %10685 }
 0xe30   : > { %v6412_v9 = vpop.permute.xlu1 %6411  ;;  %6257 = vmax.xlane.f32.xlu2 %v14320_v35  ;;  %5770 = vadd.xlane.f32.xlu1 %v14322_v33 }
 0xe31   : > { %6424 = vmatpush.bf16.msrb.mxu1 %v6412_v9 }
 0xe32   : > { %v6930_v31 = vpop.permute.xlu2 %6929 }
 0xe33   : > { %6939 = vmatpush.bf16.msra.mxu0 %v6930_v31 }
 0xe34   : > { %9048 = vmatmul.msk.bf16.gmra.mxu3 %vm1353_vm1, %v13993_v16  ;;  %v6406_v16 = vpop.permute.xlu0 %6405  ;;  %v14342_v28 = vpop.f32.mrf.mxu3 }
 0xe35   : > { %6425 = vmatpush.bf16.msrb.mxu1 %v6410_v51 }
 0xe38   : > { %6259 = vmax.xlane.f32.xlu2 %v14334_v39  ;;  %6329 = vadd.xlane.f32.xlu1 %v14336_v37  ;;  %v6926_v0 = vpop.permute.xlu1 %6925 }
 0xe3a   : > { %v6408_v5 = vpop.permute.xlu2 %6407 }
 0xe3b   : > { %6426 = vmatpush.bf16.msrb.mxu1 %v6408_v5  ;;  %v10132_v5 = vld [vmem:[%s15317_s1 + $0xc0] sm:$0xff]  }
 0xe3c   : > { %v6402_v50 = vpop.permute.xlu0 %6401  ;;  %v9862_v57 = vunpack.c.l.bf16 %v10132_v5 }
 0xe3f   : > { %6427 = vmatpush.bf16.msrb.mxu1 %v6406_v16 }
 0xe40   : > { %5756 = vadd.xlane.f32.xlu2 %v14344_v52  ;;  %v6922_v55 = vpop.permute.xlu1 %6921 }
 0xe42   : > { %v6928_v26 = vpop.permute.xlu2 %6927 }
 0xe43   : > { %6940 = vmatpush.bf16.msra.mxu0 %v6928_v26 }
 0xe44   : > { %9049 = vmatmul.msk.bf16.gmra.mxu3 %vm1353_vm1, %v14074_v13  ;;  %v14364_v13 = vpop.eup %10687 }
 0xe46   : > { %v14357_v24 = vpop.f32.mrf.mxu3 }
 0xe47   : > { %6941 = vmatpush.bf16.msra.mxu0 %v6926_v0 }
 0xe48   : > { %5758 = vadd.xlane.f32.xlu2 %v14359_v59  ;;  %v6400_v6 = vpop.permute.xlu1 %6399 }
 0xe4a   : > { %v6404_v48 = vpop.permute.xlu2 %6403 }
 0xe4b   : > { %6428 = vmatpush.bf16.msrb.mxu1 %v6404_v48  ;;  %v5747_v20 = vpop.xlane.xlu0 %5746  ;;  %v14397_v48 = vld [vmem:[%s15317_s1 + $0xc8] sm:$0xff]  }
 0xe4e   : > { %v14362_v44 = vpop.f32.mrf.mxu3 }
 0xe4f   : > { %6429 = vmatpush.bf16.msrb.mxu1 %v6402_v50 }
 0xe50   : > { %5772 = vadd.xlane.f32.xlu2 %v14364_v13 }
 0xe52   : > { %v6924_v49 = vpop.permute.xlu2 %6923 }
 0xe53   : > { %6430 = vmatpush.bf16.msrb.mxu1 %v6400_v6  ;;  %6942 = vmatpush.bf16.msra.mxu0 %v6924_v49  ;;  %v5751_v6 = vpop.xlane.xlu0 %5750 }
 0xe54   : > { %9050 = vmatmul.msk.bf16.gmra.mxu3 %vm1353_vm1, %v14081_v27 }
 0xe56   : > { %v14369_v47 = vpop.f32.mrf.mxu3 }
 0xe57   : > { %15343 = vst [vmem:[#allocation26_spill] sm:$0xff] %v14369_v47  ;;  %6943 = vmatpush.bf16.msra.mxu0 %v6922_v55 }
 0xe5a   : > { %v6920_v15 = vpop.permute.xlu2 %6919 }
 0xe5b   : > { %6944 = vmatpush.bf16.msra.mxu0 %v6920_v15  ;;  %v9866_v15 = vunpack.c.l.bf16 %v14397_v48 }
 0xe5e   : > { %v5847_v51 = vpop.f32.mrf.mxu1  ;;  %v14371_v23 = vpop.f32.mrf.mxu3 }
 0xe5f   : > { %15344 = vst [vmem:[#allocation21_spill] sm:$0xff] %v14371_v23 }
 0xe64   : > { %9051 = vmatmul.msk.bf16.gmra.mxu3 %vm1353_vm1, %v14177_v19 }
 0xe66   : > { %v5849_v9 = vpop.f32.mrf.mxu1 }
 0xe67   : > { %v5887_v7 = vpack.c.bf16 %v5849_v9, %v5847_v51  ;;  %v14375_v31 = vpop.f32.mrf.mxu3 }
 0xe68   : > { %15345 = vst [vmem:[#allocation15_spill] sm:$0xff] %v14375_v31 }
 0xe69   : > { %8961 = vmatmul.msk.bf16.vlgmr.msrb.gmra.mxu2 %vm1353_vm1, %v5887_v7 }
 0xe6f   : > { %v14378_v12 = vpop.f32.mrf.mxu3 }
 0xe70   : > { %15346 = vst [vmem:[#allocation22_spill] sm:$0xff] %v14378_v12  ;;  %v14450_v12 = vpop.f32.mrf.mxu0 }
 0xe73   : > { %v6252_v19 = vpop.xlane.xlu1 %6251 }
 0xe74   : > { %9052 = vmatmul.msk.bf16.gmra.mxu3 %vm1353_vm1, %v14289_v17  ;;  %v6281_v16 = vsub.f32 %v14241_v46, %v6252_v19  ;;  %v9863_v17 = vunpack.c.h.bf16 %v10132_v5 }
 0xe76   : > { %v6299_v26 = vmul.f32 1.442695, %v6281_v16 }
 0xe77   : > { %v14382_v27 = vpop.f32.mrf.mxu3 }
 0xe78   : > { %15347 = vst [vmem:[#allocation16_spill] sm:$0xff] %v14382_v27  ;;  %10689 = vpow2.f32 %v6299_v26 }
 0xe79   : > { %10691 = vrcp.f32 %v5747_v20 }
 0xe7e   : > { %v14402_v50 = vpop.eup %10689 }
 0xe7f   : > { %v14384_v1 = vpop.f32.mrf.mxu3  ;;  %v10692_v9 = vpop.eup %10691 }
 0xe80   : > { %15348 = vst [vmem:[#allocation24_spill] sm:$0xff] %v14384_v1  ;;  %v5792_v16 = vmul.f32 %v10692_v9, %v14188_v61 }
 0xe87   : > { %v6707_v0 = vpop.f32.mrf.mxu3 }
 0xe88   : > { %v6708_v29 = vadd.f32 %v9862_v57, %v6707_v0 }
 0xe8a   : > { %v14391_v36 = vadd.f32 %v6708_v29, %v11868_v60  ;;  %v5753_v29 = vpop.xlane.xlu0 %5752 }
 0xe8c   : > { %6763 = vmax.xlane.f32.xlu2 %v14391_v36 }
 0xe8f   : > { %v6709_v11 = vpop.f32.mrf.mxu3 }
 0xe90   : > { %v6710_v55 = vadd.f32 %v9863_v17, %v6709_v11  ;;  %v14419_v11 = vpop.xlane.xlu1 %6255 }
 0xe92   : > { %v14400_v46 = vadd.f32 %v6710_v55, %v11868_v60 }
 0xe93   : > { %v5749_v49 = vpop.xlane.xlu2 %5748 }
 0xe94   : > { %10693 = vrcp.f32 %v5749_v49  ;;  %6331 = vadd.xlane.f32.xlu2 %v14402_v50  ;;  %6765 = vmax.xlane.f32.xlu0 %v14400_v46 }
 0xe95   : > { %10695 = vrcp.f32 %v5753_v29  ;;  %v14435_v29 = vpop.xlane.xlu0 %6261 }
 0xe96   : > { %10697 = vrcp.f32 %v5751_v6 }
 0xe97   : > { %v6712_v51 = vpop.f32.mrf.mxu3 }
 0xe98   : > { %v6713_v7 = vadd.f32 %v9866_v15, %v6712_v51 }
 0xe9a   : > { %v10694_v5 = vpop.eup %10693  ;;  %v14408_v19 = vadd.f32 %v6713_v7, %v11868_v60 }
 0xe9b   : > { %v14410_v57 = vpop.xlane.xlu2 %6253  ;;  %v5793_v0 = vmul.f32 %v10694_v5, %v14291_v63  ;;  %v10696_v55 = vpop.eup %10695  ;;  %v14429_v63 = vld [vmem:[%s15317_s1 + $0xd0] sm:$0xff]  }
 0xe9c   : > { %6767 = vmax.xlane.f32.xlu2 %v14408_v19  ;;  %v10698_v15 = vpop.eup %10697  ;;  %v5795_v61 = vmul.f32 %v10696_v55, %v14204_v25  ;;  %v9871_v9 = vunpack.c.h.bf16 %v14429_v63  ;;  %v5755_v5 = vpop.xlane.xlu1 %5754 }
 0xe9d   : > { %v5807_v20 = vpack.c.bf16 %v5793_v0, %v5792_v16  ;;  %v5794_v6 = vmul.f32 %v10698_v15, %v14196_v56  ;;  %10699 = vrcp.f32 %v5755_v5 }
 0xe9f   : > { %5851 = vmatmul.bf16.gmra.mxu1 %v5807_v20  ;;  %v14415_v26 = vpop.f32.mrf.mxu3  ;;  %v5808_v7 = vpack.c.bf16 %v5795_v61, %v5794_v6 }
 0xea3   : > { %v14417_v17 = vpop.xlane.xlu2 %6257  ;;  %v10700_v15 = vpop.eup %10699 }
 0xea7   : > { %v14421_v49 = vpop.f32.mrf.mxu3 }
 0xea8   : > { %6917 = vrot.lane.b32.xlu0 %v13642_v2, %s15342_s21  ;;  %v10135_v2 = vld [vmem:[%s15317_s1 + $0xd8] sm:$0xff]  }
 0xea9   : > { %v9874_v56 = vunpack.c.l.bf16 %v10135_v2 }
 0xeab   : > { %v14431_v51 = vpop.xlane.xlu2 %6259 }
 0xeaf   : > { %5856 = vmatmul.bf16.gmra.mxu1 %v5808_v7  ;;  %v6719_v16 = vpop.f32.mrf.mxu3  ;;  %v5761_v7 = vpop.xlane.xlu0 %5760 }
 0xeb0   : > { %v6720_v0 = vadd.f32 %v9871_v9, %v6719_v16  ;;  %v5796_v16 = vmul.f32 %v10700_v15, %v14268_v18 }
 0xeb2   : > { %v14441_v25 = vadd.f32 %v6720_v0, %v11868_v60  ;;  %v9875_v0 = vunpack.c.h.bf16 %v10135_v2 }
 0xeb3   : > { %v5757_v20 = vpop.xlane.xlu2 %5756 }
 0xeb4   : > { %10701 = vrcp.f32 %v5757_v20  ;;  %6773 = vmax.xlane.f32.xlu1 %v14441_v25 }
 0xeb7   : > { %v6722_v55 = vpop.f32.mrf.mxu3 }
 0xeb8   : > { %v6723_v61 = vadd.f32 %v9874_v56, %v6722_v55  ;;  %v14455_v56 = vld [vmem:[%s15317_s1 + $0xe0] sm:$0xff]   ;;  %v14464_v55 = vpop.xlane.xlu0 %6265 }
 0xeb9   : > { %v9878_v2 = vunpack.c.l.bf16 %v14455_v56 }
 0xeba   : > { %v10702_v6 = vpop.eup %10701  ;;  %v14445_v9 = vadd.f32 %v6723_v61, %v11868_v60  ;;  %v9867_v61 = vunpack.c.h.bf16 %v14397_v48 }
 0xebb   : > { %v5797_v5 = vmul.f32 %v10702_v6, %v14344_v52  ;;  %v5759_v1 = vpop.xlane.xlu2 %5758  ;;  %v14460_v52 = vpop.xlane.xlu1 %6263 }
 0xebc   : > { %6775 = vmax.xlane.f32.xlu2 %v14445_v9  ;;  %10703 = vrcp.f32 %v5759_v1  ;;  %v6715_v23 = vadd.f32 %v9867_v61, %v14415_v26 }
 0xebd   : > { %v5809_v20 = vpack.c.bf16 %v5797_v5, %v5796_v16  ;;  %10705 = vrcp.f32 %v5761_v7  ;;  %v10129_v7 = vld [vmem:[%s15317_s1 + $0xa8] sm:$0xff]  }
 0xebe   : > { %v9851_v16 = vunpack.c.h.bf16 %v10129_v7 }
 0xebf   : > { %5861 = vmatmul.bf16.gmra.mxu1 %v5809_v20  ;;  %v6724_v27 = vpop.f32.mrf.mxu3  ;;  %v6282_v20 = vsub.f32 %v14308_v40, %v14410_v57  ;;  %v14484_v40 = vadd.f32 %v6715_v23, %v11868_v60 }
 0xec0   : > { %v6725_v43 = vadd.f32 %v9875_v0, %v6724_v27  ;;  %v6218_v0 = vpop.f32.mrf.mxu0 }
 0xec1   : > { %v6301_v47 = vmul.f32 1.442695, %v6282_v20 }
 0xec2   : > { %v14458_v18 = vadd.f32 %v6725_v43, %v11868_v60  ;;  %v10704_v27 = vpop.eup %10703 }
 0xec3   : > { %v10706_v15 = vpop.eup %10705  ;;  %v5798_v43 = vmul.f32 %v10704_v27, %v14359_v59  ;;  %v5765_v48 = vpop.xlane.xlu1 %5764  ;;  %v6219_v59 = vadd.f32 %v9851_v16, %v6218_v0 }
 0xec4   : > { %6777 = vmax.xlane.f32.xlu1 %v14458_v18  ;;  %v5799_v31 = vmul.f32 %v10706_v15, %v14226_v30  ;;  %v5763_v27 = vpop.xlane.xlu0 %5762  ;;  %10707 = vrcp.f32 %v5765_v48 }
 0xec5   : > { %v14487_v57 = vadd.f32 %v6219_v59, %v11868_v60  ;;  %10709 = vrcp.f32 %v5763_v27 }
 0xec6   : > { %10711 = vpow2.f32 %v6301_v47  ;;  %v14503_v47 = vld [vmem:[%s15317_s1 + $0xe8] sm:$0xff]  }
 0xec7   : > { %v6727_v1 = vpop.f32.mrf.mxu3 }
 0xec8   : > { %v6728_v6 = vadd.f32 %v9878_v2, %v6727_v1  ;;  %v6284_v2 = vsub.f32 %v14320_v35, %v14417_v17  ;;  %v5810_v1 = vpack.c.bf16 %v5799_v31, %v5798_v43  ;;  %v9870_v17 = vunpack.c.l.bf16 %v14429_v63 }
 0xec9   : > { %v9883_v63 = vunpack.c.h.bf16 %v14503_v47 }
 0xeca   : > { %v14472_v5 = vadd.f32 %v6728_v6, %v11868_v60  ;;  %v6305_v30 = vmul.f32 1.442695, %v6284_v2  ;;  %v10708_v35 = vpop.eup %10707  ;;  %v6718_v16 = vadd.f32 %v9870_v17, %v14421_v49  ;;  %v9850_v2 = vunpack.c.l.bf16 %v10129_v7 }
 0xecb   : > { %v10710_v26 = vpop.eup %10709  ;;  %v5801_v23 = vmul.f32 %v10708_v35, %v14294_v54  ;;  %v5769_v0 = vpop.xlane.xlu1 %5768 }
 0xecc   : > { %6779 = vmax.xlane.f32.xlu2 %v14472_v5  ;;  %10713 = vpow2.f32 %v6305_v30  ;;  %v14494_v15 = vpop.eup %10711  ;;  %v5800_v43 = vmul.f32 %v10710_v26, %v14261_v53  ;;  %v5767_v20 = vpop.xlane.xlu0 %5766  ;;  %v6217_v59 = vadd.f32 %v9850_v2, %v14450_v12 }
 0xecd   : > { %10715 = vrcp.f32 %v5769_v0  ;;  %v5773_v26 = vpop.xlane.xlu2 %5772 }
 0xece   : > { %v5811_v54 = vpack.c.bf16 %v5801_v23, %v5800_v43  ;;  %10717 = vrcp.f32 %v5767_v20  ;;  %v14521_v30 = vadd.f32 %v6217_v59, %v11868_v60 }
 0xecf   : > { %5866 = vmatmul.bf16.gmra.mxu1 %v5810_v1  ;;  %v14481_v6 = vpop.f32.mrf.mxu3  ;;  %v14512_v1 = vadd.f32 %v6718_v16, %v11868_v60  ;;  %10719 = vrcp.f32 %v5773_v26 }
 0xed2   : > { %6769 = vmax.xlane.f32.xlu0 %v14484_v40  ;;  %v14498_v61 = vpop.eup %10713 }
 0xed3   : > { %v5771_v23 = vpop.xlane.xlu1 %5770 }
 0xed4   : > { %6269 = vmax.xlane.f32.xlu2 %v14487_v57  ;;  %10721 = vrcp.f32 %v5771_v23  ;;  %v6328_v20 = vpop.xlane.xlu0 %6327 }
 0xed7   : > { %v14491_v31 = vpop.f32.mrf.mxu3 }
 0xeda   : > { %6333 = vadd.xlane.f32.xlu0 %v14494_v15 }
 0xedb   : > { %v6330_v0 = vpop.xlane.xlu1 %6329 }
 0xedc   : > { %6337 = vadd.xlane.f32.xlu2 %v14498_v61  ;;  %10723 = vrcp.f32 %v6330_v0  ;;  %v14564_v0 = vld [vmem:[%s15317_s1 + $0xb0] sm:$0xff]  }
 0xedd   : > { %6915 = vrot.lane.b32.xlu1 %v13647_v34, %s15342_s21  ;;  %v10716_v34 = vpop.eup %10715  ;;  %10725 = vrcp.f32 %v6328_v20  ;;  %s8101_s21 = sshll.u32 %s8097_s0, 4  ;;  %s8102_s21 = int_to_ptr.hbm [resolvable:$true] %s8101_s21 }
 0xede   : > { %v10718_v27 = vpop.eup %10717  ;;  %v5803_v7 = vmul.f32 %v10716_v34, %v14311_v14  ;;  %s10889_s20 = sshra.s32 %s8102_s21, 4  ;;  %s10890_s20 = int_to_ptr.hbm [resolvable:$true] %s10889_s20 }
 0xedf   : > { %5871 = vmatmul.bf16.gmra.mxu1 %v5811_v54  ;;  %v6734_v48 = vpop.f32.mrf.mxu3  ;;  %v5802_v35 = vmul.f32 %v10718_v27, %v14276_v3  ;;  %v10720_v12 = vpop.eup %10719  ;;  %v9879_v54 = vunpack.c.h.bf16 %v14455_v56  ;;  %v6285_v3 = vsub.f32 %v14334_v39, %v14431_v51  ;;  %s10891_s30 = scalar_lea.hbm %s10890_s20, 1  ;;  %p10896_p1 = scmp.lt.s32.totalorder %s10890_s20, %s15248_s12 }
 0xee0   : > { %v6735_v53 = vadd.f32 %v9883_v63, %v6734_v48  ;;  %v10722_v43 = vpop.eup %10721  ;;  %v5805_v16 = vmul.f32 %v10720_v12, %v14364_v13  ;;  %v14550_v12 = vpop.f32.mrf.mxu0  ;;  %p10892_p12 = scmp.ne.s32.totalorder %s10890_s20, %s10891_s30  ;;  %p10897_p2 = scmp.lt.s32.totalorder %s10895_s2, %s10891_s30 }
 0xee1   : > { %v5812_v17 = vpack.c.bf16 %v5803_v7, %v5802_v35  ;;  %v5804_v63 = vmul.f32 %v10722_v43, %v14322_v33  ;;  %v6283_v33 = vsub.f32 %v14259_v58, %v14419_v11  ;;  %v6307_v13 = vmul.f32 1.442695, %v6285_v3 }
 0xee2   : > { %v14515_v49 = vadd.f32 %v6735_v53, %v11868_v60  ;;  %6771 = vmax.xlane.f32.xlu0 %v14512_v1  ;;  %v6730_v53 = vadd.f32 %v9879_v54, %v14481_v6  ;;  %v10724_v34 = vpop.eup %10723  ;;  %v9882_v43 = vunpack.c.l.bf16 %v14503_v47  ;;  %p10893_p13 = pnand %p10892_p12, %p11083_p5  ;;  %p10898_p3 = por %p10897_p2, %p10896_p1 }
 0xee3   : > { %v5813_v14 = vpack.c.bf16 %v5805_v16, %v5804_v63  ;;  %v6303_v27 = vmul.f32 1.442695, %v6283_v33  ;;  %v6376_v6 = vmul.f32 %v10724_v34, %v14336_v37 }
 0xee4   : > { %6785 = vmax.xlane.f32.xlu2 %v14515_v49  ;;  %v14536_v56 = vadd.f32 %v6730_v53, %v11868_v60  ;;  %v6733_v63 = vadd.f32 %v9882_v43, %v14491_v31  ;;  %p10894_p0 = pneg %p10893_p13 }
 0xee6   : > { %v14568_v54 = vadd.f32 %v6733_v63, %v11868_v60  ;;  %v6288_v63 = vsub.f32 %v14245_v4, %v14464_v55  ;;  %p10899_p4 = pnand %p10898_p3, %p10894_p0 }
 0xee7   : > { %v14579_v33 = vpop.f32.mrf.mxu3 }
 0xeea   : > { %6267 = vmax.xlane.f32.xlu0 %v14521_v30 }
 0xeef   : > { %5876 = vmatmul.bf16.gmra.mxu1 %v5812_v17 }
 0xeff   : > { %v6764_v48 = vpop.xlane.xlu2 %6763  ;;  %5881 = vmatmul.bf16.gmra.mxu1 %v5813_v14  ;;  %v6223_v14 = vpop.f32.mrf.mxu0 }
 0xf00   : > { %v6795_v2 = vsub.f32 %v14391_v36, %v6764_v48  ;;  %v10726_v36 = vpop.eup %10725 }
 0xf01   : > { %v6375_v11 = vmul.f32 %v10726_v36, %v14302_v21 }
 0xf02   : > { %v6811_v59 = vmul.f32 1.442695, %v6795_v2 }
 0xf03   : > { %v6391_v26 = vpack.c.bf16 %v6376_v6, %v6375_v11  ;;  %v6739_v6 = vpop.f32.mrf.mxu3 }
 0xf04   : > { %10727 = vpow2.f32 %v6811_v59 }
 0xf05   : > { %10729 = vpow2.f32 %v6307_v13 }
 0xf06   : > { %10731 = vpow2.f32 %v6303_v27 }
 0xf07   : > { %v14538_v7 = vpop.xlane.xlu2 %6331  ;;  %6781 = vmax.xlane.f32.xlu1 %v14536_v56  ;;  %v6766_v39 = vpop.xlane.xlu0 %6765 }
 0xf08   : > { %v6796_v51 = vsub.f32 %v14400_v46, %v6766_v39  ;;  %v14585_v39 = vld [vmem:[%s15317_s1 + $0xf0] sm:$0xff]  }
 0xf09   : > { %v9887_v36 = vunpack.c.h.bf16 %v14585_v39 }
 0xf0a   : > { %v14543_v35 = vpop.eup %10727  ;;  %v6813_v58 = vmul.f32 1.442695, %v6796_v51 }
 0xf0b   : > { %6843 = vadd.xlane.f32.xlu0 %v14543_v35  ;;  %v14547_v17 = vpop.eup %10729  ;;  %v6740_v11 = vadd.f32 %v9887_v36, %v6739_v6 }
 0xf0c   : > { %10733 = vpow2.f32 %v6813_v58  ;;  %v14553_v46 = vpop.eup %10731 }
 0xf0d   : > { %v14601_v43 = vadd.f32 %v6740_v11, %v11868_v60 }
 0xf0f   : > { %v6768_v23 = vpop.xlane.xlu2 %6767  ;;  %6339 = vadd.xlane.f32.xlu1 %v14547_v17  ;;  %6431 = vmatmul.bf16.vlgmr.msrb.gmra.mxu1 %v6391_v26 }
 0xf10   : > { %v6797_v37 = vsub.f32 %v14408_v19, %v6768_v23  ;;  %v9855_v19 = vunpack.c.h.bf16 %v14564_v0 }
 0xf12   : > { %v14556_v16 = vpop.eup %10733  ;;  %v6815_v21 = vmul.f32 1.442695, %v6797_v37  ;;  %v6224_v48 = vadd.f32 %v9855_v19, %v6223_v14 }
 0xf13   : > { %6335 = vadd.xlane.f32.xlu0 %v14553_v46  ;;  %6845 = vadd.xlane.f32.xlu2 %v14556_v16 }
 0xf14   : > { %10735 = vpow2.f32 %v6815_v21  ;;  %v14575_v3 = vadd.f32 %v6224_v48, %v11868_v60  ;;  %v6226_v21 = vpop.f32.mrf.mxu0 }
 0xf1a   : > { %v14570_v47 = vpop.eup %10735  ;;  %v6918_v20 = vpop.permute.xlu0 %6917 }
 0xf1b   : > { %6783 = vmax.xlane.f32.xlu0 %v14568_v54  ;;  %6847 = vadd.xlane.f32.xlu2 %v14570_v47 }
 0xf1c   : > { %6945 = vmatpush.bf16.msra.mxu0 %v6918_v20  ;;  %v5852_v31 = vpop.f32.mrf.mxu1 }
 0xf23   : > { %6273 = vmax.xlane.f32.xlu0 %v14575_v3 }
 0xf24   : > { %v5854_v2 = vpop.f32.mrf.mxu1 }
 0xf25   : > { %v5888_v53 = vpack.c.bf16 %v5854_v2, %v5852_v31  ;;  %v6313_v31 = vmul.f32 1.442695, %v6288_v63 }
 0xf27   : > { %v6774_v59 = vpop.xlane.xlu1 %6773  ;;  %8962 = vmatmul.msk.bf16.gmra.mxu2 %vm1353_vm1, %v5888_v53 }
 0xf28   : > { %v6800_v13 = vsub.f32 %v14441_v25, %v6774_v59  ;;  %v14594_v25 = vld [vmem:[%s15317_s1 + $0xb8] sm:$0xff]  }
 0xf29   : > { %v9858_v37 = vunpack.c.l.bf16 %v14594_v25 }
 0xf2a   : > { %v6821_v34 = vmul.f32 1.442695, %v6800_v13 }
 0xf2b   : > { %v6227_v14 = vadd.f32 %v9858_v37, %v6226_v21 }
 0xf2c   : > { %10737 = vpow2.f32 %v6821_v34  ;;  %v5857_v27 = vpop.f32.mrf.mxu1 }
 0xf2d   : > { %v14607_v48 = vadd.f32 %v6227_v14, %v11868_v60  ;;  %10739 = vpow2.f32 %v6313_v31 }
 0xf2f   : > { %v14596_v23 = vpop.xlane.xlu2 %6775 }
 0xf32   : > { %v14588_v51 = vpop.eup %10737 }
 0xf33   : > { %6853 = vadd.xlane.f32.xlu1 %v14588_v51  ;;  %v14613_v6 = vpop.eup %10739 }
 0xf34   : > { %v5859_v58 = vpop.f32.mrf.mxu1 }
 0xf35   : > { %v5889_v26 = vpack.c.bf16 %v5859_v58, %v5857_v27 }
 0xf37   : > { %8963 = vmatmul.msk.bf16.gmra.mxu2 %vm1353_vm1, %v5889_v26  ;;  %v6778_v27 = vpop.xlane.xlu1 %6777 }
 0xf3b   : > { %6789 = vmax.xlane.f32.xlu1 %v14601_v43 }
 0xf3c   : > { %v5862_v19 = vpop.f32.mrf.mxu1 }
 0xf3f   : > { %v6780_v20 = vpop.xlane.xlu2 %6779 }
 0xf40   : > { %v6803_v2 = vsub.f32 %v14472_v5, %v6780_v20 }
 0xf42   : > { %v6827_v4 = vmul.f32 1.442695, %v6803_v2 }
 0xf43   : > { %6275 = vmax.xlane.f32.xlu1 %v14607_v48 }
 0xf44   : > { %v5864_v53 = vpop.f32.mrf.mxu1 }
 0xf45   : > { %v5890_v59 = vpack.c.bf16 %v5864_v53, %v5862_v19  ;;  %v6770_v13 = vpop.xlane.xlu0 %6769  ;;  %v6286_v19 = vsub.f32 %v14211_v22, %v14435_v29 }
 0xf46   : > { %v6798_v34 = vsub.f32 %v14484_v40, %v6770_v13  ;;  %v9854_v40 = vunpack.c.l.bf16 %v14564_v0 }
 0xf47   : > { %8964 = vmatmul.msk.bf16.gmra.mxu2 %vm1353_vm1, %v5890_v59  ;;  %v6270_v36 = vpop.xlane.xlu2 %6269  ;;  %v6309_v20 = vmul.f32 1.442695, %v6286_v19 }
 0xf48   : > { %v6817_v55 = vmul.f32 1.442695, %v6798_v34  ;;  %v6290_v5 = vsub.f32 %v14487_v57, %v6270_v36  ;;  %v6222_v57 = vadd.f32 %v9854_v40, %v14550_v12  ;;  %v6228_v36 = vpop.f32.mrf.mxu0 }
 0xf4a   : > { %10741 = vpow2.f32 %v6817_v55  ;;  %v6317_v21 = vmul.f32 1.442695, %v6290_v5  ;;  %v14632_v29 = vadd.f32 %v6222_v57, %v11868_v60  ;;  %v6801_v5 = vsub.f32 %v14445_v9, %v14596_v23 }
 0xf4b   : > { %10743 = vrcp.f32 %v14538_v7  ;;  %6345 = vadd.xlane.f32.xlu1 %v14613_v6  ;;  %v6287_v9 = vsub.f32 %v14282_v41, %v14460_v52  ;;  %v9392_v52 = vld [vmem:[%s15241_s5 + $0x60] sm:$0xff] }
 0xf4c   : > { %10745 = vpow2.f32 %v6827_v4  ;;  %v5867_v58 = vpop.f32.mrf.mxu1  ;;  %v9886_v4 = vunpack.c.l.bf16 %v14585_v39 }
 0xf4d   : > { %v6334_v11 = vpop.xlane.xlu0 %6333  ;;  %v6311_v23 = vmul.f32 1.442695, %v6287_v9 }
 0xf4e   : > { %10747 = vrcp.f32 %v6334_v11  ;;  %v6738_v40 = vadd.f32 %v9886_v4, %v14579_v33 }
 0xf4f   : > { %v6916_v26 = vpop.permute.xlu1 %6915  ;;  %10749 = vpow2.f32 %v6317_v21  ;;  %v6823_v21 = vmul.f32 1.442695, %v6801_v5 }
 0xf50   : > { %v14619_v37 = vpop.eup %10741  ;;  %6946 = vmatpush.bf16.msra.mxu0 %v6916_v26  ;;  %10751 = vpow2.f32 %v6309_v20  ;;  %v14655_v19 = vadd.f32 %v6738_v40, %v11868_v60 }
 0xf51   : > { %v10744_v63 = vpop.eup %10743  ;;  %6849 = vadd.xlane.f32.xlu2 %v14619_v37 }
 0xf52   : > { %v14624_v7 = vpop.eup %10745  ;;  %v6377_v53 = vmul.f32 %v10744_v63, %v14402_v50 }
 0xf53   : > { %6859 = vadd.xlane.f32.xlu1 %v14624_v7 }
 0xf54   : > { %v10748_v14 = vpop.eup %10747  ;;  %v5869_v0 = vpop.f32.mrf.mxu1 }
 0xf55   : > { %v5891_v31 = vpack.c.bf16 %v5869_v0, %v5867_v58  ;;  %v6772_v2 = vpop.xlane.xlu0 %6771  ;;  %v6378_v59 = vmul.f32 %v10748_v14, %v14494_v15  ;;  %v14636_v34 = vpop.eup %10749  ;;  %v6802_v58 = vsub.f32 %v14458_v18, %v6778_v27  ;;  %v10139_v18 = vld [vmem:[%s15317_s1 + $0xf8] sm:$0xff]   ;;  %v9393_v0 = vld [vmem:[%s15241_s5 + $0x68] sm:$0xff] }
 0xf56   : > { %v6799_v22 = vsub.f32 %v14512_v1, %v6772_v2  ;;  %v14639_v15 = vpop.eup %10751  ;;  %v9859_v1 = vunpack.c.h.bf16 %v14594_v25  ;;  %v6742_v27 = vpop.f32.mrf.mxu3  ;;  %v9890_v14 = vunpack.c.l.bf16 %v10139_v18  ;;  %6527 = vmatpush.bf16.msra.mxu2 %v9393_v0 }
 0xf57   : > { %8965 = vmatmul.msk.bf16.gmra.mxu2 %vm1353_vm1, %v5891_v31  ;;  %v6392_v12 = vpack.c.bf16 %v6378_v59, %v6377_v53  ;;  %v6825_v63 = vmul.f32 1.442695, %v6802_v58  ;;  %v6338_v31 = vpop.xlane.xlu2 %6337 }
 0xf58   : > { %v6819_v13 = vmul.f32 1.442695, %v6799_v22  ;;  %v6229_v11 = vadd.f32 %v9859_v1, %v6228_v36  ;;  %v6743_v41 = vadd.f32 %v9890_v14, %v6742_v27 }
 0xf59   : > { %6271 = vmax.xlane.f32.xlu2 %v14632_v29  ;;  %6436 = vmatmul.bf16.gmra.mxu1 %v6392_v12  ;;  %v9891_v12 = vunpack.c.h.bf16 %v10139_v18 }
 0xf5a   : > { %10753 = vpow2.f32 %v6819_v13  ;;  %v14652_v39 = vadd.f32 %v6229_v11, %v11868_v60  ;;  %6528 = vmatpush.bf16.msra.mxu2 %v9392_v52  ;;  %v14678_v22 = vadd.f32 %v6743_v41, %v11868_v60 }
 0xf5b   : > { %6349 = vadd.xlane.f32.xlu1 %v14636_v34  ;;  %10755 = vpow2.f32 %v6823_v21 }
 0xf5c   : > { %v5872_v50 = vpop.f32.mrf.mxu1  ;;  %10757 = vpow2.f32 %v6825_v63 }
 0xf5d   : > { %10759 = vpow2.f32 %v6311_v23  ;;  %v6268_v59 = vpop.xlane.xlu0 %6267 }
 0xf5e   : > { %v6289_v1 = vsub.f32 %v14521_v30, %v6268_v59 }
 0xf5f   : > { %v6786_v40 = vpop.xlane.xlu2 %6785 }
 0xf60   : > { %v14643_v55 = vpop.eup %10753  ;;  %v6806_v63 = vsub.f32 %v14515_v49, %v6786_v40 }
 0xf61   : > { %6341 = vadd.xlane.f32.xlu2 %v14639_v15  ;;  %6851 = vadd.xlane.f32.xlu0 %v14643_v55  ;;  %v14665_v57 = vpop.eup %10755 }
 0xf62   : > { %v14670_v20 = vpop.eup %10757 }
 0xf63   : > { %v14681_v13 = vpop.eup %10759 }
 0xf64   : > { %v5874_v26 = vpop.f32.mrf.mxu1 }
 0xf65   : > { %v5892_v25 = vpack.c.bf16 %v5874_v26, %v5872_v50  ;;  %v6744_v50 = vpop.f32.mrf.mxu3  ;;  %v6315_v26 = vmul.f32 1.442695, %v6289_v1 }
 0xf66   : > { %v6745_v36 = vadd.f32 %v9891_v12, %v6744_v50 }
 0xf67   : > { %8966 = vmatmul.msk.bf16.gmra.mxu2 %vm1353_vm1, %v5892_v25 }
 0xf68   : > { %v14688_v25 = vadd.f32 %v6745_v36, %v11868_v60 }
 0xf69   : > { %6277 = vmax.xlane.f32.xlu2 %v14652_v39  ;;  %6787 = vmax.xlane.f32.xlu0 %v14655_v19 }
 0xf6c   : > { %v5877_v33 = vpop.f32.mrf.mxu1 }
 0xf71   : > { %6855 = vadd.xlane.f32.xlu2 %v14665_v57  ;;  %6857 = vadd.xlane.f32.xlu0 %v14670_v20 }
 0xf74   : > { %v5879_v2 = vpop.f32.mrf.mxu1 }
 0xf75   : > { %v5893_v53 = vpack.c.bf16 %v5879_v2, %v5877_v33 }
 0xf77   : > { %8967 = vmatmul.msk.bf16.gmra.mxu2 %vm1353_vm1, %v5893_v53 }
 0xf79   : > { %6791 = vmax.xlane.f32.xlu2 %v14678_v22  ;;  %6343 = vadd.xlane.f32.xlu0 %v14681_v13 }
 0xf7a   : > { %v6782_v4 = vpop.xlane.xlu1 %6781 }
 0xf7b   : > { %v6804_v5 = vsub.f32 %v14536_v56, %v6782_v4  ;;  %v6833_v56 = vmul.f32 1.442695, %v6806_v63 }
 0xf7c   : > { %v5882_v58 = vpop.f32.mrf.mxu1 }
 0xf7d   : > { %v6829_v11 = vmul.f32 1.442695, %v6804_v5 }
 0xf7e   : > { %v6844_v21 = vpop.xlane.xlu0 %6843 }
 0xf7f   : > { %10761 = vpow2.f32 %v6829_v11 }
 0xf80   : > { %10763 = vpow2.f32 %v6315_v26 }
 0xf81   : > { %6793 = vmax.xlane.f32.xlu0 %v14688_v25  ;;  %10765 = vrcp.f32 %v6844_v21 }
 0xf82   : > { %10767 = vrcp.f32 %v6338_v31 }
 0xf84   : > { %v5884_v9 = vpop.f32.mrf.mxu1 }
 0xf85   : > { %v14692_v30 = vpop.eup %10761  ;;  %v5894_v18 = vpack.c.bf16 %v5884_v9, %v5882_v58 }
 0xf86   : > { %v6846_v33 = vpop.xlane.xlu2 %6845  ;;  %6861 = vadd.xlane.f32.xlu2 %v14692_v30  ;;  %v6336_v23 = vpop.xlane.xlu0 %6335 }
 0xf87   : > { %10769 = vrcp.f32 %v6846_v33  ;;  %8968 = vmatmul.msk.bf16.gmra.mxu2 %vm1353_vm1, %v5894_v18  ;;  %v14696_v60 = vpop.eup %10763 }
 0xf88   : > { %10771 = vrcp.f32 %v6336_v23  ;;  %v10766_v49 = vpop.eup %10765 }
 0xf89   : > { %6347 = vadd.xlane.f32.xlu0 %v14696_v60  ;;  %10773 = vpow2.f32 %v6833_v56  ;;  %v10768_v27 = vpop.eup %10767  ;;  %v6891_v52 = vmul.f32 %v10766_v49, %v14543_v35 }
 0xf8a   : > { %v6380_v12 = vmul.f32 %v10768_v27, %v14498_v61 }
 0xf8c   : > { %v6432_v14 = vpop.f32.mrf.mxu1 }
 0xf8d   : > { %v10770_v0 = vpop.eup %10769 }
 0xf8e   : > { %v10772_v41 = vpop.eup %10771  ;;  %v6892_v31 = vmul.f32 %v10770_v0, %v14556_v16  ;;  %v6784_v2 = vpop.xlane.xlu0 %6783 }
 0xf8f   : > { %v6805_v53 = vsub.f32 %v14568_v54, %v6784_v2  ;;  %v6379_v59 = vmul.f32 %v10772_v41, %v14553_v46  ;;  %v14704_v50 = vpop.eup %10773  ;;  %v6340_v54 = vpop.xlane.xlu1 %6339 }
 0xf90   : > { %v6907_v1 = vpack.c.bf16 %v6892_v31, %v6891_v52 }
 0xf91   : > { %v6831_v4 = vmul.f32 1.442695, %v6805_v53  ;;  %6865 = vadd.xlane.f32.xlu0 %v14704_v50  ;;  %v6393_v36 = vpack.c.bf16 %v6380_v12, %v6379_v59 }
 0xf92   : > { %6947 = vmatmul.bf16.vlgmr.msra.gmra.mxu0 %v6907_v1 }
 0xf93   : > { %10775 = vpow2.f32 %v6831_v4  ;;  %6441 = vmatmul.bf16.gmra.mxu1 %v6393_v36 }
 0xf94   : > { %v6434_v35 = vpop.f32.mrf.mxu1 }
 0xf95   : > { %v6472_v5 = vpack.c.bf16 %v6434_v35, %v6432_v14 }
 0xf96   : > { %v6274_v16 = vpop.xlane.xlu0 %6273 }
 0xf97   : > { %v6292_v58 = vsub.f32 %v14575_v3, %v6274_v16  ;;  %9021 = vmatmul.msk.bf16.vlgmr.msra.gmra.mxu2 %vm1353_vm1, %v6472_v5  ;;  %v6848_v3 = vpop.xlane.xlu2 %6847 }
 0xf99   : > { %v14709_v46 = vpop.eup %10775  ;;  %v6321_v61 = vmul.f32 1.442695, %v6292_v58 }
 0xf9a   : > { %6863 = vadd.xlane.f32.xlu2 %v14709_v46 }
 0xf9b   : > { %10777 = vpow2.f32 %v6321_v61 }
 0xfa1   : > { %v14712_v11 = vpop.eup %10777 }
 0xfa2   : > { %6353 = vadd.xlane.f32.xlu2 %v14712_v11 }
 0xfa6   : > { %v6854_v40 = vpop.xlane.xlu1 %6853 }
 0xfae   : > { %v6790_v26 = vpop.xlane.xlu1 %6789 }
 0xfaf   : > { %v6808_v52 = vsub.f32 %v14601_v43, %v6790_v26 }
 0xfb1   : > { %v6837_v53 = vmul.f32 1.442695, %v6808_v52 }
 0xfb6   : > { %v6276_v21 = vpop.xlane.xlu1 %6275 }
 0xfb7   : > { %v6293_v63 = vsub.f32 %v14607_v48, %v6276_v21 }
 0xfb9   : > { %v6323_v9 = vmul.f32 1.442695, %v6293_v63 }
 0xfbb   : > { %10779 = vpow2.f32 %v6323_v9 }
 0xfbc   : > { %10781 = vrcp.f32 %v6848_v3 }
 0xfc1   : > { %v14716_v18 = vpop.eup %10779 }
 0xfc2   : > { %6355 = vadd.xlane.f32.xlu2 %v14716_v18  ;;  %v10782_v33 = vpop.eup %10781 }
 0xfc3   : > { %v6893_v27 = vmul.f32 %v10782_v33, %v14570_v47 }
 0xfc4   : > { %v6850_v56 = vpop.xlane.xlu2 %6849 }
 0xfc5   : > { %10783 = vrcp.f32 %v6850_v56 }
 0xfcb   : > { %v10784_v23 = vpop.eup %10783 }
 0xfcc   : > { %v6272_v49 = vpop.xlane.xlu2 %6271  ;;  %v6894_v14 = vmul.f32 %v10784_v23, %v14619_v37 }
 0xfcd   : > { %v6291_v0 = vsub.f32 %v14632_v29, %v6272_v49 }
 0xfce   : > { %v6908_v48 = vpack.c.bf16 %v6894_v14, %v6893_v27 }
 0xfcf   : > { %v6319_v41 = vmul.f32 1.442695, %v6291_v0 }
 0xfd0   : > { %6952 = vmatmul.bf16.gmra.mxu0 %v6908_v48 }
 0xfd1   : > { %10785 = vpow2.f32 %v6319_v41 }
 0xfd2   : > { %10787 = vrcp.f32 %v6340_v54 }
 0xfd3   : > { %10789 = vrcp.f32 %v6854_v40 }
 0xfd4   : > { %v6342_v31 = vpop.xlane.xlu2 %6341  ;;  %v6852_v2 = vpop.xlane.xlu0 %6851 }
 0xfd5   : > { %10791 = vrcp.f32 %v6342_v31 }
 0xfd6   : > { %10793 = vrcp.f32 %v6852_v2  ;;  %v6437_v59 = vpop.f32.mrf.mxu1 }
 0xfd7   : > { %v14723_v12 = vpop.eup %10785  ;;  %10795 = vpow2.f32 %v6837_v53 }
 0xfd8   : > { %6351 = vadd.xlane.f32.xlu1 %v14723_v12  ;;  %v10788_v47 = vpop.eup %10787 }
 0xfd9   : > { %v10790_v37 = vpop.eup %10789  ;;  %v6381_v36 = vmul.f32 %v10788_v47, %v14547_v17 }
 0xfda   : > { %v6896_v58 = vmul.f32 %v10790_v37, %v14588_v51 }
 0xfdb   : > { %v10792_v29 = vpop.eup %10791 }
 0xfdc   : > { %v10794_v1 = vpop.eup %10793  ;;  %v6278_v4 = vpop.xlane.xlu2 %6277  ;;  %v6382_v35 = vmul.f32 %v10792_v29, %v14639_v15 }
 0xfdd   : > { %v6788_v43 = vpop.xlane.xlu0 %6787  ;;  %v6895_v16 = vmul.f32 %v10794_v1, %v14643_v55  ;;  %v14731_v40 = vpop.eup %10795  ;;  %v6294_v17 = vsub.f32 %v14652_v39, %v6278_v4 }
 0xfde   : > { %v6807_v5 = vsub.f32 %v14655_v19, %v6788_v43  ;;  %v6439_v61 = vpop.f32.mrf.mxu1  ;;  %v6394_v54 = vpack.c.bf16 %v6382_v35, %v6381_v36  ;;  %v6346_v15 = vpop.xlane.xlu1 %6345 }
 0xfdf   : > { %v6473_v21 = vpack.c.bf16 %v6439_v61, %v6437_v59  ;;  %v6909_v63 = vpack.c.bf16 %v6896_v58, %v6895_v16  ;;  %v6325_v51 = vmul.f32 1.442695, %v6294_v17 }
 0xfe0   : > { %v6835_v26 = vmul.f32 1.442695, %v6807_v5  ;;  %6869 = vadd.xlane.f32.xlu1 %v14731_v40  ;;  %6446 = vmatmul.bf16.gmra.mxu1 %v6394_v54 }
 0xfe1   : > { %6957 = vmatmul.bf16.gmra.mxu0 %v6909_v63  ;;  %9022 = vmatmul.msk.bf16.gmra.mxu2 %vm1353_vm1, %v6473_v21 }
 0xfe2   : > { %10797 = vpow2.f32 %v6835_v26 }
 0xfe4   : > { %v6856_v55 = vpop.xlane.xlu2 %6855 }
 0xfe5   : > { %v6858_v19 = vpop.xlane.xlu0 %6857  ;;  %10799 = vrcp.f32 %v6856_v55 }
 0xfe6   : > { %10801 = vrcp.f32 %v6858_v19  ;;  %v6860_v14 = vpop.xlane.xlu1 %6859 }
 0xfe7   : > { %10803 = vpow2.f32 %v6325_v51 }
 0xfe8   : > { %v14736_v9 = vpop.eup %10797  ;;  %10805 = vrcp.f32 %v6346_v15 }
 0xfe9   : > { %6867 = vadd.xlane.f32.xlu0 %v14736_v9 }
 0xfeb   : > { %v10800_v3 = vpop.eup %10799 }
 0xfec   : > { %v10802_v56 = vpop.eup %10801  ;;  %v6792_v33 = vpop.xlane.xlu2 %6791  ;;  %v6897_v49 = vmul.f32 %v10800_v3, %v14665_v57 }
 0xfed   : > { %v6344_v23 = vpop.xlane.xlu0 %6343  ;;  %v6809_v39 = vsub.f32 %v14678_v22, %v6792_v33  ;;  %v6898_v27 = vmul.f32 %v10802_v56, %v14670_v20  ;;  %v14742_v41 = vpop.eup %10803 }
 0xfee   : > { %10807 = vrcp.f32 %v6344_v23  ;;  %v10806_v52 = vpop.eup %10805  ;;  %v6350_v37 = vpop.xlane.xlu1 %6349 }
 0xfef   : > { %v6839_v0 = vmul.f32 1.442695, %v6809_v39  ;;  %v6910_v48 = vpack.c.bf16 %v6898_v27, %v6897_v49  ;;  %v6384_v57 = vmul.f32 %v10806_v52, %v14613_v6  ;;  %v14764_v3 = vpop.f32.mrf.mxu2  ;;  %v9394_v39 = vld [vmem:[%s15241_s5 + $0x70] sm:$0xff] }
 0xff1   : > { %10809 = vpow2.f32 %v6839_v0  ;;  %6357 = vadd.xlane.f32.xlu0 %v14742_v41  ;;  %6962 = vmatmul.bf16.gmra.mxu0 %v6910_v48 }
 0xff2   : > { %10811 = vrcp.f32 %v6860_v14 }
 0xff4   : > { %v10808_v31 = vpop.eup %10807 }
 0xff5   : > { %v6794_v2 = vpop.xlane.xlu0 %6793  ;;  %v6383_v53 = vmul.f32 %v10808_v31, %v14681_v13 }
 0xff6   : > { %v6810_v22 = vsub.f32 %v14688_v25, %v6794_v2 }
 0xff7   : > { %v6395_v59 = vpack.c.bf16 %v6384_v57, %v6383_v53  ;;  %v14748_v20 = vpop.eup %10809  ;;  %v14768_v49 = vpop.f32.mrf.mxu2 }
 0xff8   : > { %v6841_v47 = vmul.f32 1.442695, %v6810_v22  ;;  %6871 = vadd.xlane.f32.xlu1 %v14748_v20  ;;  %v10812_v13 = vpop.eup %10811 }
 0xff9   : > { %6451 = vmatmul.bf16.gmra.mxu1 %v6395_v59  ;;  %v6862_v29 = vpop.xlane.xlu2 %6861  ;;  %v6899_v43 = vmul.f32 %v10812_v13, %v14624_v7 }
 0xffa   : > { %10813 = vpow2.f32 %v6841_v47 }
 0xffb   : > { %10815 = vrcp.f32 %v6862_v29 }
 0xffc   : > { %10817 = vrcp.f32 %v6350_v37 }
 0xffd   : > { %v6348_v1 = vpop.xlane.xlu0 %6347 }
 0xffe   : > { %10819 = vrcp.f32 %v6348_v1 }
 0xfff   : > { %v14773_v48 = vpop.f32.mrf.mxu2 }
0x1000   : > { %v14751_v4 = vpop.eup %10813 }
0x1001   : > { %v10816_v6 = vpop.eup %10815  ;;  %6873 = vadd.xlane.f32.xlu2 %v14751_v4 }
0x1002   : > { %v10818_v25 = vpop.eup %10817  ;;  %v6900_v36 = vmul.f32 %v10816_v6, %v14692_v30 }
0x1003   : > { %v6386_v58 = vmul.f32 %v10818_v25, %v14636_v34  ;;  %v9395_v34 = vld [vmem:[%s15241_s5 + $0x78] sm:$0xff] }
0x1004   : > { %v10820_v35 = vpop.eup %10819  ;;  %v6911_v5 = vpack.c.bf16 %v6900_v36, %v6899_v43  ;;  %7043 = vmatpush.bf16.msra.mxu1 %v9395_v34 }
0x1005   : > { %v6385_v16 = vmul.f32 %v10820_v35, %v14696_v60  ;;  %v6866_v54 = vpop.xlane.xlu0 %6865 }
0x1006   : > { %6967 = vmatmul.bf16.gmra.mxu0 %v6911_v5  ;;  %10821 = vrcp.f32 %v6866_v54 }
0x1007   : > { %v6396_v61 = vpack.c.bf16 %v6386_v58, %v6385_v16  ;;  %v14778_v29 = vpop.f32.mrf.mxu2 }
0x1008   : > { %7044 = vmatpush.bf16.msra.mxu1 %v9394_v39 }
0x1009   : > { %6456 = vmatmul.bf16.gmra.mxu1 %v6396_v61 }
0x100c   : > { %v10822_v63 = vpop.eup %10821 }
0x100d   : > { %v6864_v26 = vpop.xlane.xlu2 %6863  ;;  %v6902_v30 = vmul.f32 %v10822_v63, %v14704_v50 }
0x100e   : > { %10823 = vrcp.f32 %v6864_v26 }
0x1010   : > { %v6442_v21 = vpop.f32.mrf.mxu1 }
0x1014   : > { %v10824_v17 = vpop.eup %10823 }
0x1015   : > { %v6901_v7 = vmul.f32 %v10824_v17, %v14709_v46  ;;  %v6354_v60 = vpop.xlane.xlu2 %6353 }
0x1016   : > { %10825 = vrcp.f32 %v6354_v60 }
0x1017   : > { %v6912_v15 = vpack.c.bf16 %v6902_v30, %v6901_v7 }
0x1018   : > { %v6444_v55 = vpop.f32.mrf.mxu1 }
0x1019   : > { %v6474_v19 = vpack.c.bf16 %v6444_v55, %v6442_v21  ;;  %6972 = vmatmul.bf16.gmra.mxu0 %v6912_v15 }
0x101b   : > { %9023 = vmatmul.msk.bf16.gmra.mxu2 %vm1353_vm1, %v6474_v19 }
0x101c   : > { %v10826_v46 = vpop.eup %10825 }
0x101d   : > { %v6388_v33 = vmul.f32 %v10826_v46, %v14712_v11  ;;  %v6948_v11 = vpop.f32.mrf.mxu0 }
0x1025   : > { %v6950_v25 = vpop.f32.mrf.mxu0 }
0x1026   : > { %v6988_v21 = vpack.c.bf16 %v6950_v25, %v6948_v11 }
0x1035   : > { %v6356_v52 = vpop.xlane.xlu2 %6355 }
0x104b   : > { %v6352_v51 = vpop.xlane.xlu1 %6351 }
0x104c   : > { %10827 = vrcp.f32 %v6352_v51 }
0x104d   : > { %v6953_v35 = vpop.f32.mrf.mxu0 }
0x1052   : > { %v10828_v56 = vpop.eup %10827 }
0x1053   : > { %v6387_v50 = vmul.f32 %v10828_v56, %v14723_v12  ;;  %v6870_v27 = vpop.xlane.xlu1 %6869 }
0x1054   : > { %10829 = vrcp.f32 %v6870_v27 }
0x1055   : > { %v6397_v23 = vpack.c.bf16 %v6388_v33, %v6387_v50  ;;  %v6955_v17 = vpop.f32.mrf.mxu0 }
0x1057   : > { %6461 = vmatmul.bf16.gmra.mxu1 %v6397_v23 }
0x105a   : > { %v10830_v12 = vpop.eup %10829 }
0x105b   : > { %v6904_v57 = vmul.f32 %v10830_v12, %v14731_v40  ;;  %v14782_v40 = vpop.f32.mrf.mxu2 }
0x105c   : > { %v6868_v14 = vpop.xlane.xlu0 %6867 }
0x105d   : > { %10831 = vrcp.f32 %v6868_v14  ;;  %v6447_v0 = vpop.f32.mrf.mxu1 }
0x105e   : > { %10833 = vrcp.f32 %v6356_v52  ;;  %v6958_v15 = vpop.f32.mrf.mxu0 }
0x1063   : > { %v10832_v31 = vpop.eup %10831 }
0x1064   : > { %v6358_v2 = vpop.xlane.xlu0 %6357  ;;  %v6903_v53 = vmul.f32 %v10832_v31, %v14736_v9  ;;  %v10834_v37 = vpop.eup %10833 }
0x1065   : > { %10835 = vrcp.f32 %v6358_v2  ;;  %v6449_v22 = vpop.f32.mrf.mxu1  ;;  %v6389_v13 = vmul.f32 %v10834_v37, %v14716_v18  ;;  %v14786_v18 = vpop.f32.mrf.mxu2 }
0x1066   : > { %v6475_v59 = vpack.c.bf16 %v6449_v22, %v6447_v0  ;;  %v6913_v47 = vpack.c.bf16 %v6904_v57, %v6903_v53  ;;  %v6960_v34 = vpop.f32.mrf.mxu0 }
0x1067   : > { %v6990_v46 = vpack.c.bf16 %v6960_v34, %v6958_v15 }
0x1068   : > { %6977 = vmatmul.bf16.gmra.mxu0 %v6913_v47  ;;  %9024 = vmatmul.msk.bf16.gmra.mxu2 %vm1353_vm1, %v6475_v59 }
0x106b   : > { %v10836_v1 = vpop.eup %10835  ;;  %v6872_v9 = vpop.xlane.xlu1 %6871 }
0x106c   : > { %v6390_v6 = vmul.f32 %v10836_v1, %v14742_v41  ;;  %10837 = vrcp.f32 %v6872_v9 }
0x106d   : > { %v14790_v30 = vpop.f32.mrf.mxu2 }
0x106e   : > { %v6398_v43 = vpack.c.bf16 %v6390_v6, %v6389_v13  ;;  %v6963_v51 = vpop.f32.mrf.mxu0 }
0x1070   : > { %6466 = vmatmul.bf16.gmra.mxu1 %v6398_v43 }
0x1072   : > { %v10838_v16 = vpop.eup %10837 }
0x1073   : > { %v6905_v61 = vmul.f32 %v10838_v16, %v14748_v20  ;;  %v6989_v20 = vpack.c.bf16 %v6955_v17, %v6953_v35 }
0x1074   : > { %v6874_v36 = vpop.xlane.xlu2 %6873 }
0x1075   : > { %10839 = vrcp.f32 %v6874_v36 }
0x1076   : > { %v6452_v5 = vpop.f32.mrf.mxu1  ;;  %v6965_v50 = vpop.f32.mrf.mxu0 }
0x1077   : > { %v6991_v33 = vpack.c.bf16 %v6965_v50, %v6963_v51 }
0x107b   : > { %v10840_v58 = vpop.eup %10839 }
0x107c   : > { %v6906_v54 = vmul.f32 %v10840_v58, %v14751_v4  ;;  %v14794_v4 = vpop.f32.mrf.mxu2  ;;  %v6031_v58 = vadd.f32 %v14232_v8, %v14764_v3 }
0x107e   : > { %v6454_v41 = vpop.f32.mrf.mxu1  ;;  %v6914_v26 = vpack.c.bf16 %v6906_v54, %v6905_v61  ;;  %v6033_v61 = vadd.f32 %v14254_v62, %v14768_v49 }
0x107f   : > { %v6476_v63 = vpack.c.bf16 %v6454_v41, %v6452_v5  ;;  %v9893_v41 = vld [vmem:[#allocation2] sm:$0xff]  }
0x1080   : > { %6982 = vmatmul.bf16.gmra.mxu0 %v6914_v26  ;;  %9065 = vmatmul.msk.bf16.vlgmr.msra.gmra.mxu1 %vm1353_vm1, %v6988_v21  ;;  %v9894_v15 = vunpack.c.l.bf16 %v9893_v41 }
0x1081   : > { %9025 = vmatmul.msk.bf16.gmra.mxu2 %vm1353_vm1, %v6476_v63 }
0x1083   : > { %v6968_v39 = vpop.f32.mrf.mxu0 }
0x1084   : > { %v14796_v60 = vpop.f32.mrf.mxu2 }
0x1086   : > { %v6457_v7 = vpop.f32.mrf.mxu1 }
0x108b   : > { %v6970_v14 = vpop.f32.mrf.mxu0 }
0x108c   : > { %v14799_v56 = vpop.f32.mrf.mxu2  ;;  %v6992_v0 = vpack.c.bf16 %v6970_v14, %v6968_v39  ;;  %v6036_v39 = vadd.f32 %v14266_v10, %v14773_v48  ;;  %v6038_v14 = vadd.f32 %v14284_v32, %v14778_v29 }
0x108e   : > { %v6459_v55 = vpop.f32.mrf.mxu1 }
0x108f   : > { %v6477_v19 = vpack.c.bf16 %v6459_v55, %v6457_v7 }
0x1090   : > { %9066 = vmatmul.msk.bf16.gmra.mxu1 %vm1353_vm1, %v6989_v20  ;;  %v9895_v20 = vunpack.c.h.bf16 %v9893_v41 }
0x1091   : > { %9026 = vmatmul.msk.bf16.gmra.mxu2 %vm1353_vm1, %v6477_v19 }
0x1094   : > { %v14801_v23 = vpop.f32.mrf.mxu2 }
0x1096   : > { %v6973_v52 = vpop.f32.mrf.mxu0 }
0x109c   : > { %v14804_v27 = vpop.f32.mrf.mxu2 }
0x109e   : > { %v6975_v31 = vpop.f32.mrf.mxu0 }
0x109f   : > { %v6993_v2 = vpack.c.bf16 %v6975_v31, %v6973_v52  ;;  %v10140_v52 = vld [vmem:[#allocation2 + $0x8] sm:$0xff]  }
0x10a0   : > { %9067 = vmatmul.msk.bf16.gmra.mxu1 %vm1353_vm1, %v6990_v46 }
0x10a4   : > { %v14807_v12 = vpop.f32.mrf.mxu2 }
0x10ac   : > { %v14809_v11 = vpop.f32.mrf.mxu2 }
0x10b0   : > { %9068 = vmatmul.msk.bf16.gmra.mxu1 %vm1353_vm1, %v6991_v33 }
0x10b4   : > { %v14812_v57 = vpop.f32.mrf.mxu2 }
0x10bc   : > { %v14815_v47 = vpop.f32.mrf.mxu2 }
0x10c0   : > { %9069 = vmatmul.msk.bf16.gmra.mxu1 %vm1353_vm1, %v6992_v0 }
0x10c4   : > { %v6530_v1 = vpop.f32.mrf.mxu2 }
0x10c5   : > { %v6570_v54 = vadd.f32 %v6530_v1, %v6031_v58 }
0x10cc   : > { %v6532_v43 = vpop.f32.mrf.mxu2 }
0x10cd   : > { %v6571_v26 = vadd.f32 %v6532_v43, %v6033_v61 }
0x10d0   : > { %9070 = vmatmul.msk.bf16.gmra.mxu1 %vm1353_vm1, %v6993_v2 }
0x10d4   : > { %v6462_v53 = vpop.f32.mrf.mxu1  ;;  %v6535_v5 = vpop.f32.mrf.mxu2 }
0x10d5   : > { %v6572_v0 = vadd.f32 %v6535_v5, %v6036_v39 }
0x10dc   : > { %v6464_v22 = vpop.f32.mrf.mxu1  ;;  %v6537_v19 = vpop.f32.mrf.mxu2 }
0x10dd   : > { %v6478_v59 = vpack.c.bf16 %v6464_v22, %v6462_v53  ;;  %v6573_v31 = vadd.f32 %v6537_v19, %v6038_v14  ;;  %v9898_v22 = vunpack.c.l.bf16 %v10140_v52  ;;  %v6048_v19 = vadd.f32 %v14342_v28, %v14794_v4 }
0x10df   : > { %9027 = vmatmul.msk.bf16.gmra.mxu2 %vm1353_vm1, %v6478_v59 }
0x10e4   : > { %v6540_v33 = vpop.f32.mrf.mxu2 }
0x10e5   : > { %v6978_v37 = vpop.f32.mrf.mxu0 }
0x10ed   : > { %v6467_v13 = vpop.f32.mrf.mxu1  ;;  %v6980_v6 = vpop.f32.mrf.mxu0 }
0x10ee   : > { %v6994_v25 = vpack.c.bf16 %v6980_v6, %v6978_v37  ;;  %v9899_v37 = vunpack.c.h.bf16 %v10140_v52  ;;  %v6542_v6 = vpop.f32.mrf.mxu2 }
0x10f0   : > { %9071 = vmatmul.msk.bf16.gmra.mxu1 %vm1353_vm1, %v6994_v25 }
0x10f5   : > { %v6469_v9 = vpop.f32.mrf.mxu1 }
0x10f6   : > { %v6479_v36 = vpack.c.bf16 %v6469_v9, %v6467_v13  ;;  %v6041_v9 = vadd.f32 %v14296_v42, %v14782_v40 }
0x10f8   : > { %9028 = vmatmul.msk.bf16.gmra.mxu2 %vm1353_vm1, %v6479_v36  ;;  %v6545_v36 = vpop.f32.mrf.mxu2  ;;  %v6574_v5 = vadd.f32 %v6540_v33, %v6041_v9 }
0x10fd   : > { %v6983_v35 = vpop.f32.mrf.mxu0  ;;  %v7046_v16 = vpop.f32.mrf.mxu1 }
0x10fe   : > { %v7086_v21 = vadd.f32 %v7046_v16, %v6570_v54  ;;  %v10141_v16 = vld [vmem:[#allocation2 + $0x10] sm:$0xff]  }
0x10ff   : > { %v9902_v41 = vunpack.c.l.bf16 %v10141_v16 }
0x1100   : > { %v7134_v34 = vadd.f32 %v9894_v15, %v7086_v21  ;;  %v9903_v21 = vunpack.c.h.bf16 %v10141_v16  ;;  %v6547_v15 = vpop.f32.mrf.mxu2 }
0x1105   : > { %v6985_v63 = vpop.f32.mrf.mxu0  ;;  %v7048_v7 = vpop.f32.mrf.mxu1 }
0x1106   : > { %v6995_v17 = vpack.c.bf16 %v6985_v63, %v6983_v35  ;;  %v7087_v55 = vadd.f32 %v7048_v7, %v6571_v26  ;;  %v6043_v35 = vadd.f32 %v14317_v45, %v14786_v18 }
0x1108   : > { %9072 = vmatmul.msk.bf16.gmra.mxu1 %vm1353_vm1, %v6995_v17  ;;  %v7135_v51 = vadd.f32 %v9895_v20, %v7087_v55  ;;  %v6575_v58 = vadd.f32 %v6542_v6, %v6043_v35  ;;  %v6046_v20 = vadd.f32 %v14328_v38, %v14790_v30 }
0x110a   : > { %v9927_v46 = vpack.c.bf16 %v7135_v51, %v7134_v34  ;;  %v6576_v34 = vadd.f32 %v6545_v36, %v6046_v20  ;;  %v6550_v51 = vpop.f32.mrf.mxu2 }
0x110c   : > { %v14824_v8 = vunpack.c.h.bf16 %v9927_v46  ;;  %v14826_v3 = vunpack.c.l.bf16 %v9927_v46  ;;  %v10142_v46 = vld [vmem:[#allocation2 + $0x18] sm:$0xff]  }
0x110d   : > { %v7051_v62 = vpop.f32.mrf.mxu1  ;;  %v9906_v33 = vunpack.c.l.bf16 %v10142_v46  ;;  %v9907_v14 = vunpack.c.h.bf16 %v10142_v46  ;;  %v9148_v46 = vld [vmem:[%s15243_s7 + $0xf0] sm:$0xf] }
0x110e   : > { %v7217_v49 = vmul.f32 %v14824_v8, %v14824_v8  ;;  %v7216_v50 = vmul.f32 %v14826_v3, %v14826_v3  ;;  %v7088_v2 = vadd.f32 %v7051_v62, %v6572_v0  ;;  %v6577_v62 = vadd.f32 %v6547_v15, %v6048_v19 }
0x1110   : > { %7234 = vadd.xlane.f32.xlu1 %v7217_v49  ;;  %7232 = vadd.xlane.f32.xlu0 %v7216_v50  ;;  %v7136_v1 = vadd.f32 %v9898_v22, %v7088_v2  ;;  %v6051_v22 = vadd.f32 %v14357_v24, %v14796_v60 }
0x1112   : > { %v6552_v30 = vpop.f32.mrf.mxu2 }
0x1115   : > { %v7053_v53 = vpop.f32.mrf.mxu1 }
0x1116   : > { %v7089_v59 = vadd.f32 %v7053_v53, %v6573_v31 }
0x1118   : > { %v7137_v13 = vadd.f32 %v9899_v37, %v7089_v59  ;;  %v6053_v59 = vadd.f32 %v14362_v44, %v14799_v56  ;;  %v6578_v37 = vadd.f32 %v6550_v51, %v6051_v22  ;;  %v9132_v22 = vld [vmem:[%s15243_s7 + $0xd0] sm:$0xf] }
0x111a   : > { %v9932_v25 = vpack.c.bf16 %v7137_v13, %v7136_v1  ;;  %v10143_v1 = vld [vmem:[#allocation2 + $0x20] sm:$0xff]   ;;  %v6579_v13 = vadd.f32 %v6552_v30, %v6053_v59  ;;  %v6555_v9 = vpop.f32.mrf.mxu2  ;;  %v9407_v59 = vld [vmem:[%s15243_s7 + $0xd4] sm:$0xf0] }
0x111c   : > { %v14836_v43 = vunpack.c.h.bf16 %v9932_v25  ;;  %v14838_v10 = vunpack.c.l.bf16 %v9932_v25 }
0x111d   : > { %v7056_v48 = vpop.f32.mrf.mxu1 }
0x111e   : > { %v7219_v32 = vmul.f32 %v14836_v43, %v14836_v43  ;;  %v7218_v29 = vmul.f32 %v14838_v10, %v14838_v10  ;;  %v7090_v61 = vadd.f32 %v7056_v48, %v6574_v5  ;;  %v9910_v48 = vunpack.c.l.bf16 %v10143_v1 }
0x1120   : > { %7238 = vadd.xlane.f32.xlu0 %v7219_v32  ;;  %7236 = vadd.xlane.f32.xlu2 %v7218_v29  ;;  %v7138_v63 = vadd.f32 %v9902_v41, %v7090_v61  ;;  %v9911_v29 = vunpack.c.h.bf16 %v10143_v1  ;;  %v15350_v41 = vld [vmem:[#allocation21_spill] sm:$0xff]  ;;  %v9406_v1 = vld [vmem:[%s15243_s7 + $0xd4] sm:$0xf] }
0x1125   : > { %v7058_v54 = vpop.f32.mrf.mxu1 }
0x1126   : > { %v7091_v26 = vadd.f32 %v7058_v54, %v6575_v58  ;;  %v15349_v58 = vld [vmem:[#allocation26_spill] sm:$0xff]  ;;  %v6557_v54 = vpop.f32.mrf.mxu2 }
0x1127   : > { %v6056_v61 = vadd.f32 %v15349_v58, %v14801_v23 }
0x1128   : > { %v7139_v17 = vadd.f32 %v9903_v21, %v7091_v26  ;;  %v6058_v26 = vadd.f32 %v15350_v41, %v14804_v27  ;;  %v9411_v27 = vld [vmem:[%s15243_s7 + $0xf4] sm:$0xf0] }
0x1129   : > { %v6580_v21 = vadd.f32 %v6555_v9, %v6056_v61  ;;  %v9126_v9 = vld [vmem:[%s15243_s7 + $0xc8] sm:$0xf0] }
0x112a   : > { %v9937_v7 = vpack.c.bf16 %v7139_v17, %v7138_v63  ;;  %v10144_v63 = vld [vmem:[#allocation2 + $0x28] sm:$0xff]   ;;  %v6581_v17 = vadd.f32 %v6557_v54, %v6058_v26  ;;  %v9118_v54 = vld [vmem:[%s15243_s7 + $0xb8] sm:$0xf0] }
0x112c   : > { %v14848_v55 = vunpack.c.h.bf16 %v9937_v7  ;;  %v14850_v42 = vunpack.c.l.bf16 %v9937_v7 }
0x112d   : > { %v7061_v40 = vpop.f32.mrf.mxu1 }
0x112e   : > { %v7221_v45 = vmul.f32 %v14848_v55, %v14848_v55  ;;  %v7220_v18 = vmul.f32 %v14850_v42, %v14850_v42  ;;  %v7092_v49 = vadd.f32 %v7061_v40, %v6576_v34  ;;  %v9914_v40 = vunpack.c.l.bf16 %v10144_v63 }
0x1130   : > { %7242 = vadd.xlane.f32.xlu2 %v7221_v45  ;;  %7240 = vadd.xlane.f32.xlu1 %v7220_v18  ;;  %v7140_v0 = vadd.f32 %v9906_v33, %v7092_v49  ;;  %v9915_v18 = vunpack.c.h.bf16 %v10144_v63  ;;  %v9149_v49 = vor.u32 %v9411_v27, %v9148_v46 }
0x1132   : > { %7596 = vmatpush.bf16.msrb.mxu2 %v9149_v49  ;;  %v9100_v49 = vld [vmem:[%s15243_s7 + $0x90] sm:$0xf] }
0x1135   : > { %v7063_v50 = vpop.f32.mrf.mxu1 }
0x1136   : > { %v7093_v39 = vadd.f32 %v7063_v50, %v6577_v62  ;;  %v9410_v62 = vld [vmem:[%s15243_s7 + $0xf4] sm:$0xf]  ;;  %v9150_v50 = vld [vmem:[%s15243_s7 + $0xf8] sm:$0xf0] }
0x1138   : > { %v7141_v52 = vadd.f32 %v9907_v14, %v7093_v39  ;;  %v9153_v14 = vor.u32 %v9410_v62, %v9150_v50  ;;  %v9399_v50 = vld [vmem:[%s15243_s7 + $0x94] sm:$0xf0] }
0x113a   : > { %v9942_v31 = vpack.c.bf16 %v7141_v52, %v7140_v0  ;;  %7645 = vmatpush.bf16.msrb.mxu3 %v9153_v14  ;;  %v9140_v0 = vld [vmem:[%s15243_s7 + $0xe0] sm:$0xf]  ;;  %v9409_v52 = vld [vmem:[%s15243_s7 + $0xe4] sm:$0xf0] }
0x113b   : > { %v9141_v30 = vor.u32 %v9409_v52, %v9140_v0  ;;  %v9101_v0 = vor.u32 %v9399_v50, %v9100_v49  ;;  %v9102_v52 = vld [vmem:[%s15243_s7 + $0x98] sm:$0xf0] }
0x113c   : > { %v14860_v2 = vunpack.c.h.bf16 %v9942_v31  ;;  %v14862_v38 = vunpack.c.l.bf16 %v9942_v31  ;;  %v9408_v31 = vld [vmem:[%s15243_s7 + $0xe4] sm:$0xf] }
0x113d   : > { %v7066_v53 = vpop.f32.mrf.mxu1  ;;  %7597 = vmatpush.bf16.msrb.mxu2 %v9141_v30 }
0x113e   : > { %v7223_v28 = vmul.f32 %v14860_v2, %v14860_v2  ;;  %v7222_v4 = vmul.f32 %v14862_v38, %v14862_v38  ;;  %v7094_v6 = vadd.f32 %v7066_v53, %v6578_v37  ;;  %v9142_v53 = vld [vmem:[%s15243_s7 + $0xe8] sm:$0xf0]  ;;  %v9133_v37 = vor.u32 %v9407_v59, %v9132_v22 }
0x1140   : > { %7246 = vadd.xlane.f32.xlu1 %v7223_v28  ;;  %7244 = vadd.xlane.f32.xlu0 %v7222_v4  ;;  %v7142_v36 = vadd.f32 %v9910_v48, %v7094_v6  ;;  %v9145_v28 = vor.u32 %v9408_v31, %v9142_v53  ;;  %v9405_v48 = vld [vmem:[%s15243_s7 + $0xc4] sm:$0xf0]  ;;  %v9092_v53 = vld [vmem:[%s15243_s7 + $0x80] sm:$0xf] }
0x1141   : > { %7598 = vmatpush.bf16.msrb.mxu2 %v9133_v37 }
0x1142   : > { %7646 = vmatpush.bf16.msrb.mxu3 %v9145_v28  ;;  %v9397_v28 = vld [vmem:[%s15243_s7 + $0x84] sm:$0xf0] }
0x1143   : > { %v9093_v37 = vor.u32 %v9397_v28, %v9092_v53 }
0x1145   : > { %v7068_v25 = vpop.f32.mrf.mxu1 }
0x1146   : > { %v7095_v32 = vadd.f32 %v7068_v25, %v6579_v13  ;;  %v9134_v13 = vld [vmem:[%s15243_s7 + $0xd8] sm:$0xf0]  ;;  %v9124_v25 = vld [vmem:[%s15243_s7 + $0xc0] sm:$0xf] }
0x1147   : > { %v9137_v6 = vor.u32 %v9406_v1, %v9134_v13  ;;  %v9094_v1 = vld [vmem:[%s15243_s7 + $0x88] sm:$0xf0] }
0x1148   : > { %v7143_v35 = vadd.f32 %v9911_v29, %v7095_v32  ;;  %v9404_v32 = vld [vmem:[%s15243_s7 + $0xc4] sm:$0xf]  ;;  %v9125_v29 = vor.u32 %v9405_v48, %v9124_v25 }
0x1149   : > { %7647 = vmatpush.bf16.msrb.mxu3 %v9137_v6 }
0x114a   : > { %v9947_v5 = vpack.c.bf16 %v7143_v35, %v7142_v36  ;;  %v9129_v35 = vor.u32 %v9404_v32, %v9126_v9  ;;  %7599 = vmatpush.bf16.msrb.mxu2 %v9125_v29  ;;  %v15353_v9 = vld [vmem:[#allocation12_spill] sm:$0xff] }
0x114c   : > { %v14872_v16 = vunpack.c.h.bf16 %v9947_v5  ;;  %v14874_v24 = vunpack.c.l.bf16 %v9947_v5  ;;  %v9116_v5 = vld [vmem:[%s15243_s7 + $0xb0] sm:$0xf] }
0x114d   : > { %v7071_v60 = vpop.f32.mrf.mxu1  ;;  %7648 = vmatpush.bf16.msrb.mxu3 %v9129_v35 }
0x114e   : > { %v7225_v44 = vmul.f32 %v14872_v16, %v14872_v16  ;;  %v7224_v56 = vmul.f32 %v14874_v24, %v14874_v24  ;;  %v7096_v7 = vadd.f32 %v7071_v60, %v6580_v21  ;;  %v9403_v60 = vld [vmem:[%s15243_s7 + $0xb4] sm:$0xf0] }
0x114f   : > { %v9117_v61 = vor.u32 %v9403_v60, %v9116_v5  ;;  %v15352_v21 = vld [vmem:[#allocation22_spill] sm:$0xff] }
0x1150   : > { %7250 = vadd.xlane.f32.xlu0 %v7225_v44  ;;  %7248 = vadd.xlane.f32.xlu2 %v7224_v56  ;;  %v7144_v20 = vadd.f32 %v9914_v40, %v7096_v7  ;;  %v9402_v44 = vld [vmem:[%s15243_s7 + $0xb4] sm:$0xf]  ;;  %v15351_v56 = vld [vmem:[#allocation15_spill] sm:$0xff]  ;;  %v6063_v63 = vadd.f32 %v15352_v21, %v14809_v11  ;;  %v9400_v40 = vld [vmem:[%s15243_s7 + $0xa4] sm:$0xf] }
0x1151   : > { %v6061_v58 = vadd.f32 %v15351_v56, %v14807_v12  ;;  %v9121_v26 = vor.u32 %v9402_v44, %v9118_v54  ;;  %v10145_v7 = vld [vmem:[#allocation2 + $0x30] sm:$0xff]   ;;  %7600 = vmatpush.bf16.msrb.mxu2 %v9117_v61  ;;  %v9401_v12 = vld [vmem:[%s15243_s7 + $0xa4] sm:$0xf0]  ;;  %v9110_v11 = vld [vmem:[%s15243_s7 + $0xa8] sm:$0xf0] }
0x1152   : > { %v9918_v46 = vunpack.c.l.bf16 %v10145_v7  ;;  %v9919_v62 = vunpack.c.h.bf16 %v10145_v7  ;;  %v15354_v44 = vld [vmem:[#allocation16_spill] sm:$0xff]  ;;  %v10146_v21 = vld [vmem:[#allocation2 + $0x38] sm:$0xff]  }
0x1153   : > { %7649 = vmatpush.bf16.msrb.mxu3 %v9121_v26  ;;  %v6066_v56 = vadd.f32 %v15354_v44, %v14812_v57  ;;  %v15355_v54 = vld [vmem:[#allocation24_spill] sm:$0xff] }
0x1155   : > { %v7073_v15 = vpop.f32.mrf.mxu1 }
0x1156   : > { %v7097_v45 = vadd.f32 %v7073_v15, %v6581_v17  ;;  %v9108_v15 = vld [vmem:[%s15243_s7 + $0xa0] sm:$0xf] }
0x1158   : > { %v7145_v19 = vadd.f32 %v9915_v18, %v7097_v45 }
0x115a   : > { %v9952_v34 = vpack.c.bf16 %v7145_v19, %v7144_v20  ;;  %v9109_v20 = vor.u32 %v9401_v12, %v9108_v15  ;;  %v9922_v15 = vunpack.c.l.bf16 %v10146_v21 }
0x115c   : > { %v14884_v51 = vunpack.c.h.bf16 %v9952_v34  ;;  %v14886_v23 = vunpack.c.l.bf16 %v9952_v34  ;;  %v9113_v34 = vor.u32 %v9400_v40, %v9110_v11  ;;  %7601 = vmatpush.bf16.msrb.mxu2 %v9109_v20  ;;  %v9923_v40 = vunpack.c.h.bf16 %v10146_v21 }
0x115e   : > { %v7227_v33 = vmul.f32 %v14884_v51, %v14884_v51  ;;  %v7226_v39 = vmul.f32 %v14886_v23, %v14886_v23  ;;  %7650 = vmatpush.bf16.msrb.mxu3 %v9113_v34 }
0x1160   : > { %7254 = vadd.xlane.f32.xlu2 %v7227_v33  ;;  %7252 = vadd.xlane.f32.xlu1 %v7226_v39  ;;  %v9398_v33 = vld [vmem:[%s15243_s7 + $0x94] sm:$0xf] }
0x1161   : > { %v9105_v31 = vor.u32 %v9398_v33, %v9102_v52  ;;  %7602 = vmatpush.bf16.msrb.mxu2 %v9101_v0 }
0x1162   : > { %v6560_v4 = vpop.f32.mrf.mxu2 }
0x1163   : > { %v6582_v17 = vadd.f32 %v6560_v4, %v6061_v58  ;;  %7651 = vmatpush.bf16.msrb.mxu3 %v9105_v31  ;;  %v9396_v4 = vld [vmem:[%s15243_s7 + $0x84] sm:$0xf] }
0x1164   : > { %v9097_v13 = vor.u32 %v9396_v4, %v9094_v1  ;;  %v15019_v1 = vld [vmem:[%s15242_s6 + $0x1] ss:$0 sm:$0xff] }
0x1165   : > { %7603 = vmatpush.bf16.msrb.mxu2 %v9093_v37 }
0x1167   : > { %7652 = vmatpush.bf16.msrb.mxu3 %v9097_v13 }
0x116a   : > { %v6562_v41 = vpop.f32.mrf.mxu2 }
0x116b   : > { %v6583_v45 = vadd.f32 %v6562_v41, %v6063_v63  ;;  %v6068_v41 = vadd.f32 %v15355_v54, %v14815_v47 }
0x116d   : > { %v7076_v36 = vpop.f32.mrf.mxu1 }
0x116e   : > { %v7098_v18 = vadd.f32 %v7076_v36, %v6582_v17 }
0x1170   : > { %v7146_v39 = vadd.f32 %v9918_v46, %v7098_v18 }
0x1175   : > { %v7078_v19 = vpop.f32.mrf.mxu1 }
0x1176   : > { %v7099_v27 = vadd.f32 %v7078_v19, %v6583_v45 }
0x1178   : > { %v7147_v14 = vadd.f32 %v9919_v62, %v7099_v27 }
0x117a   : > { %v9957_v30 = vpack.c.bf16 %v7147_v14, %v7146_v39 }
0x117b   : > { %v6565_v6 = vpop.f32.mrf.mxu2 }
0x117c   : > { %v14989_v22 = vunpack.c.h.bf16 %v9957_v30  ;;  %v14991_v59 = vunpack.c.l.bf16 %v9957_v30  ;;  %v6584_v26 = vadd.f32 %v6565_v6, %v6066_v56 }
0x117e   : > { %v7229_v25 = vmul.f32 %v14989_v22, %v14989_v22  ;;  %v7228_v48 = vmul.f32 %v14991_v59, %v14991_v59 }
0x1180   : > { %7258 = vadd.xlane.f32.xlu1 %v7229_v25  ;;  %7256 = vadd.xlane.f32.xlu0 %v7228_v48 }
0x1183   : > { %v7235_v32 = vpop.xlane.xlu1 %7234  ;;  %v7233_v35 = vpop.xlane.xlu0 %7232 }
0x1184   : > { %v7265_v36 = vmul.f32 %v7235_v32, %v15353_v9  ;;  %v7264_v5 = vmul.f32 %v7233_v35, %v15353_v9  ;;  %v6567_v61 = vpop.f32.mrf.mxu2 }
0x1185   : > { %v7081_v29 = vpop.f32.mrf.mxu1  ;;  %v6585_v63 = vadd.f32 %v6567_v61, %v6068_v41 }
0x1186   : > { %v7281_v60 = vadd.f32 1e-06, %v7265_v36  ;;  %v7280_v58 = vadd.f32 1e-06, %v7264_v5  ;;  %v7100_v17 = vadd.f32 %v7081_v29, %v6584_v26 }
0x1188   : > { %10841 = vrsqrt.f32 %v7281_v60  ;;  %v7148_v20 = vadd.f32 %v9922_v15, %v7100_v17  ;;  %vm7312_vm9 = vweird.f32 %v7281_v60  ;;  %vm7302_vm11 = vweird.f32 %v7280_v58 }
0x1189   : > { %10843 = vrsqrt.f32 %v7280_v58 }
0x118d   : > { %v7083_v7 = vpop.f32.mrf.mxu1 }
0x118e   : > { %v7101_v12 = vadd.f32 %v7083_v7, %v6585_v63  ;;  %v10842_v45 = vpop.eup %10841 }
0x118f   : > { %v10844_v18 = vpop.eup %10843  ;;  %v7307_v11 = vmul.f32 %v10842_v45, %v7281_v60  ;;  %vm7313_vm1 = vweird.f32 %v10842_v45 }
0x1190   : > { %v7149_v57 = vadd.f32 %v9923_v40, %v7101_v12  ;;  %v7297_v19 = vmul.f32 %v10844_v18, %v7280_v58  ;;  %vm7303_vm8 = vweird.f32 %v10844_v18  ;;  %vm7314_vm10 = vmor %vm7312_vm9, %vm7313_vm1 }
0x1191   : > { %v7308_v34 = vmul.f32 %v10842_v45, %v7307_v11  ;;  %vm7304_vm12 = vmor %vm7302_vm11, %vm7303_vm8 }
0x1192   : > { %v9962_v46 = vpack.c.bf16 %v7149_v57, %v7148_v20  ;;  %v7298_v27 = vmul.f32 %v10844_v18, %v7297_v19 }
0x1193   : > { %v7309_v62 = vmul.f32 0.5, %v7308_v34  ;;  %v7239_v47 = vpop.xlane.xlu0 %7238  ;;  %v7237_v49 = vpop.xlane.xlu2 %7236 }
0x1194   : > { %v15006_v50 = vunpack.c.h.bf16 %v9962_v46  ;;  %v15008_v33 = vunpack.c.l.bf16 %v9962_v46  ;;  %v7299_v39 = vmul.f32 0.5, %v7298_v27  ;;  %v7267_v14 = vmul.f32 %v7239_v47, %v15353_v9 }
0x1195   : > { %v7266_v0 = vmul.f32 %v7237_v49, %v15353_v9  ;;  %v7310_v52 = vsub.f32 1.5, %v7309_v62 }
0x1196   : > { %v7231_v31 = vmul.f32 %v15006_v50, %v15006_v50  ;;  %v7230_v30 = vmul.f32 %v15008_v33, %v15008_v33  ;;  %v7300_v53 = vsub.f32 1.5, %v7299_v39  ;;  %v7283_v28 = vadd.f32 1e-06, %v7267_v14 }
0x1197   : > { %v7282_v4 = vadd.f32 1e-06, %v7266_v0  ;;  %v7311_v37 = vmul.f32 %v10842_v45, %v7310_v52 }
0x1198   : > { %7262 = vadd.xlane.f32.xlu0 %v7231_v31  ;;  %7260 = vadd.xlane.f32.xlu2 %v7230_v30  ;;  %v7301_v13 = vmul.f32 %v10844_v18, %v7300_v53  ;;  %10845 = vrsqrt.f32 %v7283_v28  ;;  %vm7332_vm15 = vweird.f32 %v7283_v28 }
0x1199   : > { %v7315_v6 = vsel %vm7314_vm10, %v10842_v45, %v7311_v37  ;;  %10847 = vrsqrt.f32 %v7282_v4  ;;  %vm7322_vm2 = vweird.f32 %v7282_v4 }
0x119a   : > { %v7457_v25 = vmul.f32 %v14824_v8, %v7315_v6  ;;  %v7305_v48 = vsel %vm7304_vm12, %v10844_v18, %v7301_v13 }
0x119b   : > { %v7456_v32 = vmul.f32 %v14826_v3, %v7305_v48 }
0x119c   : > { %v7476_v29 = vmul.f32 %v15019_v1, %v7457_v25 }
0x119d   : > { %v7475_v36 = vmul.f32 %v15019_v1, %v7456_v32 }
0x119e   : > { %v10846_v35 = vpop.eup %10845 }
0x119f   : > { %v10848_v5 = vpop.eup %10847  ;;  %v7327_v60 = vmul.f32 %v10846_v35, %v7283_v28  ;;  %v7491_v44 = vpack.c.bf16 %v7476_v29, %v7475_v36  ;;  %vm7333_vm13 = vweird.f32 %v10846_v35 }
0x11a0   : > { %v7317_v56 = vmul.f32 %v10848_v5, %v7282_v4  ;;  %vm7323_vm14 = vweird.f32 %v10848_v5  ;;  %vm7334_vm0 = vmor %vm7332_vm15, %vm7333_vm13 }
0x11a1   : > { %v7328_v61 = vmul.f32 %v10846_v35, %v7327_v60  ;;  %7604 = vmatmul.bf16.vlgmr.msrb.gmra.mxu2 %v7491_v44  ;;  %7653 = vmatmul.bf16.vlgmr.msrb.gmra.mxu3 %v7491_v44  ;;  %vm7324_vm3 = vmor %vm7322_vm2, %vm7323_vm14 }
0x11a2   : > { %v7318_v58 = vmul.f32 %v10848_v5, %v7317_v56 }
0x11a3   : > { %v7329_v54 = vmul.f32 0.5, %v7328_v61  ;;  %v7243_v41 = vpop.xlane.xlu2 %7242  ;;  %v7241_v26 = vpop.xlane.xlu1 %7240 }
0x11a4   : > { %v7319_v21 = vmul.f32 0.5, %v7318_v58  ;;  %v7269_v63 = vmul.f32 %v7243_v41, %v15353_v9  ;;  %v7268_v17 = vmul.f32 %v7241_v26, %v15353_v9 }
0x11a5   : > { %v7330_v7 = vsub.f32 1.5, %v7329_v54 }
0x11a6   : > { %v7320_v15 = vsub.f32 1.5, %v7319_v21  ;;  %v7285_v12 = vadd.f32 1e-06, %v7269_v63  ;;  %v7284_v40 = vadd.f32 1e-06, %v7268_v17 }
0x11a7   : > { %v7331_v45 = vmul.f32 %v10846_v35, %v7330_v7 }
0x11a8   : > { %v7321_v18 = vmul.f32 %v10848_v5, %v7320_v15  ;;  %10849 = vrsqrt.f32 %v7285_v12  ;;  %vm7352_vm6 = vweird.f32 %v7285_v12  ;;  %vm7342_vm1 = vweird.f32 %v7284_v40 }
0x11a9   : > { %v7335_v20 = vsel %vm7334_vm0, %v10846_v35, %v7331_v45  ;;  %10851 = vrsqrt.f32 %v7284_v40 }
0x11aa   : > { %v7325_v11 = vsel %vm7324_vm3, %v10848_v5, %v7321_v18  ;;  %v7459_v57 = vmul.f32 %v14836_v43, %v7335_v20 }
0x11ab   : > { %v7458_v19 = vmul.f32 %v14838_v10, %v7325_v11 }
0x11ac   : > { %v7478_v34 = vmul.f32 %v15019_v1, %v7459_v57 }
0x11ad   : > { %v7477_v46 = vmul.f32 %v15019_v1, %v7458_v19 }
0x11ae   : > { %v10850_v27 = vpop.eup %10849 }
0x11af   : > { %v10852_v62 = vpop.eup %10851  ;;  %v7347_v47 = vmul.f32 %v10850_v27, %v7285_v12  ;;  %v7492_v49 = vpack.c.bf16 %v7478_v34, %v7477_v46  ;;  %vm7353_vm4 = vweird.f32 %v10850_v27 }
0x11b0   : > { %v7337_v39 = vmul.f32 %v10852_v62, %v7284_v40  ;;  %vm7343_vm5 = vweird.f32 %v10852_v62  ;;  %vm7354_vm7 = vmor %vm7352_vm6, %vm7353_vm4 }
0x11b1   : > { %v7348_v14 = vmul.f32 %v10850_v27, %v7347_v47  ;;  %7609 = vmatmul.bf16.gmra.mxu2 %v7492_v49  ;;  %7658 = vmatmul.bf16.gmra.mxu3 %v7492_v49  ;;  %vm7344_vm8 = vmor %vm7342_vm1, %vm7343_vm5 }
0x11b2   : > { %v7338_v0 = vmul.f32 %v10852_v62, %v7337_v39 }
0x11b3   : > { %v7349_v52 = vmul.f32 0.5, %v7348_v14  ;;  %v7247_v31 = vpop.xlane.xlu1 %7246  ;;  %v7245_v30 = vpop.xlane.xlu0 %7244 }
0x11b4   : > { %v7339_v53 = vmul.f32 0.5, %v7338_v0  ;;  %v7271_v28 = vmul.f32 %v7247_v31, %v15353_v9  ;;  %v7270_v4 = vmul.f32 %v7245_v30, %v15353_v9 }
0x11b5   : > { %v7350_v37 = vsub.f32 1.5, %v7349_v52 }
0x11b6   : > { %v7340_v13 = vsub.f32 1.5, %v7339_v53  ;;  %v7287_v6 = vadd.f32 1e-06, %v7271_v28  ;;  %v7286_v25 = vadd.f32 1e-06, %v7270_v4 }
0x11b7   : > { %v7351_v48 = vmul.f32 %v10850_v27, %v7350_v37 }
0x11b8   : > { %v7341_v32 = vmul.f32 %v10852_v62, %v7340_v13  ;;  %10853 = vrsqrt.f32 %v7287_v6  ;;  %vm7372_vm11 = vweird.f32 %v7287_v6  ;;  %vm7362_vm13 = vweird.f32 %v7286_v25 }
0x11b9   : > { %v7355_v29 = vsel %vm7354_vm7, %v10850_v27, %v7351_v48  ;;  %10855 = vrsqrt.f32 %v7286_v25 }
0x11ba   : > { %v7345_v36 = vsel %vm7344_vm8, %v10852_v62, %v7341_v32  ;;  %v7461_v35 = vmul.f32 %v14848_v55, %v7355_v29 }
0x11bb   : > { %v7460_v5 = vmul.f32 %v14850_v42, %v7345_v36 }
0x11bc   : > { %v7480_v60 = vmul.f32 %v15019_v1, %v7461_v35 }
0x11bd   : > { %v7479_v44 = vmul.f32 %v15019_v1, %v7460_v5 }
0x11be   : > { %v10854_v56 = vpop.eup %10853 }
0x11bf   : > { %v10856_v61 = vpop.eup %10855  ;;  %v7367_v58 = vmul.f32 %v10854_v56, %v7287_v6  ;;  %v7493_v54 = vpack.c.bf16 %v7480_v60, %v7479_v44  ;;  %vm7373_vm9 = vweird.f32 %v10854_v56 }
0x11c0   : > { %v7357_v41 = vmul.f32 %v10856_v61, %v7286_v25  ;;  %vm7363_vm10 = vweird.f32 %v10856_v61  ;;  %vm7374_vm12 = vmor %vm7372_vm11, %vm7373_vm9 }
0x11c1   : > { %v7368_v26 = vmul.f32 %v10854_v56, %v7367_v58  ;;  %7614 = vmatmul.bf16.gmra.mxu2 %v7493_v54  ;;  %7663 = vmatmul.bf16.gmra.mxu3 %v7493_v54  ;;  %vm7364_vm14 = vmor %vm7362_vm13, %vm7363_vm10 }
0x11c2   : > { %v7358_v21 = vmul.f32 %v10856_v61, %v7357_v41 }
0x11c3   : > { %v7369_v63 = vmul.f32 0.5, %v7368_v26  ;;  %v7251_v17 = vpop.xlane.xlu0 %7250  ;;  %v7249_v7 = vpop.xlane.xlu2 %7248 }
0x11c4   : > { %v7359_v15 = vmul.f32 0.5, %v7358_v21  ;;  %v7273_v12 = vmul.f32 %v7251_v17, %v15353_v9  ;;  %v7272_v40 = vmul.f32 %v7249_v7, %v15353_v9 }
0x11c5   : > { %v7370_v45 = vsub.f32 1.5, %v7369_v63 }
0x11c6   : > { %v7360_v18 = vsub.f32 1.5, %v7359_v15  ;;  %v7289_v20 = vadd.f32 1e-06, %v7273_v12  ;;  %v7288_v11 = vadd.f32 1e-06, %v7272_v40 }
0x11c7   : > { %v7371_v57 = vmul.f32 %v10854_v56, %v7370_v45 }
0x11c8   : > { %v7361_v19 = vmul.f32 %v10856_v61, %v7360_v18  ;;  %10857 = vrsqrt.f32 %v7289_v20  ;;  %vm7392_vm2 = vweird.f32 %v7289_v20  ;;  %vm7382_vm4 = vweird.f32 %v7288_v11 }
0x11c9   : > { %v7375_v34 = vsel %vm7374_vm12, %v10854_v56, %v7371_v57  ;;  %10859 = vrsqrt.f32 %v7288_v11 }
0x11ca   : > { %v7365_v46 = vsel %vm7364_vm14, %v10856_v61, %v7361_v19  ;;  %v7463_v27 = vmul.f32 %v14860_v2, %v7375_v34 }
0x11cb   : > { %v7462_v62 = vmul.f32 %v14862_v38, %v7365_v46  ;;  %v9419_v46 = vld [vmem:[%s15244_s8 + $0xb8] sm:$0xff] }
0x11cc   : > { %v7482_v47 = vmul.f32 %v15019_v1, %v7463_v27  ;;  %v9427_v27 = vld [vmem:[%s15244_s8 + $0xf8] sm:$0xff]  ;;  %7871 = vmatpush.bf16.msrb.mxu0 %v9419_v46  ;;  %v9420_v46 = vld [vmem:[%s15244_s8 + $0xc0] sm:$0xff] }
0x11cd   : > { %v7481_v49 = vmul.f32 %v15019_v1, %v7462_v62  ;;  %7920 = vmatpush.bf16.msrb.mxu1 %v9427_v27 }
0x11ce   : > { %v10858_v39 = vpop.eup %10857 }
0x11cf   : > { %v10860_v14 = vpop.eup %10859  ;;  %v7387_v0 = vmul.f32 %v10858_v39, %v7289_v20  ;;  %v7494_v52 = vpack.c.bf16 %v7482_v47, %v7481_v49  ;;  %vm7393_vm15 = vweird.f32 %v10858_v39 }
0x11d0   : > { %v7377_v31 = vmul.f32 %v10860_v14, %v7288_v11  ;;  %vm7383_vm0 = vweird.f32 %v10860_v14  ;;  %vm7394_vm3 = vmor %vm7392_vm2, %vm7393_vm15 }
0x11d1   : > { %v7388_v30 = vmul.f32 %v10858_v39, %v7387_v0  ;;  %7619 = vmatmul.bf16.gmra.mxu2 %v7494_v52  ;;  %7668 = vmatmul.bf16.gmra.mxu3 %v7494_v52  ;;  %vm7384_vm5 = vmor %vm7382_vm4, %vm7383_vm0 }
0x11d2   : > { %v7378_v53 = vmul.f32 %v10860_v14, %v7377_v31 }
0x11d3   : > { %v7389_v28 = vmul.f32 0.5, %v7388_v30  ;;  %v7255_v4 = vpop.xlane.xlu2 %7254  ;;  %v7253_v37 = vpop.xlane.xlu1 %7252  ;;  %v9418_v30 = vld [vmem:[%s15244_s8 + $0xb0] sm:$0xff] }
0x11d4   : > { %v7379_v13 = vmul.f32 0.5, %v7378_v53  ;;  %v7275_v6 = vmul.f32 %v7255_v4, %v15353_v9  ;;  %v7274_v25 = vmul.f32 %v7253_v37, %v15353_v9  ;;  %v9426_v53 = vld [vmem:[%s15244_s8 + $0xf0] sm:$0xff]  ;;  %7872 = vmatpush.bf16.msrb.mxu0 %v9418_v30  ;;  %v9417_v37 = vld [vmem:[%s15244_s8 + $0xa8] sm:$0xff] }
0x11d5   : > { %v7390_v48 = vsub.f32 1.5, %v7389_v28  ;;  %7921 = vmatpush.bf16.msrb.mxu1 %v9426_v53 }
0x11d6   : > { %v7380_v32 = vsub.f32 1.5, %v7379_v13  ;;  %v7291_v29 = vadd.f32 1e-06, %v7275_v6  ;;  %v7290_v36 = vadd.f32 1e-06, %v7274_v25  ;;  %v9425_v13 = vld [vmem:[%s15244_s8 + $0xe8] sm:$0xff] }
0x11d7   : > { %v7391_v35 = vmul.f32 %v10858_v39, %v7390_v48  ;;  %v9416_v6 = vld [vmem:[%s15244_s8 + $0xa0] sm:$0xff] }
0x11d8   : > { %v7381_v5 = vmul.f32 %v10860_v14, %v7380_v32  ;;  %10861 = vrsqrt.f32 %v7291_v29  ;;  %vm7412_vm1 = vweird.f32 %v7291_v29  ;;  %vm7402_vm9 = vweird.f32 %v7290_v36  ;;  %7873 = vmatpush.bf16.msrb.mxu0 %v9417_v37  ;;  %v9424_v25 = vld [vmem:[%s15244_s8 + $0xe0] sm:$0xff] }
0x11d9   : > { %v7395_v60 = vsel %vm7394_vm3, %v10858_v39, %v7391_v35  ;;  %10863 = vrsqrt.f32 %v7290_v36  ;;  %7922 = vmatpush.bf16.msrb.mxu1 %v9425_v13  ;;  %v9415_v35 = vld [vmem:[%s15244_s8 + $0x98] sm:$0xff] }
0x11da   : > { %v7385_v44 = vsel %vm7384_vm5, %v10860_v14, %v7381_v5  ;;  %v7465_v56 = vmul.f32 %v14872_v16, %v7395_v60  ;;  %v9423_v5 = vld [vmem:[%s15244_s8 + $0xd8] sm:$0xff] }
0x11db   : > { %v7464_v61 = vmul.f32 %v14874_v24, %v7385_v44 }
0x11dc   : > { %v7484_v58 = vmul.f32 %v15019_v1, %v7465_v56  ;;  %7874 = vmatpush.bf16.msrb.mxu0 %v9416_v6 }
0x11dd   : > { %v7483_v54 = vmul.f32 %v15019_v1, %v7464_v61  ;;  %7923 = vmatpush.bf16.msrb.mxu1 %v9424_v25 }
0x11de   : > { %v10862_v41 = vpop.eup %10861 }
0x11df   : > { %v10864_v26 = vpop.eup %10863  ;;  %v7407_v21 = vmul.f32 %v10862_v41, %v7291_v29  ;;  %v7495_v63 = vpack.c.bf16 %v7484_v58, %v7483_v54  ;;  %vm7413_vm6 = vweird.f32 %v10862_v41  ;;  %v9414_v58 = vld [vmem:[%s15244_s8 + $0x90] sm:$0xff] }
0x11e0   : > { %v7397_v17 = vmul.f32 %v10864_v26, %v7290_v36  ;;  %vm7403_vm7 = vweird.f32 %v10864_v26  ;;  %vm7414_vm8 = vmor %vm7412_vm1, %vm7413_vm6  ;;  %7875 = vmatpush.bf16.msrb.mxu0 %v9415_v35  ;;  %v9422_v54 = vld [vmem:[%s15244_s8 + $0xd0] sm:$0xff]  ;;  %vm8021_vm1 = vcmask 1047559  }
0x11e1   : > { %v7408_v7 = vmul.f32 %v10862_v41, %v7407_v21  ;;  %7624 = vmatmul.bf16.gmra.mxu2 %v7495_v63  ;;  %7673 = vmatmul.bf16.gmra.mxu3 %v7495_v63  ;;  %vm7404_vm10 = vmor %vm7402_vm9, %vm7403_vm7 }
0x11e2   : > { %v7398_v15 = vmul.f32 %v10864_v26, %v7397_v17  ;;  %7924 = vmatpush.bf16.msrb.mxu1 %v9423_v5  ;;  %v9413_v17 = vld [vmem:[%s15244_s8 + $0x88] sm:$0xff] }
0x11e3   : > { %v7409_v12 = vmul.f32 0.5, %v7408_v7  ;;  %v9421_v7 = vld [vmem:[%s15244_s8 + $0xc8] sm:$0xff] }
0x11e4   : > { %v7399_v40 = vmul.f32 0.5, %v7398_v15  ;;  %7876 = vmatpush.bf16.msrb.mxu0 %v9414_v58 }
0x11e5   : > { %v7410_v45 = vsub.f32 1.5, %v7409_v12 }
0x11e6   : > { %v7400_v18 = vsub.f32 1.5, %v7399_v40  ;;  %7925 = vmatpush.bf16.msrb.mxu1 %v9422_v54 }
0x11e7   : > { %v7411_v20 = vmul.f32 %v10862_v41, %v7410_v45 }
0x11e8   : > { %v7401_v11 = vmul.f32 %v10864_v26, %v7400_v18  ;;  %7877 = vmatpush.bf16.msrb.mxu0 %v9413_v17 }
0x11e9   : > { %v7415_v57 = vsel %vm7414_vm8, %v10862_v41, %v7411_v20 }
0x11ea   : > { %v7405_v19 = vsel %vm7404_vm10, %v10864_v26, %v7401_v11  ;;  %v7467_v34 = vmul.f32 %v14884_v51, %v7415_v57  ;;  %7926 = vmatpush.bf16.msrb.mxu1 %v9421_v7 }
0x11eb   : > { %v7466_v62 = vmul.f32 %v14886_v23, %v7405_v19 }
0x11ec   : > { %v7486_v47 = vmul.f32 %v15019_v1, %v7467_v34  ;;  %v9412_v34 = vld [vmem:[%s15244_s8 + $0x80] sm:$0xff] }
0x11ed   : > { %v7485_v49 = vmul.f32 %v15019_v1, %v7466_v62  ;;  %7878 = vmatpush.bf16.msrb.mxu0 %v9412_v34 }
0x11ee   : > { %7927 = vmatpush.bf16.msrb.mxu1 %v9420_v46 }
0x11ef   : > { %v7496_v39 = vpack.c.bf16 %v7486_v47, %v7485_v49 }
0x11f1   : > { %7629 = vmatmul.bf16.gmra.mxu2 %v7496_v39  ;;  %7678 = vmatmul.bf16.gmra.mxu3 %v7496_v39 }
0x11f3   : > { %v7259_v14 = vpop.xlane.xlu1 %7258  ;;  %v7257_v0 = vpop.xlane.xlu0 %7256 }
0x11f4   : > { %v7277_v52 = vmul.f32 %v7259_v14, %v15353_v9  ;;  %v7276_v31 = vmul.f32 %v7257_v0, %v15353_v9 }
0x11f6   : > { %v7293_v28 = vadd.f32 1e-06, %v7277_v52  ;;  %v7292_v4 = vadd.f32 1e-06, %v7276_v31 }
0x11f8   : > { %10865 = vrsqrt.f32 %v7293_v28  ;;  %vm7432_vm13 = vweird.f32 %v7293_v28  ;;  %vm7422_vm15 = vweird.f32 %v7292_v4 }
0x11f9   : > { %10867 = vrsqrt.f32 %v7292_v4 }
0x11fe   : > { %v10866_v48 = vpop.eup %10865 }
0x11ff   : > { %v10868_v32 = vpop.eup %10867  ;;  %v7427_v29 = vmul.f32 %v10866_v48, %v7293_v28  ;;  %vm7433_vm11 = vweird.f32 %v10866_v48 }
0x1200   : > { %v7417_v36 = vmul.f32 %v10868_v32, %v7292_v4  ;;  %vm7423_vm12 = vweird.f32 %v10868_v32  ;;  %vm7434_vm14 = vmor %vm7432_vm13, %vm7433_vm11 }
0x1201   : > { %v7428_v60 = vmul.f32 %v10866_v48, %v7427_v29  ;;  %vm7424_vm0 = vmor %vm7422_vm15, %vm7423_vm12 }
0x1202   : > { %v7418_v44 = vmul.f32 %v10868_v32, %v7417_v36 }
0x1203   : > { %v7429_v56 = vmul.f32 0.5, %v7428_v60 }
0x1204   : > { %v7419_v61 = vmul.f32 0.5, %v7418_v44 }
0x1205   : > { %v7430_v41 = vsub.f32 1.5, %v7429_v56 }
0x1206   : > { %v7420_v26 = vsub.f32 1.5, %v7419_v61 }
0x1207   : > { %v7431_v21 = vmul.f32 %v10866_v48, %v7430_v41 }
0x1208   : > { %v7421_v63 = vmul.f32 %v10868_v32, %v7420_v26 }
0x1209   : > { %v7435_v15 = vsel %vm7434_vm14, %v10866_v48, %v7431_v21 }
0x120a   : > { %v7425_v12 = vsel %vm7424_vm0, %v10868_v32, %v7421_v63  ;;  %v7469_v18 = vmul.f32 %v14989_v22, %v7435_v15 }
0x120b   : > { %v7263_v40 = vpop.xlane.xlu0 %7262  ;;  %v7261_v45 = vpop.xlane.xlu2 %7260  ;;  %v7468_v57 = vmul.f32 %v14991_v59, %v7425_v12 }
0x120c   : > { %v7279_v20 = vmul.f32 %v7263_v40, %v15353_v9  ;;  %v7278_v11 = vmul.f32 %v7261_v45, %v15353_v9  ;;  %v7488_v19 = vmul.f32 %v15019_v1, %v7469_v18 }
0x120d   : > { %v7487_v47 = vmul.f32 %v15019_v1, %v7468_v57 }
0x120e   : > { %v7295_v27 = vadd.f32 1e-06, %v7279_v20  ;;  %v7294_v62 = vadd.f32 1e-06, %v7278_v11 }
0x120f   : > { %v7497_v49 = vpack.c.bf16 %v7488_v19, %v7487_v47 }
0x1210   : > { %10869 = vrsqrt.f32 %v7295_v27  ;;  %vm7452_vm4 = vweird.f32 %v7295_v27  ;;  %vm7442_vm6 = vweird.f32 %v7294_v62 }
0x1211   : > { %10871 = vrsqrt.f32 %v7294_v62  ;;  %7634 = vmatmul.bf16.gmra.mxu2 %v7497_v49  ;;  %7683 = vmatmul.bf16.gmra.mxu3 %v7497_v49 }
0x1216   : > { %v10870_v39 = vpop.eup %10869 }
0x1217   : > { %v10872_v14 = vpop.eup %10871  ;;  %v7447_v0 = vmul.f32 %v10870_v39, %v7295_v27  ;;  %vm7453_vm2 = vweird.f32 %v10870_v39 }
0x1218   : > { %v7437_v52 = vmul.f32 %v10872_v14, %v7294_v62  ;;  %vm7443_vm3 = vweird.f32 %v10872_v14  ;;  %vm7454_vm5 = vmor %vm7452_vm4, %vm7453_vm2 }
0x1219   : > { %v7448_v31 = vmul.f32 %v10870_v39, %v7447_v0  ;;  %vm7444_vm7 = vmor %vm7442_vm6, %vm7443_vm3 }
0x121a   : > { %v7438_v30 = vmul.f32 %v10872_v14, %v7437_v52 }
0x121b   : > { %v7449_v53 = vmul.f32 0.5, %v7448_v31 }
0x121c   : > { %v7439_v28 = vmul.f32 0.5, %v7438_v30 }
0x121d   : > { %v7450_v4 = vsub.f32 1.5, %v7449_v53 }
0x121e   : > { %v7440_v37 = vsub.f32 1.5, %v7439_v28 }
0x121f   : > { %v7451_v13 = vmul.f32 %v10870_v39, %v7450_v4 }
0x1220   : > { %v7441_v6 = vmul.f32 %v10872_v14, %v7440_v37 }
0x1221   : > { %v7455_v25 = vsel %vm7454_vm5, %v10870_v39, %v7451_v13 }
0x1222   : > { %v7445_v48 = vsel %vm7444_vm7, %v10872_v14, %v7441_v6  ;;  %v7471_v32 = vmul.f32 %v15006_v50, %v7455_v25 }
0x1223   : > { %v7470_v29 = vmul.f32 %v15008_v33, %v7445_v48 }
0x1224   : > { %v7490_v36 = vmul.f32 %v15019_v1, %v7471_v32  ;;  %v7605_v35 = vpop.f32.mrf.mxu2  ;;  %v7654_v5 = vpop.f32.mrf.mxu3 }
0x1225   : > { %v7489_v60 = vmul.f32 %v15019_v1, %v7470_v29  ;;  %v7694_v58 = vmax.f32 %v7605_v35, 0.0  ;;  %v7695_v54 = vmax.f32 %v7654_v5, 0.0 }
0x1227   : > { %v7498_v44 = vpack.c.bf16 %v7490_v36, %v7489_v60 }
0x1229   : > { %7639 = vmatmul.bf16.gmra.mxu2 %v7498_v44  ;;  %7688 = vmatmul.bf16.gmra.mxu3 %v7498_v44 }
0x122c   : > { %v7607_v56 = vpop.f32.mrf.mxu2  ;;  %v7656_v61 = vpop.f32.mrf.mxu3 }
0x122d   : > { %v7696_v41 = vmax.f32 %v7607_v56, 0.0  ;;  %v7697_v26 = vmax.f32 %v7656_v61, 0.0 }
0x122f   : > { %v7726_v21 = vpack.c.bf16 %v7696_v41, %v7694_v58  ;;  %v7727_v63 = vpack.c.bf16 %v7697_v26, %v7695_v54 }
0x1231   : > { %7879 = vmatmul.bf16.vlgmr.msrb.gmra.mxu0 %v7726_v21  ;;  %7928 = vmatmul.bf16.vlgmr.msrb.gmra.mxu1 %v7727_v63 }
0x1234   : > { %v7610_v17 = vpop.f32.mrf.mxu2  ;;  %v7659_v7 = vpop.f32.mrf.mxu3 }
0x1235   : > { %v7698_v40 = vmax.f32 %v7610_v17, 0.0  ;;  %v7699_v45 = vmax.f32 %v7659_v7, 0.0 }
0x123c   : > { %v7612_v15 = vpop.f32.mrf.mxu2  ;;  %v7661_v12 = vpop.f32.mrf.mxu3 }
0x123d   : > { %v7700_v1 = vmax.f32 %v7612_v15, 0.0  ;;  %v7701_v18 = vmax.f32 %v7661_v12, 0.0 }
0x123f   : > { %v7728_v20 = vpack.c.bf16 %v7700_v1, %v7698_v40  ;;  %v7729_v11 = vpack.c.bf16 %v7701_v18, %v7699_v45 }
0x1241   : > { %7884 = vmatmul.bf16.gmra.mxu0 %v7728_v20  ;;  %7933 = vmatmul.bf16.gmra.mxu1 %v7729_v11 }
0x1244   : > { %v7615_v57 = vpop.f32.mrf.mxu2  ;;  %v7664_v19 = vpop.f32.mrf.mxu3 }
0x1245   : > { %v7702_v27 = vmax.f32 %v7615_v57, 0.0  ;;  %v7703_v62 = vmax.f32 %v7664_v19, 0.0 }
0x124c   : > { %v7617_v34 = vpop.f32.mrf.mxu2  ;;  %v7666_v46 = vpop.f32.mrf.mxu3 }
0x124d   : > { %v7704_v47 = vmax.f32 %v7617_v34, 0.0  ;;  %v7705_v49 = vmax.f32 %v7666_v46, 0.0 }
0x124f   : > { %v7730_v39 = vpack.c.bf16 %v7704_v47, %v7702_v27  ;;  %v7731_v14 = vpack.c.bf16 %v7705_v49, %v7703_v62 }
0x1251   : > { %7889 = vmatmul.bf16.gmra.mxu0 %v7730_v39  ;;  %7938 = vmatmul.bf16.gmra.mxu1 %v7731_v14 }
0x1254   : > { %v7620_v0 = vpop.f32.mrf.mxu2  ;;  %v7669_v52 = vpop.f32.mrf.mxu3 }
0x1255   : > { %v7706_v53 = vmax.f32 %v7620_v0, 0.0  ;;  %v7707_v28 = vmax.f32 %v7669_v52, 0.0 }
0x125c   : > { %v7622_v31 = vpop.f32.mrf.mxu2  ;;  %v7671_v30 = vpop.f32.mrf.mxu3 }
0x125d   : > { %v7708_v4 = vmax.f32 %v7622_v31, 0.0  ;;  %v7709_v37 = vmax.f32 %v7671_v30, 0.0 }
0x125f   : > { %v7732_v13 = vpack.c.bf16 %v7708_v4, %v7706_v53  ;;  %v7733_v6 = vpack.c.bf16 %v7709_v37, %v7707_v28 }
0x1261   : > { %7894 = vmatmul.bf16.gmra.mxu0 %v7732_v13  ;;  %7943 = vmatmul.bf16.gmra.mxu1 %v7733_v6 }
0x1264   : > { %v7625_v25 = vpop.f32.mrf.mxu2  ;;  %v7674_v48 = vpop.f32.mrf.mxu3 }
0x1265   : > { %v7710_v36 = vmax.f32 %v7625_v25, 0.0  ;;  %v7711_v35 = vmax.f32 %v7674_v48, 0.0 }
0x126c   : > { %v7627_v32 = vpop.f32.mrf.mxu2  ;;  %v7676_v29 = vpop.f32.mrf.mxu3 }
0x126d   : > { %v7712_v5 = vmax.f32 %v7627_v32, 0.0  ;;  %v7713_v60 = vmax.f32 %v7676_v29, 0.0 }
0x126f   : > { %v7734_v44 = vpack.c.bf16 %v7712_v5, %v7710_v36  ;;  %v7735_v56 = vpack.c.bf16 %v7713_v60, %v7711_v35 }
0x1271   : > { %7899 = vmatmul.bf16.gmra.mxu0 %v7734_v44  ;;  %7948 = vmatmul.bf16.gmra.mxu1 %v7735_v56 }
0x1274   : > { %v7630_v61 = vpop.f32.mrf.mxu2  ;;  %v7679_v58 = vpop.f32.mrf.mxu3 }
0x1275   : > { %v7714_v26 = vmax.f32 %v7630_v61, 0.0  ;;  %v7715_v21 = vmax.f32 %v7679_v58, 0.0 }
0x127c   : > { %v7632_v54 = vpop.f32.mrf.mxu2  ;;  %v7681_v41 = vpop.f32.mrf.mxu3 }
0x127d   : > { %v7716_v63 = vmax.f32 %v7632_v54, 0.0  ;;  %v7717_v17 = vmax.f32 %v7681_v41, 0.0 }
0x127f   : > { %v7736_v7 = vpack.c.bf16 %v7716_v63, %v7714_v26  ;;  %v7737_v15 = vpack.c.bf16 %v7717_v17, %v7715_v21 }
0x1281   : > { %7904 = vmatmul.bf16.gmra.mxu0 %v7736_v7  ;;  %7953 = vmatmul.bf16.gmra.mxu1 %v7737_v15 }
0x1294   : > { %v7635_v12 = vpop.f32.mrf.mxu2  ;;  %v7684_v40 = vpop.f32.mrf.mxu3 }
0x1295   : > { %v7718_v18 = vmax.f32 %v7635_v12, 0.0  ;;  %v7719_v20 = vmax.f32 %v7684_v40, 0.0 }
0x129c   : > { %v7637_v45 = vpop.f32.mrf.mxu2  ;;  %v7686_v1 = vpop.f32.mrf.mxu3 }
0x129d   : > { %v7720_v11 = vmax.f32 %v7637_v45, 0.0  ;;  %v7721_v57 = vmax.f32 %v7686_v1, 0.0 }
0x129f   : > { %v7738_v19 = vpack.c.bf16 %v7720_v11, %v7718_v18  ;;  %v7739_v34 = vpack.c.bf16 %v7721_v57, %v7719_v20 }
0x12a1   : > { %7909 = vmatmul.bf16.gmra.mxu0 %v7738_v19  ;;  %7958 = vmatmul.bf16.gmra.mxu1 %v7739_v34 }
0x12ac   : > { %v7640_v46 = vpop.f32.mrf.mxu2  ;;  %v7689_v27 = vpop.f32.mrf.mxu3 }
0x12ad   : > { %v7722_v14 = vmax.f32 %v7640_v46, 0.0  ;;  %v7723_v0 = vmax.f32 %v7689_v27, 0.0 }
0x12ae   : > { %v7880_v62 = vpop.f32.mrf.mxu0  ;;  %v7929_v47 = vpop.f32.mrf.mxu1 }
0x12af   : > { %v7930_v30 = vadd.f32 %v7929_v47, %v7880_v62 }
0x12b1   : > { %v7969_v6 = vadd.f32 %v14826_v3, %v7930_v30 }
0x12b4   : > { %v7642_v49 = vpop.f32.mrf.mxu2  ;;  %v7691_v39 = vpop.f32.mrf.mxu3 }
0x12b5   : > { %v7724_v52 = vmax.f32 %v7642_v49, 0.0  ;;  %v7725_v31 = vmax.f32 %v7691_v39, 0.0 }
0x12b6   : > { %v7882_v4 = vpop.f32.mrf.mxu0  ;;  %v7931_v37 = vpop.f32.mrf.mxu1 }
0x12b7   : > { %v7740_v53 = vpack.c.bf16 %v7724_v52, %v7722_v14  ;;  %v7741_v28 = vpack.c.bf16 %v7725_v31, %v7723_v0  ;;  %v7932_v13 = vadd.f32 %v7931_v37, %v7882_v4 }
0x12b9   : > { %7914 = vmatmul.bf16.gmra.mxu0 %v7740_v53  ;;  %7963 = vmatmul.bf16.gmra.mxu1 %v7741_v28  ;;  %v7970_v25 = vadd.f32 %v14824_v8, %v7932_v13 }
0x12bb   : > { %v9999_v48 = vpack.c.bf16 %v7970_v25, %v7969_v6  ;;  %v8056_v6 = vld [vmem:[%s15246_s10 + $0x68] sm:$0xff] }
0x12bd   : > { %10000 = vst [vmem:[#allocation2] sm:$0xff] %v9999_v48   ;;  %v8054_v48 = vld [vmem:[%s15246_s10 + $0x58] sm:$0xff] }
0x12be   : > { %v7885_v32 = vpop.f32.mrf.mxu0  ;;  %v7934_v29 = vpop.f32.mrf.mxu1 }
0x12bf   : > { %v7935_v36 = vadd.f32 %v7934_v29, %v7885_v32 }
0x12c1   : > { %v7971_v44 = vadd.f32 %v14838_v10, %v7935_v36 }
0x12c6   : > { %v7887_v35 = vpop.f32.mrf.mxu0  ;;  %v7936_v5 = vpop.f32.mrf.mxu1 }
0x12c7   : > { %v7937_v60 = vadd.f32 %v7936_v5, %v7887_v35 }
0x12c9   : > { %v7972_v56 = vadd.f32 %v14836_v43, %v7937_v60 }
0x12cb   : > { %v10004_v61 = vpack.c.bf16 %v7972_v56, %v7971_v44 }
0x12cd   : > { %10161 = vst [vmem:[#allocation2 + $0x8] sm:$0xff] %v10004_v61  }
0x12ce   : > { %v7890_v58 = vpop.f32.mrf.mxu0  ;;  %v7939_v54 = vpop.f32.mrf.mxu1 }
0x12cf   : > { %v7940_v41 = vadd.f32 %v7939_v54, %v7890_v58 }
0x12d1   : > { %v7973_v21 = vadd.f32 %v14850_v42, %v7940_v41  ;;  %v8053_v41 = vld [vmem:[%s15246_s10 + $0x50] sm:$0xff] }
0x12d6   : > { %v7892_v3 = vpop.f32.mrf.mxu0  ;;  %v7941_v26 = vpop.f32.mrf.mxu1 }
0x12d7   : > { %v7942_v8 = vadd.f32 %v7941_v26, %v7892_v3  ;;  %v8052_v3 = vld [vmem:[%s15246_s10 + $0x48] sm:$0xff]  ;;  %v8049_v26 = vld [vmem:[%s15246_s10 + $0x30] sm:$0xff] }
0x12d9   : > { %v7974_v63 = vadd.f32 %v14848_v55, %v7942_v8  ;;  %v8048_v8 = vld [vmem:[%s15246_s10 + $0x28] sm:$0xff] }
0x12db   : > { %v10009_v17 = vpack.c.bf16 %v7974_v63, %v7973_v21  ;;  %v8047_v21 = vld [vmem:[%s15246_s10 + $0x20] sm:$0xff]  ;;  %v8046_v63 = vld [vmem:[%s15246_s10 + $0x18] sm:$0xff] }
0x12dd   : > { %10162 = vst [vmem:[#allocation2 + $0x10] sm:$0xff] %v10009_v17   ;;  %v8045_v17 = vld [vmem:[%s15246_s10 + $0x10] sm:$0xff] }
0x12de   : > { %v7895_v7 = vpop.f32.mrf.mxu0  ;;  %v7944_v15 = vpop.f32.mrf.mxu1 }
0x12df   : > { %v7945_v12 = vadd.f32 %v7944_v15, %v7895_v7  ;;  %v8044_v7 = vld [vmem:[%s15246_s10 + $0x8] sm:$0xff]  ;;  %v8043_v15 = vld [vmem:[%s15246_s10] sm:$0xff] }
0x12e1   : > { %v7975_v45 = vadd.f32 %v14862_v38, %v7945_v12 }
0x12e6   : > { %v7897_v10 = vpop.f32.mrf.mxu0  ;;  %v7946_v40 = vpop.f32.mrf.mxu1 }
0x12e7   : > { %v7947_v43 = vadd.f32 %v7946_v40, %v7897_v10 }
0x12e9   : > { %v7976_v1 = vadd.f32 %v14860_v2, %v7947_v43 }
0x12eb   : > { %v10014_v18 = vpack.c.bf16 %v7976_v1, %v7975_v45 }
0x12ed   : > { %10163 = vst [vmem:[#allocation2 + $0x18] sm:$0xff] %v10014_v18  }
0x12ee   : > { %v7900_v20 = vpop.f32.mrf.mxu0  ;;  %v7949_v11 = vpop.f32.mrf.mxu1 }
0x12ef   : > { %v7950_v57 = vadd.f32 %v7949_v11, %v7900_v20 }
0x12f1   : > { %v7977_v34 = vadd.f32 %v14874_v24, %v7950_v57  ;;  %v10230_v57 = vld [vmem:[%s15245_s9] ss:$0 sm:$0xff] }
0x12f6   : > { %v7902_v42 = vpop.f32.mrf.mxu0  ;;  %v7951_v19 = vpop.f32.mrf.mxu1 }
0x12f7   : > { %v7952_v55 = vadd.f32 %v7951_v19, %v7902_v42 }
0x12f9   : > { %v7978_v46 = vadd.f32 %v14872_v16, %v7952_v55 }
0x12fb   : > { %v10019_v27 = vpack.c.bf16 %v7978_v46, %v7977_v34 }
0x12fd   : > { %10164 = vst [vmem:[#allocation2 + $0x20] sm:$0xff] %v10019_v27  }
0x12fe   : > { %v7905_v62 = vpop.f32.mrf.mxu0  ;;  %v7954_v47 = vpop.f32.mrf.mxu1 }
0x12ff   : > { %v7955_v49 = vadd.f32 %v7954_v47, %v7905_v62 }
0x1301   : > { %v7979_v14 = vadd.f32 %v14886_v23, %v7955_v49  ;;  %v8058_v23 = vld [vmem:[%s15246_s10 + $0x78] sm:$0xff] }
0x1302   : > { %8063 = vmatpush.msra.mxu2 %v8058_v23 }
0x1306   : > { %v7907_v38 = vpop.f32.mrf.mxu0  ;;  %v7956_v39 = vpop.f32.mrf.mxu1 }
0x1307   : > { %v7957_v2 = vadd.f32 %v7956_v39, %v7907_v38 }
0x1309   : > { %v7980_v0 = vadd.f32 %v14884_v51, %v7957_v2  ;;  %v8057_v51 = vld [vmem:[%s15246_s10 + $0x70] sm:$0xff] }
0x130a   : > { %8064 = vmatpush.msra.mxu2 %v8057_v51 }
0x130b   : > { %v10024_v52 = vpack.c.bf16 %v7980_v0, %v7979_v14 }
0x130c   : > { %8065 = vmatpush.msra.mxu2 %v8056_v6 }
0x130d   : > { %10165 = vst [vmem:[#allocation2 + $0x28] sm:$0xff] %v10024_v52  }
0x131e   : > { %v7910_v31 = vpop.f32.mrf.mxu0  ;;  %v7959_v30 = vpop.f32.mrf.mxu1 }
0x131f   : > { %v7960_v53 = vadd.f32 %v7959_v30, %v7910_v31 }
0x1321   : > { %v7981_v4 = vadd.f32 %v14991_v59, %v7960_v53 }
0x1326   : > { %v7912_v24 = vpop.f32.mrf.mxu0  ;;  %v7961_v28 = vpop.f32.mrf.mxu1 }
0x1327   : > { %v7962_v16 = vadd.f32 %v7961_v28, %v7912_v24 }
0x1329   : > { %v7982_v37 = vadd.f32 %v14989_v22, %v7962_v16  ;;  %v8055_v22 = vld [vmem:[%s15246_s10 + $0x60] sm:$0xff] }
0x132a   : > { %8066 = vmatpush.msra.mxu2 %v8055_v22 }
0x132b   : > { %v10029_v13 = vpack.c.bf16 %v7982_v37, %v7981_v4 }
0x132c   : > { %8067 = vmatpush.msra.mxu2 %v8054_v48 }
0x132d   : > { %10166 = vst [vmem:[#allocation2 + $0x30] sm:$0xff] %v10029_v13  }
0x132e   : > { %8068 = vmatpush.msra.mxu2 %v8053_v41 }
0x1330   : > { %8069 = vmatpush.msra.mxu2 %v8052_v3 }
0x1336   : > { %v7915_v25 = vpop.f32.mrf.mxu0  ;;  %v7964_v59 = vpop.f32.mrf.mxu1 }
0x1337   : > { %v7965_v32 = vadd.f32 %v7964_v59, %v7915_v25 }
0x1339   : > { %v7983_v5 = vadd.f32 %v15008_v33, %v7965_v32  ;;  %v8050_v33 = vld [vmem:[%s15246_s10 + $0x38] sm:$0xff] }
0x133e   : > { %v7917_v29 = vpop.f32.mrf.mxu0  ;;  %v7966_v36 = vpop.f32.mrf.mxu1 }
0x133f   : > { %v7967_v35 = vadd.f32 %v7966_v36, %v7917_v29 }
0x1341   : > { %v7984_v60 = vadd.f32 %v15006_v50, %v7967_v35  ;;  %v8051_v50 = vld [vmem:[%s15246_s10 + $0x40] sm:$0xff] }
0x1342   : > { %8070 = vmatpush.msra.mxu2 %v8051_v50 }
0x1343   : > { %v10034_v44 = vpack.c.bf16 %v7984_v60, %v7983_v5 }
0x1344   : > { %8071 = vmatpush.msra.mxu2 %v8050_v33 }
0x1345   : > { %10167 = vst [vmem:[#allocation2 + $0x38] sm:$0xff] %v10034_v44  }
0x1346   : > { %8072 = vmatpush.msra.mxu2 %v8049_v26 }
0x1348   : > { %8073 = vmatpush.msra.mxu2 %v8048_v8 }
0x134a   : > { %8074 = vmatpush.msra.mxu2 %v8047_v21 }
0x134c   : > { %v8017_v56 = vld [vmem:[#allocation2 + $0x3c] sm:$0x8]  ;;  %8075 = vmatpush.msra.mxu2 %v8046_v63 }
0x134d   : > { %v8018_v61 = vunpack.c.l.bf16 %v8017_v56 }
0x134e   : > { %8076 = vmatpush.msra.mxu2 %v8045_v17 }
0x134f   : > { %v8020_v58 = vmul.f32 %v8018_v61, %v8018_v61 }
0x1350   : > { %8077 = vmatpush.msra.mxu2 %v8044_v7 }
0x1351   : > { %v8022_v54 = vsel %vm8021_vm1, %v8020_v58, 0.0 }
0x1352   : > { %8023 = vadd.xlane.f32.xlu1 %v8022_v54  ;;  %8078 = vmatpush.msra.mxu2 %v8043_v15 }
0x13c5   : > { %v8024_v12 = vpop.xlane.xlu1 %8023 }
0x13c6   : > { %v8025_v10 = vmul.f32 %v8024_v12, %v15353_v9 }
0x13c8   : > { %v8026_v40 = vadd.f32 1e-06, %v8025_v10 }
0x13ca   : > { %10873 = vrsqrt.f32 %v8026_v40  ;;  %vm8033_vm9 = vweird.f32 %v8026_v40 }
0x13d0   : > { %v10874_v43 = vpop.eup %10873 }
0x13d1   : > { %v8028_v45 = vmul.f32 %v10874_v43, %v8026_v40  ;;  %vm8034_vm8 = vweird.f32 %v10874_v43 }
0x13d2   : > { %vm8035_vm10 = vmor %vm8033_vm9, %vm8034_vm8 }
0x13d3   : > { %v8029_v1 = vmul.f32 %v10874_v43, %v8028_v45 }
0x13d5   : > { %v8030_v18 = vmul.f32 0.5, %v8029_v1 }
0x13d7   : > { %v8031_v20 = vsub.f32 1.5, %v8030_v18 }
0x13d9   : > { %v8032_v11 = vmul.f32 %v10874_v43, %v8031_v20 }
0x13db   : > { %v8036_v9 = vsel %vm8035_vm10, %v10874_v43, %v8032_v11 }
0x13dc   : > { %v8037_v42 = vmul.f32 %v8036_v9, %v8018_v61 }
0x13de   : > { %v8041_v19 = vmul.f32 %v10230_v57, %v8037_v42 }
0x13e0   : > { %v8061_v55 = vrot.slane %v8041_v19, 7  ;;  %8042 = vst [vmem:[%s448_s15 - $0x7] sm:$0x80] %v8041_v19 }
0x13e2   : > { %8079 = vmatmul.f32.vlgmr.msra.gmra.mxu2 %v8061_v55 }
0x13e3   : > { %10902 = shalt.err (!%p10899_p4)
}
0x13e4   : > { %10178 = dma.vmem_to_hbm [thread:$0]  (%p11083_p5), %s8100_s17, 16, %s8102_s21, %s8085_s24   ;;  %v8059_v34 = vld [vmem:[%s15247_s11] sm:$0x1] }
0x13e5   : > { %s8110_s1 = scalar_lea.hbm %s15249_s13, %s11066_s29  ;;  %s454_s3 = scalar_lea.vmem [#allocation6], %s15182_s22 }
0x13e6   : > { %s8112_s2 = sshll.u32 %s454_s3, 4  ;;  %s8114_s4 = sshll.u32 %s8110_s1, 4  ;;  %s8113_s2 = int_to_ptr.vmem [resolvable:$true] %s8112_s2  ;;  %s8115_s4 = int_to_ptr.hbm [resolvable:$true] %s8114_s4 }
0x13e7   : > { %s8089_s20 = scalar_lea.sflag [#allocation7], %s15182_s22  ;;  %s10917_s30 = sshra.s32 %s8115_s4, 4  ;;  %s10918_s30 = int_to_ptr.hbm [resolvable:$true] %s10917_s30 }
0x13e8   : > { %s10919_s17 = scalar_lea.hbm %s10918_s30, 1  ;;  %s10923_s24 = scalar_lea.hbm %s15249_s13, 2 }
0x13e9   : > { %p10920_p7 = scmp.ne.s32.totalorder %s10918_s30, %s10919_s17  ;;  %p10924_p10 = scmp.lt.s32.totalorder %s10918_s30, %s15249_s13 }
0x13ea   : > { %p10925_p11 = scmp.lt.s32.totalorder %s10923_s24, %s10919_s17 }
0x13eb   : > { %p10921_p8 = pnand %p10920_p7, %p11083_p5 }
0x13ec   : > { %p10926_p12 = por %p10925_p11, %p10924_p10 }
0x13ed   : > { %p10922_p9 = pneg %p10921_p8 }
0x13ef   : > { %p10927_p13 = pnand %p10926_p12, %p10922_p9 }
0x1465   : > { %v8080_v46 = vpop.f32.mrf.mxu2 }
0x1466   : > { %v8081_v27 = vadd.f32 %v8080_v46, %v8059_v34 }
0x1468   : > { %8083 = vst [vmem:[%s454_s3] sm:$0x1] %v8081_v27 }
0x1469   : > { %10930 = shalt.err (!%p10927_p13)
}
0x146a   : > { %10179 = dma.vmem_to_hbm [thread:$0]  (%p11083_p5), %s8113_s2, 16, %s8115_s4, %s8089_s20  }
0x146b PF: > { %p10189_p0 = scmp.ge.s32.totalorder %s10969_s28, 2  ;;  %s8126_s22 = sand.u32 1, %s10957_s25  }
0x146c   : > { %s8127_s16 = scalar_lea.sflag [#allocation5], %s8126_s22 }
0x146d   : > { %p10183_p1 = pnand %p10189_p0, %p11087_p6 }
0x146f   : > { %p10184_p2 = pneg %p10183_p1 }
0x1471   : > { %10948 = dma.done.wait (%p10184_p2), %s8127_s16, 16  }
0x1472   : > { %10950 = vsyncadd (%p10184_p2), %s8127_s16, 4294967280  ;;  %s8136_s1 = scalar_lea.sflag [#allocation7], %s8126_s22 }
0x1473   : > { %10952 = dma.done.wait (%p10184_p2), %s8136_s1, 16  }
0x1474   : > { %10954 = vsyncadd (%p10184_p2), %s8136_s1, 4294967280  ;;  %s15356_s23 = sld [smem:[#allocation10_spill]]  ;;  %p27_p5 = scmp.ge.s32.totalorder %s11070_s14, 4  }
0x1475   : > { %s15357_s27 = sld [smem:[#allocation11_spill]]  ;;  %s15358_s25 = smov %s10961_s26 }
0x1476   : > { %s15360_s28 = smov %s11070_s14  ;;  %29 = sbr.rel (!%p27_p5) target bundleno = 11 (0xb), region = 138 }
0x147a   : > { %s15359_s26 = smov %s15356_s23 }
0x147b   :  { %8141 = vsyncpa [#allocation5], 1 }
0x147c   :  { %8143 = vsyncpa [#allocation5 + $0x1], 1 }
0x147d   :  { %8144 = vsyncpa [#allocation7], 1 }
0x147e   :  { %8146 = vsyncpa [#allocation7 + $0x1], 1 }

</bundles_post_ra>
